<compile_context>
chip_gen: v7x
topology: tpu7x:2x2x1
jax: 0.10.0
libtpu: 0.0.40
codegen_flags: <defaults>
</compile_context>

<pallas_src>
import functools

import jax
import jax.numpy as jnp
from jax.experimental import pallas as pl
from jax.experimental.pallas import tpu as pltpu

CP = 128        # padded channel width (lane dimension)
NC_PAD = 128    # padded num_classes for the fc2 matmul (lane-dense output)
FC_M_PAD = 8    # FC batch padded to a full sublane group
BN_EPS = 1e-5


# ---------------------------------------------------------------------------
# Pallas kernels
# ---------------------------------------------------------------------------
def _conv_block_kernel(xp_ref, wa_ref, ba_ref, wb_ref, bb_ref, o_ref,
                       acc_ref, pad_ref, *, H, W, K):
    """conv(+folded BN)+relu -> conv(+folded BN)+relu -> 2x2 maxpool.

    xp_ref : (1, H+2, W+2, CP) bf16  zero-padded input for one image
    w*_ref : (K*K, CP, CP)     bf16  per-tap weights (BN scale folded in)
    b*_ref : (1, CP)           f32   folded bias (conv_bias*scale + shift)
    o_ref  : (1, H//2, W//2, CP) bf16
    acc_ref: (H*W, CP) f32     GEMM accumulator scratch
    pad_ref: (H+2, W+2, CP) bf16  re-padded buffer for the second conv
    """
    HW = H * W

    def conv(x_padded, w_ref, b_ref):
        # implicit GEMM: one MXU dot per (kh, kw) filter tap
        acc_ref[...] = jnp.zeros_like(acc_ref)
        for kh in range(K):
            for kw in range(K):
                xs = x_padded[kh:kh + H, kw:kw + W, :].reshape(HW, CP)
                acc_ref[...] += jnp.dot(xs, w_ref[kh * K + kw],
                                        preferred_element_type=jnp.float32)
        return jnp.maximum(acc_ref[...] + b_ref[...], 0.0)      # (HW, CP) f32

    # ---- conv A (+BN +ReLU) -------------------------------------------------
    ya = conv(xp_ref[0], wa_ref, ba_ref)

    # ---- re-pad conv-A output inside VMEM (zero halo) for conv B ------------
    pad_ref[...] = jnp.zeros_like(pad_ref)
    pad_ref[1:H + 1, 1:W + 1, :] = ya.reshape(H, W, CP).astype(pad_ref.dtype)

    # ---- conv B (+BN +ReLU) -------------------------------------------------
    yb = conv(pad_ref[...], wb_ref, bb_ref)

    # ---- fused 2x2 max pool, stride 2 ---------------------------------------
    yb = jnp.max(yb.reshape(H // 2, 2, W, CP), axis=1)           # pool along H
    yb = jnp.max(yb.reshape(H // 2, W // 2, 2, CP), axis=2)      # pool along W
    o_ref[...] = yb.reshape(1, H // 2, W // 2, CP).astype(o_ref.dtype)


def _fc_kernel(a_ref, w1_ref, b1_ref, w2_ref, b2_ref, o_ref):
    """fc1(+folded bn5)+relu -> dropout(identity, eval) -> fc2."""
    h = jnp.dot(a_ref[...], w1_ref[...], preferred_element_type=jnp.float32)
    h = jnp.maximum(h + b1_ref[...], 0.0)
    y = jnp.dot(h.astype(w2_ref.dtype), w2_ref[...],
                preferred_element_type=jnp.float32)
    o_ref[...] = y + b2_ref[...]


# ---------------------------------------------------------------------------
# Wrappers around pallas_call
# ---------------------------------------------------------------------------
def conv_block(xp, wa, ba, wb, bb, H, W):
    """xp: (B, H+2, W+2, CP) bf16  ->  (B, H//2, W//2, CP) bf16."""
    B = xp.shape[0]
    Hp, Wp = H + 2, W + 2
    Ho, Wo = H // 2, W // 2
    kernel = functools.partial(_conv_block_kernel, H=H, W=W, K=3)
    return pl.pallas_call(
        kernel,
        out_shape=jax.ShapeDtypeStruct((B, Ho, Wo, CP), jnp.bfloat16),
        grid=(B,),
        in_specs=[
            pl.BlockSpec((1, Hp, Wp, CP), lambda b: (b, 0, 0, 0)),
            pl.BlockSpec((9, CP, CP), lambda b: (0, 0, 0)),
            pl.BlockSpec((1, CP), lambda b: (0, 0)),
            pl.BlockSpec((9, CP, CP), lambda b: (0, 0, 0)),
            pl.BlockSpec((1, CP), lambda b: (0, 0)),
        ],
        out_specs=pl.BlockSpec((1, Ho, Wo, CP), lambda b: (b, 0, 0, 0)),
        scratch_shapes=[
            pltpu.VMEM((H * W, CP), jnp.float32),     # GEMM accumulator
            pltpu.VMEM((Hp, Wp, CP), jnp.bfloat16),   # re-padded activation
        ],
        compiler_params=pltpu.CompilerParams(
            dimension_semantics=("parallel",)),
    )(xp, wa, ba, wb, bb)


def fc_fused(a, w1, b1, w2, b2):
    """a: (8, K) bf16 -> (8, NC_PAD) f32.  Tiny single-step call (no grid)."""
    M = a.shape[0]
    N = w2.shape[1]
    return pl.pallas_call(
        _fc_kernel,
        out_shape=jax.ShapeDtypeStruct((M, N), jnp.float32),
    )(a, w1, b1, w2, b2)


# ---------------------------------------------------------------------------
# Parameters: natural (PyTorch-like) init + one-time packing / folding
# ---------------------------------------------------------------------------
def init_params(key, config, H, W, num_classes=3):
    assert config['kernel_size'] == 3 and config['stride_size'] == 1, \
        "this Pallas port implements the default 3x3 / stride-1 configuration"
    assert H % 4 == 0 and W % 4 == 0
    ks = jax.random.split(key, 22)

    def conv_w(kk, cin, cout):   # HWIO == torch OIHW weight.transpose(2,3,1,0)
        return 0.05 * jax.random.normal(kk, (3, 3, cin, cout), jnp.float32)

    def vec(kk, n, s=0.01):
        return s * jax.random.normal(kk, (n,), jnp.float32)

    def gamma(kk, n):
        return 1.0 + 0.05 * jax.random.normal(kk, (n,), jnp.float32)

    # pad=1, k=3, s=1 convs preserve H,W; two 2x2 pools divide spatial by 4.
    output_size = 64 * (H // 4) * (W // 4)   # == heavynet._get_conv_output for this input

    p = {
        'conv1_w': conv_w(ks[0], 1, 32),   'conv1_b': vec(ks[1], 32),
        'bn1_g': gamma(ks[2], 32),         'bn1_b': vec(ks[3], 32),
        'conv2_w': conv_w(ks[4], 32, 32),  'conv2_b': vec(ks[5], 32),
        'bn2_g': gamma(ks[6], 32),         'bn2_b': vec(ks[7], 32),
        'conv3_w': conv_w(ks[8], 32, 64),  'conv3_b': vec(ks[9], 64),
        'bn3_g': gamma(ks[10], 64),        'bn3_b': vec(ks[11], 64),
        'conv4_w': conv_w(ks[12], 64, 64), 'conv4_b': vec(ks[13], 64),
        'bn4_g': gamma(ks[14], 64),        'bn4_b': vec(ks[15], 64),
        'fc1_w': 0.02 * jax.random.normal(ks[16], (output_size, 512), jnp.float32),
        'fc1_b': vec(ks[17], 512),
        'bn5_g': gamma(ks[18], 512),       'bn5_b': vec(ks[19], 512),
        'fc2_w': 0.02 * jax.random.normal(ks[20], (512, num_classes), jnp.float32),
        'fc2_b': vec(ks[21], num_classes),
        'output_size': output_size,
    }
    return p


def _bn_affine(g, b):
    # Inference BatchNorm with PyTorch default running stats (mean=0, var=1).
    return g / jnp.sqrt(1.0 + BN_EPS), b


def _pack_conv(w_hwio, bias, g, beta):
    scale, shift = _bn_affine(g, beta)
    cin, cout = w_hwio.shape[2], w_hwio.shape[3]
    w = w_hwio * scale[None, None, None, :]          # fold BN scale
    b = bias * scale + shift                         # fold bias + BN shift
    w = jnp.pad(w, ((0, 0), (0, 0), (0, CP - cin), (0, CP - cout)))
    w = w.reshape(9, CP, CP).astype(jnp.bfloat16)    # (kh*3+kw, cin_pad, cout_pad)
    b = jnp.pad(b, (0, CP - cout)).reshape(1, CP).astype(jnp.float32)
    return w, b


def pack_params(p, H, W, num_classes=3):
    """One-time: fold conv-bias/BN into weights, pad channels to 128 lanes,
    cast matmul operands to bf16, and permute fc1's K axis from torch's NCHW
    flatten order to the kernels' NHWC+channel-padded order."""
    assert NC_PAD >= num_classes
    pk = {}
    pk['c1_w'], pk['c1_b'] = _pack_conv(p['conv1_w'], p['conv1_b'], p['bn1_g'], p['bn1_b'])
    pk['c2_w'], pk['c2_b'] = _pack_conv(p['conv2_w'], p['conv2_b'], p['bn2_g'], p['bn2_b'])
    pk['c3_w'], pk['c3_b'] = _pack_conv(p['conv3_w'], p['conv3_b'], p['bn3_g'], p['bn3_b'])
    pk['c4_w'], pk['c4_b'] = _pack_conv(p['conv4_w'], p['conv4_b'], p['bn4_g'], p['bn4_b'])

    Ho, Wo, c_real = H // 4, W // 4, 64
    scale5, shift5 = _bn_affine(p['bn5_g'], p['bn5_b'])
    w1 = p['fc1_w'] * scale5[None, :]                          # fold bn5 into fc1
    b1 = p['fc1_b'] * scale5 + shift5
    w1 = w1.reshape(c_real, Ho, Wo, 512)                       # torch rows are (c, h, w)
    w1 = jnp.transpose(w1, (1, 2, 0, 3))                       # -> (h, w, c, 512)
    w1 = jnp.pad(w1, ((0, 0), (0, 0), (0, CP - c_real), (0, 0)))
    pk['fc1_w'] = w1.reshape(Ho * Wo * CP, 512).astype(jnp.bfloat16)
    pk['fc1_b'] = b1.reshape(1, 512).astype(jnp.float32)

    pk['fc2_w'] = jnp.pad(p['fc2_w'], ((0, 0), (0, NC_PAD - num_classes))).astype(jnp.bfloat16)
    pk['fc2_b'] = jnp.pad(p['fc2_b'], (0, NC_PAD - num_classes)).reshape(1, NC_PAD).astype(jnp.float32)
    return pk


# ---------------------------------------------------------------------------
# Forward pass (3 pallas_calls + trivial pad/transpose/reshape glue)
# ---------------------------------------------------------------------------
def heavynet_forward(x_nchw, pk, num_classes=3):
    B, cin, H, W = x_nchw.shape
    x = jnp.transpose(x_nchw, (0, 2, 3, 1))                                   # NCHW -> NHWC
    x = jnp.pad(x, ((0, 0), (1, 1), (1, 1), (0, CP - cin))).astype(jnp.bfloat16)
    x = conv_block(x, pk['c1_w'], pk['c1_b'], pk['c2_w'], pk['c2_b'], H, W)   # (B,H/2,W/2,CP)
    x = jnp.pad(x, ((0, 0), (1, 1), (1, 1), (0, 0)))
    x = conv_block(x, pk['c3_w'], pk['c3_b'], pk['c4_w'], pk['c4_b'], H // 2, W // 2)  # (B,H/4,W/4,CP)

    a = x.reshape(B, -1)                                                      # (B, H/4*W/4*CP)
    a = jnp.pad(a, ((0, FC_M_PAD - B), (0, 0)))                               # fill sublane group
    y = fc_fused(a, pk['fc1_w'], pk['fc1_b'], pk['fc2_w'], pk['fc2_b'])       # (8, NC_PAD) f32
    return y[:B, :num_classes]


# ---------------------------------------------------------------------------
if __name__ == "__main__":
    config = {'kernel_size': 3, 'stride_size': 1, 'dropout': 0.5}
    B, H, W = 2, 16, 16
    num_classes = 3

    key = jax.random.PRNGKey(0)
    kx, kp = jax.random.split(key)
    x = jax.random.normal(kx, (B, 1, H, W), dtype=jnp.float32)   # NCHW, like PyTorch
    params = init_params(kp, config, H, W, num_classes)
    packed = pack_params(params, H, W, num_classes)              # one-time fold/pad/cast

    fwd = jax.jit(functools.partial(heavynet_forward, num_classes=num_classes))
    out = jax.block_until_ready(fwd(x, packed))

    assert out.shape == (B, num_classes), out.shape
    assert bool(jnp.all(jnp.isfinite(out)))
    print("KERNEL_OK")
</pallas_src>

<mosaic_0001>
module attributes {stable_mosaic.version = 11 : i64} {
  func.func @_conv_block_kernel(%arg0: i32, %arg1: memref<1x18x18x128xbf16, #tpu.memory_space<vmem>>, %arg2: memref<9x128x128xbf16, #tpu.memory_space<vmem>>, %arg3: memref<1x128xf32, #tpu.memory_space<vmem>>, %arg4: memref<9x128x128xbf16, #tpu.memory_space<vmem>>, %arg5: memref<1x128xf32, #tpu.memory_space<vmem>>, %arg6: memref<1x8x8x128xbf16, #tpu.memory_space<vmem>>, %arg7: memref<256x128xf32, #tpu.memory_space<vmem>>, %arg8: memref<18x18x128xbf16, #tpu.memory_space<vmem>>) attributes {dimension_semantics = [#tpu.dimension_semantics<parallel>], iteration_bounds = array<i64: 2>, scalar_prefetch = 0 : i64, scratch_operands = 2 : i64, tpu.core_type = #tpu.core_type<tc>, window_params = [{transform_indices = @transform_0, window_bounds = array<i64: 1, 18, 18, 128>}, {pipeline_mode = #tpu.pipeline_mode<synchronous>, transform_indices = @transform_1, window_bounds = array<i64: 9, 128, 128>}, {pipeline_mode = #tpu.pipeline_mode<synchronous>, transform_indices = @transform_2, window_bounds = array<i64: 1, 128>}, {pipeline_mode = #tpu.pipeline_mode<synchronous>, transform_indices = @transform_3, window_bounds = array<i64: 9, 128, 128>}, {pipeline_mode = #tpu.pipeline_mode<synchronous>, transform_indices = @transform_4, window_bounds = array<i64: 1, 128>}, {transform_indices = @transform_5, window_bounds = array<i64: 1, 8, 8, 128>}]} {
    %c0 = arith.constant 0 : index
    %c0_0 = arith.constant 0 : index
    %c0_1 = arith.constant 0 : index
    %c0_2 = arith.constant 0 : index
    %0 = vector.load %arg1[%c0, %c0_0, %c0_1, %c0_2] : memref<1x18x18x128xbf16, #tpu.memory_space<vmem>>, vector<1x18x18x128xbf16>
    %1 = vector.shape_cast %0 : vector<1x18x18x128xbf16> to vector<18x18x128xbf16>
    %cst = arith.constant 0.000000e+00 : f32
    %2 = vector.broadcast %cst : f32 to vector<256x128xf32>
    %c0_3 = arith.constant 0 : index
    %c0_4 = arith.constant 0 : index
    %3 = vector.load %arg7[%c0_3, %c0_4] : memref<256x128xf32, #tpu.memory_space<vmem>>, vector<256x128xf32>
    tpu.vector_store %arg7[%c0_3, %c0_4], %2 {strides = array<i32>} : memref<256x128xf32, #tpu.memory_space<vmem>>, vector<256x128xf32>,
    %4 = vector.extract_strided_slice %1 {offsets = [0, 0, 0], sizes = [16, 16, 128], strides = [1, 1, 1]} : vector<18x18x128xbf16> to vector<16x16x128xbf16>
    %5 = vector.shape_cast %4 : vector<16x16x128xbf16> to vector<256x128xbf16>
    %c0_5 = arith.constant 0 : index
    %c0_6 = arith.constant 0 : index
    %6 = vector.load %arg7[%c0_5, %c0_6] : memref<256x128xf32, #tpu.memory_space<vmem>>, vector<256x128xf32>
    %c0_7 = arith.constant 0 : index
    %c0_8 = arith.constant 0 : index
    %c0_9 = arith.constant 0 : index
    %7 = vector.load %arg2[%c0_7, %c0_8, %c0_9] : memref<9x128x128xbf16, #tpu.memory_space<vmem>>, vector<1x128x128xbf16>
    %8 = vector.shape_cast %7 : vector<1x128x128xbf16> to vector<128x128xbf16>
    %cst_10 = arith.constant dense<0.000000e+00> : vector<256x128xf32>
    %9 = tpu.matmul %5, %8, %cst_10 {dimension_numbers = #tpu.dot_dimension_numbers<[1], [0], [0], [1], [0, 0, 1, 1], [], []>} : vector<256x128xbf16>, vector<128x128xbf16>, vector<256x128xf32> -> vector<256x128xf32>
    %10 = arith.addf %6, %9 : vector<256x128xf32>
    %c0_11 = arith.constant 0 : index
    %c0_12 = arith.constant 0 : index
    %11 = vector.load %arg7[%c0_11, %c0_12] : memref<256x128xf32, #tpu.memory_space<vmem>>, vector<256x128xf32>
    tpu.vector_store %arg7[%c0_11, %c0_12], %10 {strides = array<i32>} : memref<256x128xf32, #tpu.memory_space<vmem>>, vector<256x128xf32>,
    %12 = vector.extract_strided_slice %1 {offsets = [0, 1, 0], sizes = [16, 16, 128], strides = [1, 1, 1]} : vector<18x18x128xbf16> to vector<16x16x128xbf16>
    %13 = vector.shape_cast %12 : vector<16x16x128xbf16> to vector<256x128xbf16>
    %c0_13 = arith.constant 0 : index
    %c0_14 = arith.constant 0 : index
    %14 = vector.load %arg7[%c0_13, %c0_14] : memref<256x128xf32, #tpu.memory_space<vmem>>, vector<256x128xf32>
    %c1 = arith.constant 1 : index
    %c0_15 = arith.constant 0 : index
    %c0_16 = arith.constant 0 : index
    %15 = vector.load %arg2[%c1, %c0_15, %c0_16] : memref<9x128x128xbf16, #tpu.memory_space<vmem>>, vector<1x128x128xbf16>
    %16 = vector.shape_cast %15 : vector<1x128x128xbf16> to vector<128x128xbf16>
    %cst_17 = arith.constant dense<0.000000e+00> : vector<256x128xf32>
    %17 = tpu.matmul %13, %16, %cst_17 {dimension_numbers = #tpu.dot_dimension_numbers<[1], [0], [0], [1], [0, 0, 1, 1], [], []>} : vector<256x128xbf16>, vector<128x128xbf16>, vector<256x128xf32> -> vector<256x128xf32>
    %18 = arith.addf %14, %17 : vector<256x128xf32>
    %c0_18 = arith.constant 0 : index
    %c0_19 = arith.constant 0 : index
    %19 = vector.load %arg7[%c0_18, %c0_19] : memref<256x128xf32, #tpu.memory_space<vmem>>, vector<256x128xf32>
    tpu.vector_store %arg7[%c0_18, %c0_19], %18 {strides = array<i32>} : memref<256x128xf32, #tpu.memory_space<vmem>>, vector<256x128xf32>,
    %20 = vector.extract_strided_slice %1 {offsets = [0, 2, 0], sizes = [16, 16, 128], strides = [1, 1, 1]} : vector<18x18x128xbf16> to vector<16x16x128xbf16>
    %21 = vector.shape_cast %20 : vector<16x16x128xbf16> to vector<256x128xbf16>
    %c0_20 = arith.constant 0 : index
    %c0_21 = arith.constant 0 : index
    %22 = vector.load %arg7[%c0_20, %c0_21] : memref<256x128xf32, #tpu.memory_space<vmem>>, vector<256x128xf32>
    %c2 = arith.constant 2 : index
    %c0_22 = arith.constant 0 : index
    %c0_23 = arith.constant 0 : index
    %23 = vector.load %arg2[%c2, %c0_22, %c0_23] : memref<9x128x128xbf16, #tpu.memory_space<vmem>>, vector<1x128x128xbf16>
    %24 = vector.shape_cast %23 : vector<1x128x128xbf16> to vector<128x128xbf16>
    %cst_24 = arith.constant dense<0.000000e+00> : vector<256x128xf32>
    %25 = tpu.matmul %21, %24, %cst_24 {dimension_numbers = #tpu.dot_dimension_numbers<[1], [0], [0], [1], [0, 0, 1, 1], [], []>} : vector<256x128xbf16>, vector<128x128xbf16>, vector<256x128xf32> -> vector<256x128xf32>
    %26 = arith.addf %22, %25 : vector<256x128xf32>
    %c0_25 = arith.constant 0 : index
    %c0_26 = arith.constant 0 : index
    %27 = vector.load %arg7[%c0_25, %c0_26] : memref<256x128xf32, #tpu.memory_space<vmem>>, vector<256x128xf32>
    tpu.vector_store %arg7[%c0_25, %c0_26], %26 {strides = array<i32>} : memref<256x128xf32, #tpu.memory_space<vmem>>, vector<256x128xf32>,
    %28 = vector.extract_strided_slice %1 {offsets = [1, 0, 0], sizes = [16, 16, 128], strides = [1, 1, 1]} : vector<18x18x128xbf16> to vector<16x16x128xbf16>
    %29 = vector.shape_cast %28 : vector<16x16x128xbf16> to vector<256x128xbf16>
    %c0_27 = arith.constant 0 : index
    %c0_28 = arith.constant 0 : index
    %30 = vector.load %arg7[%c0_27, %c0_28] : memref<256x128xf32, #tpu.memory_space<vmem>>, vector<256x128xf32>
    %c3 = arith.constant 3 : index
    %c0_29 = arith.constant 0 : index
    %c0_30 = arith.constant 0 : index
    %31 = vector.load %arg2[%c3, %c0_29, %c0_30] : memref<9x128x128xbf16, #tpu.memory_space<vmem>>, vector<1x128x128xbf16>
    %32 = vector.shape_cast %31 : vector<1x128x128xbf16> to vector<128x128xbf16>
    %cst_31 = arith.constant dense<0.000000e+00> : vector<256x128xf32>
    %33 = tpu.matmul %29, %32, %cst_31 {dimension_numbers = #tpu.dot_dimension_numbers<[1], [0], [0], [1], [0, 0, 1, 1], [], []>} : vector<256x128xbf16>, vector<128x128xbf16>, vector<256x128xf32> -> vector<256x128xf32>
    %34 = arith.addf %30, %33 : vector<256x128xf32>
    %c0_32 = arith.constant 0 : index
    %c0_33 = arith.constant 0 : index
    %35 = vector.load %arg7[%c0_32, %c0_33] : memref<256x128xf32, #tpu.memory_space<vmem>>, vector<256x128xf32>
    tpu.vector_store %arg7[%c0_32, %c0_33], %34 {strides = array<i32>} : memref<256x128xf32, #tpu.memory_space<vmem>>, vector<256x128xf32>,
    %36 = vector.extract_strided_slice %1 {offsets = [1, 1, 0], sizes = [16, 16, 128], strides = [1, 1, 1]} : vector<18x18x128xbf16> to vector<16x16x128xbf16>
    %37 = vector.shape_cast %36 : vector<16x16x128xbf16> to vector<256x128xbf16>
    %c0_34 = arith.constant 0 : index
    %c0_35 = arith.constant 0 : index
    %38 = vector.load %arg7[%c0_34, %c0_35] : memref<256x128xf32, #tpu.memory_space<vmem>>, vector<256x128xf32>
    %c4 = arith.constant 4 : index
    %c0_36 = arith.constant 0 : index
    %c0_37 = arith.constant 0 : index
    %39 = vector.load %arg2[%c4, %c0_36, %c0_37] : memref<9x128x128xbf16, #tpu.memory_space<vmem>>, vector<1x128x128xbf16>
    %40 = vector.shape_cast %39 : vector<1x128x128xbf16> to vector<128x128xbf16>
    %cst_38 = arith.constant dense<0.000000e+00> : vector<256x128xf32>
    %41 = tpu.matmul %37, %40, %cst_38 {dimension_numbers = #tpu.dot_dimension_numbers<[1], [0], [0], [1], [0, 0, 1, 1], [], []>} : vector<256x128xbf16>, vector<128x128xbf16>, vector<256x128xf32> -> vector<256x128xf32>
    %42 = arith.addf %38, %41 : vector<256x128xf32>
    %c0_39 = arith.constant 0 : index
    %c0_40 = arith.constant 0 : index
    %43 = vector.load %arg7[%c0_39, %c0_40] : memref<256x128xf32, #tpu.memory_space<vmem>>, vector<256x128xf32>
    tpu.vector_store %arg7[%c0_39, %c0_40], %42 {strides = array<i32>} : memref<256x128xf32, #tpu.memory_space<vmem>>, vector<256x128xf32>,
    %44 = vector.extract_strided_slice %1 {offsets = [1, 2, 0], sizes = [16, 16, 128], strides = [1, 1, 1]} : vector<18x18x128xbf16> to vector<16x16x128xbf16>
    %45 = vector.shape_cast %44 : vector<16x16x128xbf16> to vector<256x128xbf16>
    %c0_41 = arith.constant 0 : index
    %c0_42 = arith.constant 0 : index
    %46 = vector.load %arg7[%c0_41, %c0_42] : memref<256x128xf32, #tpu.memory_space<vmem>>, vector<256x128xf32>
    %c5 = arith.constant 5 : index
    %c0_43 = arith.constant 0 : index
    %c0_44 = arith.constant 0 : index
    %47 = vector.load %arg2[%c5, %c0_43, %c0_44] : memref<9x128x128xbf16, #tpu.memory_space<vmem>>, vector<1x128x128xbf16>
    %48 = vector.shape_cast %47 : vector<1x128x128xbf16> to vector<128x128xbf16>
    %cst_45 = arith.constant dense<0.000000e+00> : vector<256x128xf32>
    %49 = tpu.matmul %45, %48, %cst_45 {dimension_numbers = #tpu.dot_dimension_numbers<[1], [0], [0], [1], [0, 0, 1, 1], [], []>} : vector<256x128xbf16>, vector<128x128xbf16>, vector<256x128xf32> -> vector<256x128xf32>
    %50 = arith.addf %46, %49 : vector<256x128xf32>
    %c0_46 = arith.constant 0 : index
    %c0_47 = arith.constant 0 : index
    %51 = vector.load %arg7[%c0_46, %c0_47] : memref<256x128xf32, #tpu.memory_space<vmem>>, vector<256x128xf32>
    tpu.vector_store %arg7[%c0_46, %c0_47], %50 {strides = array<i32>} : memref<256x128xf32, #tpu.memory_space<vmem>>, vector<256x128xf32>,
    %52 = vector.extract_strided_slice %1 {offsets = [2, 0, 0], sizes = [16, 16, 128], strides = [1, 1, 1]} : vector<18x18x128xbf16> to vector<16x16x128xbf16>
    %53 = vector.shape_cast %52 : vector<16x16x128xbf16> to vector<256x128xbf16>
    %c0_48 = arith.constant 0 : index
    %c0_49 = arith.constant 0 : index
    %54 = vector.load %arg7[%c0_48, %c0_49] : memref<256x128xf32, #tpu.memory_space<vmem>>, vector<256x128xf32>
    %c6 = arith.constant 6 : index
    %c0_50 = arith.constant 0 : index
    %c0_51 = arith.constant 0 : index
    %55 = vector.load %arg2[%c6, %c0_50, %c0_51] : memref<9x128x128xbf16, #tpu.memory_space<vmem>>, vector<1x128x128xbf16>
    %56 = vector.shape_cast %55 : vector<1x128x128xbf16> to vector<128x128xbf16>
    %cst_52 = arith.constant dense<0.000000e+00> : vector<256x128xf32>
    %57 = tpu.matmul %53, %56, %cst_52 {dimension_numbers = #tpu.dot_dimension_numbers<[1], [0], [0], [1], [0, 0, 1, 1], [], []>} : vector<256x128xbf16>, vector<128x128xbf16>, vector<256x128xf32> -> vector<256x128xf32>
    %58 = arith.addf %54, %57 : vector<256x128xf32>
    %c0_53 = arith.constant 0 : index
    %c0_54 = arith.constant 0 : index
    %59 = vector.load %arg7[%c0_53, %c0_54] : memref<256x128xf32, #tpu.memory_space<vmem>>, vector<256x128xf32>
    tpu.vector_store %arg7[%c0_53, %c0_54], %58 {strides = array<i32>} : memref<256x128xf32, #tpu.memory_space<vmem>>, vector<256x128xf32>,
    %60 = vector.extract_strided_slice %1 {offsets = [2, 1, 0], sizes = [16, 16, 128], strides = [1, 1, 1]} : vector<18x18x128xbf16> to vector<16x16x128xbf16>
    %61 = vector.shape_cast %60 : vector<16x16x128xbf16> to vector<256x128xbf16>
    %c0_55 = arith.constant 0 : index
    %c0_56 = arith.constant 0 : index
    %62 = vector.load %arg7[%c0_55, %c0_56] : memref<256x128xf32, #tpu.memory_space<vmem>>, vector<256x128xf32>
    %c7 = arith.constant 7 : index
    %c0_57 = arith.constant 0 : index
    %c0_58 = arith.constant 0 : index
    %63 = vector.load %arg2[%c7, %c0_57, %c0_58] : memref<9x128x128xbf16, #tpu.memory_space<vmem>>, vector<1x128x128xbf16>
    %64 = vector.shape_cast %63 : vector<1x128x128xbf16> to vector<128x128xbf16>
    %cst_59 = arith.constant dense<0.000000e+00> : vector<256x128xf32>
    %65 = tpu.matmul %61, %64, %cst_59 {dimension_numbers = #tpu.dot_dimension_numbers<[1], [0], [0], [1], [0, 0, 1, 1], [], []>} : vector<256x128xbf16>, vector<128x128xbf16>, vector<256x128xf32> -> vector<256x128xf32>
    %66 = arith.addf %62, %65 : vector<256x128xf32>
    %c0_60 = arith.constant 0 : index
    %c0_61 = arith.constant 0 : index
    %67 = vector.load %arg7[%c0_60, %c0_61] : memref<256x128xf32, #tpu.memory_space<vmem>>, vector<256x128xf32>
    tpu.vector_store %arg7[%c0_60, %c0_61], %66 {strides = array<i32>} : memref<256x128xf32, #tpu.memory_space<vmem>>, vector<256x128xf32>,
    %68 = vector.extract_strided_slice %1 {offsets = [2, 2, 0], sizes = [16, 16, 128], strides = [1, 1, 1]} : vector<18x18x128xbf16> to vector<16x16x128xbf16>
    %69 = vector.shape_cast %68 : vector<16x16x128xbf16> to vector<256x128xbf16>
    %c0_62 = arith.constant 0 : index
    %c0_63 = arith.constant 0 : index
    %70 = vector.load %arg7[%c0_62, %c0_63] : memref<256x128xf32, #tpu.memory_space<vmem>>, vector<256x128xf32>
    %c8 = arith.constant 8 : index
    %c0_64 = arith.constant 0 : index
    %c0_65 = arith.constant 0 : index
    %71 = vector.load %arg2[%c8, %c0_64, %c0_65] : memref<9x128x128xbf16, #tpu.memory_space<vmem>>, vector<1x128x128xbf16>
    %72 = vector.shape_cast %71 : vector<1x128x128xbf16> to vector<128x128xbf16>
    %cst_66 = arith.constant dense<0.000000e+00> : vector<256x128xf32>
    %73 = tpu.matmul %69, %72, %cst_66 {dimension_numbers = #tpu.dot_dimension_numbers<[1], [0], [0], [1], [0, 0, 1, 1], [], []>} : vector<256x128xbf16>, vector<128x128xbf16>, vector<256x128xf32> -> vector<256x128xf32>
    %74 = arith.addf %70, %73 : vector<256x128xf32>
    %c0_67 = arith.constant 0 : index
    %c0_68 = arith.constant 0 : index
    %75 = vector.load %arg7[%c0_67, %c0_68] : memref<256x128xf32, #tpu.memory_space<vmem>>, vector<256x128xf32>
    tpu.vector_store %arg7[%c0_67, %c0_68], %74 {strides = array<i32>} : memref<256x128xf32, #tpu.memory_space<vmem>>, vector<256x128xf32>,
    %c0_69 = arith.constant 0 : index
    %c0_70 = arith.constant 0 : index
    %76 = vector.load %arg7[%c0_69, %c0_70] : memref<256x128xf32, #tpu.memory_space<vmem>>, vector<256x128xf32>
    %c0_71 = arith.constant 0 : index
    %c0_72 = arith.constant 0 : index
    %77 = vector.load %arg3[%c0_71, %c0_72] : memref<1x128xf32, #tpu.memory_space<vmem>>, vector<1x128xf32>
    %78 = vector.broadcast %77 : vector<1x128xf32> to vector<256x128xf32>
    %79 = arith.addf %76, %78 : vector<256x128xf32>
    %cst_73 = arith.constant 0.000000e+00 : f32
    %80 = vector.broadcast %cst_73 : f32 to vector<256x128xf32>
    %81 = arith.maximumf %79, %80 : vector<256x128xf32>
    %cst_74 = arith.constant 0.000000e+00 : bf16
    %82 = vector.broadcast %cst_74 : bf16 to vector<18x18x128xbf16>
    %c0_75 = arith.constant 0 : index
    %c0_76 = arith.constant 0 : index
    %c0_77 = arith.constant 0 : index
    %83 = vector.load %arg8[%c0_75, %c0_76, %c0_77] : memref<18x18x128xbf16, #tpu.memory_space<vmem>>, vector<18x18x128xbf16>
    tpu.vector_store %arg8[%c0_75, %c0_76, %c0_77], %82 {strides = array<i32>} : memref<18x18x128xbf16, #tpu.memory_space<vmem>>, vector<18x18x128xbf16>,
    %84 = vector.shape_cast %81 : vector<256x128xf32> to vector<16x16x128xf32>
    %85 = arith.truncf %84 : vector<16x16x128xf32> to vector<16x16x128xbf16>
    %c1_78 = arith.constant 1 : index
    %c1_79 = arith.constant 1 : index
    %c0_80 = arith.constant 0 : index
    %86 = vector.load %arg8[%c1_78, %c1_79, %c0_80] : memref<18x18x128xbf16, #tpu.memory_space<vmem>>, vector<16x16x128xbf16>
    tpu.vector_store %arg8[%c1_78, %c1_79, %c0_80], %85 {strides = array<i32>} : memref<18x18x128xbf16, #tpu.memory_space<vmem>>, vector<16x16x128xbf16>,
    %c0_81 = arith.constant 0 : index
    %c0_82 = arith.constant 0 : index
    %c0_83 = arith.constant 0 : index
    %87 = vector.load %arg8[%c0_81, %c0_82, %c0_83] : memref<18x18x128xbf16, #tpu.memory_space<vmem>>, vector<18x18x128xbf16>
    %cst_84 = arith.constant 0.000000e+00 : f32
    %88 = vector.broadcast %cst_84 : f32 to vector<256x128xf32>
    %c0_85 = arith.constant 0 : index
    %c0_86 = arith.constant 0 : index
    %89 = vector.load %arg7[%c0_85, %c0_86] : memref<256x128xf32, #tpu.memory_space<vmem>>, vector<256x128xf32>
    tpu.vector_store %arg7[%c0_85, %c0_86], %88 {strides = array<i32>} : memref<256x128xf32, #tpu.memory_space<vmem>>, vector<256x128xf32>,
    %90 = vector.extract_strided_slice %87 {offsets = [0, 0, 0], sizes = [16, 16, 128], strides = [1, 1, 1]} : vector<18x18x128xbf16> to vector<16x16x128xbf16>
    %91 = vector.shape_cast %90 : vector<16x16x128xbf16> to vector<256x128xbf16>
    %c0_87 = arith.constant 0 : index
    %c0_88 = arith.constant 0 : index
    %92 = vector.load %arg7[%c0_87, %c0_88] : memref<256x128xf32, #tpu.memory_space<vmem>>, vector<256x128xf32>
    %c0_89 = arith.constant 0 : index
    %c0_90 = arith.constant 0 : index
    %c0_91 = arith.constant 0 : index
    %93 = vector.load %arg4[%c0_89, %c0_90, %c0_91] : memref<9x128x128xbf16, #tpu.memory_space<vmem>>, vector<1x128x128xbf16>
    %94 = vector.shape_cast %93 : vector<1x128x128xbf16> to vector<128x128xbf16>
    %cst_92 = arith.constant dense<0.000000e+00> : vector<256x128xf32>
    %95 = tpu.matmul %91, %94, %cst_92 {dimension_numbers = #tpu.dot_dimension_numbers<[1], [0], [0], [1], [0, 0, 1, 1], [], []>} : vector<256x128xbf16>, vector<128x128xbf16>, vector<256x128xf32> -> vector<256x128xf32>
    %96 = arith.addf %92, %95 : vector<256x128xf32>
    %c0_93 = arith.constant 0 : index
    %c0_94 = arith.constant 0 : index
    %97 = vector.load %arg7[%c0_93, %c0_94] : memref<256x128xf32, #tpu.memory_space<vmem>>, vector<256x128xf32>
    tpu.vector_store %arg7[%c0_93, %c0_94], %96 {strides = array<i32>} : memref<256x128xf32, #tpu.memory_space<vmem>>, vector<256x128xf32>,
    %98 = vector.extract_strided_slice %87 {offsets = [0, 1, 0], sizes = [16, 16, 128], strides = [1, 1, 1]} : vector<18x18x128xbf16> to vector<16x16x128xbf16>
    %99 = vector.shape_cast %98 : vector<16x16x128xbf16> to vector<256x128xbf16>
    %c0_95 = arith.constant 0 : index
    %c0_96 = arith.constant 0 : index
    %100 = vector.load %arg7[%c0_95, %c0_96] : memref<256x128xf32, #tpu.memory_space<vmem>>, vector<256x128xf32>
    %c1_97 = arith.constant 1 : index
    %c0_98 = arith.constant 0 : index
    %c0_99 = arith.constant 0 : index
    %101 = vector.load %arg4[%c1_97, %c0_98, %c0_99] : memref<9x128x128xbf16, #tpu.memory_space<vmem>>, vector<1x128x128xbf16>
    %102 = vector.shape_cast %101 : vector<1x128x128xbf16> to vector<128x128xbf16>
    %cst_100 = arith.constant dense<0.000000e+00> : vector<256x128xf32>
    %103 = tpu.matmul %99, %102, %cst_100 {dimension_numbers = #tpu.dot_dimension_numbers<[1], [0], [0], [1], [0, 0, 1, 1], [], []>} : vector<256x128xbf16>, vector<128x128xbf16>, vector<256x128xf32> -> vector<256x128xf32>
    %104 = arith.addf %100, %103 : vector<256x128xf32>
    %c0_101 = arith.constant 0 : index
    %c0_102 = arith.constant 0 : index
    %105 = vector.load %arg7[%c0_101, %c0_102] : memref<256x128xf32, #tpu.memory_space<vmem>>, vector<256x128xf32>
    tpu.vector_store %arg7[%c0_101, %c0_102], %104 {strides = array<i32>} : memref<256x128xf32, #tpu.memory_space<vmem>>, vector<256x128xf32>,
    %106 = vector.extract_strided_slice %87 {offsets = [0, 2, 0], sizes = [16, 16, 128], strides = [1, 1, 1]} : vector<18x18x128xbf16> to vector<16x16x128xbf16>
    %107 = vector.shape_cast %106 : vector<16x16x128xbf16> to vector<256x128xbf16>
    %c0_103 = arith.constant 0 : index
    %c0_104 = arith.constant 0 : index
    %108 = vector.load %arg7[%c0_103, %c0_104] : memref<256x128xf32, #tpu.memory_space<vmem>>, vector<256x128xf32>
    %c2_105 = arith.constant 2 : index
    %c0_106 = arith.constant 0 : index
    %c0_107 = arith.constant 0 : index
    %109 = vector.load %arg4[%c2_105, %c0_106, %c0_107] : memref<9x128x128xbf16, #tpu.memory_space<vmem>>, vector<1x128x128xbf16>
    %110 = vector.shape_cast %109 : vector<1x128x128xbf16> to vector<128x128xbf16>
    %cst_108 = arith.constant dense<0.000000e+00> : vector<256x128xf32>
    %111 = tpu.matmul %107, %110, %cst_108 {dimension_numbers = #tpu.dot_dimension_numbers<[1], [0], [0], [1], [0, 0, 1, 1], [], []>} : vector<256x128xbf16>, vector<128x128xbf16>, vector<256x128xf32> -> vector<256x128xf32>
    %112 = arith.addf %108, %111 : vector<256x128xf32>
    %c0_109 = arith.constant 0 : index
    %c0_110 = arith.constant 0 : index
    %113 = vector.load %arg7[%c0_109, %c0_110] : memref<256x128xf32, #tpu.memory_space<vmem>>, vector<256x128xf32>
    tpu.vector_store %arg7[%c0_109, %c0_110], %112 {strides = array<i32>} : memref<256x128xf32, #tpu.memory_space<vmem>>, vector<256x128xf32>,
    %114 = vector.extract_strided_slice %87 {offsets = [1, 0, 0], sizes = [16, 16, 128], strides = [1, 1, 1]} : vector<18x18x128xbf16> to vector<16x16x128xbf16>
    %115 = vector.shape_cast %114 : vector<16x16x128xbf16> to vector<256x128xbf16>
    %c0_111 = arith.constant 0 : index
    %c0_112 = arith.constant 0 : index
    %116 = vector.load %arg7[%c0_111, %c0_112] : memref<256x128xf32, #tpu.memory_space<vmem>>, vector<256x128xf32>
    %c3_113 = arith.constant 3 : index
    %c0_114 = arith.constant 0 : index
    %c0_115 = arith.constant 0 : index
    %117 = vector.load %arg4[%c3_113, %c0_114, %c0_115] : memref<9x128x128xbf16, #tpu.memory_space<vmem>>, vector<1x128x128xbf16>
    %118 = vector.shape_cast %117 : vector<1x128x128xbf16> to vector<128x128xbf16>
    %cst_116 = arith.constant dense<0.000000e+00> : vector<256x128xf32>
    %119 = tpu.matmul %115, %118, %cst_116 {dimension_numbers = #tpu.dot_dimension_numbers<[1], [0], [0], [1], [0, 0, 1, 1], [], []>} : vector<256x128xbf16>, vector<128x128xbf16>, vector<256x128xf32> -> vector<256x128xf32>
    %120 = arith.addf %116, %119 : vector<256x128xf32>
    %c0_117 = arith.constant 0 : index
    %c0_118 = arith.constant 0 : index
    %121 = vector.load %arg7[%c0_117, %c0_118] : memref<256x128xf32, #tpu.memory_space<vmem>>, vector<256x128xf32>
    tpu.vector_store %arg7[%c0_117, %c0_118], %120 {strides = array<i32>} : memref<256x128xf32, #tpu.memory_space<vmem>>, vector<256x128xf32>,
    %122 = vector.extract_strided_slice %87 {offsets = [1, 1, 0], sizes = [16, 16, 128], strides = [1, 1, 1]} : vector<18x18x128xbf16> to vector<16x16x128xbf16>
    %123 = vector.shape_cast %122 : vector<16x16x128xbf16> to vector<256x128xbf16>
    %c0_119 = arith.constant 0 : index
    %c0_120 = arith.constant 0 : index
    %124 = vector.load %arg7[%c0_119, %c0_120] : memref<256x128xf32, #tpu.memory_space<vmem>>, vector<256x128xf32>
    %c4_121 = arith.constant 4 : index
    %c0_122 = arith.constant 0 : index
    %c0_123 = arith.constant 0 : index
    %125 = vector.load %arg4[%c4_121, %c0_122, %c0_123] : memref<9x128x128xbf16, #tpu.memory_space<vmem>>, vector<1x128x128xbf16>
    %126 = vector.shape_cast %125 : vector<1x128x128xbf16> to vector<128x128xbf16>
    %cst_124 = arith.constant dense<0.000000e+00> : vector<256x128xf32>
    %127 = tpu.matmul %123, %126, %cst_124 {dimension_numbers = #tpu.dot_dimension_numbers<[1], [0], [0], [1], [0, 0, 1, 1], [], []>} : vector<256x128xbf16>, vector<128x128xbf16>, vector<256x128xf32> -> vector<256x128xf32>
    %128 = arith.addf %124, %127 : vector<256x128xf32>
    %c0_125 = arith.constant 0 : index
    %c0_126 = arith.constant 0 : index
    %129 = vector.load %arg7[%c0_125, %c0_126] : memref<256x128xf32, #tpu.memory_space<vmem>>, vector<256x128xf32>
    tpu.vector_store %arg7[%c0_125, %c0_126], %128 {strides = array<i32>} : memref<256x128xf32, #tpu.memory_space<vmem>>, vector<256x128xf32>,
    %130 = vector.extract_strided_slice %87 {offsets = [1, 2, 0], sizes = [16, 16, 128], strides = [1, 1, 1]} : vector<18x18x128xbf16> to vector<16x16x128xbf16>
    %131 = vector.shape_cast %130 : vector<16x16x128xbf16> to vector<256x128xbf16>
    %c0_127 = arith.constant 0 : index
    %c0_128 = arith.constant 0 : index
    %132 = vector.load %arg7[%c0_127, %c0_128] : memref<256x128xf32, #tpu.memory_space<vmem>>, vector<256x128xf32>
    %c5_129 = arith.constant 5 : index
    %c0_130 = arith.constant 0 : index
    %c0_131 = arith.constant 0 : index
    %133 = vector.load %arg4[%c5_129, %c0_130, %c0_131] : memref<9x128x128xbf16, #tpu.memory_space<vmem>>, vector<1x128x128xbf16>
    %134 = vector.shape_cast %133 : vector<1x128x128xbf16> to vector<128x128xbf16>
    %cst_132 = arith.constant dense<0.000000e+00> : vector<256x128xf32>
    %135 = tpu.matmul %131, %134, %cst_132 {dimension_numbers = #tpu.dot_dimension_numbers<[1], [0], [0], [1], [0, 0, 1, 1], [], []>} : vector<256x128xbf16>, vector<128x128xbf16>, vector<256x128xf32> -> vector<256x128xf32>
    %136 = arith.addf %132, %135 : vector<256x128xf32>
    %c0_133 = arith.constant 0 : index
    %c0_134 = arith.constant 0 : index
    %137 = vector.load %arg7[%c0_133, %c0_134] : memref<256x128xf32, #tpu.memory_space<vmem>>, vector<256x128xf32>
    tpu.vector_store %arg7[%c0_133, %c0_134], %136 {strides = array<i32>} : memref<256x128xf32, #tpu.memory_space<vmem>>, vector<256x128xf32>,
    %138 = vector.extract_strided_slice %87 {offsets = [2, 0, 0], sizes = [16, 16, 128], strides = [1, 1, 1]} : vector<18x18x128xbf16> to vector<16x16x128xbf16>
    %139 = vector.shape_cast %138 : vector<16x16x128xbf16> to vector<256x128xbf16>
    %c0_135 = arith.constant 0 : index
    %c0_136 = arith.constant 0 : index
    %140 = vector.load %arg7[%c0_135, %c0_136] : memref<256x128xf32, #tpu.memory_space<vmem>>, vector<256x128xf32>
    %c6_137 = arith.constant 6 : index
    %c0_138 = arith.constant 0 : index
    %c0_139 = arith.constant 0 : index
    %141 = vector.load %arg4[%c6_137, %c0_138, %c0_139] : memref<9x128x128xbf16, #tpu.memory_space<vmem>>, vector<1x128x128xbf16>
    %142 = vector.shape_cast %141 : vector<1x128x128xbf16> to vector<128x128xbf16>
    %cst_140 = arith.constant dense<0.000000e+00> : vector<256x128xf32>
    %143 = tpu.matmul %139, %142, %cst_140 {dimension_numbers = #tpu.dot_dimension_numbers<[1], [0], [0], [1], [0, 0, 1, 1], [], []>} : vector<256x128xbf16>, vector<128x128xbf16>, vector<256x128xf32> -> vector<256x128xf32>
    %144 = arith.addf %140, %143 : vector<256x128xf32>
    %c0_141 = arith.constant 0 : index
    %c0_142 = arith.constant 0 : index
    %145 = vector.load %arg7[%c0_141, %c0_142] : memref<256x128xf32, #tpu.memory_space<vmem>>, vector<256x128xf32>
    tpu.vector_store %arg7[%c0_141, %c0_142], %144 {strides = array<i32>} : memref<256x128xf32, #tpu.memory_space<vmem>>, vector<256x128xf32>,
    %146 = vector.extract_strided_slice %87 {offsets = [2, 1, 0], sizes = [16, 16, 128], strides = [1, 1, 1]} : vector<18x18x128xbf16> to vector<16x16x128xbf16>
    %147 = vector.shape_cast %146 : vector<16x16x128xbf16> to vector<256x128xbf16>
    %c0_143 = arith.constant 0 : index
    %c0_144 = arith.constant 0 : index
    %148 = vector.load %arg7[%c0_143, %c0_144] : memref<256x128xf32, #tpu.memory_space<vmem>>, vector<256x128xf32>
    %c7_145 = arith.constant 7 : index
    %c0_146 = arith.constant 0 : index
    %c0_147 = arith.constant 0 : index
    %149 = vector.load %arg4[%c7_145, %c0_146, %c0_147] : memref<9x128x128xbf16, #tpu.memory_space<vmem>>, vector<1x128x128xbf16>
    %150 = vector.shape_cast %149 : vector<1x128x128xbf16> to vector<128x128xbf16>
    %cst_148 = arith.constant dense<0.000000e+00> : vector<256x128xf32>
    %151 = tpu.matmul %147, %150, %cst_148 {dimension_numbers = #tpu.dot_dimension_numbers<[1], [0], [0], [1], [0, 0, 1, 1], [], []>} : vector<256x128xbf16>, vector<128x128xbf16>, vector<256x128xf32> -> vector<256x128xf32>
    %152 = arith.addf %148, %151 : vector<256x128xf32>
    %c0_149 = arith.constant 0 : index
    %c0_150 = arith.constant 0 : index
    %153 = vector.load %arg7[%c0_149, %c0_150] : memref<256x128xf32, #tpu.memory_space<vmem>>, vector<256x128xf32>
    tpu.vector_store %arg7[%c0_149, %c0_150], %152 {strides = array<i32>} : memref<256x128xf32, #tpu.memory_space<vmem>>, vector<256x128xf32>,
    %154 = vector.extract_strided_slice %87 {offsets = [2, 2, 0], sizes = [16, 16, 128], strides = [1, 1, 1]} : vector<18x18x128xbf16> to vector<16x16x128xbf16>
    %155 = vector.shape_cast %154 : vector<16x16x128xbf16> to vector<256x128xbf16>
    %c0_151 = arith.constant 0 : index
    %c0_152 = arith.constant 0 : index
    %156 = vector.load %arg7[%c0_151, %c0_152] : memref<256x128xf32, #tpu.memory_space<vmem>>, vector<256x128xf32>
    %c8_153 = arith.constant 8 : index
    %c0_154 = arith.constant 0 : index
    %c0_155 = arith.constant 0 : index
    %157 = vector.load %arg4[%c8_153, %c0_154, %c0_155] : memref<9x128x128xbf16, #tpu.memory_space<vmem>>, vector<1x128x128xbf16>
    %158 = vector.shape_cast %157 : vector<1x128x128xbf16> to vector<128x128xbf16>
    %cst_156 = arith.constant dense<0.000000e+00> : vector<256x128xf32>
    %159 = tpu.matmul %155, %158, %cst_156 {dimension_numbers = #tpu.dot_dimension_numbers<[1], [0], [0], [1], [0, 0, 1, 1], [], []>} : vector<256x128xbf16>, vector<128x128xbf16>, vector<256x128xf32> -> vector<256x128xf32>
    %160 = arith.addf %156, %159 : vector<256x128xf32>
    %c0_157 = arith.constant 0 : index
    %c0_158 = arith.constant 0 : index
    %161 = vector.load %arg7[%c0_157, %c0_158] : memref<256x128xf32, #tpu.memory_space<vmem>>, vector<256x128xf32>
    tpu.vector_store %arg7[%c0_157, %c0_158], %160 {strides = array<i32>} : memref<256x128xf32, #tpu.memory_space<vmem>>, vector<256x128xf32>,
    %c0_159 = arith.constant 0 : index
    %c0_160 = arith.constant 0 : index
    %162 = vector.load %arg7[%c0_159, %c0_160] : memref<256x128xf32, #tpu.memory_space<vmem>>, vector<256x128xf32>
    %c0_161 = arith.constant 0 : index
    %c0_162 = arith.constant 0 : index
    %163 = vector.load %arg5[%c0_161, %c0_162] : memref<1x128xf32, #tpu.memory_space<vmem>>, vector<1x128xf32>
    %164 = vector.broadcast %163 : vector<1x128xf32> to vector<256x128xf32>
    %165 = arith.addf %162, %164 : vector<256x128xf32>
    %cst_163 = arith.constant 0.000000e+00 : f32
    %166 = vector.broadcast %cst_163 : f32 to vector<256x128xf32>
    %167 = arith.maximumf %165, %166 : vector<256x128xf32>
    %168 = vector.shape_cast %167 : vector<256x128xf32> to vector<8x2x16x128xf32>
    %cst_164 = arith.constant dense<0xFF800000> : vector<8x16x128xf32>
    %169 = vector.multi_reduction <maximumf>, %168, %cst_164 [1] : vector<8x2x16x128xf32> to vector<8x16x128xf32>
    %170 = vector.shape_cast %169 : vector<8x16x128xf32> to vector<8x8x2x128xf32>
    %cst_165 = arith.constant dense<0xFF800000> : vector<8x8x128xf32>
    %171 = vector.multi_reduction <maximumf>, %170, %cst_165 [2] : vector<8x8x2x128xf32> to vector<8x8x128xf32>
    %172 = vector.shape_cast %171 : vector<8x8x128xf32> to vector<1x8x8x128xf32>
    %173 = arith.truncf %172 : vector<1x8x8x128xf32> to vector<1x8x8x128xbf16>
    %c0_166 = arith.constant 0 : index
    %c0_167 = arith.constant 0 : index
    %c0_168 = arith.constant 0 : index
    %c0_169 = arith.constant 0 : index
    %174 = vector.load %arg6[%c0_166, %c0_167, %c0_168, %c0_169] : memref<1x8x8x128xbf16, #tpu.memory_space<vmem>>, vector<1x8x8x128xbf16>
    tpu.vector_store %arg6[%c0_166, %c0_167, %c0_168, %c0_169], %173 {strides = array<i32>} : memref<1x8x8x128xbf16, #tpu.memory_space<vmem>>, vector<1x8x8x128xbf16>,
    return
  }
  func.func @transform_0(%arg0: i32) -> (i32, i32, i32, i32) {
    %c0_i32 = arith.constant 0 : i32
    %c0_i32_0 = arith.constant 0 : i32
    %c0_i32_1 = arith.constant 0 : i32
    %c0_i32_2 = arith.constant 0 : i32
    return %arg0, %c0_i32, %c0_i32_0, %c0_i32_1 : i32, i32, i32, i32
  }
  func.func @transform_1(%arg0: i32) -> (i32, i32, i32) {
    %c0_i32 = arith.constant 0 : i32
    %c0_i32_0 = arith.constant 0 : i32
    %c0_i32_1 = arith.constant 0 : i32
    %c0_i32_2 = arith.constant 0 : i32
    return %c0_i32, %c0_i32_0, %c0_i32_1 : i32, i32, i32
  }
  func.func @transform_2(%arg0: i32) -> (i32, i32) {
    %c0_i32 = arith.constant 0 : i32
    %c0_i32_0 = arith.constant 0 : i32
    %c0_i32_1 = arith.constant 0 : i32
    return %c0_i32, %c0_i32_0 : i32, i32
  }
  func.func @transform_3(%arg0: i32) -> (i32, i32, i32) {
    %c0_i32 = arith.constant 0 : i32
    %c0_i32_0 = arith.constant 0 : i32
    %c0_i32_1 = arith.constant 0 : i32
    %c0_i32_2 = arith.constant 0 : i32
    return %c0_i32, %c0_i32_0, %c0_i32_1 : i32, i32, i32
  }
  func.func @transform_4(%arg0: i32) -> (i32, i32) {
    %c0_i32 = arith.constant 0 : i32
    %c0_i32_0 = arith.constant 0 : i32
    %c0_i32_1 = arith.constant 0 : i32
    return %c0_i32, %c0_i32_0 : i32, i32
  }
  func.func @transform_5(%arg0: i32) -> (i32, i32, i32, i32) {
    %c0_i32 = arith.constant 0 : i32
    %c0_i32_0 = arith.constant 0 : i32
    %c0_i32_1 = arith.constant 0 : i32
    %c0_i32_2 = arith.constant 0 : i32
    return %arg0, %c0_i32, %c0_i32_0, %c0_i32_1 : i32, i32, i32, i32
  }
}

module attributes {stable_mosaic.version = 11 : i64} {
  func.func @_fc_kernel(%arg0: memref<8x2048xbf16, #tpu.memory_space<vmem>>, %arg1: memref<2048x512xbf16, #tpu.memory_space<vmem>>, %arg2: memref<1x512xf32, #tpu.memory_space<vmem>>, %arg3: memref<512x128xbf16, #tpu.memory_space<vmem>>, %arg4: memref<1x128xf32, #tpu.memory_space<vmem>>, %arg5: memref<8x128xf32, #tpu.memory_space<vmem>>) attributes {dimension_semantics = [], scalar_prefetch = 0 : i64, scratch_operands = 0 : i64, tpu.core_type = #tpu.core_type<tc>} {
    %c0 = arith.constant 0 : index
    %c0_0 = arith.constant 0 : index
    %0 = vector.load %arg0[%c0, %c0_0] : memref<8x2048xbf16, #tpu.memory_space<vmem>>, vector<8x2048xbf16>
    %c0_1 = arith.constant 0 : index
    %c0_2 = arith.constant 0 : index
    %1 = vector.load %arg1[%c0_1, %c0_2] : memref<2048x512xbf16, #tpu.memory_space<vmem>>, vector<2048x512xbf16>
    %cst = arith.constant dense<0.000000e+00> : vector<8x512xf32>
    %2 = tpu.matmul %0, %1, %cst {dimension_numbers = #tpu.dot_dimension_numbers<[1], [0], [0], [1], [0, 0, 1, 1], [], []>} : vector<8x2048xbf16>, vector<2048x512xbf16>, vector<8x512xf32> -> vector<8x512xf32>
    %c0_3 = arith.constant 0 : index
    %c0_4 = arith.constant 0 : index
    %3 = vector.load %arg2[%c0_3, %c0_4] : memref<1x512xf32, #tpu.memory_space<vmem>>, vector<1x512xf32>
    %4 = vector.broadcast %3 : vector<1x512xf32> to vector<8x512xf32>
    %5 = arith.addf %2, %4 : vector<8x512xf32>
    %cst_5 = arith.constant 0.000000e+00 : f32
    %6 = vector.broadcast %cst_5 : f32 to vector<8x512xf32>
    %7 = arith.maximumf %5, %6 : vector<8x512xf32>
    %8 = arith.truncf %7 : vector<8x512xf32> to vector<8x512xbf16>
    %c0_6 = arith.constant 0 : index
    %c0_7 = arith.constant 0 : index
    %9 = vector.load %arg3[%c0_6, %c0_7] : memref<512x128xbf16, #tpu.memory_space<vmem>>, vector<512x128xbf16>
    %cst_8 = arith.constant dense<0.000000e+00> : vector<8x128xf32>
    %10 = tpu.matmul %8, %9, %cst_8 {dimension_numbers = #tpu.dot_dimension_numbers<[1], [0], [0], [1], [0, 0, 1, 1], [], []>} : vector<8x512xbf16>, vector<512x128xbf16>, vector<8x128xf32> -> vector<8x128xf32>
    %c0_9 = arith.constant 0 : index
    %c0_10 = arith.constant 0 : index
    %11 = vector.load %arg4[%c0_9, %c0_10] : memref<1x128xf32, #tpu.memory_space<vmem>>, vector<1x128xf32>
    %12 = vector.broadcast %11 : vector<1x128xf32> to vector<8x128xf32>
    %13 = arith.addf %10, %12 : vector<8x128xf32>
    %c0_11 = arith.constant 0 : index
    %c0_12 = arith.constant 0 : index
    %14 = vector.load %arg5[%c0_11, %c0_12] : memref<8x128xf32, #tpu.memory_space<vmem>>, vector<8x128xf32>
    tpu.vector_store %arg5[%c0_11, %c0_12], %13 {strides = array<i32>} : memref<8x128xf32, #tpu.memory_space<vmem>>, vector<8x128xf32>,
    return
  }
}

module attributes {stable_mosaic.version = 11 : i64} {
  func.func @_conv_block_kernel(%arg0: i32, %arg1: memref<1x10x10x128xbf16, #tpu.memory_space<vmem>>, %arg2: memref<9x128x128xbf16, #tpu.memory_space<vmem>>, %arg3: memref<1x128xf32, #tpu.memory_space<vmem>>, %arg4: memref<9x128x128xbf16, #tpu.memory_space<vmem>>, %arg5: memref<1x128xf32, #tpu.memory_space<vmem>>, %arg6: memref<1x4x4x128xbf16, #tpu.memory_space<vmem>>, %arg7: memref<64x128xf32, #tpu.memory_space<vmem>>, %arg8: memref<10x10x128xbf16, #tpu.memory_space<vmem>>) attributes {dimension_semantics = [#tpu.dimension_semantics<parallel>], iteration_bounds = array<i64: 2>, scalar_prefetch = 0 : i64, scratch_operands = 2 : i64, tpu.core_type = #tpu.core_type<tc>, window_params = [{transform_indices = @transform_0, window_bounds = array<i64: 1, 10, 10, 128>}, {pipeline_mode = #tpu.pipeline_mode<synchronous>, transform_indices = @transform_1, window_bounds = array<i64: 9, 128, 128>}, {pipeline_mode = #tpu.pipeline_mode<synchronous>, transform_indices = @transform_2, window_bounds = array<i64: 1, 128>}, {pipeline_mode = #tpu.pipeline_mode<synchronous>, transform_indices = @transform_3, window_bounds = array<i64: 9, 128, 128>}, {pipeline_mode = #tpu.pipeline_mode<synchronous>, transform_indices = @transform_4, window_bounds = array<i64: 1, 128>}, {transform_indices = @transform_5, window_bounds = array<i64: 1, 4, 4, 128>}]} {
    %c0 = arith.constant 0 : index
    %c0_0 = arith.constant 0 : index
    %c0_1 = arith.constant 0 : index
    %c0_2 = arith.constant 0 : index
    %0 = vector.load %arg1[%c0, %c0_0, %c0_1, %c0_2] : memref<1x10x10x128xbf16, #tpu.memory_space<vmem>>, vector<1x10x10x128xbf16>
    %1 = vector.shape_cast %0 : vector<1x10x10x128xbf16> to vector<10x10x128xbf16>
    %cst = arith.constant 0.000000e+00 : f32
    %2 = vector.broadcast %cst : f32 to vector<64x128xf32>
    %c0_3 = arith.constant 0 : index
    %c0_4 = arith.constant 0 : index
    %3 = vector.load %arg7[%c0_3, %c0_4] : memref<64x128xf32, #tpu.memory_space<vmem>>, vector<64x128xf32>
    tpu.vector_store %arg7[%c0_3, %c0_4], %2 {strides = array<i32>} : memref<64x128xf32, #tpu.memory_space<vmem>>, vector<64x128xf32>,
    %4 = vector.extract_strided_slice %1 {offsets = [0, 0, 0], sizes = [8, 8, 128], strides = [1, 1, 1]} : vector<10x10x128xbf16> to vector<8x8x128xbf16>
    %5 = vector.shape_cast %4 : vector<8x8x128xbf16> to vector<64x128xbf16>
    %c0_5 = arith.constant 0 : index
    %c0_6 = arith.constant 0 : index
    %6 = vector.load %arg7[%c0_5, %c0_6] : memref<64x128xf32, #tpu.memory_space<vmem>>, vector<64x128xf32>
    %c0_7 = arith.constant 0 : index
    %c0_8 = arith.constant 0 : index
    %c0_9 = arith.constant 0 : index
    %7 = vector.load %arg2[%c0_7, %c0_8, %c0_9] : memref<9x128x128xbf16, #tpu.memory_space<vmem>>, vector<1x128x128xbf16>
    %8 = vector.shape_cast %7 : vector<1x128x128xbf16> to vector<128x128xbf16>
    %cst_10 = arith.constant dense<0.000000e+00> : vector<64x128xf32>
    %9 = tpu.matmul %5, %8, %cst_10 {dimension_numbers = #tpu.dot_dimension_numbers<[1], [0], [0], [1], [0, 0, 1, 1], [], []>} : vector<64x128xbf16>, vector<128x128xbf16>, vector<64x128xf32> -> vector<64x128xf32>
    %10 = arith.addf %6, %9 : vector<64x128xf32>
    %c0_11 = arith.constant 0 : index
    %c0_12 = arith.constant 0 : index
    %11 = vector.load %arg7[%c0_11, %c0_12] : memref<64x128xf32, #tpu.memory_space<vmem>>, vector<64x128xf32>
    tpu.vector_store %arg7[%c0_11, %c0_12], %10 {strides = array<i32>} : memref<64x128xf32, #tpu.memory_space<vmem>>, vector<64x128xf32>,
    %12 = vector.extract_strided_slice %1 {offsets = [0, 1, 0], sizes = [8, 8, 128], strides = [1, 1, 1]} : vector<10x10x128xbf16> to vector<8x8x128xbf16>
    %13 = vector.shape_cast %12 : vector<8x8x128xbf16> to vector<64x128xbf16>
    %c0_13 = arith.constant 0 : index
    %c0_14 = arith.constant 0 : index
    %14 = vector.load %arg7[%c0_13, %c0_14] : memref<64x128xf32, #tpu.memory_space<vmem>>, vector<64x128xf32>
    %c1 = arith.constant 1 : index
    %c0_15 = arith.constant 0 : index
    %c0_16 = arith.constant 0 : index
    %15 = vector.load %arg2[%c1, %c0_15, %c0_16] : memref<9x128x128xbf16, #tpu.memory_space<vmem>>, vector<1x128x128xbf16>
    %16 = vector.shape_cast %15 : vector<1x128x128xbf16> to vector<128x128xbf16>
    %cst_17 = arith.constant dense<0.000000e+00> : vector<64x128xf32>
    %17 = tpu.matmul %13, %16, %cst_17 {dimension_numbers = #tpu.dot_dimension_numbers<[1], [0], [0], [1], [0, 0, 1, 1], [], []>} : vector<64x128xbf16>, vector<128x128xbf16>, vector<64x128xf32> -> vector<64x128xf32>
    %18 = arith.addf %14, %17 : vector<64x128xf32>
    %c0_18 = arith.constant 0 : index
    %c0_19 = arith.constant 0 : index
    %19 = vector.load %arg7[%c0_18, %c0_19] : memref<64x128xf32, #tpu.memory_space<vmem>>, vector<64x128xf32>
    tpu.vector_store %arg7[%c0_18, %c0_19], %18 {strides = array<i32>} : memref<64x128xf32, #tpu.memory_space<vmem>>, vector<64x128xf32>,
    %20 = vector.extract_strided_slice %1 {offsets = [0, 2, 0], sizes = [8, 8, 128], strides = [1, 1, 1]} : vector<10x10x128xbf16> to vector<8x8x128xbf16>
    %21 = vector.shape_cast %20 : vector<8x8x128xbf16> to vector<64x128xbf16>
    %c0_20 = arith.constant 0 : index
    %c0_21 = arith.constant 0 : index
    %22 = vector.load %arg7[%c0_20, %c0_21] : memref<64x128xf32, #tpu.memory_space<vmem>>, vector<64x128xf32>
    %c2 = arith.constant 2 : index
    %c0_22 = arith.constant 0 : index
    %c0_23 = arith.constant 0 : index
    %23 = vector.load %arg2[%c2, %c0_22, %c0_23] : memref<9x128x128xbf16, #tpu.memory_space<vmem>>, vector<1x128x128xbf16>
    %24 = vector.shape_cast %23 : vector<1x128x128xbf16> to vector<128x128xbf16>
    %cst_24 = arith.constant dense<0.000000e+00> : vector<64x128xf32>
    %25 = tpu.matmul %21, %24, %cst_24 {dimension_numbers = #tpu.dot_dimension_numbers<[1], [0], [0], [1], [0, 0, 1, 1], [], []>} : vector<64x128xbf16>, vector<128x128xbf16>, vector<64x128xf32> -> vector<64x128xf32>
    %26 = arith.addf %22, %25 : vector<64x128xf32>
    %c0_25 = arith.constant 0 : index
    %c0_26 = arith.constant 0 : index
    %27 = vector.load %arg7[%c0_25, %c0_26] : memref<64x128xf32, #tpu.memory_space<vmem>>, vector<64x128xf32>
    tpu.vector_store %arg7[%c0_25, %c0_26], %26 {strides = array<i32>} : memref<64x128xf32, #tpu.memory_space<vmem>>, vector<64x128xf32>,
    %28 = vector.extract_strided_slice %1 {offsets = [1, 0, 0], sizes = [8, 8, 128], strides = [1, 1, 1]} : vector<10x10x128xbf16> to vector<8x8x128xbf16>
    %29 = vector.shape_cast %28 : vector<8x8x128xbf16> to vector<64x128xbf16>
    %c0_27 = arith.constant 0 : index
    %c0_28 = arith.constant 0 : index
    %30 = vector.load %arg7[%c0_27, %c0_28] : memref<64x128xf32, #tpu.memory_space<vmem>>, vector<64x128xf32>
    %c3 = arith.constant 3 : index
    %c0_29 = arith.constant 0 : index
    %c0_30 = arith.constant 0 : index
    %31 = vector.load %arg2[%c3, %c0_29, %c0_30] : memref<9x128x128xbf16, #tpu.memory_space<vmem>>, vector<1x128x128xbf16>
    %32 = vector.shape_cast %31 : vector<1x128x128xbf16> to vector<128x128xbf16>
    %cst_31 = arith.constant dense<0.000000e+00> : vector<64x128xf32>
    %33 = tpu.matmul %29, %32, %cst_31 {dimension_numbers = #tpu.dot_dimension_numbers<[1], [0], [0], [1], [0, 0, 1, 1], [], []>} : vector<64x128xbf16>, vector<128x128xbf16>, vector<64x128xf32> -> vector<64x128xf32>
    %34 = arith.addf %30, %33 : vector<64x128xf32>
    %c0_32 = arith.constant 0 : index
    %c0_33 = arith.constant 0 : index
    %35 = vector.load %arg7[%c0_32, %c0_33] : memref<64x128xf32, #tpu.memory_space<vmem>>, vector<64x128xf32>
    tpu.vector_store %arg7[%c0_32, %c0_33], %34 {strides = array<i32>} : memref<64x128xf32, #tpu.memory_space<vmem>>, vector<64x128xf32>,
    %36 = vector.extract_strided_slice %1 {offsets = [1, 1, 0], sizes = [8, 8, 128], strides = [1, 1, 1]} : vector<10x10x128xbf16> to vector<8x8x128xbf16>
    %37 = vector.shape_cast %36 : vector<8x8x128xbf16> to vector<64x128xbf16>
    %c0_34 = arith.constant 0 : index
    %c0_35 = arith.constant 0 : index
    %38 = vector.load %arg7[%c0_34, %c0_35] : memref<64x128xf32, #tpu.memory_space<vmem>>, vector<64x128xf32>
    %c4 = arith.constant 4 : index
    %c0_36 = arith.constant 0 : index
    %c0_37 = arith.constant 0 : index
    %39 = vector.load %arg2[%c4, %c0_36, %c0_37] : memref<9x128x128xbf16, #tpu.memory_space<vmem>>, vector<1x128x128xbf16>
    %40 = vector.shape_cast %39 : vector<1x128x128xbf16> to vector<128x128xbf16>
    %cst_38 = arith.constant dense<0.000000e+00> : vector<64x128xf32>
    %41 = tpu.matmul %37, %40, %cst_38 {dimension_numbers = #tpu.dot_dimension_numbers<[1], [0], [0], [1], [0, 0, 1, 1], [], []>} : vector<64x128xbf16>, vector<128x128xbf16>, vector<64x128xf32> -> vector<64x128xf32>
    %42 = arith.addf %38, %41 : vector<64x128xf32>
    %c0_39 = arith.constant 0 : index
    %c0_40 = arith.constant 0 : index
    %43 = vector.load %arg7[%c0_39, %c0_40] : memref<64x128xf32, #tpu.memory_space<vmem>>, vector<64x128xf32>
    tpu.vector_store %arg7[%c0_39, %c0_40], %42 {strides = array<i32>} : memref<64x128xf32, #tpu.memory_space<vmem>>, vector<64x128xf32>,
    %44 = vector.extract_strided_slice %1 {offsets = [1, 2, 0], sizes = [8, 8, 128], strides = [1, 1, 1]} : vector<10x10x128xbf16> to vector<8x8x128xbf16>
    %45 = vector.shape_cast %44 : vector<8x8x128xbf16> to vector<64x128xbf16>
    %c0_41 = arith.constant 0 : index
    %c0_42 = arith.constant 0 : index
    %46 = vector.load %arg7[%c0_41, %c0_42] : memref<64x128xf32, #tpu.memory_space<vmem>>, vector<64x128xf32>
    %c5 = arith.constant 5 : index
    %c0_43 = arith.constant 0 : index
    %c0_44 = arith.constant 0 : index
    %47 = vector.load %arg2[%c5, %c0_43, %c0_44] : memref<9x128x128xbf16, #tpu.memory_space<vmem>>, vector<1x128x128xbf16>
    %48 = vector.shape_cast %47 : vector<1x128x128xbf16> to vector<128x128xbf16>
    %cst_45 = arith.constant dense<0.000000e+00> : vector<64x128xf32>
    %49 = tpu.matmul %45, %48, %cst_45 {dimension_numbers = #tpu.dot_dimension_numbers<[1], [0], [0], [1], [0, 0, 1, 1], [], []>} : vector<64x128xbf16>, vector<128x128xbf16>, vector<64x128xf32> -> vector<64x128xf32>
    %50 = arith.addf %46, %49 : vector<64x128xf32>
    %c0_46 = arith.constant 0 : index
    %c0_47 = arith.constant 0 : index
    %51 = vector.load %arg7[%c0_46, %c0_47] : memref<64x128xf32, #tpu.memory_space<vmem>>, vector<64x128xf32>
    tpu.vector_store %arg7[%c0_46, %c0_47], %50 {strides = array<i32>} : memref<64x128xf32, #tpu.memory_space<vmem>>, vector<64x128xf32>,
    %52 = vector.extract_strided_slice %1 {offsets = [2, 0, 0], sizes = [8, 8, 128], strides = [1, 1, 1]} : vector<10x10x128xbf16> to vector<8x8x128xbf16>
    %53 = vector.shape_cast %52 : vector<8x8x128xbf16> to vector<64x128xbf16>
    %c0_48 = arith.constant 0 : index
    %c0_49 = arith.constant 0 : index
    %54 = vector.load %arg7[%c0_48, %c0_49] : memref<64x128xf32, #tpu.memory_space<vmem>>, vector<64x128xf32>
    %c6 = arith.constant 6 : index
    %c0_50 = arith.constant 0 : index
    %c0_51 = arith.constant 0 : index
    %55 = vector.load %arg2[%c6, %c0_50, %c0_51] : memref<9x128x128xbf16, #tpu.memory_space<vmem>>, vector<1x128x128xbf16>
    %56 = vector.shape_cast %55 : vector<1x128x128xbf16> to vector<128x128xbf16>
    %cst_52 = arith.constant dense<0.000000e+00> : vector<64x128xf32>
    %57 = tpu.matmul %53, %56, %cst_52 {dimension_numbers = #tpu.dot_dimension_numbers<[1], [0], [0], [1], [0, 0, 1, 1], [], []>} : vector<64x128xbf16>, vector<128x128xbf16>, vector<64x128xf32> -> vector<64x128xf32>
    %58 = arith.addf %54, %57 : vector<64x128xf32>
    %c0_53 = arith.constant 0 : index
    %c0_54 = arith.constant 0 : index
    %59 = vector.load %arg7[%c0_53, %c0_54] : memref<64x128xf32, #tpu.memory_space<vmem>>, vector<64x128xf32>
    tpu.vector_store %arg7[%c0_53, %c0_54], %58 {strides = array<i32>} : memref<64x128xf32, #tpu.memory_space<vmem>>, vector<64x128xf32>,
    %60 = vector.extract_strided_slice %1 {offsets = [2, 1, 0], sizes = [8, 8, 128], strides = [1, 1, 1]} : vector<10x10x128xbf16> to vector<8x8x128xbf16>
    %61 = vector.shape_cast %60 : vector<8x8x128xbf16> to vector<64x128xbf16>
    %c0_55 = arith.constant 0 : index
    %c0_56 = arith.constant 0 : index
    %62 = vector.load %arg7[%c0_55, %c0_56] : memref<64x128xf32, #tpu.memory_space<vmem>>, vector<64x128xf32>
    %c7 = arith.constant 7 : index
    %c0_57 = arith.constant 0 : index
    %c0_58 = arith.constant 0 : index
    %63 = vector.load %arg2[%c7, %c0_57, %c0_58] : memref<9x128x128xbf16, #tpu.memory_space<vmem>>, vector<1x128x128xbf16>
    %64 = vector.shape_cast %63 : vector<1x128x128xbf16> to vector<128x128xbf16>
    %cst_59 = arith.constant dense<0.000000e+00> : vector<64x128xf32>
    %65 = tpu.matmul %61, %64, %cst_59 {dimension_numbers = #tpu.dot_dimension_numbers<[1], [0], [0], [1], [0, 0, 1, 1], [], []>} : vector<64x128xbf16>, vector<128x128xbf16>, vector<64x128xf32> -> vector<64x128xf32>
    %66 = arith.addf %62, %65 : vector<64x128xf32>
    %c0_60 = arith.constant 0 : index
    %c0_61 = arith.constant 0 : index
    %67 = vector.load %arg7[%c0_60, %c0_61] : memref<64x128xf32, #tpu.memory_space<vmem>>, vector<64x128xf32>
    tpu.vector_store %arg7[%c0_60, %c0_61], %66 {strides = array<i32>} : memref<64x128xf32, #tpu.memory_space<vmem>>, vector<64x128xf32>,
    %68 = vector.extract_strided_slice %1 {offsets = [2, 2, 0], sizes = [8, 8, 128], strides = [1, 1, 1]} : vector<10x10x128xbf16> to vector<8x8x128xbf16>
    %69 = vector.shape_cast %68 : vector<8x8x128xbf16> to vector<64x128xbf16>
    %c0_62 = arith.constant 0 : index
    %c0_63 = arith.constant 0 : index
    %70 = vector.load %arg7[%c0_62, %c0_63] : memref<64x128xf32, #tpu.memory_space<vmem>>, vector<64x128xf32>
    %c8 = arith.constant 8 : index
    %c0_64 = arith.constant 0 : index
    %c0_65 = arith.constant 0 : index
    %71 = vector.load %arg2[%c8, %c0_64, %c0_65] : memref<9x128x128xbf16, #tpu.memory_space<vmem>>, vector<1x128x128xbf16>
    %72 = vector.shape_cast %71 : vector<1x128x128xbf16> to vector<128x128xbf16>
    %cst_66 = arith.constant dense<0.000000e+00> : vector<64x128xf32>
    %73 = tpu.matmul %69, %72, %cst_66 {dimension_numbers = #tpu.dot_dimension_numbers<[1], [0], [0], [1], [0, 0, 1, 1], [], []>} : vector<64x128xbf16>, vector<128x128xbf16>, vector<64x128xf32> -> vector<64x128xf32>
    %74 = arith.addf %70, %73 : vector<64x128xf32>
    %c0_67 = arith.constant 0 : index
    %c0_68 = arith.constant 0 : index
    %75 = vector.load %arg7[%c0_67, %c0_68] : memref<64x128xf32, #tpu.memory_space<vmem>>, vector<64x128xf32>
    tpu.vector_store %arg7[%c0_67, %c0_68], %74 {strides = array<i32>} : memref<64x128xf32, #tpu.memory_space<vmem>>, vector<64x128xf32>,
    %c0_69 = arith.constant 0 : index
    %c0_70 = arith.constant 0 : index
    %76 = vector.load %arg7[%c0_69, %c0_70] : memref<64x128xf32, #tpu.memory_space<vmem>>, vector<64x128xf32>
    %c0_71 = arith.constant 0 : index
    %c0_72 = arith.constant 0 : index
    %77 = vector.load %arg3[%c0_71, %c0_72] : memref<1x128xf32, #tpu.memory_space<vmem>>, vector<1x128xf32>
    %78 = vector.broadcast %77 : vector<1x128xf32> to vector<64x128xf32>
    %79 = arith.addf %76, %78 : vector<64x128xf32>
    %cst_73 = arith.constant 0.000000e+00 : f32
    %80 = vector.broadcast %cst_73 : f32 to vector<64x128xf32>
    %81 = arith.maximumf %79, %80 : vector<64x128xf32>
    %cst_74 = arith.constant 0.000000e+00 : bf16
    %82 = vector.broadcast %cst_74 : bf16 to vector<10x10x128xbf16>
    %c0_75 = arith.constant 0 : index
    %c0_76 = arith.constant 0 : index
    %c0_77 = arith.constant 0 : index
    %83 = vector.load %arg8[%c0_75, %c0_76, %c0_77] : memref<10x10x128xbf16, #tpu.memory_space<vmem>>, vector<10x10x128xbf16>
    tpu.vector_store %arg8[%c0_75, %c0_76, %c0_77], %82 {strides = array<i32>} : memref<10x10x128xbf16, #tpu.memory_space<vmem>>, vector<10x10x128xbf16>,
    %84 = vector.shape_cast %81 : vector<64x128xf32> to vector<8x8x128xf32>
    %85 = arith.truncf %84 : vector<8x8x128xf32> to vector<8x8x128xbf16>
    %c1_78 = arith.constant 1 : index
    %c1_79 = arith.constant 1 : index
    %c0_80 = arith.constant 0 : index
    %86 = vector.load %arg8[%c1_78, %c1_79, %c0_80] : memref<10x10x128xbf16, #tpu.memory_space<vmem>>, vector<8x8x128xbf16>
    tpu.vector_store %arg8[%c1_78, %c1_79, %c0_80], %85 {strides = array<i32>} : memref<10x10x128xbf16, #tpu.memory_space<vmem>>, vector<8x8x128xbf16>,
    %c0_81 = arith.constant 0 : index
    %c0_82 = arith.constant 0 : index
    %c0_83 = arith.constant 0 : index
    %87 = vector.load %arg8[%c0_81, %c0_82, %c0_83] : memref<10x10x128xbf16, #tpu.memory_space<vmem>>, vector<10x10x128xbf16>
    %cst_84 = arith.constant 0.000000e+00 : f32
    %88 = vector.broadcast %cst_84 : f32 to vector<64x128xf32>
    %c0_85 = arith.constant 0 : index
    %c0_86 = arith.constant 0 : index
    %89 = vector.load %arg7[%c0_85, %c0_86] : memref<64x128xf32, #tpu.memory_space<vmem>>, vector<64x128xf32>
    tpu.vector_store %arg7[%c0_85, %c0_86], %88 {strides = array<i32>} : memref<64x128xf32, #tpu.memory_space<vmem>>, vector<64x128xf32>,
    %90 = vector.extract_strided_slice %87 {offsets = [0, 0, 0], sizes = [8, 8, 128], strides = [1, 1, 1]} : vector<10x10x128xbf16> to vector<8x8x128xbf16>
    %91 = vector.shape_cast %90 : vector<8x8x128xbf16> to vector<64x128xbf16>
    %c0_87 = arith.constant 0 : index
    %c0_88 = arith.constant 0 : index
    %92 = vector.load %arg7[%c0_87, %c0_88] : memref<64x128xf32, #tpu.memory_space<vmem>>, vector<64x128xf32>
    %c0_89 = arith.constant 0 : index
    %c0_90 = arith.constant 0 : index
    %c0_91 = arith.constant 0 : index
    %93 = vector.load %arg4[%c0_89, %c0_90, %c0_91] : memref<9x128x128xbf16, #tpu.memory_space<vmem>>, vector<1x128x128xbf16>
    %94 = vector.shape_cast %93 : vector<1x128x128xbf16> to vector<128x128xbf16>
    %cst_92 = arith.constant dense<0.000000e+00> : vector<64x128xf32>
    %95 = tpu.matmul %91, %94, %cst_92 {dimension_numbers = #tpu.dot_dimension_numbers<[1], [0], [0], [1], [0, 0, 1, 1], [], []>} : vector<64x128xbf16>, vector<128x128xbf16>, vector<64x128xf32> -> vector<64x128xf32>
    %96 = arith.addf %92, %95 : vector<64x128xf32>
    %c0_93 = arith.constant 0 : index
    %c0_94 = arith.constant 0 : index
    %97 = vector.load %arg7[%c0_93, %c0_94] : memref<64x128xf32, #tpu.memory_space<vmem>>, vector<64x128xf32>
    tpu.vector_store %arg7[%c0_93, %c0_94], %96 {strides = array<i32>} : memref<64x128xf32, #tpu.memory_space<vmem>>, vector<64x128xf32>,
    %98 = vector.extract_strided_slice %87 {offsets = [0, 1, 0], sizes = [8, 8, 128], strides = [1, 1, 1]} : vector<10x10x128xbf16> to vector<8x8x128xbf16>
    %99 = vector.shape_cast %98 : vector<8x8x128xbf16> to vector<64x128xbf16>
    %c0_95 = arith.constant 0 : index
    %c0_96 = arith.constant 0 : index
    %100 = vector.load %arg7[%c0_95, %c0_96] : memref<64x128xf32, #tpu.memory_space<vmem>>, vector<64x128xf32>
    %c1_97 = arith.constant 1 : index
    %c0_98 = arith.constant 0 : index
    %c0_99 = arith.constant 0 : index
    %101 = vector.load %arg4[%c1_97, %c0_98, %c0_99] : memref<9x128x128xbf16, #tpu.memory_space<vmem>>, vector<1x128x128xbf16>
    %102 = vector.shape_cast %101 : vector<1x128x128xbf16> to vector<128x128xbf16>
    %cst_100 = arith.constant dense<0.000000e+00> : vector<64x128xf32>
    %103 = tpu.matmul %99, %102, %cst_100 {dimension_numbers = #tpu.dot_dimension_numbers<[1], [0], [0], [1], [0, 0, 1, 1], [], []>} : vector<64x128xbf16>, vector<128x128xbf16>, vector<64x128xf32> -> vector<64x128xf32>
    %104 = arith.addf %100, %103 : vector<64x128xf32>
    %c0_101 = arith.constant 0 : index
    %c0_102 = arith.constant 0 : index
    %105 = vector.load %arg7[%c0_101, %c0_102] : memref<64x128xf32, #tpu.memory_space<vmem>>, vector<64x128xf32>
    tpu.vector_store %arg7[%c0_101, %c0_102], %104 {strides = array<i32>} : memref<64x128xf32, #tpu.memory_space<vmem>>, vector<64x128xf32>,
    %106 = vector.extract_strided_slice %87 {offsets = [0, 2, 0], sizes = [8, 8, 128], strides = [1, 1, 1]} : vector<10x10x128xbf16> to vector<8x8x128xbf16>
    %107 = vector.shape_cast %106 : vector<8x8x128xbf16> to vector<64x128xbf16>
    %c0_103 = arith.constant 0 : index
    %c0_104 = arith.constant 0 : index
    %108 = vector.load %arg7[%c0_103, %c0_104] : memref<64x128xf32, #tpu.memory_space<vmem>>, vector<64x128xf32>
    %c2_105 = arith.constant 2 : index
    %c0_106 = arith.constant 0 : index
    %c0_107 = arith.constant 0 : index
    %109 = vector.load %arg4[%c2_105, %c0_106, %c0_107] : memref<9x128x128xbf16, #tpu.memory_space<vmem>>, vector<1x128x128xbf16>
    %110 = vector.shape_cast %109 : vector<1x128x128xbf16> to vector<128x128xbf16>
    %cst_108 = arith.constant dense<0.000000e+00> : vector<64x128xf32>
    %111 = tpu.matmul %107, %110, %cst_108 {dimension_numbers = #tpu.dot_dimension_numbers<[1], [0], [0], [1], [0, 0, 1, 1], [], []>} : vector<64x128xbf16>, vector<128x128xbf16>, vector<64x128xf32> -> vector<64x128xf32>
    %112 = arith.addf %108, %111 : vector<64x128xf32>
    %c0_109 = arith.constant 0 : index
    %c0_110 = arith.constant 0 : index
    %113 = vector.load %arg7[%c0_109, %c0_110] : memref<64x128xf32, #tpu.memory_space<vmem>>, vector<64x128xf32>
    tpu.vector_store %arg7[%c0_109, %c0_110], %112 {strides = array<i32>} : memref<64x128xf32, #tpu.memory_space<vmem>>, vector<64x128xf32>,
    %114 = vector.extract_strided_slice %87 {offsets = [1, 0, 0], sizes = [8, 8, 128], strides = [1, 1, 1]} : vector<10x10x128xbf16> to vector<8x8x128xbf16>
    %115 = vector.shape_cast %114 : vector<8x8x128xbf16> to vector<64x128xbf16>
    %c0_111 = arith.constant 0 : index
    %c0_112 = arith.constant 0 : index
    %116 = vector.load %arg7[%c0_111, %c0_112] : memref<64x128xf32, #tpu.memory_space<vmem>>, vector<64x128xf32>
    %c3_113 = arith.constant 3 : index
    %c0_114 = arith.constant 0 : index
    %c0_115 = arith.constant 0 : index
    %117 = vector.load %arg4[%c3_113, %c0_114, %c0_115] : memref<9x128x128xbf16, #tpu.memory_space<vmem>>, vector<1x128x128xbf16>
    %118 = vector.shape_cast %117 : vector<1x128x128xbf16> to vector<128x128xbf16>
    %cst_116 = arith.constant dense<0.000000e+00> : vector<64x128xf32>
    %119 = tpu.matmul %115, %118, %cst_116 {dimension_numbers = #tpu.dot_dimension_numbers<[1], [0], [0], [1], [0, 0, 1, 1], [], []>} : vector<64x128xbf16>, vector<128x128xbf16>, vector<64x128xf32> -> vector<64x128xf32>
    %120 = arith.addf %116, %119 : vector<64x128xf32>
    %c0_117 = arith.constant 0 : index
    %c0_118 = arith.constant 0 : index
    %121 = vector.load %arg7[%c0_117, %c0_118] : memref<64x128xf32, #tpu.memory_space<vmem>>, vector<64x128xf32>
    tpu.vector_store %arg7[%c0_117, %c0_118], %120 {strides = array<i32>} : memref<64x128xf32, #tpu.memory_space<vmem>>, vector<64x128xf32>,
    %122 = vector.extract_strided_slice %87 {offsets = [1, 1, 0], sizes = [8, 8, 128], strides = [1, 1, 1]} : vector<10x10x128xbf16> to vector<8x8x128xbf16>
    %123 = vector.shape_cast %122 : vector<8x8x128xbf16> to vector<64x128xbf16>
    %c0_119 = arith.constant 0 : index
    %c0_120 = arith.constant 0 : index
    %124 = vector.load %arg7[%c0_119, %c0_120] : memref<64x128xf32, #tpu.memory_space<vmem>>, vector<64x128xf32>
    %c4_121 = arith.constant 4 : index
    %c0_122 = arith.constant 0 : index
    %c0_123 = arith.constant 0 : index
    %125 = vector.load %arg4[%c4_121, %c0_122, %c0_123] : memref<9x128x128xbf16, #tpu.memory_space<vmem>>, vector<1x128x128xbf16>
    %126 = vector.shape_cast %125 : vector<1x128x128xbf16> to vector<128x128xbf16>
    %cst_124 = arith.constant dense<0.000000e+00> : vector<64x128xf32>
    %127 = tpu.matmul %123, %126, %cst_124 {dimension_numbers = #tpu.dot_dimension_numbers<[1], [0], [0], [1], [0, 0, 1, 1], [], []>} : vector<64x128xbf16>, vector<128x128xbf16>, vector<64x128xf32> -> vector<64x128xf32>
    %128 = arith.addf %124, %127 : vector<64x128xf32>
    %c0_125 = arith.constant 0 : index
    %c0_126 = arith.constant 0 : index
    %129 = vector.load %arg7[%c0_125, %c0_126] : memref<64x128xf32, #tpu.memory_space<vmem>>, vector<64x128xf32>
    tpu.vector_store %arg7[%c0_125, %c0_126], %128 {strides = array<i32>} : memref<64x128xf32, #tpu.memory_space<vmem>>, vector<64x128xf32>,
    %130 = vector.extract_strided_slice %87 {offsets = [1, 2, 0], sizes = [8, 8, 128], strides = [1, 1, 1]} : vector<10x10x128xbf16> to vector<8x8x128xbf16>
    %131 = vector.shape_cast %130 : vector<8x8x128xbf16> to vector<64x128xbf16>
    %c0_127 = arith.constant 0 : index
    %c0_128 = arith.constant 0 : index
    %132 = vector.load %arg7[%c0_127, %c0_128] : memref<64x128xf32, #tpu.memory_space<vmem>>, vector<64x128xf32>
    %c5_129 = arith.constant 5 : index
    %c0_130 = arith.constant 0 : index
    %c0_131 = arith.constant 0 : index
    %133 = vector.load %arg4[%c5_129, %c0_130, %c0_131] : memref<9x128x128xbf16, #tpu.memory_space<vmem>>, vector<1x128x128xbf16>
    %134 = vector.shape_cast %133 : vector<1x128x128xbf16> to vector<128x128xbf16>
    %cst_132 = arith.constant dense<0.000000e+00> : vector<64x128xf32>
    %135 = tpu.matmul %131, %134, %cst_132 {dimension_numbers = #tpu.dot_dimension_numbers<[1], [0], [0], [1], [0, 0, 1, 1], [], []>} : vector<64x128xbf16>, vector<128x128xbf16>, vector<64x128xf32> -> vector<64x128xf32>
    %136 = arith.addf %132, %135 : vector<64x128xf32>
    %c0_133 = arith.constant 0 : index
    %c0_134 = arith.constant 0 : index
    %137 = vector.load %arg7[%c0_133, %c0_134] : memref<64x128xf32, #tpu.memory_space<vmem>>, vector<64x128xf32>
    tpu.vector_store %arg7[%c0_133, %c0_134], %136 {strides = array<i32>} : memref<64x128xf32, #tpu.memory_space<vmem>>, vector<64x128xf32>,
    %138 = vector.extract_strided_slice %87 {offsets = [2, 0, 0], sizes = [8, 8, 128], strides = [1, 1, 1]} : vector<10x10x128xbf16> to vector<8x8x128xbf16>
    %139 = vector.shape_cast %138 : vector<8x8x128xbf16> to vector<64x128xbf16>
    %c0_135 = arith.constant 0 : index
    %c0_136 = arith.constant 0 : index
    %140 = vector.load %arg7[%c0_135, %c0_136] : memref<64x128xf32, #tpu.memory_space<vmem>>, vector<64x128xf32>
    %c6_137 = arith.constant 6 : index
    %c0_138 = arith.constant 0 : index
    %c0_139 = arith.constant 0 : index
    %141 = vector.load %arg4[%c6_137, %c0_138, %c0_139] : memref<9x128x128xbf16, #tpu.memory_space<vmem>>, vector<1x128x128xbf16>
    %142 = vector.shape_cast %141 : vector<1x128x128xbf16> to vector<128x128xbf16>
    %cst_140 = arith.constant dense<0.000000e+00> : vector<64x128xf32>
    %143 = tpu.matmul %139, %142, %cst_140 {dimension_numbers = #tpu.dot_dimension_numbers<[1], [0], [0], [1], [0, 0, 1, 1], [], []>} : vector<64x128xbf16>, vector<128x128xbf16>, vector<64x128xf32> -> vector<64x128xf32>
    %144 = arith.addf %140, %143 : vector<64x128xf32>
    %c0_141 = arith.constant 0 : index
    %c0_142 = arith.constant 0 : index
    %145 = vector.load %arg7[%c0_141, %c0_142] : memref<64x128xf32, #tpu.memory_space<vmem>>, vector<64x128xf32>
    tpu.vector_store %arg7[%c0_141, %c0_142], %144 {strides = array<i32>} : memref<64x128xf32, #tpu.memory_space<vmem>>, vector<64x128xf32>,
    %146 = vector.extract_strided_slice %87 {offsets = [2, 1, 0], sizes = [8, 8, 128], strides = [1, 1, 1]} : vector<10x10x128xbf16> to vector<8x8x128xbf16>
    %147 = vector.shape_cast %146 : vector<8x8x128xbf16> to vector<64x128xbf16>
    %c0_143 = arith.constant 0 : index
    %c0_144 = arith.constant 0 : index
    %148 = vector.load %arg7[%c0_143, %c0_144] : memref<64x128xf32, #tpu.memory_space<vmem>>, vector<64x128xf32>
    %c7_145 = arith.constant 7 : index
    %c0_146 = arith.constant 0 : index
    %c0_147 = arith.constant 0 : index
    %149 = vector.load %arg4[%c7_145, %c0_146, %c0_147] : memref<9x128x128xbf16, #tpu.memory_space<vmem>>, vector<1x128x128xbf16>
    %150 = vector.shape_cast %149 : vector<1x128x128xbf16> to vector<128x128xbf16>
    %cst_148 = arith.constant dense<0.000000e+00> : vector<64x128xf32>
    %151 = tpu.matmul %147, %150, %cst_148 {dimension_numbers = #tpu.dot_dimension_numbers<[1], [0], [0], [1], [0, 0, 1, 1], [], []>} : vector<64x128xbf16>, vector<128x128xbf16>, vector<64x128xf32> -> vector<64x128xf32>
    %152 = arith.addf %148, %151 : vector<64x128xf32>
    %c0_149 = arith.constant 0 : index
    %c0_150 = arith.constant 0 : index
    %153 = vector.load %arg7[%c0_149, %c0_150] : memref<64x128xf32, #tpu.memory_space<vmem>>, vector<64x128xf32>
    tpu.vector_store %arg7[%c0_149, %c0_150], %152 {strides = array<i32>} : memref<64x128xf32, #tpu.memory_space<vmem>>, vector<64x128xf32>,
    %154 = vector.extract_strided_slice %87 {offsets = [2, 2, 0], sizes = [8, 8, 128], strides = [1, 1, 1]} : vector<10x10x128xbf16> to vector<8x8x128xbf16>
    %155 = vector.shape_cast %154 : vector<8x8x128xbf16> to vector<64x128xbf16>
    %c0_151 = arith.constant 0 : index
    %c0_152 = arith.constant 0 : index
    %156 = vector.load %arg7[%c0_151, %c0_152] : memref<64x128xf32, #tpu.memory_space<vmem>>, vector<64x128xf32>
    %c8_153 = arith.constant 8 : index
    %c0_154 = arith.constant 0 : index
    %c0_155 = arith.constant 0 : index
    %157 = vector.load %arg4[%c8_153, %c0_154, %c0_155] : memref<9x128x128xbf16, #tpu.memory_space<vmem>>, vector<1x128x128xbf16>
    %158 = vector.shape_cast %157 : vector<1x128x128xbf16> to vector<128x128xbf16>
    %cst_156 = arith.constant dense<0.000000e+00> : vector<64x128xf32>
    %159 = tpu.matmul %155, %158, %cst_156 {dimension_numbers = #tpu.dot_dimension_numbers<[1], [0], [0], [1], [0, 0, 1, 1], [], []>} : vector<64x128xbf16>, vector<128x128xbf16>, vector<64x128xf32> -> vector<64x128xf32>
    %160 = arith.addf %156, %159 : vector<64x128xf32>
    %c0_157 = arith.constant 0 : index
    %c0_158 = arith.constant 0 : index
    %161 = vector.load %arg7[%c0_157, %c0_158] : memref<64x128xf32, #tpu.memory_space<vmem>>, vector<64x128xf32>
    tpu.vector_store %arg7[%c0_157, %c0_158], %160 {strides = array<i32>} : memref<64x128xf32, #tpu.memory_space<vmem>>, vector<64x128xf32>,
    %c0_159 = arith.constant 0 : index
    %c0_160 = arith.constant 0 : index
    %162 = vector.load %arg7[%c0_159, %c0_160] : memref<64x128xf32, #tpu.memory_space<vmem>>, vector<64x128xf32>
    %c0_161 = arith.constant 0 : index
    %c0_162 = arith.constant 0 : index
    %163 = vector.load %arg5[%c0_161, %c0_162] : memref<1x128xf32, #tpu.memory_space<vmem>>, vector<1x128xf32>
    %164 = vector.broadcast %163 : vector<1x128xf32> to vector<64x128xf32>
    %165 = arith.addf %162, %164 : vector<64x128xf32>
    %cst_163 = arith.constant 0.000000e+00 : f32
    %166 = vector.broadcast %cst_163 : f32 to vector<64x128xf32>
    %167 = arith.maximumf %165, %166 : vector<64x128xf32>
    %168 = vector.shape_cast %167 : vector<64x128xf32> to vector<4x2x8x128xf32>
    %cst_164 = arith.constant dense<0xFF800000> : vector<4x8x128xf32>
    %169 = vector.multi_reduction <maximumf>, %168, %cst_164 [1] : vector<4x2x8x128xf32> to vector<4x8x128xf32>
    %170 = vector.shape_cast %169 : vector<4x8x128xf32> to vector<4x4x2x128xf32>
    %cst_165 = arith.constant dense<0xFF800000> : vector<4x4x128xf32>
    %171 = vector.multi_reduction <maximumf>, %170, %cst_165 [2] : vector<4x4x2x128xf32> to vector<4x4x128xf32>
    %172 = vector.shape_cast %171 : vector<4x4x128xf32> to vector<1x4x4x128xf32>
    %173 = arith.truncf %172 : vector<1x4x4x128xf32> to vector<1x4x4x128xbf16>
    %c0_166 = arith.constant 0 : index
    %c0_167 = arith.constant 0 : index
    %c0_168 = arith.constant 0 : index
    %c0_169 = arith.constant 0 : index
    %174 = vector.load %arg6[%c0_166, %c0_167, %c0_168, %c0_169] : memref<1x4x4x128xbf16, #tpu.memory_space<vmem>>, vector<1x4x4x128xbf16>
    tpu.vector_store %arg6[%c0_166, %c0_167, %c0_168, %c0_169], %173 {strides = array<i32>} : memref<1x4x4x128xbf16, #tpu.memory_space<vmem>>, vector<1x4x4x128xbf16>,
    return
  }
  func.func @transform_0(%arg0: i32) -> (i32, i32, i32, i32) {
    %c0_i32 = arith.constant 0 : i32
    %c0_i32_0 = arith.constant 0 : i32
    %c0_i32_1 = arith.constant 0 : i32
    %c0_i32_2 = arith.constant 0 : i32
    return %arg0, %c0_i32, %c0_i32_0, %c0_i32_1 : i32, i32, i32, i32
  }
  func.func @transform_1(%arg0: i32) -> (i32, i32, i32) {
    %c0_i32 = arith.constant 0 : i32
    %c0_i32_0 = arith.constant 0 : i32
    %c0_i32_1 = arith.constant 0 : i32
    %c0_i32_2 = arith.constant 0 : i32
    return %c0_i32, %c0_i32_0, %c0_i32_1 : i32, i32, i32
  }
  func.func @transform_2(%arg0: i32) -> (i32, i32) {
    %c0_i32 = arith.constant 0 : i32
    %c0_i32_0 = arith.constant 0 : i32
    %c0_i32_1 = arith.constant 0 : i32
    return %c0_i32, %c0_i32_0 : i32, i32
  }
  func.func @transform_3(%arg0: i32) -> (i32, i32, i32) {
    %c0_i32 = arith.constant 0 : i32
    %c0_i32_0 = arith.constant 0 : i32
    %c0_i32_1 = arith.constant 0 : i32
    %c0_i32_2 = arith.constant 0 : i32
    return %c0_i32, %c0_i32_0, %c0_i32_1 : i32, i32, i32
  }
  func.func @transform_4(%arg0: i32) -> (i32, i32) {
    %c0_i32 = arith.constant 0 : i32
    %c0_i32_0 = arith.constant 0 : i32
    %c0_i32_1 = arith.constant 0 : i32
    return %c0_i32, %c0_i32_0 : i32, i32
  }
  func.func @transform_5(%arg0: i32) -> (i32, i32, i32, i32) {
    %c0_i32 = arith.constant 0 : i32
    %c0_i32_0 = arith.constant 0 : i32
    %c0_i32_1 = arith.constant 0 : i32
    %c0_i32_2 = arith.constant 0 : i32
    return %arg0, %c0_i32, %c0_i32_0, %c0_i32_1 : i32, i32, i32, i32
  }
}

</mosaic_0001>

<bundles_post_ra>
// kernel: heavynet_forward.5
= control target key start
LH: loop header
LB: loop body
LE: loop exit
PB: predicated region body
PF: predicated region fallthrough
CT: control target
= control target key end

     0   :  { %s7409_s1 = inlined_call_operand.vmem [shape: bf16[2048,512], index: 1, kind: input, shape index: {}]   ;;  %s7410_s0 = inlined_call_operand.vmem [shape: bf16[8,2048], index: 0, kind: input, shape index: {}]   ;;  %s7411_s3 = inlined_call_operand.vmem [shape: bf16[512,128], index: 3, kind: input, shape index: {}]   ;;  %s7412_s2 = inlined_call_operand.vmem [shape: f32[1,512], index: 2, kind: input, shape index: {}]   ;;  %s7413_s4 = inlined_call_operand.vmem [shape: f32[1,128], index: 4, kind: input, shape index: {}]   ;;  %s7414_s5 = inlined_call_operand.vmem [shape: f32[8,128], index: 5, kind: output, shape index: {}]  }
   0x1   :  { %v4856_v0 = vld [vmem:[%s7409_s1 + $0x4] ss:$16 sps:$4 sm:$0xff]   ;;  %v4858_v1 = vld [vmem:[%s7409_s1 + $0xc] ss:$16 sps:$4 sm:$0xff]   ;;  %v4860_v2 = vld [vmem:[%s7409_s1] ss:$16 sps:$4 sm:$0xff]  }
   0x2   :  { %3179 = vmatprep.subr.bf16.mxu0 %v4856_v0  ;;  %v4861_v3 = vld [vmem:[%s7409_s1 + $0x8] ss:$16 sps:$4 sm:$0xff]   ;;  %3507 = vmatprep.subr.bf16.mxu1 %v4858_v1  ;;  %v4862_v4 = vld [vmem:[%s7409_s1 + $0x24] ss:$16 sps:$4 sm:$0xff]   ;;  %v4864_v5 = vld [vmem:[%s7409_s1 + $0x2c] ss:$16 sps:$4 sm:$0xff]  }
   0x3   :  { %3180 = vmatpush1.bf16.msra.mxu0 %v4860_v2  ;;  %3508 = vmatpush1.bf16.msra.mxu1 %v4861_v3  ;;  %v4866_v6 = vld [vmem:[%s7409_s1 + $0x20] ss:$16 sps:$4 sm:$0xff]   ;;  %v4867_v7 = vld [vmem:[%s7409_s1 + $0x28] ss:$16 sps:$4 sm:$0xff]   ;;  %v4868_v8 = vld [vmem:[%s7409_s1 + $0x44] ss:$16 sps:$4 sm:$0xff]  }
   0x4   :  { %3181 = vmatprep.subr.bf16.mxu0 %v4862_v4  ;;  %3509 = vmatprep.subr.bf16.mxu1 %v4864_v5  ;;  %v4870_v9 = vld [vmem:[%s7409_s1 + $0x4c] ss:$16 sps:$4 sm:$0xff]   ;;  %v4872_v10 = vld [vmem:[%s7409_s1 + $0x40] ss:$16 sps:$4 sm:$0xff]   ;;  %v4873_v11 = vld [vmem:[%s7409_s1 + $0x48] ss:$16 sps:$4 sm:$0xff]  }
   0x5   :  { %v4874_v12 = vld [vmem:[%s7409_s1 + $0x64] ss:$16 sps:$4 sm:$0xff]   ;;  %v4876_v13 = vld [vmem:[%s7409_s1 + $0x6c] ss:$16 sps:$4 sm:$0xff]   ;;  %v4878_v14 = vld [vmem:[%s7409_s1 + $0x60] ss:$16 sps:$4 sm:$0xff]  }
   0x6   :  { %v4879_v15 = vld [vmem:[%s7409_s1 + $0x68] ss:$16 sps:$4 sm:$0xff]   ;;  %v4880_v16 = vld [vmem:[%s7409_s1 + $0x84] ss:$16 sps:$4 sm:$0xff]   ;;  %v4882_v17 = vld [vmem:[%s7409_s1 + $0x8c] ss:$16 sps:$4 sm:$0xff]  }
   0x7   :  { %3182 = vmatpush1.bf16.msra.mxu0 %v4866_v6  ;;  %3510 = vmatpush1.bf16.msra.mxu1 %v4867_v7  ;;  %v4884_v18 = vld [vmem:[%s7409_s1 + $0x80] ss:$16 sps:$4 sm:$0xff]   ;;  %v4885_v19 = vld [vmem:[%s7409_s1 + $0x88] ss:$16 sps:$4 sm:$0xff]   ;;  %v4886_v20 = vld [vmem:[%s7409_s1 + $0xa4] ss:$16 sps:$4 sm:$0xff]  }
   0x8   :  { %3183 = vmatprep.subr.bf16.mxu0 %v4868_v8  ;;  %3511 = vmatprep.subr.bf16.mxu1 %v4870_v9  ;;  %v4888_v21 = vld [vmem:[%s7409_s1 + $0xac] ss:$16 sps:$4 sm:$0xff]   ;;  %v4890_v22 = vld [vmem:[%s7409_s1 + $0xa0] ss:$16 sps:$4 sm:$0xff]   ;;  %v4891_v23 = vld [vmem:[%s7409_s1 + $0xa8] ss:$16 sps:$4 sm:$0xff]  }
   0x9   :  { %v4892_v24 = vld [vmem:[%s7409_s1 + $0xc4] ss:$16 sps:$4 sm:$0xff]   ;;  %v4894_v25 = vld [vmem:[%s7409_s1 + $0xcc] ss:$16 sps:$4 sm:$0xff]   ;;  %v4896_v26 = vld [vmem:[%s7409_s1 + $0xc0] ss:$16 sps:$4 sm:$0xff]  }
   0xa   :  { %v4897_v27 = vld [vmem:[%s7409_s1 + $0xc8] ss:$16 sps:$4 sm:$0xff]   ;;  %v4898_v28 = vld [vmem:[%s7409_s1 + $0xe4] ss:$16 sps:$4 sm:$0xff]   ;;  %v4900_v29 = vld [vmem:[%s7409_s1 + $0xec] ss:$16 sps:$4 sm:$0xff]  }
   0xb   :  { %3184 = vmatpush1.bf16.msra.mxu0 %v4872_v10  ;;  %3512 = vmatpush1.bf16.msra.mxu1 %v4873_v11  ;;  %v4902_v30 = vld [vmem:[%s7409_s1 + $0xe0] ss:$16 sps:$4 sm:$0xff]   ;;  %v4903_v31 = vld [vmem:[%s7409_s1 + $0xe8] ss:$16 sps:$4 sm:$0xff]   ;;  %v4904_v32 = vld [vmem:[%s7409_s1 + $0x104] ss:$16 sps:$4 sm:$0xff]  }
   0xc   :  { %3185 = vmatprep.subr.bf16.mxu0 %v4874_v12  ;;  %3513 = vmatprep.subr.bf16.mxu1 %v4876_v13  ;;  %v4906_v33 = vld [vmem:[%s7409_s1 + $0x10c] ss:$16 sps:$4 sm:$0xff]   ;;  %v4908_v34 = vld [vmem:[%s7409_s1 + $0x100] ss:$16 sps:$4 sm:$0xff]   ;;  %v4909_v35 = vld [vmem:[%s7409_s1 + $0x108] ss:$16 sps:$4 sm:$0xff]  }
   0xd   :  { %v4910_v36 = vld [vmem:[%s7409_s1 + $0x124] ss:$16 sps:$4 sm:$0xff]   ;;  %v4912_v37 = vld [vmem:[%s7409_s1 + $0x12c] ss:$16 sps:$4 sm:$0xff]   ;;  %v4914_v38 = vld [vmem:[%s7409_s1 + $0x120] ss:$16 sps:$4 sm:$0xff]  }
   0xe   :  { %v4915_v39 = vld [vmem:[%s7409_s1 + $0x128] ss:$16 sps:$4 sm:$0xff]   ;;  %v4916_v40 = vld [vmem:[%s7409_s1 + $0x144] ss:$16 sps:$4 sm:$0xff]   ;;  %v4918_v41 = vld [vmem:[%s7409_s1 + $0x14c] ss:$16 sps:$4 sm:$0xff]  }
   0xf   :  { %3186 = vmatpush1.bf16.msra.mxu0 %v4878_v14  ;;  %3514 = vmatpush1.bf16.msra.mxu1 %v4879_v15  ;;  %v4920_v42 = vld [vmem:[%s7409_s1 + $0x140] ss:$16 sps:$4 sm:$0xff]   ;;  %v4921_v43 = vld [vmem:[%s7409_s1 + $0x148] ss:$16 sps:$4 sm:$0xff]   ;;  %v4922_v44 = vld [vmem:[%s7409_s1 + $0x164] ss:$16 sps:$4 sm:$0xff]  }
  0x10   :  { %3187 = vmatprep.subr.bf16.mxu0 %v4880_v16  ;;  %3515 = vmatprep.subr.bf16.mxu1 %v4882_v17  ;;  %v4924_v45 = vld [vmem:[%s7409_s1 + $0x16c] ss:$16 sps:$4 sm:$0xff]   ;;  %v21_v46 = vld [vmem:[%s7410_s0] sm:$0xff]  ;;  %v4927_v49 = vld [vmem:[%s7409_s1 + $0x168] ss:$16 sps:$4 sm:$0xff]  }
  0x11   :  { %v4926_v47 = vld [vmem:[%s7409_s1 + $0x160] ss:$16 sps:$4 sm:$0xff]   ;;  %v4192_v48 = vcombine.high %v21_v46, %v21_v46  ;;  %v4928_v50 = vld [vmem:[%s7409_s1 + $0x184] ss:$16 sps:$4 sm:$0xff]   ;;  %v4930_v51 = vld [vmem:[%s7409_s1 + $0x18c] ss:$16 sps:$4 sm:$0xff]   ;;  %v4191_v4 = vcombine.low %v21_v46, %v21_v46 }
  0x12   :  { %v4932_v52 = vld [vmem:[%s7409_s1 + $0x180] ss:$16 sps:$4 sm:$0xff]   ;;  %v4933_v53 = vld [vmem:[%s7409_s1 + $0x188] ss:$16 sps:$4 sm:$0xff]   ;;  %v4934_v54 = vld [vmem:[%s7409_s1 + $0x1a4] ss:$16 sps:$4 sm:$0xff]  }
  0x13   :  { %3188 = vmatpush1.bf16.msra.mxu0 %v4884_v18  ;;  %3516 = vmatpush1.bf16.msra.mxu1 %v4885_v19  ;;  %v4936_v55 = vld [vmem:[%s7409_s1 + $0x1ac] ss:$16 sps:$4 sm:$0xff]   ;;  %v4938_v56 = vld [vmem:[%s7409_s1 + $0x1a0] ss:$16 sps:$4 sm:$0xff]   ;;  %v4939_v57 = vld [vmem:[%s7409_s1 + $0x1a8] ss:$16 sps:$4 sm:$0xff]  }
  0x14   :  { %3189 = vmatprep.subr.bf16.mxu0 %v4886_v20  ;;  %3517 = vmatprep.subr.bf16.mxu1 %v4888_v21  ;;  %v4940_v58 = vld [vmem:[%s7409_s1 + $0x1c4] ss:$16 sps:$4 sm:$0xff]   ;;  %v4942_v59 = vld [vmem:[%s7409_s1 + $0x1cc] ss:$16 sps:$4 sm:$0xff]   ;;  %v4944_v60 = vld [vmem:[%s7409_s1 + $0x1c0] ss:$16 sps:$4 sm:$0xff]  }
  0x15   :  { %3211 = vmatprep.mubr.bf16.mxu0 %v4192_v48  ;;  %3539 = vmatprep.mubr.bf16.mxu1 %v4192_v48  ;;  %v4945_v61 = vld [vmem:[%s7409_s1 + $0x1c8] ss:$16 sps:$4 sm:$0xff]   ;;  %v4946_v62 = vld [vmem:[%s7409_s1 + $0x1e4] ss:$16 sps:$4 sm:$0xff]   ;;  %v4948_v63 = vld [vmem:[%s7409_s1 + $0x1ec] ss:$16 sps:$4 sm:$0xff]  }
  0x16   :  { %v4950_v0 = vld [vmem:[%s7409_s1 + $0x1e0] ss:$16 sps:$4 sm:$0xff]   ;;  %v4951_v1 = vld [vmem:[%s7409_s1 + $0x1e8] ss:$16 sps:$4 sm:$0xff]   ;;  %v4956_v2 = vld [vmem:[%s7409_s1 + $0x204] ss:$16 sps:$4 sm:$0xff]  }
  0x17   :  { %3190 = vmatpush1.bf16.msra.mxu0 %v4890_v22  ;;  %3518 = vmatpush1.bf16.msra.mxu1 %v4891_v23  ;;  %v4959_v3 = vld [vmem:[%s7409_s1 + $0x20c] ss:$16 sps:$4 sm:$0xff]   ;;  %v4954_v5 = vld [vmem:[%s7409_s1 + $0x200] ss:$16 sps:$4 sm:$0xff]   ;;  %v4957_v6 = vld [vmem:[%s7409_s1 + $0x208] ss:$16 sps:$4 sm:$0xff]  }
  0x18   :  { %3191 = vmatprep.subr.bf16.mxu0 %v4892_v24  ;;  %3519 = vmatprep.subr.bf16.mxu1 %v4894_v25  ;;  %v4962_v7 = vld [vmem:[%s7409_s1 + $0x224] ss:$16 sps:$4 sm:$0xff]   ;;  %v4965_v8 = vld [vmem:[%s7409_s1 + $0x22c] ss:$16 sps:$4 sm:$0xff]   ;;  %v4960_v9 = vld [vmem:[%s7409_s1 + $0x220] ss:$16 sps:$4 sm:$0xff]  }
  0x19   :  { %v4963_v10 = vld [vmem:[%s7409_s1 + $0x228] ss:$16 sps:$4 sm:$0xff]   ;;  %v4968_v11 = vld [vmem:[%s7409_s1 + $0x244] ss:$16 sps:$4 sm:$0xff]   ;;  %v4971_v12 = vld [vmem:[%s7409_s1 + $0x24c] ss:$16 sps:$4 sm:$0xff]  }
  0x1a   :  { %v4966_v13 = vld [vmem:[%s7409_s1 + $0x240] ss:$16 sps:$4 sm:$0xff]   ;;  %v4969_v14 = vld [vmem:[%s7409_s1 + $0x248] ss:$16 sps:$4 sm:$0xff]   ;;  %v4974_v15 = vld [vmem:[%s7409_s1 + $0x264] ss:$16 sps:$4 sm:$0xff]  }
  0x1b   :  { %3192 = vmatpush1.bf16.msra.mxu0 %v4896_v26  ;;  %3520 = vmatpush1.bf16.msra.mxu1 %v4897_v27  ;;  %v4977_v16 = vld [vmem:[%s7409_s1 + $0x26c] ss:$16 sps:$4 sm:$0xff]   ;;  %v4972_v17 = vld [vmem:[%s7409_s1 + $0x260] ss:$16 sps:$4 sm:$0xff]   ;;  %v4975_v18 = vld [vmem:[%s7409_s1 + $0x268] ss:$16 sps:$4 sm:$0xff]  }
  0x1c   :  { %3193 = vmatprep.subr.bf16.mxu0 %v4898_v28  ;;  %3521 = vmatprep.subr.bf16.mxu1 %v4900_v29  ;;  %v4980_v19 = vld [vmem:[%s7409_s1 + $0x284] ss:$16 sps:$4 sm:$0xff]   ;;  %v4983_v20 = vld [vmem:[%s7409_s1 + $0x28c] ss:$16 sps:$4 sm:$0xff]   ;;  %v4978_v21 = vld [vmem:[%s7409_s1 + $0x280] ss:$16 sps:$4 sm:$0xff]  }
  0x1d   :  { %v4981_v22 = vld [vmem:[%s7409_s1 + $0x288] ss:$16 sps:$4 sm:$0xff]   ;;  %v4986_v23 = vld [vmem:[%s7409_s1 + $0x2a4] ss:$16 sps:$4 sm:$0xff]   ;;  %v4989_v24 = vld [vmem:[%s7409_s1 + $0x2ac] ss:$16 sps:$4 sm:$0xff]  }
  0x1e   :  { %v4984_v25 = vld [vmem:[%s7409_s1 + $0x2a0] ss:$16 sps:$4 sm:$0xff]   ;;  %v4987_v26 = vld [vmem:[%s7409_s1 + $0x2a8] ss:$16 sps:$4 sm:$0xff]   ;;  %v4992_v27 = vld [vmem:[%s7409_s1 + $0x2c4] ss:$16 sps:$4 sm:$0xff]  }
  0x1f   :  { %3194 = vmatpush1.bf16.msra.mxu0 %v4902_v30  ;;  %3522 = vmatpush1.bf16.msra.mxu1 %v4903_v31  ;;  %v4995_v28 = vld [vmem:[%s7409_s1 + $0x2cc] ss:$16 sps:$4 sm:$0xff]   ;;  %v4990_v31 = vld [vmem:[%s7409_s1 + $0x2c0] ss:$16 sps:$4 sm:$0xff]   ;;  %v5017_v48 = vld [vmem:[%s7409_s1 + $0x348] ss:$16 sps:$4 sm:$0xff]  }
  0x20   :  { %3195 = vmatprep.subr.bf16.mxu0 %v4904_v32  ;;  %3523 = vmatprep.subr.bf16.mxu1 %v4906_v33  ;;  %v5978_v29 = vld [vmem:[%s7410_s0 + $0x8] sm:$0xff]  ;;  %v4998_v33 = vld [vmem:[%s7409_s1 + $0x2e4] ss:$16 sps:$4 sm:$0xff]  }
  0x21   :  { %v4194_v30 = vcombine.high %v5978_v29, %v5978_v29  ;;  %v4993_v32 = vld [vmem:[%s7409_s1 + $0x2c8] ss:$16 sps:$4 sm:$0xff]   ;;  %v5019_v46 = vld [vmem:[%s7409_s1 + $0x34c] ss:$16 sps:$4 sm:$0xff]  }
  0x23   :  { %3196 = vmatpush1.bf16.msra.mxu0 %v4908_v34  ;;  %3524 = vmatpush1.bf16.msra.mxu1 %v4909_v35  ;;  %v5001_v34 = vld [vmem:[%s7409_s1 + $0x2ec] ss:$16 sps:$4 sm:$0xff]   ;;  %v4996_v35 = vld [vmem:[%s7409_s1 + $0x2e0] ss:$16 sps:$4 sm:$0xff]  }
  0x24   :  { %3197 = vmatprep.subr.bf16.mxu0 %v4910_v36  ;;  %3525 = vmatprep.subr.bf16.mxu1 %v4912_v37  ;;  %v4999_v36 = vld [vmem:[%s7409_s1 + $0x2e8] ss:$16 sps:$4 sm:$0xff]   ;;  %v5004_v37 = vld [vmem:[%s7409_s1 + $0x304] ss:$16 sps:$4 sm:$0xff]  }
  0x27   :  { %3198 = vmatpush1.bf16.msra.mxu0 %v4914_v38  ;;  %3526 = vmatpush1.bf16.msra.mxu1 %v4915_v39  ;;  %v5007_v38 = vld [vmem:[%s7409_s1 + $0x30c] ss:$16 sps:$4 sm:$0xff]   ;;  %v5002_v39 = vld [vmem:[%s7409_s1 + $0x300] ss:$16 sps:$4 sm:$0xff]  }
  0x28   :  { %3199 = vmatprep.subr.bf16.mxu0 %v4916_v40  ;;  %3527 = vmatprep.subr.bf16.mxu1 %v4918_v41  ;;  %v5005_v40 = vld [vmem:[%s7409_s1 + $0x308] ss:$16 sps:$4 sm:$0xff]   ;;  %v5010_v41 = vld [vmem:[%s7409_s1 + $0x324] ss:$16 sps:$4 sm:$0xff]  }
  0x2b   :  { %3200 = vmatpush1.bf16.msra.mxu0 %v4920_v42  ;;  %3528 = vmatpush1.bf16.msra.mxu1 %v4921_v43  ;;  %v5013_v42 = vld [vmem:[%s7409_s1 + $0x32c] ss:$16 sps:$4 sm:$0xff]   ;;  %v5008_v43 = vld [vmem:[%s7409_s1 + $0x320] ss:$16 sps:$4 sm:$0xff]  }
  0x2c   :  { %3201 = vmatprep.subr.bf16.mxu0 %v4922_v44  ;;  %3529 = vmatprep.subr.bf16.mxu1 %v4924_v45  ;;  %v5011_v44 = vld [vmem:[%s7409_s1 + $0x328] ss:$16 sps:$4 sm:$0xff]   ;;  %v5016_v45 = vld [vmem:[%s7409_s1 + $0x344] ss:$16 sps:$4 sm:$0xff]  }
  0x2f   :  { %3202 = vmatpush1.bf16.msra.mxu0 %v4926_v47  ;;  %3530 = vmatpush1.bf16.msra.mxu1 %v4927_v49  ;;  %v5014_v47 = vld [vmem:[%s7409_s1 + $0x340] ss:$16 sps:$4 sm:$0xff]   ;;  %v5022_v49 = vld [vmem:[%s7409_s1 + $0x364] ss:$16 sps:$4 sm:$0xff]  }
  0x30   :  { %3203 = vmatprep.subr.bf16.mxu0 %v4928_v50  ;;  %3531 = vmatprep.subr.bf16.mxu1 %v4930_v51  ;;  %v5025_v50 = vld [vmem:[%s7409_s1 + $0x36c] ss:$16 sps:$4 sm:$0xff]   ;;  %v5020_v51 = vld [vmem:[%s7409_s1 + $0x360] ss:$16 sps:$4 sm:$0xff]  }
  0x33   :  { %3204 = vmatpush1.bf16.msra.mxu0 %v4932_v52  ;;  %3532 = vmatpush1.bf16.msra.mxu1 %v4933_v53  ;;  %v5023_v52 = vld [vmem:[%s7409_s1 + $0x368] ss:$16 sps:$4 sm:$0xff]   ;;  %v5028_v53 = vld [vmem:[%s7409_s1 + $0x384] ss:$16 sps:$4 sm:$0xff]  }
  0x34   :  { %3205 = vmatprep.subr.bf16.mxu0 %v4934_v54  ;;  %3533 = vmatprep.subr.bf16.mxu1 %v4936_v55  ;;  %v5031_v54 = vld [vmem:[%s7409_s1 + $0x38c] ss:$16 sps:$4 sm:$0xff]   ;;  %v5026_v55 = vld [vmem:[%s7409_s1 + $0x380] ss:$16 sps:$4 sm:$0xff]  }
  0x37   :  { %3206 = vmatpush1.bf16.msra.mxu0 %v4938_v56  ;;  %3534 = vmatpush1.bf16.msra.mxu1 %v4939_v57  ;;  %v5029_v56 = vld [vmem:[%s7409_s1 + $0x388] ss:$16 sps:$4 sm:$0xff]   ;;  %v5034_v57 = vld [vmem:[%s7409_s1 + $0x3a4] ss:$16 sps:$4 sm:$0xff]  }
  0x38   :  { %3207 = vmatprep.subr.bf16.mxu0 %v4940_v58  ;;  %3535 = vmatprep.subr.bf16.mxu1 %v4942_v59  ;;  %v5037_v58 = vld [vmem:[%s7409_s1 + $0x3ac] ss:$16 sps:$4 sm:$0xff]   ;;  %v5032_v59 = vld [vmem:[%s7409_s1 + $0x3a0] ss:$16 sps:$4 sm:$0xff]  }
  0x3b   :  { %3208 = vmatpush1.bf16.msra.mxu0 %v4944_v60  ;;  %3536 = vmatpush1.bf16.msra.mxu1 %v4945_v61  ;;  %v5035_v60 = vld [vmem:[%s7409_s1 + $0x3a8] ss:$16 sps:$4 sm:$0xff]   ;;  %v5040_v61 = vld [vmem:[%s7409_s1 + $0x3c4] ss:$16 sps:$4 sm:$0xff]  }
  0x3c   :  { %3209 = vmatprep.subr.bf16.mxu0 %v4946_v62  ;;  %3537 = vmatprep.subr.bf16.mxu1 %v4948_v63  ;;  %v5043_v62 = vld [vmem:[%s7409_s1 + $0x3cc] ss:$16 sps:$4 sm:$0xff]   ;;  %v5038_v63 = vld [vmem:[%s7409_s1 + $0x3c0] ss:$16 sps:$4 sm:$0xff]  }
  0x3f   :  { %3210 = vmatpush1.bf16.msra.mxu0 %v4950_v0  ;;  %3538 = vmatpush1.bf16.msra.mxu1 %v4951_v1  ;;  %v5041_v0 = vld [vmem:[%s7409_s1 + $0x3c8] ss:$16 sps:$4 sm:$0xff]   ;;  %v5046_v1 = vld [vmem:[%s7409_s1 + $0x3e4] ss:$16 sps:$4 sm:$0xff]  }
  0x40   :  { %3220 = vmatprep.subr.bf16.mxu0 %v4956_v2  ;;  %3548 = vmatprep.subr.bf16.mxu1 %v4959_v3  ;;  %v5049_v2 = vld [vmem:[%s7409_s1 + $0x3ec] ss:$16 sps:$4 sm:$0xff]   ;;  %v5044_v3 = vld [vmem:[%s7409_s1 + $0x3e0] ss:$16 sps:$4 sm:$0xff]  }
  0x42   :  { %3212 = vmatmul.mubr.bf16.vlgmr.msra.gmra.mrb[0].mxu0 %v4191_v4  ;;  %3540 = vmatmul.mubr.bf16.vlgmr.msra.gmra.mrb[0].mxu1 %v4191_v4  ;;  %v5047_v4 = vld [vmem:[%s7409_s1 + $0x3e8] ss:$16 sps:$4 sm:$0xff]  }
  0x43   :  { %3221 = vmatpush1.bf16.msra.mxu0 %v4954_v5  ;;  %3549 = vmatpush1.bf16.msra.mxu1 %v4957_v6  ;;  %v5054_v5 = vld [vmem:[%s7409_s1 + $0x404] ss:$16 sps:$4 sm:$0xff]   ;;  %v5057_v6 = vld [vmem:[%s7409_s1 + $0x40c] ss:$16 sps:$4 sm:$0xff]  }
  0x44   :  { %3222 = vmatprep.subr.bf16.mxu0 %v4962_v7  ;;  %3550 = vmatprep.subr.bf16.mxu1 %v4965_v8  ;;  %v4193_v7 = vcombine.low %v5978_v29, %v5978_v29  ;;  %v5052_v8 = vld [vmem:[%s7409_s1 + $0x400] ss:$16 sps:$4 sm:$0xff]   ;;  %v5087_v29 = vld [vmem:[%s7409_s1 + $0x4ac] ss:$16 sps:$4 sm:$0xff]  }
  0x45   :  { %3252 = vmatprep.mubr.bf16.mxu0 %v4194_v30  ;;  %3580 = vmatprep.mubr.bf16.mxu1 %v4194_v30  ;;  %v5082_v30 = vld [vmem:[%s7409_s1 + $0x4a0] ss:$16 sps:$4 sm:$0xff]  }
  0x47   :  { %3223 = vmatpush1.bf16.msra.mxu0 %v4960_v9  ;;  %3551 = vmatpush1.bf16.msra.mxu1 %v4963_v10  ;;  %v5055_v9 = vld [vmem:[%s7409_s1 + $0x408] ss:$16 sps:$4 sm:$0xff]   ;;  %v5060_v10 = vld [vmem:[%s7409_s1 + $0x424] ss:$16 sps:$4 sm:$0xff]  }
  0x48   :  { %3224 = vmatprep.subr.bf16.mxu0 %v4968_v11  ;;  %3552 = vmatprep.subr.bf16.mxu1 %v4971_v12  ;;  %v6116_v11 = vld [vmem:[%s7410_s0 + $0x10] sm:$0xff]  ;;  %v5063_v12 = vld [vmem:[%s7409_s1 + $0x42c] ss:$16 sps:$4 sm:$0xff]  }
  0x4b   :  { %3225 = vmatpush1.bf16.msra.mxu0 %v4966_v13  ;;  %3553 = vmatpush1.bf16.msra.mxu1 %v4969_v14  ;;  %v4196_v13 = vcombine.high %v6116_v11, %v6116_v11  ;;  %v5058_v14 = vld [vmem:[%s7409_s1 + $0x420] ss:$16 sps:$4 sm:$0xff]  }
  0x4c   :  { %3226 = vmatprep.subr.bf16.mxu0 %v4974_v15  ;;  %3554 = vmatprep.subr.bf16.mxu1 %v4977_v16  ;;  %v5061_v15 = vld [vmem:[%s7409_s1 + $0x428] ss:$16 sps:$4 sm:$0xff]   ;;  %v5066_v16 = vld [vmem:[%s7409_s1 + $0x444] ss:$16 sps:$4 sm:$0xff]  }
  0x4f   :  { %3227 = vmatpush1.bf16.msra.mxu0 %v4972_v17  ;;  %3555 = vmatpush1.bf16.msra.mxu1 %v4975_v18  ;;  %v5069_v17 = vld [vmem:[%s7409_s1 + $0x44c] ss:$16 sps:$4 sm:$0xff]   ;;  %v5064_v18 = vld [vmem:[%s7409_s1 + $0x440] ss:$16 sps:$4 sm:$0xff]  }
  0x50   :  { %3228 = vmatprep.subr.bf16.mxu0 %v4980_v19  ;;  %3556 = vmatprep.subr.bf16.mxu1 %v4983_v20  ;;  %v5067_v19 = vld [vmem:[%s7409_s1 + $0x448] ss:$16 sps:$4 sm:$0xff]   ;;  %v5072_v20 = vld [vmem:[%s7409_s1 + $0x464] ss:$16 sps:$4 sm:$0xff]  }
  0x53   :  { %3229 = vmatpush1.bf16.msra.mxu0 %v4978_v21  ;;  %3557 = vmatpush1.bf16.msra.mxu1 %v4981_v22  ;;  %v5075_v21 = vld [vmem:[%s7409_s1 + $0x46c] ss:$16 sps:$4 sm:$0xff]   ;;  %v5070_v22 = vld [vmem:[%s7409_s1 + $0x460] ss:$16 sps:$4 sm:$0xff]  }
  0x54   :  { %3230 = vmatprep.subr.bf16.mxu0 %v4986_v23  ;;  %3558 = vmatprep.subr.bf16.mxu1 %v4989_v24  ;;  %v5073_v23 = vld [vmem:[%s7409_s1 + $0x468] ss:$16 sps:$4 sm:$0xff]   ;;  %v5078_v24 = vld [vmem:[%s7409_s1 + $0x484] ss:$16 sps:$4 sm:$0xff]  }
  0x57   :  { %3231 = vmatpush1.bf16.msra.mxu0 %v4984_v25  ;;  %3559 = vmatpush1.bf16.msra.mxu1 %v4987_v26  ;;  %v5081_v25 = vld [vmem:[%s7409_s1 + $0x48c] ss:$16 sps:$4 sm:$0xff]   ;;  %v5076_v26 = vld [vmem:[%s7409_s1 + $0x480] ss:$16 sps:$4 sm:$0xff]  }
  0x58   :  { %3232 = vmatprep.subr.bf16.mxu0 %v4992_v27  ;;  %3560 = vmatprep.subr.bf16.mxu1 %v4995_v28  ;;  %v5079_v27 = vld [vmem:[%s7409_s1 + $0x488] ss:$16 sps:$4 sm:$0xff]   ;;  %v5084_v28 = vld [vmem:[%s7409_s1 + $0x4a4] ss:$16 sps:$4 sm:$0xff]  }
  0x5b   :  { %3233 = vmatpush1.bf16.msra.mxu0 %v4990_v31  ;;  %3561 = vmatpush1.bf16.msra.mxu1 %v4993_v32  ;;  %v5085_v31 = vld [vmem:[%s7409_s1 + $0x4a8] ss:$16 sps:$4 sm:$0xff]   ;;  %v5090_v32 = vld [vmem:[%s7409_s1 + $0x4c4] ss:$16 sps:$4 sm:$0xff]  }
  0x5c   :  { %3234 = vmatprep.subr.bf16.mxu0 %v4998_v33  ;;  %3562 = vmatprep.subr.bf16.mxu1 %v5001_v34  ;;  %v5093_v33 = vld [vmem:[%s7409_s1 + $0x4cc] ss:$16 sps:$4 sm:$0xff]   ;;  %v5088_v34 = vld [vmem:[%s7409_s1 + $0x4c0] ss:$16 sps:$4 sm:$0xff]  }
  0x5f   :  { %3235 = vmatpush1.bf16.msra.mxu0 %v4996_v35  ;;  %3563 = vmatpush1.bf16.msra.mxu1 %v4999_v36  ;;  %v5091_v35 = vld [vmem:[%s7409_s1 + $0x4c8] ss:$16 sps:$4 sm:$0xff]   ;;  %v5096_v36 = vld [vmem:[%s7409_s1 + $0x4e4] ss:$16 sps:$4 sm:$0xff]  }
  0x60   :  { %3236 = vmatprep.subr.bf16.mxu0 %v5004_v37  ;;  %3564 = vmatprep.subr.bf16.mxu1 %v5007_v38  ;;  %v5099_v37 = vld [vmem:[%s7409_s1 + $0x4ec] ss:$16 sps:$4 sm:$0xff]   ;;  %v5094_v38 = vld [vmem:[%s7409_s1 + $0x4e0] ss:$16 sps:$4 sm:$0xff]  }
  0x63   :  { %3237 = vmatpush1.bf16.msra.mxu0 %v5002_v39  ;;  %3565 = vmatpush1.bf16.msra.mxu1 %v5005_v40  ;;  %v5097_v39 = vld [vmem:[%s7409_s1 + $0x4e8] ss:$16 sps:$4 sm:$0xff]   ;;  %v5102_v40 = vld [vmem:[%s7409_s1 + $0x504] ss:$16 sps:$4 sm:$0xff]  }
  0x64   :  { %3238 = vmatprep.subr.bf16.mxu0 %v5010_v41  ;;  %3566 = vmatprep.subr.bf16.mxu1 %v5013_v42  ;;  %v5105_v41 = vld [vmem:[%s7409_s1 + $0x50c] ss:$16 sps:$4 sm:$0xff]   ;;  %v5100_v42 = vld [vmem:[%s7409_s1 + $0x500] ss:$16 sps:$4 sm:$0xff]  }
  0x67   :  { %3239 = vmatpush1.bf16.msra.mxu0 %v5008_v43  ;;  %3567 = vmatpush1.bf16.msra.mxu1 %v5011_v44  ;;  %v5103_v43 = vld [vmem:[%s7409_s1 + $0x508] ss:$16 sps:$4 sm:$0xff]   ;;  %v5108_v44 = vld [vmem:[%s7409_s1 + $0x524] ss:$16 sps:$4 sm:$0xff]  }
  0x68   :  { %3240 = vmatprep.subr.bf16.mxu0 %v5016_v45  ;;  %3568 = vmatprep.subr.bf16.mxu1 %v5019_v46  ;;  %v5111_v45 = vld [vmem:[%s7409_s1 + $0x52c] ss:$16 sps:$4 sm:$0xff]   ;;  %v5106_v46 = vld [vmem:[%s7409_s1 + $0x520] ss:$16 sps:$4 sm:$0xff]  }
  0x6b   :  { %3241 = vmatpush1.bf16.msra.mxu0 %v5014_v47  ;;  %3569 = vmatpush1.bf16.msra.mxu1 %v5017_v48  ;;  %v5109_v47 = vld [vmem:[%s7409_s1 + $0x528] ss:$16 sps:$4 sm:$0xff]   ;;  %v5114_v48 = vld [vmem:[%s7409_s1 + $0x544] ss:$16 sps:$4 sm:$0xff]  }
  0x6c   :  { %3242 = vmatprep.subr.bf16.mxu0 %v5022_v49  ;;  %3570 = vmatprep.subr.bf16.mxu1 %v5025_v50  ;;  %v5117_v49 = vld [vmem:[%s7409_s1 + $0x54c] ss:$16 sps:$4 sm:$0xff]   ;;  %v5112_v50 = vld [vmem:[%s7409_s1 + $0x540] ss:$16 sps:$4 sm:$0xff]  }
  0x6f   :  { %3243 = vmatpush1.bf16.msra.mxu0 %v5020_v51  ;;  %3571 = vmatpush1.bf16.msra.mxu1 %v5023_v52  ;;  %v5115_v51 = vld [vmem:[%s7409_s1 + $0x548] ss:$16 sps:$4 sm:$0xff]   ;;  %v5120_v52 = vld [vmem:[%s7409_s1 + $0x564] ss:$16 sps:$4 sm:$0xff]  }
  0x70   :  { %3244 = vmatprep.subr.bf16.mxu0 %v5028_v53  ;;  %3572 = vmatprep.subr.bf16.mxu1 %v5031_v54  ;;  %v5123_v53 = vld [vmem:[%s7409_s1 + $0x56c] ss:$16 sps:$4 sm:$0xff]   ;;  %v5118_v54 = vld [vmem:[%s7409_s1 + $0x560] ss:$16 sps:$4 sm:$0xff]  }
  0x73   :  { %3245 = vmatpush1.bf16.msra.mxu0 %v5026_v55  ;;  %3573 = vmatpush1.bf16.msra.mxu1 %v5029_v56  ;;  %v5121_v55 = vld [vmem:[%s7409_s1 + $0x568] ss:$16 sps:$4 sm:$0xff]   ;;  %v5126_v56 = vld [vmem:[%s7409_s1 + $0x584] ss:$16 sps:$4 sm:$0xff]  }
  0x74   :  { %3246 = vmatprep.subr.bf16.mxu0 %v5034_v57  ;;  %3574 = vmatprep.subr.bf16.mxu1 %v5037_v58  ;;  %v5129_v57 = vld [vmem:[%s7409_s1 + $0x58c] ss:$16 sps:$4 sm:$0xff]   ;;  %v5124_v58 = vld [vmem:[%s7409_s1 + $0x580] ss:$16 sps:$4 sm:$0xff]  }
  0x77   :  { %3247 = vmatpush1.bf16.msra.mxu0 %v5032_v59  ;;  %3575 = vmatpush1.bf16.msra.mxu1 %v5035_v60  ;;  %v5127_v59 = vld [vmem:[%s7409_s1 + $0x588] ss:$16 sps:$4 sm:$0xff]   ;;  %v5132_v60 = vld [vmem:[%s7409_s1 + $0x5a4] ss:$16 sps:$4 sm:$0xff]  }
  0x78   :  { %3248 = vmatprep.subr.bf16.mxu0 %v5040_v61  ;;  %3576 = vmatprep.subr.bf16.mxu1 %v5043_v62  ;;  %v5135_v61 = vld [vmem:[%s7409_s1 + $0x5ac] ss:$16 sps:$4 sm:$0xff]   ;;  %v5130_v62 = vld [vmem:[%s7409_s1 + $0x5a0] ss:$16 sps:$4 sm:$0xff]  }
  0x7b   :  { %3249 = vmatpush1.bf16.msra.mxu0 %v5038_v63  ;;  %3577 = vmatpush1.bf16.msra.mxu1 %v5041_v0  ;;  %v5133_v63 = vld [vmem:[%s7409_s1 + $0x5a8] ss:$16 sps:$4 sm:$0xff]   ;;  %v5138_v0 = vld [vmem:[%s7409_s1 + $0x5c4] ss:$16 sps:$4 sm:$0xff]  }
  0x7c   :  { %3250 = vmatprep.subr.bf16.mxu0 %v5046_v1  ;;  %3578 = vmatprep.subr.bf16.mxu1 %v5049_v2  ;;  %v5141_v1 = vld [vmem:[%s7409_s1 + $0x5cc] ss:$16 sps:$4 sm:$0xff]   ;;  %v5136_v2 = vld [vmem:[%s7409_s1 + $0x5c0] ss:$16 sps:$4 sm:$0xff]  }
  0x7f   :  { %3251 = vmatpush1.bf16.msra.mxu0 %v5044_v3  ;;  %3579 = vmatpush1.bf16.msra.mxu1 %v5047_v4  ;;  %v5139_v3 = vld [vmem:[%s7409_s1 + $0x5c8] ss:$16 sps:$4 sm:$0xff]   ;;  %v5144_v4 = vld [vmem:[%s7409_s1 + $0x5e4] ss:$16 sps:$4 sm:$0xff]  }
  0x80   :  { %3261 = vmatprep.subr.bf16.mxu0 %v5054_v5  ;;  %3589 = vmatprep.subr.bf16.mxu1 %v5057_v6  ;;  %v5147_v5 = vld [vmem:[%s7409_s1 + $0x5ec] ss:$16 sps:$4 sm:$0xff]   ;;  %v5142_v6 = vld [vmem:[%s7409_s1 + $0x5e0] ss:$16 sps:$4 sm:$0xff]  }
  0x82   :  { %3253 = vmatmul.mubr.bf16.vlgmr.msra.gmra.mrb[0].mxu0 %v4193_v7  ;;  %3581 = vmatmul.mubr.bf16.vlgmr.msra.gmra.mrb[0].mxu1 %v4193_v7  ;;  %v5145_v7 = vld [vmem:[%s7409_s1 + $0x5e8] ss:$16 sps:$4 sm:$0xff]  }
  0x83   :  { %3262 = vmatpush1.bf16.msra.mxu0 %v5052_v8  ;;  %3590 = vmatpush1.bf16.msra.mxu1 %v5055_v9  ;;  %v5152_v8 = vld [vmem:[%s7409_s1 + $0x604] ss:$16 sps:$4 sm:$0xff]   ;;  %v5155_v9 = vld [vmem:[%s7409_s1 + $0x60c] ss:$16 sps:$4 sm:$0xff]  }
  0x84   :  { %3263 = vmatprep.subr.bf16.mxu0 %v5060_v10  ;;  %3591 = vmatprep.subr.bf16.mxu1 %v5063_v12  ;;  %v5150_v10 = vld [vmem:[%s7409_s1 + $0x600] ss:$16 sps:$4 sm:$0xff]   ;;  %v4195_v12 = vcombine.low %v6116_v11, %v6116_v11  ;;  %v5161_v11 = vld [vmem:[%s7409_s1 + $0x62c] ss:$16 sps:$4 sm:$0xff]  }
  0x85   :  { %3293 = vmatprep.mubr.bf16.mxu0 %v4196_v13  ;;  %3621 = vmatprep.mubr.bf16.mxu1 %v4196_v13  ;;  %v5153_v13 = vld [vmem:[%s7409_s1 + $0x608] ss:$16 sps:$4 sm:$0xff]  }
  0x87   :  { %3264 = vmatpush1.bf16.msra.mxu0 %v5058_v14  ;;  %3592 = vmatpush1.bf16.msra.mxu1 %v5061_v15  ;;  %v6314_v14 = vld [vmem:[%s7410_s0 + $0x18] sm:$0xff]  ;;  %v5158_v15 = vld [vmem:[%s7409_s1 + $0x624] ss:$16 sps:$4 sm:$0xff]  }
  0x88   :  { %3265 = vmatprep.subr.bf16.mxu0 %v5066_v16  ;;  %3593 = vmatprep.subr.bf16.mxu1 %v5069_v17  ;;  %v4198_v16 = vcombine.high %v6314_v14, %v6314_v14  ;;  %v5156_v17 = vld [vmem:[%s7409_s1 + $0x620] ss:$16 sps:$4 sm:$0xff]  }
  0x8b   :  { %3266 = vmatpush1.bf16.msra.mxu0 %v5064_v18  ;;  %3594 = vmatpush1.bf16.msra.mxu1 %v5067_v19  ;;  %v5159_v18 = vld [vmem:[%s7409_s1 + $0x628] ss:$16 sps:$4 sm:$0xff]   ;;  %v5164_v19 = vld [vmem:[%s7409_s1 + $0x644] ss:$16 sps:$4 sm:$0xff]  }
  0x8c   :  { %3267 = vmatprep.subr.bf16.mxu0 %v5072_v20  ;;  %3595 = vmatprep.subr.bf16.mxu1 %v5075_v21  ;;  %v5167_v20 = vld [vmem:[%s7409_s1 + $0x64c] ss:$16 sps:$4 sm:$0xff]   ;;  %v5162_v21 = vld [vmem:[%s7409_s1 + $0x640] ss:$16 sps:$4 sm:$0xff]  }
  0x8f   :  { %3268 = vmatpush1.bf16.msra.mxu0 %v5070_v22  ;;  %3596 = vmatpush1.bf16.msra.mxu1 %v5073_v23  ;;  %v5165_v22 = vld [vmem:[%s7409_s1 + $0x648] ss:$16 sps:$4 sm:$0xff]   ;;  %v5170_v23 = vld [vmem:[%s7409_s1 + $0x664] ss:$16 sps:$4 sm:$0xff]  }
  0x90   :  { %3269 = vmatprep.subr.bf16.mxu0 %v5078_v24  ;;  %3597 = vmatprep.subr.bf16.mxu1 %v5081_v25  ;;  %v5173_v24 = vld [vmem:[%s7409_s1 + $0x66c] ss:$16 sps:$4 sm:$0xff]   ;;  %v5168_v25 = vld [vmem:[%s7409_s1 + $0x660] ss:$16 sps:$4 sm:$0xff]  }
  0x93   :  { %3270 = vmatpush1.bf16.msra.mxu0 %v5076_v26  ;;  %3598 = vmatpush1.bf16.msra.mxu1 %v5079_v27  ;;  %v5171_v26 = vld [vmem:[%s7409_s1 + $0x668] ss:$16 sps:$4 sm:$0xff]   ;;  %v5176_v27 = vld [vmem:[%s7409_s1 + $0x684] ss:$16 sps:$4 sm:$0xff]  }
  0x94   :  { %3271 = vmatprep.subr.bf16.mxu0 %v5084_v28  ;;  %3599 = vmatprep.subr.bf16.mxu1 %v5087_v29  ;;  %v5179_v28 = vld [vmem:[%s7409_s1 + $0x68c] ss:$16 sps:$4 sm:$0xff]   ;;  %v5174_v29 = vld [vmem:[%s7409_s1 + $0x680] ss:$16 sps:$4 sm:$0xff]  }
  0x97   :  { %3272 = vmatpush1.bf16.msra.mxu0 %v5082_v30  ;;  %3600 = vmatpush1.bf16.msra.mxu1 %v5085_v31  ;;  %v5177_v30 = vld [vmem:[%s7409_s1 + $0x688] ss:$16 sps:$4 sm:$0xff]   ;;  %v5182_v31 = vld [vmem:[%s7409_s1 + $0x6a4] ss:$16 sps:$4 sm:$0xff]  }
  0x98   :  { %3273 = vmatprep.subr.bf16.mxu0 %v5090_v32  ;;  %3601 = vmatprep.subr.bf16.mxu1 %v5093_v33  ;;  %v5185_v32 = vld [vmem:[%s7409_s1 + $0x6ac] ss:$16 sps:$4 sm:$0xff]   ;;  %v5180_v33 = vld [vmem:[%s7409_s1 + $0x6a0] ss:$16 sps:$4 sm:$0xff]  }
  0x9b   :  { %3274 = vmatpush1.bf16.msra.mxu0 %v5088_v34  ;;  %3602 = vmatpush1.bf16.msra.mxu1 %v5091_v35  ;;  %v5183_v34 = vld [vmem:[%s7409_s1 + $0x6a8] ss:$16 sps:$4 sm:$0xff]   ;;  %v5188_v35 = vld [vmem:[%s7409_s1 + $0x6c4] ss:$16 sps:$4 sm:$0xff]  }
  0x9c   :  { %3275 = vmatprep.subr.bf16.mxu0 %v5096_v36  ;;  %3603 = vmatprep.subr.bf16.mxu1 %v5099_v37  ;;  %v5191_v36 = vld [vmem:[%s7409_s1 + $0x6cc] ss:$16 sps:$4 sm:$0xff]   ;;  %v5186_v37 = vld [vmem:[%s7409_s1 + $0x6c0] ss:$16 sps:$4 sm:$0xff]  }
  0x9f   :  { %3276 = vmatpush1.bf16.msra.mxu0 %v5094_v38  ;;  %3604 = vmatpush1.bf16.msra.mxu1 %v5097_v39  ;;  %v5189_v38 = vld [vmem:[%s7409_s1 + $0x6c8] ss:$16 sps:$4 sm:$0xff]   ;;  %v5194_v39 = vld [vmem:[%s7409_s1 + $0x6e4] ss:$16 sps:$4 sm:$0xff]  }
  0xa0   :  { %3277 = vmatprep.subr.bf16.mxu0 %v5102_v40  ;;  %3605 = vmatprep.subr.bf16.mxu1 %v5105_v41  ;;  %v5197_v40 = vld [vmem:[%s7409_s1 + $0x6ec] ss:$16 sps:$4 sm:$0xff]   ;;  %v5192_v41 = vld [vmem:[%s7409_s1 + $0x6e0] ss:$16 sps:$4 sm:$0xff]  }
  0xa3   :  { %3278 = vmatpush1.bf16.msra.mxu0 %v5100_v42  ;;  %3606 = vmatpush1.bf16.msra.mxu1 %v5103_v43  ;;  %v5195_v42 = vld [vmem:[%s7409_s1 + $0x6e8] ss:$16 sps:$4 sm:$0xff]   ;;  %v5200_v43 = vld [vmem:[%s7409_s1 + $0x704] ss:$16 sps:$4 sm:$0xff]  }
  0xa4   :  { %3279 = vmatprep.subr.bf16.mxu0 %v5108_v44  ;;  %3607 = vmatprep.subr.bf16.mxu1 %v5111_v45  ;;  %v5203_v44 = vld [vmem:[%s7409_s1 + $0x70c] ss:$16 sps:$4 sm:$0xff]   ;;  %v5198_v45 = vld [vmem:[%s7409_s1 + $0x700] ss:$16 sps:$4 sm:$0xff]  }
  0xa7   :  { %3280 = vmatpush1.bf16.msra.mxu0 %v5106_v46  ;;  %3608 = vmatpush1.bf16.msra.mxu1 %v5109_v47  ;;  %v5201_v46 = vld [vmem:[%s7409_s1 + $0x708] ss:$16 sps:$4 sm:$0xff]   ;;  %v5206_v47 = vld [vmem:[%s7409_s1 + $0x724] ss:$16 sps:$4 sm:$0xff]  }
  0xa8   :  { %3281 = vmatprep.subr.bf16.mxu0 %v5114_v48  ;;  %3609 = vmatprep.subr.bf16.mxu1 %v5117_v49  ;;  %v5209_v48 = vld [vmem:[%s7409_s1 + $0x72c] ss:$16 sps:$4 sm:$0xff]   ;;  %v5204_v49 = vld [vmem:[%s7409_s1 + $0x720] ss:$16 sps:$4 sm:$0xff]  }
  0xab   :  { %3282 = vmatpush1.bf16.msra.mxu0 %v5112_v50  ;;  %3610 = vmatpush1.bf16.msra.mxu1 %v5115_v51  ;;  %v5207_v50 = vld [vmem:[%s7409_s1 + $0x728] ss:$16 sps:$4 sm:$0xff]   ;;  %v5212_v51 = vld [vmem:[%s7409_s1 + $0x744] ss:$16 sps:$4 sm:$0xff]  }
  0xac   :  { %3283 = vmatprep.subr.bf16.mxu0 %v5120_v52  ;;  %3611 = vmatprep.subr.bf16.mxu1 %v5123_v53  ;;  %v5215_v52 = vld [vmem:[%s7409_s1 + $0x74c] ss:$16 sps:$4 sm:$0xff]   ;;  %v5210_v53 = vld [vmem:[%s7409_s1 + $0x740] ss:$16 sps:$4 sm:$0xff]  }
  0xaf   :  { %3284 = vmatpush1.bf16.msra.mxu0 %v5118_v54  ;;  %3612 = vmatpush1.bf16.msra.mxu1 %v5121_v55  ;;  %v5213_v54 = vld [vmem:[%s7409_s1 + $0x748] ss:$16 sps:$4 sm:$0xff]   ;;  %v5218_v55 = vld [vmem:[%s7409_s1 + $0x764] ss:$16 sps:$4 sm:$0xff]  }
  0xb0   :  { %3285 = vmatprep.subr.bf16.mxu0 %v5126_v56  ;;  %3613 = vmatprep.subr.bf16.mxu1 %v5129_v57  ;;  %v5221_v56 = vld [vmem:[%s7409_s1 + $0x76c] ss:$16 sps:$4 sm:$0xff]   ;;  %v5216_v57 = vld [vmem:[%s7409_s1 + $0x760] ss:$16 sps:$4 sm:$0xff]  }
  0xb3   :  { %3286 = vmatpush1.bf16.msra.mxu0 %v5124_v58  ;;  %3614 = vmatpush1.bf16.msra.mxu1 %v5127_v59  ;;  %v5219_v58 = vld [vmem:[%s7409_s1 + $0x768] ss:$16 sps:$4 sm:$0xff]   ;;  %v5224_v59 = vld [vmem:[%s7409_s1 + $0x784] ss:$16 sps:$4 sm:$0xff]  }
  0xb4   :  { %3287 = vmatprep.subr.bf16.mxu0 %v5132_v60  ;;  %3615 = vmatprep.subr.bf16.mxu1 %v5135_v61  ;;  %v5227_v60 = vld [vmem:[%s7409_s1 + $0x78c] ss:$16 sps:$4 sm:$0xff]   ;;  %v5222_v61 = vld [vmem:[%s7409_s1 + $0x780] ss:$16 sps:$4 sm:$0xff]  }
  0xb7   :  { %3288 = vmatpush1.bf16.msra.mxu0 %v5130_v62  ;;  %3616 = vmatpush1.bf16.msra.mxu1 %v5133_v63  ;;  %v5225_v62 = vld [vmem:[%s7409_s1 + $0x788] ss:$16 sps:$4 sm:$0xff]   ;;  %v5230_v63 = vld [vmem:[%s7409_s1 + $0x7a4] ss:$16 sps:$4 sm:$0xff]  }
  0xb8   :  { %3289 = vmatprep.subr.bf16.mxu0 %v5138_v0  ;;  %3617 = vmatprep.subr.bf16.mxu1 %v5141_v1  ;;  %v5233_v0 = vld [vmem:[%s7409_s1 + $0x7ac] ss:$16 sps:$4 sm:$0xff]   ;;  %v5228_v1 = vld [vmem:[%s7409_s1 + $0x7a0] ss:$16 sps:$4 sm:$0xff]  }
  0xbb   :  { %3290 = vmatpush1.bf16.msra.mxu0 %v5136_v2  ;;  %3618 = vmatpush1.bf16.msra.mxu1 %v5139_v3  ;;  %v5231_v2 = vld [vmem:[%s7409_s1 + $0x7a8] ss:$16 sps:$4 sm:$0xff]   ;;  %v5236_v3 = vld [vmem:[%s7409_s1 + $0x7c4] ss:$16 sps:$4 sm:$0xff]  }
  0xbc   :  { %3291 = vmatprep.subr.bf16.mxu0 %v5144_v4  ;;  %3619 = vmatprep.subr.bf16.mxu1 %v5147_v5  ;;  %v5239_v4 = vld [vmem:[%s7409_s1 + $0x7cc] ss:$16 sps:$4 sm:$0xff]   ;;  %v5234_v5 = vld [vmem:[%s7409_s1 + $0x7c0] ss:$16 sps:$4 sm:$0xff]  }
  0xbf   :  { %3292 = vmatpush1.bf16.msra.mxu0 %v5142_v6  ;;  %3620 = vmatpush1.bf16.msra.mxu1 %v5145_v7  ;;  %v5237_v6 = vld [vmem:[%s7409_s1 + $0x7c8] ss:$16 sps:$4 sm:$0xff]   ;;  %v5242_v7 = vld [vmem:[%s7409_s1 + $0x7e4] ss:$16 sps:$4 sm:$0xff]  }
  0xc0   :  { %3302 = vmatprep.subr.bf16.mxu0 %v5152_v8  ;;  %3630 = vmatprep.subr.bf16.mxu1 %v5155_v9  ;;  %v5245_v8 = vld [vmem:[%s7409_s1 + $0x7ec] ss:$16 sps:$4 sm:$0xff]   ;;  %v5240_v9 = vld [vmem:[%s7409_s1 + $0x7e0] ss:$16 sps:$4 sm:$0xff]  }
  0xc2   :  { %3294 = vmatmul.mubr.bf16.vlgmr.msra.gmra.mrb[0].mxu0 %v4195_v12  ;;  %3622 = vmatmul.mubr.bf16.vlgmr.msra.gmra.mrb[0].mxu1 %v4195_v12  ;;  %v5250_v12 = vld [vmem:[%s7409_s1 + $0x804] ss:$16 sps:$4 sm:$0xff]  }
  0xc3   :  { %3303 = vmatpush1.bf16.msra.mxu0 %v5150_v10  ;;  %3631 = vmatpush1.bf16.msra.mxu1 %v5153_v13  ;;  %v5243_v10 = vld [vmem:[%s7409_s1 + $0x7e8] ss:$16 sps:$4 sm:$0xff]   ;;  %v5253_v13 = vld [vmem:[%s7409_s1 + $0x80c] ss:$16 sps:$4 sm:$0xff]  }
  0xc4   :  { %3304 = vmatprep.subr.bf16.mxu0 %v5158_v15  ;;  %3632 = vmatprep.subr.bf16.mxu1 %v5161_v11  ;;  %v5248_v15 = vld [vmem:[%s7409_s1 + $0x800] ss:$16 sps:$4 sm:$0xff]   ;;  %v4197_v11 = vcombine.low %v6314_v14, %v6314_v14  ;;  %v5259_v14 = vld [vmem:[%s7409_s1 + $0x82c] ss:$16 sps:$4 sm:$0xff]  }
  0xc5   :  { %3334 = vmatprep.mubr.bf16.mxu0 %v4198_v16  ;;  %3662 = vmatprep.mubr.bf16.mxu1 %v4198_v16  ;;  %v6512_v16 = vld [vmem:[%s7410_s0 + $0x20] sm:$0xff] }
  0xc7   :  { %3305 = vmatpush1.bf16.msra.mxu0 %v5156_v17  ;;  %3633 = vmatpush1.bf16.msra.mxu1 %v5159_v18  ;;  %v5251_v17 = vld [vmem:[%s7409_s1 + $0x808] ss:$16 sps:$4 sm:$0xff]   ;;  %v5256_v18 = vld [vmem:[%s7409_s1 + $0x824] ss:$16 sps:$4 sm:$0xff]  }
  0xc8   :  { %3306 = vmatprep.subr.bf16.mxu0 %v5164_v19  ;;  %3634 = vmatprep.subr.bf16.mxu1 %v5167_v20  ;;  %v4200_v19 = vcombine.high %v6512_v16, %v6512_v16  ;;  %v5254_v20 = vld [vmem:[%s7409_s1 + $0x820] ss:$16 sps:$4 sm:$0xff]  }
  0xcb   :  { %3307 = vmatpush1.bf16.msra.mxu0 %v5162_v21  ;;  %3635 = vmatpush1.bf16.msra.mxu1 %v5165_v22  ;;  %v5257_v21 = vld [vmem:[%s7409_s1 + $0x828] ss:$16 sps:$4 sm:$0xff]   ;;  %v5262_v22 = vld [vmem:[%s7409_s1 + $0x844] ss:$16 sps:$4 sm:$0xff]  }
  0xcc   :  { %3308 = vmatprep.subr.bf16.mxu0 %v5170_v23  ;;  %3636 = vmatprep.subr.bf16.mxu1 %v5173_v24  ;;  %v5265_v23 = vld [vmem:[%s7409_s1 + $0x84c] ss:$16 sps:$4 sm:$0xff]   ;;  %v5260_v24 = vld [vmem:[%s7409_s1 + $0x840] ss:$16 sps:$4 sm:$0xff]  }
  0xcf   :  { %3309 = vmatpush1.bf16.msra.mxu0 %v5168_v25  ;;  %3637 = vmatpush1.bf16.msra.mxu1 %v5171_v26  ;;  %v5263_v25 = vld [vmem:[%s7409_s1 + $0x848] ss:$16 sps:$4 sm:$0xff]   ;;  %v5268_v26 = vld [vmem:[%s7409_s1 + $0x864] ss:$16 sps:$4 sm:$0xff]  }
  0xd0   :  { %3310 = vmatprep.subr.bf16.mxu0 %v5176_v27  ;;  %3638 = vmatprep.subr.bf16.mxu1 %v5179_v28  ;;  %v5271_v27 = vld [vmem:[%s7409_s1 + $0x86c] ss:$16 sps:$4 sm:$0xff]   ;;  %v5266_v28 = vld [vmem:[%s7409_s1 + $0x860] ss:$16 sps:$4 sm:$0xff]  }
  0xd3   :  { %3311 = vmatpush1.bf16.msra.mxu0 %v5174_v29  ;;  %3639 = vmatpush1.bf16.msra.mxu1 %v5177_v30  ;;  %v5269_v29 = vld [vmem:[%s7409_s1 + $0x868] ss:$16 sps:$4 sm:$0xff]   ;;  %v5274_v30 = vld [vmem:[%s7409_s1 + $0x884] ss:$16 sps:$4 sm:$0xff]  }
  0xd4   :  { %3312 = vmatprep.subr.bf16.mxu0 %v5182_v31  ;;  %3640 = vmatprep.subr.bf16.mxu1 %v5185_v32  ;;  %v5277_v31 = vld [vmem:[%s7409_s1 + $0x88c] ss:$16 sps:$4 sm:$0xff]   ;;  %v5272_v32 = vld [vmem:[%s7409_s1 + $0x880] ss:$16 sps:$4 sm:$0xff]  }
  0xd7   :  { %3313 = vmatpush1.bf16.msra.mxu0 %v5180_v33  ;;  %3641 = vmatpush1.bf16.msra.mxu1 %v5183_v34  ;;  %v5275_v33 = vld [vmem:[%s7409_s1 + $0x888] ss:$16 sps:$4 sm:$0xff]   ;;  %v5280_v34 = vld [vmem:[%s7409_s1 + $0x8a4] ss:$16 sps:$4 sm:$0xff]  }
  0xd8   :  { %3314 = vmatprep.subr.bf16.mxu0 %v5188_v35  ;;  %3642 = vmatprep.subr.bf16.mxu1 %v5191_v36  ;;  %v5283_v35 = vld [vmem:[%s7409_s1 + $0x8ac] ss:$16 sps:$4 sm:$0xff]   ;;  %v5278_v36 = vld [vmem:[%s7409_s1 + $0x8a0] ss:$16 sps:$4 sm:$0xff]  }
  0xdb   :  { %3315 = vmatpush1.bf16.msra.mxu0 %v5186_v37  ;;  %3643 = vmatpush1.bf16.msra.mxu1 %v5189_v38  ;;  %v5281_v37 = vld [vmem:[%s7409_s1 + $0x8a8] ss:$16 sps:$4 sm:$0xff]   ;;  %v5286_v38 = vld [vmem:[%s7409_s1 + $0x8c4] ss:$16 sps:$4 sm:$0xff]  }
  0xdc   :  { %3316 = vmatprep.subr.bf16.mxu0 %v5194_v39  ;;  %3644 = vmatprep.subr.bf16.mxu1 %v5197_v40  ;;  %v5289_v39 = vld [vmem:[%s7409_s1 + $0x8cc] ss:$16 sps:$4 sm:$0xff]   ;;  %v5284_v40 = vld [vmem:[%s7409_s1 + $0x8c0] ss:$16 sps:$4 sm:$0xff]  }
  0xdf   :  { %3317 = vmatpush1.bf16.msra.mxu0 %v5192_v41  ;;  %3645 = vmatpush1.bf16.msra.mxu1 %v5195_v42  ;;  %v5287_v41 = vld [vmem:[%s7409_s1 + $0x8c8] ss:$16 sps:$4 sm:$0xff]   ;;  %v5292_v42 = vld [vmem:[%s7409_s1 + $0x8e4] ss:$16 sps:$4 sm:$0xff]  }
  0xe0   :  { %3318 = vmatprep.subr.bf16.mxu0 %v5200_v43  ;;  %3646 = vmatprep.subr.bf16.mxu1 %v5203_v44  ;;  %v5295_v43 = vld [vmem:[%s7409_s1 + $0x8ec] ss:$16 sps:$4 sm:$0xff]   ;;  %v5290_v44 = vld [vmem:[%s7409_s1 + $0x8e0] ss:$16 sps:$4 sm:$0xff]  }
  0xe3   :  { %3319 = vmatpush1.bf16.msra.mxu0 %v5198_v45  ;;  %3647 = vmatpush1.bf16.msra.mxu1 %v5201_v46  ;;  %v5293_v45 = vld [vmem:[%s7409_s1 + $0x8e8] ss:$16 sps:$4 sm:$0xff]   ;;  %v5298_v46 = vld [vmem:[%s7409_s1 + $0x904] ss:$16 sps:$4 sm:$0xff]  }
  0xe4   :  { %3320 = vmatprep.subr.bf16.mxu0 %v5206_v47  ;;  %3648 = vmatprep.subr.bf16.mxu1 %v5209_v48  ;;  %v5301_v47 = vld [vmem:[%s7409_s1 + $0x90c] ss:$16 sps:$4 sm:$0xff]   ;;  %v5296_v48 = vld [vmem:[%s7409_s1 + $0x900] ss:$16 sps:$4 sm:$0xff]  }
  0xe7   :  { %3321 = vmatpush1.bf16.msra.mxu0 %v5204_v49  ;;  %3649 = vmatpush1.bf16.msra.mxu1 %v5207_v50  ;;  %v5299_v49 = vld [vmem:[%s7409_s1 + $0x908] ss:$16 sps:$4 sm:$0xff]   ;;  %v5304_v50 = vld [vmem:[%s7409_s1 + $0x924] ss:$16 sps:$4 sm:$0xff]  }
  0xe8   :  { %3322 = vmatprep.subr.bf16.mxu0 %v5212_v51  ;;  %3650 = vmatprep.subr.bf16.mxu1 %v5215_v52  ;;  %v5307_v51 = vld [vmem:[%s7409_s1 + $0x92c] ss:$16 sps:$4 sm:$0xff]   ;;  %v5302_v52 = vld [vmem:[%s7409_s1 + $0x920] ss:$16 sps:$4 sm:$0xff]  }
  0xeb   :  { %3323 = vmatpush1.bf16.msra.mxu0 %v5210_v53  ;;  %3651 = vmatpush1.bf16.msra.mxu1 %v5213_v54  ;;  %v5305_v53 = vld [vmem:[%s7409_s1 + $0x928] ss:$16 sps:$4 sm:$0xff]   ;;  %v5310_v54 = vld [vmem:[%s7409_s1 + $0x944] ss:$16 sps:$4 sm:$0xff]  }
  0xec   :  { %3324 = vmatprep.subr.bf16.mxu0 %v5218_v55  ;;  %3652 = vmatprep.subr.bf16.mxu1 %v5221_v56  ;;  %v5313_v55 = vld [vmem:[%s7409_s1 + $0x94c] ss:$16 sps:$4 sm:$0xff]   ;;  %v5308_v56 = vld [vmem:[%s7409_s1 + $0x940] ss:$16 sps:$4 sm:$0xff]  }
  0xef   :  { %3325 = vmatpush1.bf16.msra.mxu0 %v5216_v57  ;;  %3653 = vmatpush1.bf16.msra.mxu1 %v5219_v58  ;;  %v5311_v57 = vld [vmem:[%s7409_s1 + $0x948] ss:$16 sps:$4 sm:$0xff]   ;;  %v5316_v58 = vld [vmem:[%s7409_s1 + $0x964] ss:$16 sps:$4 sm:$0xff]  }
  0xf0   :  { %3326 = vmatprep.subr.bf16.mxu0 %v5224_v59  ;;  %3654 = vmatprep.subr.bf16.mxu1 %v5227_v60  ;;  %v5319_v59 = vld [vmem:[%s7409_s1 + $0x96c] ss:$16 sps:$4 sm:$0xff]   ;;  %v5314_v60 = vld [vmem:[%s7409_s1 + $0x960] ss:$16 sps:$4 sm:$0xff]  }
  0xf3   :  { %3327 = vmatpush1.bf16.msra.mxu0 %v5222_v61  ;;  %3655 = vmatpush1.bf16.msra.mxu1 %v5225_v62  ;;  %v5317_v61 = vld [vmem:[%s7409_s1 + $0x968] ss:$16 sps:$4 sm:$0xff]   ;;  %v5322_v62 = vld [vmem:[%s7409_s1 + $0x984] ss:$16 sps:$4 sm:$0xff]  }
  0xf4   :  { %3328 = vmatprep.subr.bf16.mxu0 %v5230_v63  ;;  %3656 = vmatprep.subr.bf16.mxu1 %v5233_v0  ;;  %v5325_v63 = vld [vmem:[%s7409_s1 + $0x98c] ss:$16 sps:$4 sm:$0xff]   ;;  %v5320_v0 = vld [vmem:[%s7409_s1 + $0x980] ss:$16 sps:$4 sm:$0xff]  }
  0xf7   :  { %3329 = vmatpush1.bf16.msra.mxu0 %v5228_v1  ;;  %3657 = vmatpush1.bf16.msra.mxu1 %v5231_v2  ;;  %v5323_v1 = vld [vmem:[%s7409_s1 + $0x988] ss:$16 sps:$4 sm:$0xff]   ;;  %v5328_v2 = vld [vmem:[%s7409_s1 + $0x9a4] ss:$16 sps:$4 sm:$0xff]  }
  0xf8   :  { %3330 = vmatprep.subr.bf16.mxu0 %v5236_v3  ;;  %3658 = vmatprep.subr.bf16.mxu1 %v5239_v4  ;;  %v5331_v3 = vld [vmem:[%s7409_s1 + $0x9ac] ss:$16 sps:$4 sm:$0xff]   ;;  %v5326_v4 = vld [vmem:[%s7409_s1 + $0x9a0] ss:$16 sps:$4 sm:$0xff]  }
  0xfb   :  { %3331 = vmatpush1.bf16.msra.mxu0 %v5234_v5  ;;  %3659 = vmatpush1.bf16.msra.mxu1 %v5237_v6  ;;  %v5329_v5 = vld [vmem:[%s7409_s1 + $0x9a8] ss:$16 sps:$4 sm:$0xff]   ;;  %v5334_v6 = vld [vmem:[%s7409_s1 + $0x9c4] ss:$16 sps:$4 sm:$0xff]  }
  0xfc   :  { %3332 = vmatprep.subr.bf16.mxu0 %v5242_v7  ;;  %3660 = vmatprep.subr.bf16.mxu1 %v5245_v8  ;;  %v5337_v7 = vld [vmem:[%s7409_s1 + $0x9cc] ss:$16 sps:$4 sm:$0xff]   ;;  %v5332_v8 = vld [vmem:[%s7409_s1 + $0x9c0] ss:$16 sps:$4 sm:$0xff]  }
  0xff   :  { %3333 = vmatpush1.bf16.msra.mxu0 %v5240_v9  ;;  %3661 = vmatpush1.bf16.msra.mxu1 %v5243_v10  ;;  %v5335_v9 = vld [vmem:[%s7409_s1 + $0x9c8] ss:$16 sps:$4 sm:$0xff]   ;;  %v5340_v10 = vld [vmem:[%s7409_s1 + $0x9e4] ss:$16 sps:$4 sm:$0xff]  }
 0x100   :  { %3343 = vmatprep.subr.bf16.mxu0 %v5250_v12  ;;  %3671 = vmatprep.subr.bf16.mxu1 %v5253_v13  ;;  %v5343_v12 = vld [vmem:[%s7409_s1 + $0x9ec] ss:$16 sps:$4 sm:$0xff]   ;;  %v5338_v13 = vld [vmem:[%s7409_s1 + $0x9e0] ss:$16 sps:$4 sm:$0xff]  }
 0x102   :  { %3335 = vmatmul.mubr.bf16.vlgmr.msra.gmra.mrb[0].mxu0 %v4197_v11  ;;  %3663 = vmatmul.mubr.bf16.vlgmr.msra.gmra.mrb[0].mxu1 %v4197_v11  ;;  %v5348_v11 = vld [vmem:[%s7409_s1 + $0xa04] ss:$16 sps:$4 sm:$0xff]  }
 0x103   :  { %3344 = vmatpush1.bf16.msra.mxu0 %v5248_v15  ;;  %3672 = vmatpush1.bf16.msra.mxu1 %v5251_v17  ;;  %v5341_v15 = vld [vmem:[%s7409_s1 + $0x9e8] ss:$16 sps:$4 sm:$0xff]   ;;  %v5351_v17 = vld [vmem:[%s7409_s1 + $0xa0c] ss:$16 sps:$4 sm:$0xff]  }
 0x104   :  { %3345 = vmatprep.subr.bf16.mxu0 %v5256_v18  ;;  %3673 = vmatprep.subr.bf16.mxu1 %v5259_v14  ;;  %v6708_v18 = vld [vmem:[%s7410_s0 + $0x28] sm:$0xff]  ;;  %v4199_v14 = vcombine.low %v6512_v16, %v6512_v16 }
 0x105   :  { %3375 = vmatprep.mubr.bf16.mxu0 %v4200_v19  ;;  %3703 = vmatprep.mubr.bf16.mxu1 %v4200_v19  ;;  %v5346_v19 = vld [vmem:[%s7409_s1 + $0xa00] ss:$16 sps:$4 sm:$0xff]   ;;  %v5357_v16 = vld [vmem:[%s7409_s1 + $0xa2c] ss:$16 sps:$4 sm:$0xff]  }
 0x107   :  { %3346 = vmatpush1.bf16.msra.mxu0 %v5254_v20  ;;  %3674 = vmatpush1.bf16.msra.mxu1 %v5257_v21  ;;  %v5349_v20 = vld [vmem:[%s7409_s1 + $0xa08] ss:$16 sps:$4 sm:$0xff]   ;;  %v5354_v21 = vld [vmem:[%s7409_s1 + $0xa24] ss:$16 sps:$4 sm:$0xff]  }
 0x108   :  { %3347 = vmatprep.subr.bf16.mxu0 %v5262_v22  ;;  %3675 = vmatprep.subr.bf16.mxu1 %v5265_v23  ;;  %v4202_v22 = vcombine.high %v6708_v18, %v6708_v18  ;;  %v5352_v23 = vld [vmem:[%s7409_s1 + $0xa20] ss:$16 sps:$4 sm:$0xff]  }
 0x10b   :  { %3348 = vmatpush1.bf16.msra.mxu0 %v5260_v24  ;;  %3676 = vmatpush1.bf16.msra.mxu1 %v5263_v25  ;;  %v5355_v24 = vld [vmem:[%s7409_s1 + $0xa28] ss:$16 sps:$4 sm:$0xff]   ;;  %v5360_v25 = vld [vmem:[%s7409_s1 + $0xa44] ss:$16 sps:$4 sm:$0xff]  }
 0x10c   :  { %3349 = vmatprep.subr.bf16.mxu0 %v5268_v26  ;;  %3677 = vmatprep.subr.bf16.mxu1 %v5271_v27  ;;  %v5363_v26 = vld [vmem:[%s7409_s1 + $0xa4c] ss:$16 sps:$4 sm:$0xff]   ;;  %v5358_v27 = vld [vmem:[%s7409_s1 + $0xa40] ss:$16 sps:$4 sm:$0xff]  }
 0x10f   :  { %3350 = vmatpush1.bf16.msra.mxu0 %v5266_v28  ;;  %3678 = vmatpush1.bf16.msra.mxu1 %v5269_v29  ;;  %v5361_v28 = vld [vmem:[%s7409_s1 + $0xa48] ss:$16 sps:$4 sm:$0xff]   ;;  %v5366_v29 = vld [vmem:[%s7409_s1 + $0xa64] ss:$16 sps:$4 sm:$0xff]  }
 0x110   :  { %3351 = vmatprep.subr.bf16.mxu0 %v5274_v30  ;;  %3679 = vmatprep.subr.bf16.mxu1 %v5277_v31  ;;  %v5369_v30 = vld [vmem:[%s7409_s1 + $0xa6c] ss:$16 sps:$4 sm:$0xff]   ;;  %v5364_v31 = vld [vmem:[%s7409_s1 + $0xa60] ss:$16 sps:$4 sm:$0xff]  }
 0x113   :  { %3352 = vmatpush1.bf16.msra.mxu0 %v5272_v32  ;;  %3680 = vmatpush1.bf16.msra.mxu1 %v5275_v33  ;;  %v5367_v32 = vld [vmem:[%s7409_s1 + $0xa68] ss:$16 sps:$4 sm:$0xff]   ;;  %v5372_v33 = vld [vmem:[%s7409_s1 + $0xa84] ss:$16 sps:$4 sm:$0xff]  }
 0x114   :  { %3353 = vmatprep.subr.bf16.mxu0 %v5280_v34  ;;  %3681 = vmatprep.subr.bf16.mxu1 %v5283_v35  ;;  %v5375_v34 = vld [vmem:[%s7409_s1 + $0xa8c] ss:$16 sps:$4 sm:$0xff]   ;;  %v5370_v35 = vld [vmem:[%s7409_s1 + $0xa80] ss:$16 sps:$4 sm:$0xff]  }
 0x117   :  { %3354 = vmatpush1.bf16.msra.mxu0 %v5278_v36  ;;  %3682 = vmatpush1.bf16.msra.mxu1 %v5281_v37  ;;  %v5373_v36 = vld [vmem:[%s7409_s1 + $0xa88] ss:$16 sps:$4 sm:$0xff]   ;;  %v5378_v37 = vld [vmem:[%s7409_s1 + $0xaa4] ss:$16 sps:$4 sm:$0xff]  }
 0x118   :  { %3355 = vmatprep.subr.bf16.mxu0 %v5286_v38  ;;  %3683 = vmatprep.subr.bf16.mxu1 %v5289_v39  ;;  %v5381_v38 = vld [vmem:[%s7409_s1 + $0xaac] ss:$16 sps:$4 sm:$0xff]   ;;  %v5376_v39 = vld [vmem:[%s7409_s1 + $0xaa0] ss:$16 sps:$4 sm:$0xff]  }
 0x11b   :  { %3356 = vmatpush1.bf16.msra.mxu0 %v5284_v40  ;;  %3684 = vmatpush1.bf16.msra.mxu1 %v5287_v41  ;;  %v5379_v40 = vld [vmem:[%s7409_s1 + $0xaa8] ss:$16 sps:$4 sm:$0xff]   ;;  %v5384_v41 = vld [vmem:[%s7409_s1 + $0xac4] ss:$16 sps:$4 sm:$0xff]  }
 0x11c   :  { %3357 = vmatprep.subr.bf16.mxu0 %v5292_v42  ;;  %3685 = vmatprep.subr.bf16.mxu1 %v5295_v43  ;;  %v5387_v42 = vld [vmem:[%s7409_s1 + $0xacc] ss:$16 sps:$4 sm:$0xff]   ;;  %v5382_v43 = vld [vmem:[%s7409_s1 + $0xac0] ss:$16 sps:$4 sm:$0xff]  }
 0x11f   :  { %3358 = vmatpush1.bf16.msra.mxu0 %v5290_v44  ;;  %3686 = vmatpush1.bf16.msra.mxu1 %v5293_v45  ;;  %v5385_v44 = vld [vmem:[%s7409_s1 + $0xac8] ss:$16 sps:$4 sm:$0xff]   ;;  %v5390_v45 = vld [vmem:[%s7409_s1 + $0xae4] ss:$16 sps:$4 sm:$0xff]  }
 0x120   :  { %3359 = vmatprep.subr.bf16.mxu0 %v5298_v46  ;;  %3687 = vmatprep.subr.bf16.mxu1 %v5301_v47  ;;  %v5393_v46 = vld [vmem:[%s7409_s1 + $0xaec] ss:$16 sps:$4 sm:$0xff]   ;;  %v5388_v47 = vld [vmem:[%s7409_s1 + $0xae0] ss:$16 sps:$4 sm:$0xff]  }
 0x123   :  { %3360 = vmatpush1.bf16.msra.mxu0 %v5296_v48  ;;  %3688 = vmatpush1.bf16.msra.mxu1 %v5299_v49  ;;  %v5391_v48 = vld [vmem:[%s7409_s1 + $0xae8] ss:$16 sps:$4 sm:$0xff]   ;;  %v5396_v49 = vld [vmem:[%s7409_s1 + $0xb04] ss:$16 sps:$4 sm:$0xff]  }
 0x124   :  { %3361 = vmatprep.subr.bf16.mxu0 %v5304_v50  ;;  %3689 = vmatprep.subr.bf16.mxu1 %v5307_v51  ;;  %v5399_v50 = vld [vmem:[%s7409_s1 + $0xb0c] ss:$16 sps:$4 sm:$0xff]   ;;  %v5394_v51 = vld [vmem:[%s7409_s1 + $0xb00] ss:$16 sps:$4 sm:$0xff]  }
 0x127   :  { %3362 = vmatpush1.bf16.msra.mxu0 %v5302_v52  ;;  %3690 = vmatpush1.bf16.msra.mxu1 %v5305_v53  ;;  %v5397_v52 = vld [vmem:[%s7409_s1 + $0xb08] ss:$16 sps:$4 sm:$0xff]   ;;  %v5402_v53 = vld [vmem:[%s7409_s1 + $0xb24] ss:$16 sps:$4 sm:$0xff]  }
 0x128   :  { %3363 = vmatprep.subr.bf16.mxu0 %v5310_v54  ;;  %3691 = vmatprep.subr.bf16.mxu1 %v5313_v55  ;;  %v5405_v54 = vld [vmem:[%s7409_s1 + $0xb2c] ss:$16 sps:$4 sm:$0xff]   ;;  %v5400_v55 = vld [vmem:[%s7409_s1 + $0xb20] ss:$16 sps:$4 sm:$0xff]  }
 0x12b   :  { %3364 = vmatpush1.bf16.msra.mxu0 %v5308_v56  ;;  %3692 = vmatpush1.bf16.msra.mxu1 %v5311_v57  ;;  %v5403_v56 = vld [vmem:[%s7409_s1 + $0xb28] ss:$16 sps:$4 sm:$0xff]   ;;  %v5408_v57 = vld [vmem:[%s7409_s1 + $0xb44] ss:$16 sps:$4 sm:$0xff]  }
 0x12c   :  { %3365 = vmatprep.subr.bf16.mxu0 %v5316_v58  ;;  %3693 = vmatprep.subr.bf16.mxu1 %v5319_v59  ;;  %v5411_v58 = vld [vmem:[%s7409_s1 + $0xb4c] ss:$16 sps:$4 sm:$0xff]   ;;  %v5406_v59 = vld [vmem:[%s7409_s1 + $0xb40] ss:$16 sps:$4 sm:$0xff]  }
 0x12f   :  { %3366 = vmatpush1.bf16.msra.mxu0 %v5314_v60  ;;  %3694 = vmatpush1.bf16.msra.mxu1 %v5317_v61  ;;  %v5409_v60 = vld [vmem:[%s7409_s1 + $0xb48] ss:$16 sps:$4 sm:$0xff]   ;;  %v5414_v61 = vld [vmem:[%s7409_s1 + $0xb64] ss:$16 sps:$4 sm:$0xff]  }
 0x130   :  { %3367 = vmatprep.subr.bf16.mxu0 %v5322_v62  ;;  %3695 = vmatprep.subr.bf16.mxu1 %v5325_v63  ;;  %v5417_v62 = vld [vmem:[%s7409_s1 + $0xb6c] ss:$16 sps:$4 sm:$0xff]   ;;  %v5412_v63 = vld [vmem:[%s7409_s1 + $0xb60] ss:$16 sps:$4 sm:$0xff]  }
 0x133   :  { %3368 = vmatpush1.bf16.msra.mxu0 %v5320_v0  ;;  %3696 = vmatpush1.bf16.msra.mxu1 %v5323_v1  ;;  %v5415_v0 = vld [vmem:[%s7409_s1 + $0xb68] ss:$16 sps:$4 sm:$0xff]   ;;  %v5420_v1 = vld [vmem:[%s7409_s1 + $0xb84] ss:$16 sps:$4 sm:$0xff]  }
 0x134   :  { %3369 = vmatprep.subr.bf16.mxu0 %v5328_v2  ;;  %3697 = vmatprep.subr.bf16.mxu1 %v5331_v3  ;;  %v5423_v2 = vld [vmem:[%s7409_s1 + $0xb8c] ss:$16 sps:$4 sm:$0xff]   ;;  %v5418_v3 = vld [vmem:[%s7409_s1 + $0xb80] ss:$16 sps:$4 sm:$0xff]  }
 0x137   :  { %3370 = vmatpush1.bf16.msra.mxu0 %v5326_v4  ;;  %3698 = vmatpush1.bf16.msra.mxu1 %v5329_v5  ;;  %v5421_v4 = vld [vmem:[%s7409_s1 + $0xb88] ss:$16 sps:$4 sm:$0xff]   ;;  %v5426_v5 = vld [vmem:[%s7409_s1 + $0xba4] ss:$16 sps:$4 sm:$0xff]  }
 0x138   :  { %3371 = vmatprep.subr.bf16.mxu0 %v5334_v6  ;;  %3699 = vmatprep.subr.bf16.mxu1 %v5337_v7  ;;  %v5429_v6 = vld [vmem:[%s7409_s1 + $0xbac] ss:$16 sps:$4 sm:$0xff]   ;;  %v5424_v7 = vld [vmem:[%s7409_s1 + $0xba0] ss:$16 sps:$4 sm:$0xff]  }
 0x13b   :  { %3372 = vmatpush1.bf16.msra.mxu0 %v5332_v8  ;;  %3700 = vmatpush1.bf16.msra.mxu1 %v5335_v9  ;;  %v5427_v8 = vld [vmem:[%s7409_s1 + $0xba8] ss:$16 sps:$4 sm:$0xff]   ;;  %v5432_v9 = vld [vmem:[%s7409_s1 + $0xbc4] ss:$16 sps:$4 sm:$0xff]  }
 0x13c   :  { %3373 = vmatprep.subr.bf16.mxu0 %v5340_v10  ;;  %3701 = vmatprep.subr.bf16.mxu1 %v5343_v12  ;;  %v5435_v10 = vld [vmem:[%s7409_s1 + $0xbcc] ss:$16 sps:$4 sm:$0xff]   ;;  %v5430_v12 = vld [vmem:[%s7409_s1 + $0xbc0] ss:$16 sps:$4 sm:$0xff]  }
 0x13f   :  { %3374 = vmatpush1.bf16.msra.mxu0 %v5338_v13  ;;  %3702 = vmatpush1.bf16.msra.mxu1 %v5341_v15  ;;  %v5433_v13 = vld [vmem:[%s7409_s1 + $0xbc8] ss:$16 sps:$4 sm:$0xff]   ;;  %v5438_v15 = vld [vmem:[%s7409_s1 + $0xbe4] ss:$16 sps:$4 sm:$0xff]  }
 0x140   :  { %3384 = vmatprep.subr.bf16.mxu0 %v5348_v11  ;;  %3712 = vmatprep.subr.bf16.mxu1 %v5351_v17  ;;  %v5441_v11 = vld [vmem:[%s7409_s1 + $0xbec] ss:$16 sps:$4 sm:$0xff]   ;;  %v5436_v17 = vld [vmem:[%s7409_s1 + $0xbe0] ss:$16 sps:$4 sm:$0xff]  }
 0x142   :  { %3376 = vmatmul.mubr.bf16.vlgmr.msra.gmra.mrb[0].mxu0 %v4199_v14  ;;  %3704 = vmatmul.mubr.bf16.vlgmr.msra.gmra.mrb[0].mxu1 %v4199_v14  ;;  %v5439_v14 = vld [vmem:[%s7409_s1 + $0xbe8] ss:$16 sps:$4 sm:$0xff]  }
 0x143   :  { %3385 = vmatpush1.bf16.msra.mxu0 %v5346_v19  ;;  %3713 = vmatpush1.bf16.msra.mxu1 %v5349_v20  ;;  %v5446_v19 = vld [vmem:[%s7409_s1 + $0xc04] ss:$16 sps:$4 sm:$0xff]   ;;  %v5449_v20 = vld [vmem:[%s7409_s1 + $0xc0c] ss:$16 sps:$4 sm:$0xff]  }
 0x144   :  { %3386 = vmatprep.subr.bf16.mxu0 %v5354_v21  ;;  %3714 = vmatprep.subr.bf16.mxu1 %v5357_v16  ;;  %v4201_v21 = vcombine.low %v6708_v18, %v6708_v18  ;;  %v6911_v16 = vld [vmem:[%s7410_s0 + $0x30] sm:$0xff] }
 0x145   :  { %3416 = vmatprep.mubr.bf16.mxu0 %v4202_v22  ;;  %3744 = vmatprep.mubr.bf16.mxu1 %v4202_v22  ;;  %v5444_v22 = vld [vmem:[%s7409_s1 + $0xc00] ss:$16 sps:$4 sm:$0xff]   ;;  %v5452_v18 = vld [vmem:[%s7409_s1 + $0xc24] ss:$16 sps:$4 sm:$0xff]  }
 0x147   :  { %3387 = vmatpush1.bf16.msra.mxu0 %v5352_v23  ;;  %3715 = vmatpush1.bf16.msra.mxu1 %v5355_v24  ;;  %v5447_v23 = vld [vmem:[%s7409_s1 + $0xc08] ss:$16 sps:$4 sm:$0xff]   ;;  %v5455_v24 = vld [vmem:[%s7409_s1 + $0xc2c] ss:$16 sps:$4 sm:$0xff]  }
 0x148   :  { %3388 = vmatprep.subr.bf16.mxu0 %v5360_v25  ;;  %3716 = vmatprep.subr.bf16.mxu1 %v5363_v26  ;;  %v4204_v25 = vcombine.high %v6911_v16, %v6911_v16  ;;  %v5450_v26 = vld [vmem:[%s7409_s1 + $0xc20] ss:$16 sps:$4 sm:$0xff]  }
 0x14b   :  { %3389 = vmatpush1.bf16.msra.mxu0 %v5358_v27  ;;  %3717 = vmatpush1.bf16.msra.mxu1 %v5361_v28  ;;  %v5453_v27 = vld [vmem:[%s7409_s1 + $0xc28] ss:$16 sps:$4 sm:$0xff]   ;;  %v5458_v28 = vld [vmem:[%s7409_s1 + $0xc44] ss:$16 sps:$4 sm:$0xff]  }
 0x14c   :  { %3390 = vmatprep.subr.bf16.mxu0 %v5366_v29  ;;  %3718 = vmatprep.subr.bf16.mxu1 %v5369_v30  ;;  %v5461_v29 = vld [vmem:[%s7409_s1 + $0xc4c] ss:$16 sps:$4 sm:$0xff]   ;;  %v5456_v30 = vld [vmem:[%s7409_s1 + $0xc40] ss:$16 sps:$4 sm:$0xff]  }
 0x14f   :  { %3391 = vmatpush1.bf16.msra.mxu0 %v5364_v31  ;;  %3719 = vmatpush1.bf16.msra.mxu1 %v5367_v32  ;;  %v5459_v31 = vld [vmem:[%s7409_s1 + $0xc48] ss:$16 sps:$4 sm:$0xff]   ;;  %v5464_v32 = vld [vmem:[%s7409_s1 + $0xc64] ss:$16 sps:$4 sm:$0xff]  }
 0x150   :  { %3392 = vmatprep.subr.bf16.mxu0 %v5372_v33  ;;  %3720 = vmatprep.subr.bf16.mxu1 %v5375_v34  ;;  %v5467_v33 = vld [vmem:[%s7409_s1 + $0xc6c] ss:$16 sps:$4 sm:$0xff]   ;;  %v5462_v34 = vld [vmem:[%s7409_s1 + $0xc60] ss:$16 sps:$4 sm:$0xff]  }
 0x153   :  { %3393 = vmatpush1.bf16.msra.mxu0 %v5370_v35  ;;  %3721 = vmatpush1.bf16.msra.mxu1 %v5373_v36  ;;  %v5465_v35 = vld [vmem:[%s7409_s1 + $0xc68] ss:$16 sps:$4 sm:$0xff]   ;;  %v5470_v36 = vld [vmem:[%s7409_s1 + $0xc84] ss:$16 sps:$4 sm:$0xff]  }
 0x154   :  { %3394 = vmatprep.subr.bf16.mxu0 %v5378_v37  ;;  %3722 = vmatprep.subr.bf16.mxu1 %v5381_v38  ;;  %v5473_v37 = vld [vmem:[%s7409_s1 + $0xc8c] ss:$16 sps:$4 sm:$0xff]   ;;  %v5468_v38 = vld [vmem:[%s7409_s1 + $0xc80] ss:$16 sps:$4 sm:$0xff]  }
 0x157   :  { %3395 = vmatpush1.bf16.msra.mxu0 %v5376_v39  ;;  %3723 = vmatpush1.bf16.msra.mxu1 %v5379_v40  ;;  %v5471_v39 = vld [vmem:[%s7409_s1 + $0xc88] ss:$16 sps:$4 sm:$0xff]   ;;  %v5476_v40 = vld [vmem:[%s7409_s1 + $0xca4] ss:$16 sps:$4 sm:$0xff]  }
 0x158   :  { %3396 = vmatprep.subr.bf16.mxu0 %v5384_v41  ;;  %3724 = vmatprep.subr.bf16.mxu1 %v5387_v42  ;;  %v5479_v41 = vld [vmem:[%s7409_s1 + $0xcac] ss:$16 sps:$4 sm:$0xff]   ;;  %v5474_v42 = vld [vmem:[%s7409_s1 + $0xca0] ss:$16 sps:$4 sm:$0xff]  }
 0x15b   :  { %3397 = vmatpush1.bf16.msra.mxu0 %v5382_v43  ;;  %3725 = vmatpush1.bf16.msra.mxu1 %v5385_v44  ;;  %v5477_v43 = vld [vmem:[%s7409_s1 + $0xca8] ss:$16 sps:$4 sm:$0xff]   ;;  %v5482_v44 = vld [vmem:[%s7409_s1 + $0xcc4] ss:$16 sps:$4 sm:$0xff]  }
 0x15c   :  { %3398 = vmatprep.subr.bf16.mxu0 %v5390_v45  ;;  %3726 = vmatprep.subr.bf16.mxu1 %v5393_v46  ;;  %v5485_v45 = vld [vmem:[%s7409_s1 + $0xccc] ss:$16 sps:$4 sm:$0xff]   ;;  %v5480_v46 = vld [vmem:[%s7409_s1 + $0xcc0] ss:$16 sps:$4 sm:$0xff]  }
 0x15f   :  { %3399 = vmatpush1.bf16.msra.mxu0 %v5388_v47  ;;  %3727 = vmatpush1.bf16.msra.mxu1 %v5391_v48  ;;  %v5483_v47 = vld [vmem:[%s7409_s1 + $0xcc8] ss:$16 sps:$4 sm:$0xff]   ;;  %v5488_v48 = vld [vmem:[%s7409_s1 + $0xce4] ss:$16 sps:$4 sm:$0xff]  }
 0x160   :  { %3400 = vmatprep.subr.bf16.mxu0 %v5396_v49  ;;  %3728 = vmatprep.subr.bf16.mxu1 %v5399_v50  ;;  %v5491_v49 = vld [vmem:[%s7409_s1 + $0xcec] ss:$16 sps:$4 sm:$0xff]   ;;  %v5486_v50 = vld [vmem:[%s7409_s1 + $0xce0] ss:$16 sps:$4 sm:$0xff]  }
 0x163   :  { %3401 = vmatpush1.bf16.msra.mxu0 %v5394_v51  ;;  %3729 = vmatpush1.bf16.msra.mxu1 %v5397_v52  ;;  %v5489_v51 = vld [vmem:[%s7409_s1 + $0xce8] ss:$16 sps:$4 sm:$0xff]   ;;  %v5494_v52 = vld [vmem:[%s7409_s1 + $0xd04] ss:$16 sps:$4 sm:$0xff]  }
 0x164   :  { %3402 = vmatprep.subr.bf16.mxu0 %v5402_v53  ;;  %3730 = vmatprep.subr.bf16.mxu1 %v5405_v54  ;;  %v5497_v53 = vld [vmem:[%s7409_s1 + $0xd0c] ss:$16 sps:$4 sm:$0xff]   ;;  %v5492_v54 = vld [vmem:[%s7409_s1 + $0xd00] ss:$16 sps:$4 sm:$0xff]  }
 0x167   :  { %3403 = vmatpush1.bf16.msra.mxu0 %v5400_v55  ;;  %3731 = vmatpush1.bf16.msra.mxu1 %v5403_v56  ;;  %v5495_v55 = vld [vmem:[%s7409_s1 + $0xd08] ss:$16 sps:$4 sm:$0xff]   ;;  %v5500_v56 = vld [vmem:[%s7409_s1 + $0xd24] ss:$16 sps:$4 sm:$0xff]  }
 0x168   :  { %3404 = vmatprep.subr.bf16.mxu0 %v5408_v57  ;;  %3732 = vmatprep.subr.bf16.mxu1 %v5411_v58  ;;  %v5503_v57 = vld [vmem:[%s7409_s1 + $0xd2c] ss:$16 sps:$4 sm:$0xff]   ;;  %v5498_v58 = vld [vmem:[%s7409_s1 + $0xd20] ss:$16 sps:$4 sm:$0xff]  }
 0x16b   :  { %3405 = vmatpush1.bf16.msra.mxu0 %v5406_v59  ;;  %3733 = vmatpush1.bf16.msra.mxu1 %v5409_v60  ;;  %v5501_v59 = vld [vmem:[%s7409_s1 + $0xd28] ss:$16 sps:$4 sm:$0xff]   ;;  %v5506_v60 = vld [vmem:[%s7409_s1 + $0xd44] ss:$16 sps:$4 sm:$0xff]  }
 0x16c   :  { %3406 = vmatprep.subr.bf16.mxu0 %v5414_v61  ;;  %3734 = vmatprep.subr.bf16.mxu1 %v5417_v62  ;;  %v5509_v61 = vld [vmem:[%s7409_s1 + $0xd4c] ss:$16 sps:$4 sm:$0xff]   ;;  %v5504_v62 = vld [vmem:[%s7409_s1 + $0xd40] ss:$16 sps:$4 sm:$0xff]  }
 0x16f   :  { %3407 = vmatpush1.bf16.msra.mxu0 %v5412_v63  ;;  %3735 = vmatpush1.bf16.msra.mxu1 %v5415_v0  ;;  %v5507_v63 = vld [vmem:[%s7409_s1 + $0xd48] ss:$16 sps:$4 sm:$0xff]   ;;  %v5512_v0 = vld [vmem:[%s7409_s1 + $0xd64] ss:$16 sps:$4 sm:$0xff]  }
 0x170   :  { %3408 = vmatprep.subr.bf16.mxu0 %v5420_v1  ;;  %3736 = vmatprep.subr.bf16.mxu1 %v5423_v2  ;;  %v5515_v1 = vld [vmem:[%s7409_s1 + $0xd6c] ss:$16 sps:$4 sm:$0xff]   ;;  %v5510_v2 = vld [vmem:[%s7409_s1 + $0xd60] ss:$16 sps:$4 sm:$0xff]  }
 0x173   :  { %3409 = vmatpush1.bf16.msra.mxu0 %v5418_v3  ;;  %3737 = vmatpush1.bf16.msra.mxu1 %v5421_v4  ;;  %v5513_v3 = vld [vmem:[%s7409_s1 + $0xd68] ss:$16 sps:$4 sm:$0xff]   ;;  %v5518_v4 = vld [vmem:[%s7409_s1 + $0xd84] ss:$16 sps:$4 sm:$0xff]  }
 0x174   :  { %3410 = vmatprep.subr.bf16.mxu0 %v5426_v5  ;;  %3738 = vmatprep.subr.bf16.mxu1 %v5429_v6  ;;  %v5521_v5 = vld [vmem:[%s7409_s1 + $0xd8c] ss:$16 sps:$4 sm:$0xff]   ;;  %v5516_v6 = vld [vmem:[%s7409_s1 + $0xd80] ss:$16 sps:$4 sm:$0xff]  }
 0x177   :  { %3411 = vmatpush1.bf16.msra.mxu0 %v5424_v7  ;;  %3739 = vmatpush1.bf16.msra.mxu1 %v5427_v8  ;;  %v5519_v7 = vld [vmem:[%s7409_s1 + $0xd88] ss:$16 sps:$4 sm:$0xff]   ;;  %v5524_v8 = vld [vmem:[%s7409_s1 + $0xda4] ss:$16 sps:$4 sm:$0xff]  }
 0x178   :  { %3412 = vmatprep.subr.bf16.mxu0 %v5432_v9  ;;  %3740 = vmatprep.subr.bf16.mxu1 %v5435_v10  ;;  %v5527_v9 = vld [vmem:[%s7409_s1 + $0xdac] ss:$16 sps:$4 sm:$0xff]   ;;  %v5522_v10 = vld [vmem:[%s7409_s1 + $0xda0] ss:$16 sps:$4 sm:$0xff]  }
 0x17b   :  { %3413 = vmatpush1.bf16.msra.mxu0 %v5430_v12  ;;  %3741 = vmatpush1.bf16.msra.mxu1 %v5433_v13  ;;  %v5525_v12 = vld [vmem:[%s7409_s1 + $0xda8] ss:$16 sps:$4 sm:$0xff]   ;;  %v5530_v13 = vld [vmem:[%s7409_s1 + $0xdc4] ss:$16 sps:$4 sm:$0xff]  }
 0x17c   :  { %3414 = vmatprep.subr.bf16.mxu0 %v5438_v15  ;;  %3742 = vmatprep.subr.bf16.mxu1 %v5441_v11  ;;  %v5533_v15 = vld [vmem:[%s7409_s1 + $0xdcc] ss:$16 sps:$4 sm:$0xff]   ;;  %v5528_v11 = vld [vmem:[%s7409_s1 + $0xdc0] ss:$16 sps:$4 sm:$0xff]  }
 0x17f   :  { %3415 = vmatpush1.bf16.msra.mxu0 %v5436_v17  ;;  %3743 = vmatpush1.bf16.msra.mxu1 %v5439_v14  ;;  %v5531_v17 = vld [vmem:[%s7409_s1 + $0xdc8] ss:$16 sps:$4 sm:$0xff]   ;;  %v5536_v14 = vld [vmem:[%s7409_s1 + $0xde4] ss:$16 sps:$4 sm:$0xff]  }
 0x180   :  { %3425 = vmatprep.subr.bf16.mxu0 %v5446_v19  ;;  %3753 = vmatprep.subr.bf16.mxu1 %v5449_v20  ;;  %v5539_v19 = vld [vmem:[%s7409_s1 + $0xdec] ss:$16 sps:$4 sm:$0xff]   ;;  %v5534_v20 = vld [vmem:[%s7409_s1 + $0xde0] ss:$16 sps:$4 sm:$0xff]  }
 0x182   :  { %3417 = vmatmul.mubr.bf16.vlgmr.msra.gmra.mrb[0].mxu0 %v4201_v21  ;;  %3745 = vmatmul.mubr.bf16.vlgmr.msra.gmra.mrb[0].mxu1 %v4201_v21  ;;  %v5537_v21 = vld [vmem:[%s7409_s1 + $0xde8] ss:$16 sps:$4 sm:$0xff]  }
 0x183   :  { %3426 = vmatpush1.bf16.msra.mxu0 %v5444_v22  ;;  %3754 = vmatpush1.bf16.msra.mxu1 %v5447_v23  ;;  %v5544_v22 = vld [vmem:[%s7409_s1 + $0xe04] ss:$16 sps:$4 sm:$0xff]   ;;  %v5547_v23 = vld [vmem:[%s7409_s1 + $0xe0c] ss:$16 sps:$4 sm:$0xff]  }
 0x184   :  { %3427 = vmatprep.subr.bf16.mxu0 %v5452_v18  ;;  %3755 = vmatprep.subr.bf16.mxu1 %v5455_v24  ;;  %v4203_v18 = vcombine.low %v6911_v16, %v6911_v16  ;;  %v7112_v24 = vld [vmem:[%s7410_s0 + $0x38] sm:$0xff]  ;;  %v5550_v16 = vld [vmem:[%s7409_s1 + $0xe24] ss:$16 sps:$4 sm:$0xff]  }
 0x185   :  { %3457 = vmatprep.mubr.bf16.mxu0 %v4204_v25  ;;  %3785 = vmatprep.mubr.bf16.mxu1 %v4204_v25  ;;  %v5542_v25 = vld [vmem:[%s7409_s1 + $0xe00] ss:$16 sps:$4 sm:$0xff]  }
 0x187   :  { %3428 = vmatpush1.bf16.msra.mxu0 %v5450_v26  ;;  %3756 = vmatpush1.bf16.msra.mxu1 %v5453_v27  ;;  %v5545_v26 = vld [vmem:[%s7409_s1 + $0xe08] ss:$16 sps:$4 sm:$0xff]   ;;  %v5553_v27 = vld [vmem:[%s7409_s1 + $0xe2c] ss:$16 sps:$4 sm:$0xff]  }
 0x188   :  { %3429 = vmatprep.subr.bf16.mxu0 %v5458_v28  ;;  %3757 = vmatprep.subr.bf16.mxu1 %v5461_v29  ;;  %v4206_v28 = vcombine.high %v7112_v24, %v7112_v24  ;;  %v5548_v29 = vld [vmem:[%s7409_s1 + $0xe20] ss:$16 sps:$4 sm:$0xff]  }
 0x18b   :  { %3430 = vmatpush1.bf16.msra.mxu0 %v5456_v30  ;;  %3758 = vmatpush1.bf16.msra.mxu1 %v5459_v31  ;;  %v5551_v30 = vld [vmem:[%s7409_s1 + $0xe28] ss:$16 sps:$4 sm:$0xff]   ;;  %v5556_v31 = vld [vmem:[%s7409_s1 + $0xe44] ss:$16 sps:$4 sm:$0xff]  }
 0x18c   :  { %3431 = vmatprep.subr.bf16.mxu0 %v5464_v32  ;;  %3759 = vmatprep.subr.bf16.mxu1 %v5467_v33  ;;  %v5559_v32 = vld [vmem:[%s7409_s1 + $0xe4c] ss:$16 sps:$4 sm:$0xff]   ;;  %v5554_v33 = vld [vmem:[%s7409_s1 + $0xe40] ss:$16 sps:$4 sm:$0xff]  }
 0x18f   :  { %3432 = vmatpush1.bf16.msra.mxu0 %v5462_v34  ;;  %3760 = vmatpush1.bf16.msra.mxu1 %v5465_v35  ;;  %v5557_v34 = vld [vmem:[%s7409_s1 + $0xe48] ss:$16 sps:$4 sm:$0xff]   ;;  %v5562_v35 = vld [vmem:[%s7409_s1 + $0xe64] ss:$16 sps:$4 sm:$0xff]  }
 0x190   :  { %3433 = vmatprep.subr.bf16.mxu0 %v5470_v36  ;;  %3761 = vmatprep.subr.bf16.mxu1 %v5473_v37  ;;  %v5565_v36 = vld [vmem:[%s7409_s1 + $0xe6c] ss:$16 sps:$4 sm:$0xff]   ;;  %v5560_v37 = vld [vmem:[%s7409_s1 + $0xe60] ss:$16 sps:$4 sm:$0xff]  }
 0x193   :  { %3434 = vmatpush1.bf16.msra.mxu0 %v5468_v38  ;;  %3762 = vmatpush1.bf16.msra.mxu1 %v5471_v39  ;;  %v5563_v38 = vld [vmem:[%s7409_s1 + $0xe68] ss:$16 sps:$4 sm:$0xff]   ;;  %v5568_v39 = vld [vmem:[%s7409_s1 + $0xe84] ss:$16 sps:$4 sm:$0xff]  }
 0x194   :  { %3435 = vmatprep.subr.bf16.mxu0 %v5476_v40  ;;  %3763 = vmatprep.subr.bf16.mxu1 %v5479_v41  ;;  %v5571_v40 = vld [vmem:[%s7409_s1 + $0xe8c] ss:$16 sps:$4 sm:$0xff]   ;;  %v5566_v41 = vld [vmem:[%s7409_s1 + $0xe80] ss:$16 sps:$4 sm:$0xff]  }
 0x197   :  { %3436 = vmatpush1.bf16.msra.mxu0 %v5474_v42  ;;  %3764 = vmatpush1.bf16.msra.mxu1 %v5477_v43  ;;  %v5569_v42 = vld [vmem:[%s7409_s1 + $0xe88] ss:$16 sps:$4 sm:$0xff]   ;;  %v5574_v43 = vld [vmem:[%s7409_s1 + $0xea4] ss:$16 sps:$4 sm:$0xff]  }
 0x198   :  { %3437 = vmatprep.subr.bf16.mxu0 %v5482_v44  ;;  %3765 = vmatprep.subr.bf16.mxu1 %v5485_v45  ;;  %v5577_v44 = vld [vmem:[%s7409_s1 + $0xeac] ss:$16 sps:$4 sm:$0xff]   ;;  %v5572_v45 = vld [vmem:[%s7409_s1 + $0xea0] ss:$16 sps:$4 sm:$0xff]  }
 0x19b   :  { %3438 = vmatpush1.bf16.msra.mxu0 %v5480_v46  ;;  %3766 = vmatpush1.bf16.msra.mxu1 %v5483_v47  ;;  %v5575_v46 = vld [vmem:[%s7409_s1 + $0xea8] ss:$16 sps:$4 sm:$0xff]   ;;  %v5580_v47 = vld [vmem:[%s7409_s1 + $0xec4] ss:$16 sps:$4 sm:$0xff]  }
 0x19c   :  { %3439 = vmatprep.subr.bf16.mxu0 %v5488_v48  ;;  %3767 = vmatprep.subr.bf16.mxu1 %v5491_v49  ;;  %v5583_v48 = vld [vmem:[%s7409_s1 + $0xecc] ss:$16 sps:$4 sm:$0xff]   ;;  %v5578_v49 = vld [vmem:[%s7409_s1 + $0xec0] ss:$16 sps:$4 sm:$0xff]  }
 0x19f   :  { %3440 = vmatpush1.bf16.msra.mxu0 %v5486_v50  ;;  %3768 = vmatpush1.bf16.msra.mxu1 %v5489_v51  ;;  %v5581_v50 = vld [vmem:[%s7409_s1 + $0xec8] ss:$16 sps:$4 sm:$0xff]   ;;  %v5586_v51 = vld [vmem:[%s7409_s1 + $0xee4] ss:$16 sps:$4 sm:$0xff]  }
 0x1a0   :  { %3441 = vmatprep.subr.bf16.mxu0 %v5494_v52  ;;  %3769 = vmatprep.subr.bf16.mxu1 %v5497_v53  ;;  %v5589_v52 = vld [vmem:[%s7409_s1 + $0xeec] ss:$16 sps:$4 sm:$0xff]   ;;  %v5584_v53 = vld [vmem:[%s7409_s1 + $0xee0] ss:$16 sps:$4 sm:$0xff]  }
 0x1a3   :  { %3442 = vmatpush1.bf16.msra.mxu0 %v5492_v54  ;;  %3770 = vmatpush1.bf16.msra.mxu1 %v5495_v55  ;;  %v5587_v54 = vld [vmem:[%s7409_s1 + $0xee8] ss:$16 sps:$4 sm:$0xff]   ;;  %v5592_v55 = vld [vmem:[%s7409_s1 + $0xf04] ss:$16 sps:$4 sm:$0xff]  }
 0x1a4   :  { %3443 = vmatprep.subr.bf16.mxu0 %v5500_v56  ;;  %3771 = vmatprep.subr.bf16.mxu1 %v5503_v57  ;;  %v5595_v56 = vld [vmem:[%s7409_s1 + $0xf0c] ss:$16 sps:$4 sm:$0xff]   ;;  %v5590_v57 = vld [vmem:[%s7409_s1 + $0xf00] ss:$16 sps:$4 sm:$0xff]  }
 0x1a7   :  { %3444 = vmatpush1.bf16.msra.mxu0 %v5498_v58  ;;  %3772 = vmatpush1.bf16.msra.mxu1 %v5501_v59  ;;  %v5593_v58 = vld [vmem:[%s7409_s1 + $0xf08] ss:$16 sps:$4 sm:$0xff]   ;;  %v5598_v59 = vld [vmem:[%s7409_s1 + $0xf24] ss:$16 sps:$4 sm:$0xff]  }
 0x1a8   :  { %3445 = vmatprep.subr.bf16.mxu0 %v5506_v60  ;;  %3773 = vmatprep.subr.bf16.mxu1 %v5509_v61  ;;  %v5601_v60 = vld [vmem:[%s7409_s1 + $0xf2c] ss:$16 sps:$4 sm:$0xff]   ;;  %v5596_v61 = vld [vmem:[%s7409_s1 + $0xf20] ss:$16 sps:$4 sm:$0xff]  }
 0x1ab   :  { %3446 = vmatpush1.bf16.msra.mxu0 %v5504_v62  ;;  %3774 = vmatpush1.bf16.msra.mxu1 %v5507_v63  ;;  %v5599_v62 = vld [vmem:[%s7409_s1 + $0xf28] ss:$16 sps:$4 sm:$0xff]   ;;  %v5604_v63 = vld [vmem:[%s7409_s1 + $0xf44] ss:$16 sps:$4 sm:$0xff]  }
 0x1ac   :  { %3447 = vmatprep.subr.bf16.mxu0 %v5512_v0  ;;  %3775 = vmatprep.subr.bf16.mxu1 %v5515_v1  ;;  %v5607_v0 = vld [vmem:[%s7409_s1 + $0xf4c] ss:$16 sps:$4 sm:$0xff]   ;;  %v5602_v1 = vld [vmem:[%s7409_s1 + $0xf40] ss:$16 sps:$4 sm:$0xff]  }
 0x1af   :  { %3448 = vmatpush1.bf16.msra.mxu0 %v5510_v2  ;;  %3776 = vmatpush1.bf16.msra.mxu1 %v5513_v3  ;;  %v5605_v2 = vld [vmem:[%s7409_s1 + $0xf48] ss:$16 sps:$4 sm:$0xff]   ;;  %v5610_v3 = vld [vmem:[%s7409_s1 + $0xf64] ss:$16 sps:$4 sm:$0xff]  }
 0x1b0   :  { %3449 = vmatprep.subr.bf16.mxu0 %v5518_v4  ;;  %3777 = vmatprep.subr.bf16.mxu1 %v5521_v5  ;;  %v5613_v4 = vld [vmem:[%s7409_s1 + $0xf6c] ss:$16 sps:$4 sm:$0xff]   ;;  %v5608_v5 = vld [vmem:[%s7409_s1 + $0xf60] ss:$16 sps:$4 sm:$0xff]  }
 0x1b3   :  { %3450 = vmatpush1.bf16.msra.mxu0 %v5516_v6  ;;  %3778 = vmatpush1.bf16.msra.mxu1 %v5519_v7  ;;  %v5611_v6 = vld [vmem:[%s7409_s1 + $0xf68] ss:$16 sps:$4 sm:$0xff]   ;;  %v5616_v7 = vld [vmem:[%s7409_s1 + $0xf84] ss:$16 sps:$4 sm:$0xff]  }
 0x1b4   :  { %3451 = vmatprep.subr.bf16.mxu0 %v5524_v8  ;;  %3779 = vmatprep.subr.bf16.mxu1 %v5527_v9  ;;  %v5619_v8 = vld [vmem:[%s7409_s1 + $0xf8c] ss:$16 sps:$4 sm:$0xff]   ;;  %v5614_v9 = vld [vmem:[%s7409_s1 + $0xf80] ss:$16 sps:$4 sm:$0xff]  }
 0x1b7   :  { %3452 = vmatpush1.bf16.msra.mxu0 %v5522_v10  ;;  %3780 = vmatpush1.bf16.msra.mxu1 %v5525_v12  ;;  %v5617_v10 = vld [vmem:[%s7409_s1 + $0xf88] ss:$16 sps:$4 sm:$0xff]   ;;  %v5622_v12 = vld [vmem:[%s7409_s1 + $0xfa4] ss:$16 sps:$4 sm:$0xff]  }
 0x1b8   :  { %3453 = vmatprep.subr.bf16.mxu0 %v5530_v13  ;;  %3781 = vmatprep.subr.bf16.mxu1 %v5533_v15  ;;  %v5625_v13 = vld [vmem:[%s7409_s1 + $0xfac] ss:$16 sps:$4 sm:$0xff]   ;;  %v5620_v15 = vld [vmem:[%s7409_s1 + $0xfa0] ss:$16 sps:$4 sm:$0xff]  }
 0x1bb   :  { %3454 = vmatpush1.bf16.msra.mxu0 %v5528_v11  ;;  %3782 = vmatpush1.bf16.msra.mxu1 %v5531_v17  ;;  %v5623_v11 = vld [vmem:[%s7409_s1 + $0xfa8] ss:$16 sps:$4 sm:$0xff]   ;;  %v5628_v17 = vld [vmem:[%s7409_s1 + $0xfc4] ss:$16 sps:$4 sm:$0xff]  }
 0x1bc   :  { %3455 = vmatprep.subr.bf16.mxu0 %v5536_v14  ;;  %3783 = vmatprep.subr.bf16.mxu1 %v5539_v19  ;;  %v5631_v14 = vld [vmem:[%s7409_s1 + $0xfcc] ss:$16 sps:$4 sm:$0xff]   ;;  %v5626_v19 = vld [vmem:[%s7409_s1 + $0xfc0] ss:$16 sps:$4 sm:$0xff]  }
 0x1bf   :  { %3456 = vmatpush1.bf16.msra.mxu0 %v5534_v20  ;;  %3784 = vmatpush1.bf16.msra.mxu1 %v5537_v21  ;;  %v5629_v20 = vld [vmem:[%s7409_s1 + $0xfc8] ss:$16 sps:$4 sm:$0xff]   ;;  %v5634_v21 = vld [vmem:[%s7409_s1 + $0xfe4] ss:$16 sps:$4 sm:$0xff]  }
 0x1c0   :  { %3466 = vmatprep.subr.bf16.mxu0 %v5544_v22  ;;  %3794 = vmatprep.subr.bf16.mxu1 %v5547_v23  ;;  %v5637_v22 = vld [vmem:[%s7409_s1 + $0xfec] ss:$16 sps:$4 sm:$0xff]   ;;  %v5632_v23 = vld [vmem:[%s7409_s1 + $0xfe0] ss:$16 sps:$4 sm:$0xff]  }
 0x1c2   :  { %3458 = vmatmul.mubr.bf16.vlgmr.msra.gmra.mrb[0].mxu0 %v4203_v18  ;;  %3786 = vmatmul.mubr.bf16.vlgmr.msra.gmra.mrb[0].mxu1 %v4203_v18  ;;  %v5635_v18 = vld [vmem:[%s7409_s1 + $0xfe8] ss:$16 sps:$4 sm:$0xff]  }
 0x1c3   :  { %3467 = vmatpush1.bf16.msra.mxu0 %v5542_v25  ;;  %3795 = vmatpush1.bf16.msra.mxu1 %v5545_v26  ;;  %v5640_v25 = vld [vmem:[%s7411_s3 + $0x40] sm:$0xff]  }
 0x1c4   :  { %3468 = vmatprep.subr.bf16.mxu0 %v5550_v16  ;;  %3796 = vmatprep.subr.bf16.mxu1 %v5553_v27  ;;  %v5641_v26 = vld [vmem:[%s7411_s3 + $0xc0] sm:$0xff]   ;;  %v4205_v16 = vcombine.low %v7112_v24, %v7112_v24  ;;  %v5645_v24 = vld [vmem:[%s7411_s3 + $0xc8] sm:$0xff]  }
 0x1c5   :  { %3498 = vmatprep.mubr.bf16.mxu0 %v4206_v28  ;;  %3826 = vmatprep.mubr.bf16.mxu1 %v4206_v28  ;;  %v5642_v27 = vld [vmem:[%s7411_s3] sm:$0xff]  }
 0x1c6   :  { %v5643_v28 = vld [vmem:[%s7411_s3 + $0x80] sm:$0xff]  }
 0x1c7   :  { %3469 = vmatpush1.bf16.msra.mxu0 %v5548_v29  ;;  %3797 = vmatpush1.bf16.msra.mxu1 %v5551_v30  ;;  %v5644_v29 = vld [vmem:[%s7411_s3 + $0x48] sm:$0xff]  }
 0x1c8   :  { %3470 = vmatprep.subr.bf16.mxu0 %v5556_v31  ;;  %3798 = vmatprep.subr.bf16.mxu1 %v5559_v32  ;;  %v5646_v30 = vld [vmem:[%s7411_s3 + $0x8] sm:$0xff]   ;;  %v5648_v32 = vld [vmem:[%s7411_s3 + $0x50] sm:$0xff]  }
 0x1c9   :  { %v5647_v31 = vld [vmem:[%s7411_s3 + $0x88] sm:$0xff]  }
 0x1cb   :  { %3471 = vmatpush1.bf16.msra.mxu0 %v5554_v33  ;;  %3799 = vmatpush1.bf16.msra.mxu1 %v5557_v34  ;;  %v5649_v33 = vld [vmem:[%s7411_s3 + $0xd0] sm:$0xff]  }
 0x1cc   :  { %3472 = vmatprep.subr.bf16.mxu0 %v5562_v35  ;;  %3800 = vmatprep.subr.bf16.mxu1 %v5565_v36  ;;  %v5650_v34 = vld [vmem:[%s7411_s3 + $0x10] sm:$0xff]   ;;  %v5652_v36 = vld [vmem:[%s7411_s3 + $0x58] sm:$0xff]  }
 0x1cd   :  { %v5651_v35 = vld [vmem:[%s7411_s3 + $0x90] sm:$0xff]  }
 0x1cf   :  { %3473 = vmatpush1.bf16.msra.mxu0 %v5560_v37  ;;  %3801 = vmatpush1.bf16.msra.mxu1 %v5563_v38  ;;  %v5653_v37 = vld [vmem:[%s7411_s3 + $0xd8] sm:$0xff]  }
 0x1d0   :  { %3474 = vmatprep.subr.bf16.mxu0 %v5568_v39  ;;  %3802 = vmatprep.subr.bf16.mxu1 %v5571_v40  ;;  %v5654_v38 = vld [vmem:[%s7411_s3 + $0x18] sm:$0xff]   ;;  %v5656_v40 = vld [vmem:[%s7411_s3 + $0x60] sm:$0xff]  }
 0x1d1   :  { %v5655_v39 = vld [vmem:[%s7411_s3 + $0x98] sm:$0xff]  }
 0x1d3   :  { %3475 = vmatpush1.bf16.msra.mxu0 %v5566_v41  ;;  %3803 = vmatpush1.bf16.msra.mxu1 %v5569_v42  ;;  %v5657_v41 = vld [vmem:[%s7411_s3 + $0xe0] sm:$0xff]  }
 0x1d4   :  { %3476 = vmatprep.subr.bf16.mxu0 %v5574_v43  ;;  %3804 = vmatprep.subr.bf16.mxu1 %v5577_v44  ;;  %v5658_v42 = vld [vmem:[%s7411_s3 + $0x20] sm:$0xff]   ;;  %v5660_v44 = vld [vmem:[%s7411_s3 + $0x68] sm:$0xff]  }
 0x1d5   :  { %v5659_v43 = vld [vmem:[%s7411_s3 + $0xa0] sm:$0xff]  }
 0x1d7   :  { %3477 = vmatpush1.bf16.msra.mxu0 %v5572_v45  ;;  %3805 = vmatpush1.bf16.msra.mxu1 %v5575_v46  ;;  %v5661_v45 = vld [vmem:[%s7411_s3 + $0xe8] sm:$0xff]  }
 0x1d8   :  { %3478 = vmatprep.subr.bf16.mxu0 %v5580_v47  ;;  %3806 = vmatprep.subr.bf16.mxu1 %v5583_v48  ;;  %v5662_v46 = vld [vmem:[%s7411_s3 + $0x28] sm:$0xff]   ;;  %v5664_v48 = vld [vmem:[%s7411_s3 + $0x70] sm:$0xff]  }
 0x1d9   :  { %v5663_v47 = vld [vmem:[%s7411_s3 + $0xa8] sm:$0xff]  }
 0x1db   :  { %3479 = vmatpush1.bf16.msra.mxu0 %v5578_v49  ;;  %3807 = vmatpush1.bf16.msra.mxu1 %v5581_v50  ;;  %v5665_v49 = vld [vmem:[%s7411_s3 + $0xf0] sm:$0xff]  }
 0x1dc   :  { %3480 = vmatprep.subr.bf16.mxu0 %v5586_v51  ;;  %3808 = vmatprep.subr.bf16.mxu1 %v5589_v52  ;;  %v5666_v50 = vld [vmem:[%s7411_s3 + $0x30] sm:$0xff]   ;;  %v5668_v52 = vld [vmem:[%s7411_s3 + $0x78] sm:$0xff]  }
 0x1dd   :  { %v5667_v51 = vld [vmem:[%s7411_s3 + $0xb0] sm:$0xff]  }
 0x1df   :  { %3481 = vmatpush1.bf16.msra.mxu0 %v5584_v53  ;;  %3809 = vmatpush1.bf16.msra.mxu1 %v5587_v54  ;;  %v5669_v53 = vld [vmem:[%s7411_s3 + $0xf8] sm:$0xff]  }
 0x1e0   :  { %3482 = vmatprep.subr.bf16.mxu0 %v5592_v55  ;;  %3810 = vmatprep.subr.bf16.mxu1 %v5595_v56  ;;  %v5670_v54 = vld [vmem:[%s7411_s3 + $0x38] sm:$0xff]   ;;  %v543_v56 = vlaneseq }
 0x1e1   :  { %v5671_v55 = vld [vmem:[%s7411_s3 + $0xb8] sm:$0xff]  }
 0x1e3   :  { %3483 = vmatpush1.bf16.msra.mxu0 %v5590_v57  ;;  %3811 = vmatpush1.bf16.msra.mxu1 %v5593_v58  ;;  %v544_v57 = vshrl.u32 %v543_v56, 7 }
 0x1e4   :  { %3484 = vmatprep.subr.bf16.mxu0 %v5598_v59  ;;  %3812 = vmatprep.subr.bf16.mxu1 %v5601_v60  ;;  %v541_v60 = vld [vmem:[%s7412_s2] sm:$0xf] }
 0x1e5   :  { %v545_v58 = vsub.s32 0, %v544_v57  ;;  %v553_v59 = vsub.s32 2, %v544_v57 }
 0x1e7   :  { %3485 = vmatpush1.bf16.msra.mxu0 %v5596_v61  ;;  %3813 = vmatpush1.bf16.msra.mxu1 %v5599_v62  ;;  %v549_v61 = vsub.s32 1, %v544_v57  ;;  %v557_v62 = vsub.s32 3, %v544_v57 }
 0x1e8   :  { %3486 = vmatprep.subr.bf16.mxu0 %v5604_v63  ;;  %3814 = vmatprep.subr.bf16.mxu1 %v5607_v0  ;;  %v546_v63 = vrot.slane %v541_v60, %v545_v58  ;;  %v554_v0 = vrot.slane %v541_v60, %v553_v59 }
 0x1eb   :  { %3487 = vmatpush1.bf16.msra.mxu0 %v5602_v1  ;;  %3815 = vmatpush1.bf16.msra.mxu1 %v5605_v2  ;;  %v550_v1 = vrot.slane %v541_v60, %v549_v61  ;;  %v558_v2 = vrot.slane %v541_v60, %v557_v62 }
 0x1ec   :  { %3488 = vmatprep.subr.bf16.mxu0 %v5610_v3  ;;  %3816 = vmatprep.subr.bf16.mxu1 %v5613_v4 }
 0x1ef   :  { %3489 = vmatpush1.bf16.msra.mxu0 %v5608_v5  ;;  %3817 = vmatpush1.bf16.msra.mxu1 %v5611_v6 }
 0x1f0   :  { %3490 = vmatprep.subr.bf16.mxu0 %v5616_v7  ;;  %3818 = vmatprep.subr.bf16.mxu1 %v5619_v8 }
 0x1f3   :  { %3491 = vmatpush1.bf16.msra.mxu0 %v5614_v9  ;;  %3819 = vmatpush1.bf16.msra.mxu1 %v5617_v10 }
 0x1f4   :  { %3492 = vmatprep.subr.bf16.mxu0 %v5622_v12  ;;  %3820 = vmatprep.subr.bf16.mxu1 %v5625_v13 }
 0x1f7   :  { %3493 = vmatpush1.bf16.msra.mxu0 %v5620_v15  ;;  %3821 = vmatpush1.bf16.msra.mxu1 %v5623_v11 }
 0x1f8   :  { %3494 = vmatprep.subr.bf16.mxu0 %v5628_v17  ;;  %3822 = vmatprep.subr.bf16.mxu1 %v5631_v14 }
 0x1fb   :  { %3495 = vmatpush1.bf16.msra.mxu0 %v5626_v19  ;;  %3823 = vmatpush1.bf16.msra.mxu1 %v5629_v20 }
 0x1fc   :  { %3496 = vmatprep.subr.bf16.mxu0 %v5634_v21  ;;  %3824 = vmatprep.subr.bf16.mxu1 %v5637_v22 }
 0x1ff   :  { %3497 = vmatpush1.bf16.msra.mxu0 %v5632_v23  ;;  %3825 = vmatpush1.bf16.msra.mxu1 %v5635_v18 }
 0x200   :  { %4752 = vmatprep.subr.bf16.mxu0 %v5640_v25  ;;  %4774 = vmatprep.subr.bf16.mxu1 %v5641_v26 }
 0x202   :  { %3499 = vmatmul.mubr.bf16.vlgmr.msra.gmra.mrb[0].mxu0 %v4205_v16  ;;  %3827 = vmatmul.mubr.bf16.vlgmr.msra.gmra.mrb[0].mxu1 %v4205_v16  ;;  %v4719_v16 = vld [vmem:[%s7413_s4] ss:$0 sm:$0xff] }
 0x203   :  { %4753 = vmatpush3.bf16.msra.mxu0 %v5642_v27  ;;  %4775 = vmatpush3.bf16.msra.mxu1 %v5643_v28 }
 0x204   :  { %4754 = vmatprep.subr.bf16.mxu0 %v5644_v29  ;;  %4776 = vmatprep.subr.bf16.mxu1 %v5645_v24 }
 0x207   :  { %4755 = vmatpush3.bf16.msra.mxu0 %v5646_v30  ;;  %4777 = vmatpush3.bf16.msra.mxu1 %v5647_v31 }
 0x208   :  { %4756 = vmatprep.subr.bf16.mxu0 %v5648_v32  ;;  %4778 = vmatprep.subr.bf16.mxu1 %v5649_v33 }
 0x20b   :  { %4757 = vmatpush3.bf16.msra.mxu0 %v5650_v34  ;;  %4779 = vmatpush3.bf16.msra.mxu1 %v5651_v35 }
 0x20c   :  { %4758 = vmatprep.subr.bf16.mxu0 %v5652_v36  ;;  %4780 = vmatprep.subr.bf16.mxu1 %v5653_v37 }
 0x20f   :  { %4759 = vmatpush3.bf16.msra.mxu0 %v5654_v38  ;;  %4781 = vmatpush3.bf16.msra.mxu1 %v5655_v39 }
 0x210   :  { %4760 = vmatprep.subr.bf16.mxu0 %v5656_v40  ;;  %4782 = vmatprep.subr.bf16.mxu1 %v5657_v41 }
 0x213   :  { %4761 = vmatpush3.bf16.msra.mxu0 %v5658_v42  ;;  %4783 = vmatpush3.bf16.msra.mxu1 %v5659_v43 }
 0x214   :  { %4762 = vmatprep.subr.bf16.mxu0 %v5660_v44  ;;  %4784 = vmatprep.subr.bf16.mxu1 %v5661_v45 }
 0x217   :  { %4763 = vmatpush3.bf16.msra.mxu0 %v5662_v46  ;;  %4785 = vmatpush3.bf16.msra.mxu1 %v5663_v47 }
 0x218   :  { %4764 = vmatprep.subr.bf16.mxu0 %v5664_v48  ;;  %4786 = vmatprep.subr.bf16.mxu1 %v5665_v49 }
 0x21b   :  { %4765 = vmatpush3.bf16.msra.mxu0 %v5666_v50  ;;  %4787 = vmatpush3.bf16.msra.mxu1 %v5667_v51 }
 0x21c   :  { %4766 = vmatprep.subr.bf16.mxu0 %v5668_v52  ;;  %4788 = vmatprep.subr.bf16.mxu1 %v5669_v53 }
 0x21f   :  { %4767 = vmatpush3.bf16.msra.mxu0 %v5670_v54  ;;  %4789 = vmatpush3.bf16.msra.mxu1 %v5671_v55 }
 0x2d5   :  { %v3500_v3 = vpop.f32.mrb[0].mxu0  ;;  %v3828_v4 = vpop.f32.mrb[0].mxu1 }
 0x2d6   :  { %v4796_v5 = vadd.f32 %v3500_v3, %v546_v63  ;;  %v4798_v6 = vadd.f32 %v3828_v4, %v554_v0  ;;  %v3502_v7 = vpop.f32.mrb[1].mxu0  ;;  %v3830_v8 = vpop.f32.mrb[1].mxu1 }
 0x2d7   :  { %v4797_v9 = vadd.f32 %v3502_v7, %v550_v1  ;;  %v4799_v10 = vadd.f32 %v3830_v8, %v558_v2  ;;  %v3504_v12 = vpop.f32.mrb[2].mxu0  ;;  %v3832_v13 = vpop.f32.mrb[2].mxu1 }
 0x2d8   :  { %v3835_v15 = vmax.f32 %v4796_v5, 0.0  ;;  %v3837_v11 = vmax.f32 %v4798_v6, 0.0  ;;  %v3505_v17 = vpop.f32.mrb[3].mxu0  ;;  %v3833_v14 = vpop.f32.mrb[3].mxu1 }
 0x2d9   :  { %v3836_v19 = vmax.f32 %v4797_v9, 0.0  ;;  %v3838_v20 = vmax.f32 %v4799_v10, 0.0 }
 0x2da   :  { %v3839_v23 = vpack.c.bf16 %v3835_v15, %v3835_v15  ;;  %v3841_v18 = vpack.c.bf16 %v3837_v11, %v3837_v11 }
 0x2db   :  { %v3840_v21 = vpack.c.bf16 %v3836_v19, %v3836_v19  ;;  %v3842_v22 = vpack.c.bf16 %v3838_v20, %v3838_v20 }
 0x2dd   :  { %4138 = vmatprep.mubr.bf16.mxu0 %v3840_v21  ;;  %4178 = vmatprep.mubr.bf16.mxu1 %v3842_v22 }
 0x2de   :  { %4139 = vmatmul.mubr.bf16.vlgmr.msra.gmra.mrb[4].mxu0 %v3839_v23  ;;  %4179 = vmatmul.mubr.bf16.vlgmr.msra.gmra.mrb[4].mxu1 %v3841_v18 }
 0x3b1   :  { %v4768_v25 = vpop.f32.mrb[4].mxu0  ;;  %v4790_v26 = vpop.f32.mrb[4].mxu1 }
 0x3b2   :  { %v4769_v27 = vpop.f32.mrb[5].mxu0  ;;  %v4791_v28 = vpop.f32.mrb[5].mxu1 }
 0x3b3   :  { %v4770_v29 = vadd.f32 %v4769_v27, %v4768_v25  ;;  %v4792_v24 = vadd.f32 %v4791_v28, %v4790_v26  ;;  %v4771_v30 = vpop.f32.mrb[6].mxu0  ;;  %v4793_v31 = vpop.f32.mrb[6].mxu1 }
 0x3b4   :  { %v4772_v32 = vpop.f32.mrb[7].mxu0  ;;  %v4794_v33 = vpop.f32.mrb[7].mxu1 }
 0x3b5   :  { %v4141_v34 = vadd.f32 %v4770_v29, %v4719_v16 }
 0x3b7   :  { %v4181_v35 = vadd.f32 %v4792_v24, %v4141_v34 }
 0x3b9   :  { %4186 = vst [vmem:[%s7414_s5] sm:$0xff] %v4181_v35 }

// kernel: heavynet_forward.4
= control target key start
LH: loop header
LB: loop body
LE: loop exit
PB: predicated region body
PF: predicated region fallthrough
CT: control target
= control target key end

     0   :  { %10 = vsyncpa [#allocation5], 0  ;;  %s6862_s0 = inlined_call_operand.vmem [shape: bf16[2,10,10,128], index: 0, kind: input, shape index: {}]   ;;  %s6863_s1 = inlined_call_operand.hbm [shape: bf16[9,128,128], index: 1, kind: input, shape index: {}]   ;;  %s6864_s2 = inlined_call_operand.hbm [shape: f32[1,128], index: 2, kind: input, shape index: {}]   ;;  %s6865_s3 = inlined_call_operand.hbm [shape: bf16[9,128,128], index: 3, kind: input, shape index: {}]   ;;  %s6866_s4 = inlined_call_operand.hbm [shape: f32[1,128], index: 4, kind: input, shape index: {}]   ;;  %s6867_s5 = inlined_call_operand.vmem [shape: bf16[2,4,4,128], index: 5, kind: output, shape index: {}]  }
   0x1   :  { %11 = vsyncpa [#allocation7], 0 }
   0x2   :  { %12 = vsyncpa [#allocation10], 0  ;;  %s5991_s18 = smov 0  }
   0x3 LB: > { %s5953_s19 = smov [#allocation6]   ;;  %s5997_s21 = sadd.s32 4294967295, %s5951_s18   ;;  %s5951_s18 = sphi %s5991_s18, %s18_s18  }
   0x4   : > { %s185_s20 = sshll.u32 %s5953_s19, 4  ;;  %p4572_p0 = scmp.ge.s32.totalorder %s5951_s18, 1  ;;  %s6002_s20 = int_to_ptr.vmem [resolvable:$true] %s185_s20 }
   0x5   : > { %p159_p1 = scmp.lt.s32.totalorder %s5951_s18, 3  ;;  %p6868_p2 = scmp.eq.s32.totalorder %s5997_s21, 0 }
   0x6   : > { %s5954_s23 = smov [#allocation4]   ;;  %s5955_s26 = smov [#allocation8]  }
   0x7   : > { %p6004_p3 = pnand %p4572_p0, %p159_p1  ;;  %s171_s24 = sshll.u32 %s5954_s23, 4  ;;  %s6010_s24 = int_to_ptr.vmem [resolvable:$true] %s171_s24 }
   0x8   : > { %s195_s27 = sshll.u32 %s5955_s26, 4  ;;  %s5956_s28 = smov [#allocation9]   ;;  %s6018_s27 = int_to_ptr.vmem [resolvable:$true] %s195_s27 }
   0x9   : > { %s6870_s22 = scalar_select %p6004_p3, 1, 0 }
   0xa   : > { %p5622_p4 = pneg %p6004_p3  ;;  %s6020_s29 = sshll.u32 %s5956_s28, 4  ;;  %s210_s29 = int_to_ptr.vmem [resolvable:$true] %s6020_s29 }
   0xb   : > { %s5821_s7 = scalar_lea.hbm %s6864_s2, 16 }
   0xc   : > { %p6014_p5 = pnand %p6868_p2, %p5622_p4  ;;  %p5822_p6 = scmp.ne.s32.totalorder %s6864_s2, %s5821_s7 }
   0xd   : > { %p5828_p10 = scmp.lt.u32.totalorder %s5821_s7, %s6864_s2 }
   0xe   : > { %p6030_p7 = pneg %p6014_p5 }
  0x10   : > { %p5824_p8 = pnand %p6030_p7, %p5822_p6 }
  0x12   : > { %p5825_p9 = pneg %p5824_p8 }
  0x14   : > { %p5830_p11 = pnand %p5828_p10, %p5825_p9 }
  0x16   : > { %5833 = shalt.err (!%p5830_p11)
}
  0x17   : > { %s5834_s13 = scalar_lea.vmem %s6002_s20, 16  ;;  %s5841_s14 = scalar_lea.vmem %s6002_s20, 32 }
  0x18   : > { %p5835_p12 = scmp.ne.s32.totalorder %s6002_s20, %s5834_s13  ;;  %p5842_p1 = scmp.lt.s32.totalorder %s6002_s20, %s6002_s20 }
  0x19   : > { %p5843_p4 = scmp.lt.s32.totalorder %s5841_s14, %s5834_s13 }
  0x1a   : > { %p5837_p13 = pnand %p5835_p12, %p6030_p7 }
  0x1b   : > { %p5844_p6 = por %p5843_p4, %p5842_p1 }
  0x1c   : > { %p5838_p0 = pneg %p5837_p13 }
  0x1e   : > { %p5845_p8 = pnand %p5844_p6, %p5838_p0 }
  0x20   : > { %5848 = shalt.err (!%p5845_p8)
}
  0x21   : > { %5628 = dma.hbm_to_vmem [thread:$0]  (!%p6014_p5), %s6864_s2, 16, %s6002_s20, [#allocation7]  }
  0x22   : > { %s5849_s23 = scalar_lea.hbm %s6863_s1, 9216 }
  0x23   : > { %p5850_p9 = scmp.ne.s32.totalorder %s6863_s1, %s5849_s23  ;;  %p5856_p12 = scmp.lt.u32.totalorder %s5849_s23, %s6863_s1 }
  0x25   : > { %p5852_p10 = pnand %p5850_p9, %p6030_p7 }
  0x27   : > { %p5853_p11 = pneg %p5852_p10 }
  0x29   : > { %p5858_p13 = pnand %p5856_p12, %p5853_p11 }
  0x2b   : > { %5861 = shalt.err (!%p5858_p13)
}
  0x2c   : > { %s5862_s20 = scalar_lea.vmem %s6010_s24, 9216  ;;  %p5870_p6 = scmp.lt.s32.totalorder %s6010_s24, %s6010_s24 }
  0x2d   : > { %p5863_p0 = scmp.ne.s32.totalorder %s6010_s24, %s5862_s20  ;;  %p5871_p8 = scmp.lt.s32.totalorder %s5862_s20, %s5862_s20 }
  0x2f   : > { %p5865_p1 = pnand %p5863_p0, %p6030_p7  ;;  %p5872_p9 = por %p5871_p8, %p5870_p6 }
  0x31   : > { %p5866_p4 = pneg %p5865_p1 }
  0x33   : > { %p5873_p10 = pnand %p5872_p9, %p5866_p4 }
  0x35   : > { %5876 = shalt.err (!%p5873_p10)
}
  0x36   : > { %s5957_s7 = smov 64   ;;  %s5958_s8 = smov 4  }
  0x37   : > { %5625 = dma.hbm_to_vmem [thread:$0]  (!%p6014_p5), %s6863_s1, 9216, %s6010_s24, [#allocation5], %s5957_s7, %s5957_s7, %s5958_s8  }
  0x38   : > { %s5877_s14 = scalar_lea.hbm %s6865_s3, 9216 }
  0x39   : > { %p5878_p11 = scmp.ne.s32.totalorder %s6865_s3, %s5877_s14  ;;  %p5884_p0 = scmp.lt.u32.totalorder %s5877_s14, %s6865_s3 }
  0x3b   : > { %p5880_p12 = pnand %p5878_p11, %p6030_p7 }
  0x3d   : > { %p5881_p13 = pneg %p5880_p12 }
  0x3f   : > { %p5886_p1 = pnand %p5884_p0, %p5881_p13 }
  0x41   : > { %5889 = shalt.err (!%p5886_p1)
}
  0x42   : > { %s5890_s24 = scalar_lea.vmem %s6018_s27, 9216  ;;  %p5898_p9 = scmp.lt.s32.totalorder %s6018_s27, %s6018_s27 }
  0x43   : > { %p5891_p4 = scmp.ne.s32.totalorder %s6018_s27, %s5890_s24  ;;  %p5899_p10 = scmp.lt.s32.totalorder %s5890_s24, %s5890_s24 }
  0x45   : > { %p5893_p6 = pnand %p5891_p4, %p6030_p7  ;;  %p5900_p11 = por %p5899_p10, %p5898_p9 }
  0x47   : > { %p5894_p8 = pneg %p5893_p6 }
  0x49   : > { %p5901_p12 = pnand %p5900_p11, %p5894_p8 }
  0x4b   : > { %5904 = shalt.err (!%p5901_p12)
}
  0x4c   : > { %5631 = dma.hbm_to_vmem [thread:$0]  (!%p6014_p5), %s6865_s3, 9216, %s6018_s27, [#allocation7], %s5957_s7, %s5957_s7, %s5958_s8  }
  0x4d   : > { %s5905_s6 = scalar_lea.hbm %s6866_s4, 16 }
  0x4e   : > { %p5906_p13 = scmp.ne.s32.totalorder %s6866_s4, %s5905_s6  ;;  %p5912_p4 = scmp.lt.u32.totalorder %s5905_s6, %s6866_s4 }
  0x50   : > { %p5908_p0 = pnand %p5906_p13, %p6030_p7 }
  0x52   : > { %p5909_p1 = pneg %p5908_p0 }
  0x54   : > { %p5914_p6 = pnand %p5912_p4, %p5909_p1 }
  0x56   : > { %5917 = shalt.err (!%p5914_p6)
}
  0x57   : > { %s5918_s13 = scalar_lea.vmem %s210_s29, 16  ;;  %s5925_s27 = scalar_lea.vmem %s210_s29, 32 }
  0x58   : > { %p5919_p8 = scmp.ne.s32.totalorder %s210_s29, %s5918_s13  ;;  %p5926_p11 = scmp.lt.s32.totalorder %s210_s29, %s210_s29 }
  0x59   : > { %p5927_p12 = scmp.lt.s32.totalorder %s5925_s27, %s5918_s13 }
  0x5a   : > { %p5921_p9 = pnand %p5919_p8, %p6030_p7 }
  0x5b   : > { %p5928_p2 = por %p5927_p12, %p5926_p11 }
  0x5c   : > { %p5922_p10 = pneg %p5921_p9 }
  0x5e   : > { %p5929_p3 = pnand %p5928_p2, %p5922_p10 }
  0x60   : > { %5932 = shalt.err (!%p5929_p3)
}
  0x61   : > { %5634 = dma.hbm_to_vmem [thread:$0]  (!%p6014_p5), %s6866_s4, 16, %s210_s29, [#allocation10]  }
  0x62   : > { %p6873_p13 = scmp.ne.s32.totalorder %s6870_s22, 0 }
  0x63   : > { %p6874_p0 = scmp.eq.s32.totalorder (!%p6873_p13), %s5997_s21, 0 }
  0x64   : > { %230 = sbr.rel (%p6873_p13) target bundleno = 1186 (0x4a2), region = 40 }
  0x6b   : > { %5938 = dma.done.wait (%p6874_p0), [#allocation5], 9216   ;;  %p6875_p7 = pmov %p6874_p0 }
  0x6c   : > { %p6876_p1 = pmov %p6874_p0 }
  0x6d   : > { %5940 = vsyncadd (%p6875_p7), [#allocation5], 4294958080 }
  0x6e   : > { %5942 = dma.done.wait (%p6876_p1), [#allocation7], 9232   ;;  %p6877_p2 = pmov %p6874_p0 }
  0x6f   : > { %p6878_p3 = pmov %p6874_p0 }
  0x70   : > { %5944 = vsyncadd (%p6877_p2), [#allocation7], 4294958064 }
  0x71   : > { %5946 = dma.done.wait (%p6878_p3), [#allocation10], 16   ;;  %p6879_p5 = pmov %p6874_p0 }
  0x72   : > { %p270_p4 = scmp.lt.s32.totalorder %s5997_s21, 1  ;;  %v5659_v0 = vld [vmem:[#allocation4] sm:$0xff]   ;;  %v5660_v1 = vld [vmem:[#allocation4 + $0x8] sm:$0xff]   ;;  %v5661_v2 = vld [vmem:[#allocation4 + $0x10] sm:$0xff]   ;;  %vm486_vm0 = vsmask.f32 3328 }
  0x73   : > { %5948 = vsyncadd (%p6879_p5), [#allocation10], 4294967280  ;;  %5045 = vmatprep.subr.bf16.mxu0 %v5659_v0  ;;  %v5662_v3 = vld [vmem:[#allocation4 + $0x18] sm:$0xff]   ;;  %v5663_v7 = vld [vmem:[#allocation4 + $0x20] sm:$0xff]   ;;  %vm487_vm1 = vsmask.f32 7440 }
  0x74   : > { %s6889_s21 = smov (!%p270_p4, %s5997_s21), 1  ;;  %5046 = vmatpush3.bf16.msra.mxu0 %v5659_v0  ;;  %v5664_v10 = vld [vmem:[#allocation4 + $0x28] sm:$0xff]   ;;  %v5665_v22 = vld [vmem:[#allocation4 + $0x30] sm:$0xff]   ;;  %v5666_v31 = vld [vmem:[#allocation4 + $0x38] sm:$0xff]   ;;  %vm779_vm3 = vcmask 1042432   ;;  %vm780_vm4 = vcmask 1046532  }
  0x75   : > { %s5605_s22 = smul.u32 80, %s6889_s21  ;;  %5047 = vmatprep.subr.bf16.mxu0 %v5660_v1  ;;  %vm6195_vm2 = vmor %vm486_vm0, %vm487_vm1  ;;  %v5668_v49 = vld [vmem:[#allocation4 + $0x40] sm:$0xff]   ;;  %v5670_v0 = vld [vmem:[#allocation4 + $0x48] sm:$0xff]   ;;  %vm2148_vm6 = vcmask 1043456   ;;  %vm2149_vm7 = vsmask.f32 7938 }
  0x76   : > { %vm6256_vm5 = vmor %vm779_vm3, %vm780_vm4  ;;  %vm2154_vm8 = vcmask 1040384   ;;  %vm2155_vm9 = vsmask.f32 256  ;;  %v5820_v47 = vld [vmem:[#allocation8 + $0x238] sm:$0xff]   ;;  %vm4022_vm12 = vcmask 1041408   ;;  %vm4408_vm13 = vcmask 1041409  }
  0x77   : > { %s6139_s10 = scalar_lea.vmem %s6862_s0, %s5605_s22  ;;  %vm6453_vm10 = vmand %vm2148_vm6, %vm2149_vm7  ;;  %vm4411_vm14 = vcmask 1042434   ;;  %vm4414_vm15 = vcmask 1043459   ;;  %s4820_s14 = sshll.u32 %s6889_s21, 3 }
  0x78   : > { %5048 = vmatpush3.bf16.msra.mxu0 %v5660_v1  ;;  %v6142_v4 = vld [vmem:[%s6139_s10] sm:$0xf]  ;;  %v6145_v5 = vld [vmem:[%s6139_s10 + $0x8] sm:$0xf]  ;;  %v6150_v8 = vld [vmem:[%s6139_s10 + $0x10] sm:$0xf]  ;;  %s6815_s21 = scalar_lea.vmem %s6867_s5, %s4820_s14 }
  0x79   : > { %5049 = vmatprep.subr.bf16.mxu0 %v5661_v2  ;;  %v4586_v6 = vcombine.low %v6142_v4, %v6145_v5  ;;  %v4630_v9 = vcombine.low %v6145_v5, %v6150_v8  ;;  %v518_v11 = vshrl.u32 %v6150_v8, 16  ;;  %v521_v12 = vshll.u32 %v6150_v8, 16  ;;  %v6159_v15 = vld [vmem:[%s6139_s10 + $0x18] sm:$0xf]  ;;  %v6162_v16 = vld [vmem:[%s6139_s10 + $0x20] sm:$0xf]  ;;  %vm6460_vm11 = vmand %vm2154_vm8, %vm2155_vm9 }
  0x7a   : > { %v490_v13 = vshrl.u32 %v6142_v4, 16  ;;  %v493_v14 = vshll.u32 %v6142_v4, 16  ;;  %v504_v19 = vshrl.u32 %v6145_v5, 16  ;;  %v4631_v20 = vcombine.low %v6159_v15, %v6162_v16  ;;  %v6170_v25 = vld [vmem:[%s6139_s10 + $0xc] sm:$0x1] }
  0x7b   : > { %5061 = vmatprep.mubr.bf16.mxu0 %v4586_v6  ;;  %v520_v17 = vrot.slane %v518_v11, 4  ;;  %v523_v18 = vrot.slane %v521_v12, 5  ;;  %v532_v21 = vshrl.u32 %v6159_v15, 16  ;;  %v535_v24 = vshll.u32 %v6159_v15, 16  ;;  %v6173_v27 = vld [vmem:[%s6139_s10 + $0x28] sm:$0xf] }
  0x7c   : > { %5050 = vmatpush3.bf16.msra.mxu0 %v5661_v2  ;;  %v492_v23 = vrot.slane %v490_v13, 4  ;;  %v495_v26 = vrot.slane %v493_v14, 5  ;;  %v506_v28 = vrot.slane %v504_v19, 4  ;;  %v507_v29 = vshll.u32 %v6145_v5, 16  ;;  %v6178_v32 = vld [vmem:[%s6139_s10 + $0x30] sm:$0xf] }
  0x7d   : > { %5051 = vmatprep.subr.bf16.mxu0 %v5662_v3  ;;  %v513_v30 = vshll.u32 %v6170_v25, 16  ;;  %v6181_v33 = vld [vmem:[%s6139_s10 + $0x14] sm:$0x1]  ;;  %v524_v34 = vor.u32 %v523_v18, %v520_v17  ;;  %v534_v35 = vrot.slane %v532_v21, 4  ;;  %v6184_v36 = vld [vmem:[%s6139_s10 + $0x4] sm:$0x1]  ;;  %v4632_v41 = vcombine.low %v6173_v27, %v6178_v32 }
  0x7e   : > { %v509_v37 = vrot.slane %v507_v29, 5  ;;  %v537_v38 = vrot.slane %v535_v24, 5  ;;  %v6187_v39 = vld [vmem:[%s6139_s10 + $0x1c] sm:$0x1]  ;;  %v527_v40 = vshll.u32 %v6181_v33, 16  ;;  %v546_v44 = vshrl.u32 %v6162_v16, 16 }
  0x7f   : > { %v515_v43 = vrot.slane %v513_v30, 5  ;;  %v525_v45 = vrot.slane %v524_v34, 4  ;;  %v496_v50 = vor.u32 %v495_v26, %v492_v23  ;;  %v499_v51 = vshll.u32 %v6184_v36, 16  ;;  %v290_v54 = vld [vmem:[%s6139_s10 + $0x24] sm:$0x1]  ;;  %v5672_v29 = vld [vmem:[#allocation4 + $0x58] sm:$0xff]  }
  0x80   : > { %5052 = vmatpush3.bf16.msra.mxu0 %v5662_v3  ;;  %v510_v42 = vor.u32 %v509_v37, %v506_v28  ;;  %v529_v46 = vrot.slane %v527_v40, 5  ;;  %v538_v52 = vor.u32 %v537_v38, %v534_v35  ;;  %v541_v53 = vshll.u32 %v6187_v39, 16  ;;  %v6224_v11 = vld [vmem:[%s6139_s10 + $0x38] sm:$0xf]  ;;  %v5671_v13 = vld [vmem:[#allocation4 + $0x50] sm:$0xff]  }
  0x81   : > { %5053 = vmatprep.subr.bf16.mxu0 %v5663_v7  ;;  %v548_v55 = vrot.slane %v546_v44, 4  ;;  %v549_v56 = vshll.u32 %v6162_v16, 16  ;;  %v6205_v57 = vcombine.low %v6150_v8, %v6159_v15  ;;  %v555_v60 = vshll.u32 %v290_v54, 16  ;;  %v6252_v37 = vld [vmem:[%s6139_s10 + $0x34] sm:$0x1] }
  0x82   : > { %v511_v48 = vrot.slane %v510_v42, 4  ;;  %v6213_v59 = vsel %vm6195_vm2, %v525_v45, %v529_v46  ;;  %v6217_v61 = vcombine.low %v6162_v16, %v6173_v27  ;;  %v497_v1 = vrot.slane %v496_v50, 4  ;;  %v5673_v46 = vld [vmem:[#allocation4 + $0x60] sm:$0xff]  }
  0x83   : > { %v551_v62 = vrot.slane %v549_v56, 5  ;;  %v501_v2 = vrot.slane %v499_v51, 5  ;;  %v539_v3 = vrot.slane %v538_v52, 4  ;;  %v543_v6 = vrot.slane %v541_v53, 5 }
  0x84   : > { %5054 = vmatpush3.bf16.msra.mxu0 %v5663_v7  ;;  %v6209_v58 = vsel %vm6195_vm2, %v511_v48, %v515_v43  ;;  %v560_v17 = vshrl.u32 %v6173_v27, 16  ;;  %v563_v18 = vshll.u32 %v6173_v27, 16  ;;  %v574_v19 = vshrl.u32 %v6178_v32, 16 }
  0x85   : > { %5055 = vmatprep.subr.bf16.mxu0 %v5664_v10  ;;  %v4642_v63 = vcombine.low %v6209_v58, %v6213_v59  ;;  %v552_v7 = vor.u32 %v551_v62, %v548_v55  ;;  %v502_v14 = vsel %vm6195_vm2, %v497_v1, %v501_v2  ;;  %v6233_v21 = vsel %vm6195_vm2, %v539_v3, %v543_v6  ;;  %v5676_v2 = vld [vmem:[#allocation4 + $0x70] sm:$0xff]   ;;  %v5678_v3 = vld [vmem:[#allocation4 + $0x78] sm:$0xff]  }
  0x86   : > { %v6241_v23 = vcombine.low %v6178_v32, %v6224_v11  ;;  %v577_v26 = vshll.u32 %v6178_v32, 16  ;;  %v4613_v28 = vrot.slane %v6159_v15, 9  ;;  %v4598_v30 = vcombine.low %v502_v14, %v6209_v58  ;;  %v6286_v14 = vld [vmem:[%s6139_s10 + $0x3c] sm:$0x1]  ;;  %v5701_v15 = vld [vmem:[#allocation4 + $0x120] sm:$0xff]  }
  0x87   : > { %v553_v12 = vrot.slane %v552_v7, 4  ;;  %v562_v34 = vrot.slane %v560_v17, 4  ;;  %v565_v35 = vrot.slane %v563_v18, 5  ;;  %v576_v38 = vrot.slane %v574_v19, 4  ;;  %v298_v58 = vld [vmem:[%s6139_s10 + $0x44] sm:$0x1] }
  0x88   : > { %5056 = vmatpush3.bf16.msra.mxu0 %v5664_v10  ;;  %v557_v10 = vrot.slane %v555_v60, 5  ;;  %v796_v40 = vrot.slane %v6187_v39, 5  ;;  %v579_v42 = vrot.slane %v577_v26, 5  ;;  %v4614_v44 = vrot.slane %v6162_v16, 9  ;;  %v5702_v16 = vld [vmem:[#allocation4 + $0x128] sm:$0xff]  }
  0x89   : > { %5057 = vmatprep.subr.bf16.mxu0 %v5665_v22  ;;  %v800_v45 = vrot.slane %v290_v54, 5  ;;  %v566_v51 = vor.u32 %v565_v35, %v562_v34  ;;  %v5674_v54 = vld [vmem:[#allocation4 + $0x68] sm:$0xff]   ;;  %v591_v1 = vshll.u32 %v6224_v11, 16  ;;  %v4612_v17 = vrot.slane %v6150_v8, 9  ;;  %v6372_v8 = vld [vmem:[%s6139_s10 + $0x40] sm:$0xf] }
  0x8a   : > { %v6265_v39 = vsel %vm6256_vm5, %v4613_v28, %v796_v40  ;;  %v580_v52 = vor.u32 %v579_v42, %v576_v38  ;;  %v4611_v18 = vrot.slane %v6145_v5, 9  ;;  %v788_v19 = vrot.slane %v6170_v25, 5  ;;  %v5680_v40 = vld [vmem:[#allocation4 + $0x88] sm:$0xff]   ;;  %v5699_v5 = vld [vmem:[#allocation4 + $0x110] sm:$0xff]  }
  0x8b   : > { %v6269_v50 = vsel %vm6256_vm5, %v4614_v44, %v800_v45  ;;  %v567_v60 = vrot.slane %v566_v51, 4  ;;  %v792_v26 = vrot.slane %v6181_v33, 5  ;;  %v4610_v34 = vrot.slane %v6142_v4, 9  ;;  %v5681_v45 = vld [vmem:[#allocation4 + $0x90] sm:$0xff]   ;;  %v5682_v51 = vld [vmem:[#allocation4 + $0x98] sm:$0xff]  }
  0x8c   : > { %5058 = vmatpush3.bf16.msra.mxu0 %v5665_v22  ;;  %v6237_v22 = vsel %vm6195_vm2, %v553_v12, %v557_v10  ;;  %v4656_v53 = vcombine.low %v6265_v39, %v6269_v50  ;;  %v581_v62 = vrot.slane %v580_v52, 4  ;;  %v593_v12 = vrot.slane %v591_v1, 5  ;;  %v5685_v1 = vld [vmem:[#allocation4 + $0xb0] sm:$0xff]  }
  0x8d   : > { %5059 = vmatprep.subr.bf16.mxu0 %v5666_v31  ;;  %v4643_v24 = vcombine.low %v6233_v21, %v6237_v22  ;;  %v784_v35 = vrot.slane %v6184_v36, 5  ;;  %v6297_v38 = vcombine.low %v6213_v59, %v6233_v21  ;;  %v6301_v25 = vsel %vm6256_vm5, %v4611_v18, %v788_v19  ;;  %v5740_v21 = vld [vmem:[#allocation8] sm:$0xff]  }
  0x8e   : > { %v6305_v33 = vsel %vm6256_vm5, %v4612_v17, %v792_v26  ;;  %v5688_v17 = vld [vmem:[#allocation4 + $0xc8] sm:$0xff]   ;;  %v4617_v19 = vrot.slane %v6224_v11, 9  ;;  %v812_v26 = vrot.slane %v6286_v14, 5  ;;  %5261 = vmatprep.subr.bf16.mxu1 %v5740_v21 }
  0x8f   : > { %v4655_v44 = vcombine.low %v6301_v25, %v6305_v33  ;;  %5262 = vmatpush3.bf16.msra.mxu1 %v5740_v21 }
  0x90   : > { %5060 = vmatpush3.bf16.msra.mxu0 %v5666_v31  ;;  %v6249_v31 = vld [vmem:[%s6139_s10 + $0x2c] sm:$0x1] }
  0x91   : > { %5069 = vmatprep.subr.bf16.mxu0 %v5668_v49  ;;  %v569_v48 = vshll.u32 %v6249_v31, 16 }
  0x93   : > { %5062 = vmatmul.mubr.bf16.vlgmr.msra.gmra.mrb[0].mxu0 %v6205_v57  ;;  %v571_v55 = vrot.slane %v569_v48, 5  ;;  %v785_v48 = vsel %vm6256_vm5, %v4610_v34, %v784_v35  ;;  %v5690_v34 = vld [vmem:[#allocation4 + $0xd8] sm:$0xff]   ;;  %v5692_v35 = vld [vmem:[#allocation4 + $0xe8] sm:$0xff]  }
  0x94   : > { %5070 = vmatpush3.bf16.msra.mxu0 %v5668_v49  ;;  %5065 = vmatprep.mubr.bf16.mxu0 %v6217_v61  ;;  %v583_v49 = vshll.u32 %v6252_v37, 16  ;;  %v4618_v52 = vcombine.low %v785_v48, %v6301_v25  ;;  %v5700_v48 = vld [vmem:[#allocation4 + $0x118] sm:$0xff]   ;;  %v4654_v25 = vrot.slane %v6372_v8, 9 }
  0x95   : > { %5071 = vmatprep.subr.bf16.mxu0 %v5670_v0  ;;  %v6277_v6 = vsel %vm6195_vm2, %v567_v60, %v571_v55  ;;  %v4615_v55 = vrot.slane %v6173_v27, 9  ;;  %v5684_v60 = vld [vmem:[#allocation4 + $0xa8] sm:$0xff]   ;;  %v1152_v27 = vshll.u32 %v6372_v8, 16 }
  0x96   : > { %v585_v56 = vrot.slane %v583_v49, 5  ;;  %v6309_v42 = vcombine.low %v6237_v22, %v6277_v6  ;;  %v5741_v22 = vld [vmem:[#allocation8 + $0x8] sm:$0xff]  }
  0x97   : > { %5263 = vmatprep.subr.bf16.mxu1 %v5741_v22 }
  0x98   : > { %5072 = vmatpush3.bf16.msra.mxu0 %v5670_v0  ;;  %v588_v0 = vshrl.u32 %v6224_v11, 16  ;;  %v6281_v7 = vsel %vm6195_vm2, %v581_v62, %v585_v56  ;;  %v804_v56 = vrot.slane %v6249_v31, 5  ;;  %v4616_v62 = vrot.slane %v6178_v32, 9  ;;  %v5686_v31 = vld [vmem:[#allocation4 + $0xb8] sm:$0xff]   ;;  %v5704_v32 = vld [vmem:[#allocation4 + $0x130] sm:$0xff]   ;;  %5264 = vmatpush3.bf16.msra.mxu1 %v5741_v22 }
  0x99   : > { %5073 = vmatprep.subr.bf16.mxu0 %v5671_v13 }
  0x9a   : > { %v590_v10 = vrot.slane %v588_v0, 4  ;;  %v808_v0 = vrot.slane %v6252_v37, 5  ;;  %v5687_v37 = vld [vmem:[#allocation4 + $0xc0] sm:$0xff]  }
  0x9b   : > { %5066 = vmatmul.mubr.bf16.gmra.mrb[4].mxu0 %v6241_v23 }
  0x9c   : > { %5074 = vmatpush3.bf16.msra.mxu0 %v5671_v13  ;;  %5085 = vmatprep.mubr.bf16.mxu0 %v4598_v30  ;;  %v4644_v13 = vcombine.low %v6277_v6, %v6281_v7  ;;  %v594_v28 = vor.u32 %v593_v12, %v590_v10  ;;  %v5679_v30 = vld [vmem:[#allocation4 + $0x80] sm:$0xff]   ;;  %v6343_v12 = vcombine.low %v6305_v33, %v6265_v39  ;;  %v5712_v6 = vld [vmem:[#allocation4 + $0x168] sm:$0xff]   ;;  %v1328_v33 = vrot.slane %v298_v58, 5 }
  0x9d   : > { %5075 = vmatprep.subr.bf16.mxu0 %v5672_v29  ;;  %v5719_v39 = vld [vmem:[#allocation4 + $0x1a0] sm:$0xff]  }
  0x9e   : > { %v595_v4 = vrot.slane %v594_v28, 4  ;;  %v5689_v28 = vld [vmem:[#allocation4 + $0xd0] sm:$0xff]  }
  0xa0   : > { %5076 = vmatpush3.bf16.msra.mxu0 %v5672_v29  ;;  %v597_v29 = vshll.u32 %v6286_v14, 16  ;;  %v5691_v14 = vld [vmem:[#allocation4 + $0xe0] sm:$0xff]  }
  0xa1   : > { %5077 = vmatprep.subr.bf16.mxu0 %v5673_v46 }
  0xa2   : > { %v599_v36 = vrot.slane %v597_v29, 5  ;;  %v6355_v29 = vsel %vm6256_vm5, %v4617_v19, %v812_v26  ;;  %v5718_v19 = vld [vmem:[#allocation4 + $0x198] sm:$0xff]   ;;  %v5725_v26 = vld [vmem:[#allocation4 + $0x1d0] sm:$0xff]  }
  0xa4   : > { %5078 = vmatpush3.bf16.msra.mxu0 %v5673_v46  ;;  %v6317_v46 = vsel %vm6195_vm2, %v595_v4, %v599_v36  ;;  %v5694_v4 = vld [vmem:[#allocation4 + $0xf8] sm:$0xff]   ;;  %v5696_v36 = vld [vmem:[#allocation4 + $0x100] sm:$0xff]  }
  0xa5   : > { %5079 = vmatprep.subr.bf16.mxu0 %v5674_v54  ;;  %v6323_v49 = vcombine.low %v6281_v7, %v6317_v46  ;;  %v5713_v7 = vld [vmem:[#allocation4 + $0x170] sm:$0xff]  }
  0xa8   : > { %5080 = vmatpush3.bf16.msra.mxu0 %v5674_v54  ;;  %v5683_v54 = vld [vmem:[#allocation4 + $0xa0] sm:$0xff]  }
  0xa9   : > { %5081 = vmatprep.subr.bf16.mxu0 %v5676_v2 }
  0xac   : > { %5082 = vmatpush3.bf16.msra.mxu0 %v5676_v2  ;;  %v6333_v2 = vsel %vm6256_vm5, %v4615_v55, %v804_v56  ;;  %v5708_v56 = vld [vmem:[#allocation4 + $0x148] sm:$0xff]  }
  0xad   : > { %5083 = vmatprep.subr.bf16.mxu0 %v5678_v3  ;;  %v6347_v18 = vcombine.low %v6269_v50, %v6333_v2  ;;  %v5720_v50 = vld [vmem:[#allocation4 + $0x1a8] sm:$0xff]  }
  0xb0   : > { %5084 = vmatpush3.bf16.msra.mxu0 %v5678_v3  ;;  %v6337_v3 = vsel %vm6256_vm5, %v4616_v62, %v808_v0  ;;  %v5709_v62 = vld [vmem:[#allocation4 + $0x150] sm:$0xff]  }
  0xb1   : > { %5093 = vmatprep.subr.bf16.mxu0 %v5679_v30  ;;  %v4657_v10 = vcombine.low %v6333_v2, %v6337_v3  ;;  %v5722_v2 = vld [vmem:[#allocation4 + $0x1b8] sm:$0xff]  }
  0xb3   : > { %5086 = vmatmul.mubr.bf16.vlgmr.msra.gmra.mrb[0].mxu0 %v6297_v38 }
  0xb4   : > { %5094 = vmatpush3.bf16.msra.mxu0 %v5679_v30  ;;  %5089 = vmatprep.mubr.bf16.mxu0 %v6309_v42  ;;  %v6359_v30 = vcombine.low %v6337_v3, %v6355_v29  ;;  %v5723_v3 = vld [vmem:[#allocation4 + $0x1c0] sm:$0xff]  }
  0xb5   : > { %5095 = vmatprep.subr.bf16.mxu0 %v5680_v40 }
  0xb8   : > { %5096 = vmatpush3.bf16.msra.mxu0 %v5680_v40  ;;  %v5693_v40 = vld [vmem:[#allocation4 + $0xf0] sm:$0xff]  }
  0xb9   : > { %5097 = vmatprep.subr.bf16.mxu0 %v5681_v45 }
  0xbb   : > { %5090 = vmatmul.mubr.bf16.gmra.mrb[4].mxu0 %v6323_v49 }
  0xbc   : > { %5098 = vmatpush3.bf16.msra.mxu0 %v5681_v45  ;;  %5109 = vmatprep.mubr.bf16.mxu0 %v4618_v52  ;;  %v5698_v45 = vld [vmem:[#allocation4 + $0x108] sm:$0xff]   ;;  %v5707_v52 = vld [vmem:[#allocation4 + $0x140] sm:$0xff]  }
  0xbd   : > { %5099 = vmatprep.subr.bf16.mxu0 %v5682_v51 }
  0xc0   : > { %5100 = vmatpush3.bf16.msra.mxu0 %v5682_v51  ;;  %v5706_v51 = vld [vmem:[#allocation4 + $0x138] sm:$0xff]  }
  0xc1   : > { %5101 = vmatprep.subr.bf16.mxu0 %v5683_v54 }
  0xc4   : > { %5102 = vmatpush3.bf16.msra.mxu0 %v5683_v54 }
  0xc5   : > { %5103 = vmatprep.subr.bf16.mxu0 %v5684_v60 }
  0xc8   : > { %5104 = vmatpush3.bf16.msra.mxu0 %v5684_v60 }
  0xc9   : > { %5105 = vmatprep.subr.bf16.mxu0 %v5685_v1 }
  0xcc   : > { %5106 = vmatpush3.bf16.msra.mxu0 %v5685_v1  ;;  %v5710_v1 = vld [vmem:[#allocation4 + $0x158] sm:$0xff]  }
  0xcd   : > { %5107 = vmatprep.subr.bf16.mxu0 %v5686_v31 }
  0xd0   : > { %5108 = vmatpush3.bf16.msra.mxu0 %v5686_v31  ;;  %v6406_v31 = vsel %vm6256_vm5, %v4654_v25, %v1328_v33 }
  0xd1   : > { %5117 = vmatprep.subr.bf16.mxu0 %v5687_v37 }
  0xd3   : > { %5110 = vmatmul.mubr.bf16.vlgmr.msra.gmra.mrb[0].mxu0 %v6343_v12 }
  0xd4   : > { %5118 = vmatpush3.bf16.msra.mxu0 %v5687_v37  ;;  %5113 = vmatprep.mubr.bf16.mxu0 %v6347_v18  ;;  %v5717_v37 = vld [vmem:[#allocation4 + $0x190] sm:$0xff]  }
  0xd5   : > { %5119 = vmatprep.subr.bf16.mxu0 %v5688_v17 }
  0xd8   : > { %5120 = vmatpush3.bf16.msra.mxu0 %v5688_v17  ;;  %v4658_v17 = vcombine.low %v6355_v29, %v6406_v31  ;;  %v5726_v29 = vld [vmem:[#allocation4 + $0x1d8] sm:$0xff]  }
  0xd9   : > { %5121 = vmatprep.subr.bf16.mxu0 %v5689_v28 }
  0xdb   : > { %5114 = vmatmul.mubr.bf16.gmra.mrb[4].mxu0 %v6359_v30 }
  0xdc   : > { %5122 = vmatpush3.bf16.msra.mxu0 %v5689_v28  ;;  %5133 = vmatprep.mubr.bf16.mxu0 %v4630_v9  ;;  %v4633_v9 = vcombine.low %v6224_v11, %v6372_v8  ;;  %v1154_v11 = vrot.slane %v1152_v27, 5 }
  0xdd   : > { %5123 = vmatprep.subr.bf16.mxu0 %v5690_v34 }
  0xe0   : > { %5124 = vmatpush3.bf16.msra.mxu0 %v5690_v34 }
  0xe1   : > { %5125 = vmatprep.subr.bf16.mxu0 %v5691_v14 }
  0xe4   : > { %5126 = vmatpush3.bf16.msra.mxu0 %v5691_v14 }
  0xe5   : > { %5127 = vmatprep.subr.bf16.mxu0 %v5692_v35 }
  0xe8   : > { %5128 = vmatpush3.bf16.msra.mxu0 %v5692_v35  ;;  %v5729_v35 = vld [vmem:[#allocation4 + $0x1f0] sm:$0xff]  }
  0xe9   : > { %5129 = vmatprep.subr.bf16.mxu0 %v5693_v40 }
  0xec   : > { %5130 = vmatpush3.bf16.msra.mxu0 %v5693_v40 }
  0xed   : > { %5131 = vmatprep.subr.bf16.mxu0 %v5694_v4 }
  0xf0   : > { %5132 = vmatpush3.bf16.msra.mxu0 %v5694_v4 }
  0xf1   : > { %5141 = vmatprep.subr.bf16.mxu0 %v5696_v36 }
  0xf3   : > { %5134 = vmatmul.mubr.bf16.vlgmr.msra.gmra.mrb[0].mxu0 %v4631_v20  ;;  %v1149_v20 = vshrl.u32 %v6372_v8, 16 }
  0xf4   : > { %5142 = vmatpush3.bf16.msra.mxu0 %v5696_v36  ;;  %5137 = vmatprep.mubr.bf16.mxu0 %v4632_v41  ;;  %v5731_v36 = vld [vmem:[#allocation4 + $0x1f8] sm:$0xff]  }
  0xf5   : > { %5143 = vmatprep.subr.bf16.mxu0 %v5698_v45  ;;  %v1151_v41 = vrot.slane %v1149_v20, 4  ;;  %v5734_v20 = vld [vmem:[#allocation4 + $0x210] sm:$0xff]  }
  0xf7   : > { %v1155_v59 = vor.u32 %v1154_v11, %v1151_v41  ;;  %v5736_v41 = vld [vmem:[#allocation4 + $0x220] sm:$0xff]   ;;  %v5739_v11 = vld [vmem:[#allocation4 + $0x238] sm:$0xff]  }
  0xf8   : > { %5144 = vmatpush3.bf16.msra.mxu0 %v5698_v45  ;;  %v300_v45 = vld [vmem:[%s6139_s10 + $0x4c] sm:$0x1] }
  0xf9   : > { %5145 = vmatprep.subr.bf16.mxu0 %v5699_v5  ;;  %v1156_v54 = vrot.slane %v1155_v59, 4 }
  0xfb   : > { %5138 = vmatmul.mubr.bf16.gmra.mrb[4].mxu0 %v4633_v9 }
  0xfc   : > { %5146 = vmatpush3.bf16.msra.mxu0 %v5699_v5  ;;  %5157 = vmatprep.mubr.bf16.mxu0 %v4642_v63  ;;  %v1158_v63 = vshll.u32 %v298_v58, 16  ;;  %v1661_v5 = vshll.u32 %v300_v45, 16  ;;  %v1825_v58 = vrot.slane %v300_v45, 5 }
  0xfd   : > { %5147 = vmatprep.subr.bf16.mxu0 %v5700_v48 }
  0xfe   : > { %v1160_v55 = vrot.slane %v1158_v63, 5  ;;  %v5742_v63 = vld [vmem:[#allocation8 + $0x10] sm:$0xff]  }
  0xff   : > { %5265 = vmatprep.subr.bf16.mxu1 %v5742_v63 }
 0x100   : > { %5148 = vmatpush3.bf16.msra.mxu0 %v5700_v48  ;;  %v6390_v60 = vsel %vm6195_vm2, %v1156_v54, %v1160_v55  ;;  %v1663_v48 = vrot.slane %v1661_v5, 5  ;;  %5266 = vmatpush3.bf16.msra.mxu1 %v5742_v63  ;;  %v5745_v54 = vld [vmem:[#allocation8 + $0x28] sm:$0xff]   ;;  %v5746_v55 = vld [vmem:[#allocation8 + $0x30] sm:$0xff]  }
 0x101   : > { %5149 = vmatprep.subr.bf16.mxu0 %v5701_v15  ;;  %v4645_v0 = vcombine.low %v6317_v46, %v6390_v60  ;;  %v5715_v46 = vld [vmem:[#allocation4 + $0x180] sm:$0xff]  }
 0x104   : > { %5150 = vmatpush3.bf16.msra.mxu0 %v5701_v15  ;;  %v5733_v15 = vld [vmem:[#allocation4 + $0x208] sm:$0xff]  }
 0x105   : > { %5151 = vmatprep.subr.bf16.mxu0 %v5702_v16 }
 0x108   : > { %5152 = vmatpush3.bf16.msra.mxu0 %v5702_v16 }
 0x109   : > { %5153 = vmatprep.subr.bf16.mxu0 %v5704_v32 }
 0x10c   : > { %5154 = vmatpush3.bf16.msra.mxu0 %v5704_v32  ;;  %v5735_v32 = vld [vmem:[#allocation4 + $0x218] sm:$0xff]  }
 0x10d   : > { %5155 = vmatprep.subr.bf16.mxu0 %v5706_v51 }
 0x110   : > { %5156 = vmatpush3.bf16.msra.mxu0 %v5706_v51 }
 0x111   : > { %5165 = vmatprep.subr.bf16.mxu0 %v5707_v52 }
 0x113   : > { %5158 = vmatmul.mubr.bf16.vlgmr.msra.gmra.mrb[0].mxu0 %v4643_v24  ;;  %v5711_v24 = vld [vmem:[#allocation4 + $0x160] sm:$0xff]  }
 0x114   : > { %5166 = vmatpush3.bf16.msra.mxu0 %v5707_v52  ;;  %5161 = vmatprep.mubr.bf16.mxu0 %v4644_v13  ;;  %v5714_v13 = vld [vmem:[#allocation4 + $0x178] sm:$0xff]   ;;  %v5959_v52 = vmov 0  }
 0x115   : > { %5167 = vmatprep.subr.bf16.mxu0 %v5708_v56  ;;  %2021 = vst [vmem:[#allocation3 + $0x18] sm:$0xf] %v5959_v52  ;;  %2022 = vst [vmem:[#allocation3 + $0x1c] sm:$0x1] %v5959_v52 }
 0x116   : > { %2015 = vst [vmem:[#allocation3] sm:$0xf] %v5959_v52  ;;  %2016 = vst [vmem:[#allocation3 + $0x4] sm:$0x1] %v5959_v52 }
 0x117   : > { %2017 = vst [vmem:[#allocation3 + $0x8] sm:$0xf] %v5959_v52  ;;  %2018 = vst [vmem:[#allocation3 + $0xc] sm:$0x1] %v5959_v52 }
 0x118   : > { %5168 = vmatpush3.bf16.msra.mxu0 %v5708_v56  ;;  %2019 = vst [vmem:[#allocation3 + $0x10] sm:$0xf] %v5959_v52  ;;  %2020 = vst [vmem:[#allocation3 + $0x14] sm:$0x1] %v5959_v52  ;;  %v5747_v56 = vld [vmem:[#allocation8 + $0x38] sm:$0xff]  }
 0x119   : > { %5169 = vmatprep.subr.bf16.mxu0 %v5709_v62  ;;  %2023 = vst [vmem:[#allocation3 + $0x20] sm:$0xf] %v5959_v52  ;;  %2024 = vst [vmem:[#allocation3 + $0x24] sm:$0x1] %v5959_v52 }
 0x11a   : > { %2025 = vst [vmem:[#allocation3 + $0x28] sm:$0xf] %v5959_v52  ;;  %2026 = vst [vmem:[#allocation3 + $0x2c] sm:$0x1] %v5959_v52 }
 0x11b   : > { %5162 = vmatmul.mubr.bf16.gmra.mrb[4].mxu0 %v4645_v0  ;;  %2027 = vst [vmem:[#allocation3 + $0x30] sm:$0xf] %v5959_v52  ;;  %2028 = vst [vmem:[#allocation3 + $0x34] sm:$0x1] %v5959_v52 }
 0x11c   : > { %5170 = vmatpush3.bf16.msra.mxu0 %v5709_v62  ;;  %5181 = vmatprep.mubr.bf16.mxu0 %v4655_v44  ;;  %v5716_v44 = vld [vmem:[#allocation4 + $0x188] sm:$0xff]   ;;  %2029 = vst [vmem:[#allocation3 + $0x38] sm:$0xf] %v5959_v52  ;;  %2030 = vst [vmem:[#allocation3 + $0x3c] sm:$0x1] %v5959_v52 }
 0x11d   : > { %5171 = vmatprep.subr.bf16.mxu0 %v5710_v1  ;;  %2031 = vst [vmem:[#allocation3 + $0x40] sm:$0xf] %v5959_v52  ;;  %2032 = vst [vmem:[#allocation3 + $0x44] sm:$0x1] %v5959_v52  ;;  %v6437_v62 = vld [vmem:[#allocation6] ss:$0 sm:$0xff] }
 0x11e   : > { %2033 = vst [vmem:[#allocation3 + $0x48] sm:$0xf] %v5959_v52  ;;  %2034 = vst [vmem:[#allocation3 + $0x4c] sm:$0x1] %v5959_v52 }
 0x120   : > { %5172 = vmatpush3.bf16.msra.mxu0 %v5710_v1  ;;  %v6439_v1 = vld [vmem:[#allocation3] sm:$0xf] }
 0x121   : > { %5173 = vmatprep.subr.bf16.mxu0 %v5711_v24  ;;  %v2408_v25 = vshrl.u32 %v6439_v1, 16  ;;  %v2411_v33 = vshll.u32 %v6439_v1, 16 }
 0x124   : > { %5174 = vmatpush3.bf16.msra.mxu0 %v5711_v24 }
 0x125   : > { %5175 = vmatprep.subr.bf16.mxu0 %v5712_v6 }
 0x128   : > { %5176 = vmatpush3.bf16.msra.mxu0 %v5712_v6 }
 0x129   : > { %5177 = vmatprep.subr.bf16.mxu0 %v5713_v7 }
 0x12c   : > { %5178 = vmatpush3.bf16.msra.mxu0 %v5713_v7 }
 0x12d   : > { %5179 = vmatprep.subr.bf16.mxu0 %v5714_v13 }
 0x130   : > { %5180 = vmatpush3.bf16.msra.mxu0 %v5714_v13 }
 0x131   : > { %5189 = vmatprep.subr.bf16.mxu0 %v5715_v46 }
 0x133   : > { %5182 = vmatmul.mubr.bf16.vlgmr.msra.gmra.mrb[0].mxu0 %v4656_v53  ;;  %v5721_v53 = vld [vmem:[#allocation4 + $0x1b0] sm:$0xff]  }
 0x134   : > { %5190 = vmatpush3.bf16.msra.mxu0 %v5715_v46  ;;  %5185 = vmatprep.mubr.bf16.mxu0 %v4657_v10  ;;  %v5724_v10 = vld [vmem:[#allocation4 + $0x1c8] sm:$0xff]  }
 0x135   : > { %5191 = vmatprep.subr.bf16.mxu0 %v5716_v44 }
 0x138   : > { %5192 = vmatpush3.bf16.msra.mxu0 %v5716_v44 }
 0x139   : > { %5193 = vmatprep.subr.bf16.mxu0 %v5717_v37 }
 0x13b   : > { %5186 = vmatmul.mubr.bf16.gmra.mrb[4].mxu0 %v4658_v17 }
 0x13c   : > { %5194 = vmatpush3.bf16.msra.mxu0 %v5717_v37  ;;  %5205 = vmatprep.mubr.bf16.mxu0 %v6205_v57  ;;  %v6414_v57 = vld [vmem:[%s6139_s10 + $0x48] sm:$0xf] }
 0x13d   : > { %5195 = vmatprep.subr.bf16.mxu0 %v5718_v19  ;;  %v4667_v28 = vcombine.low %v6372_v8, %v6414_v57  ;;  %v1652_v34 = vshrl.u32 %v6414_v57, 16  ;;  %v1655_v14 = vshll.u32 %v6414_v57, 16  ;;  %v5732_v8 = vld [vmem:[#allocation4 + $0x200] sm:$0xff]   ;;  %v4685_v51 = vrot.slane %v6414_v57, 9  ;;  %v2166_v57 = vld [vmem:[#allocation3 + $0x18] sm:$0xf] }
 0x13f   : > { %v1654_v40 = vrot.slane %v1652_v34, 4  ;;  %v1657_v4 = vrot.slane %v1655_v14, 5 }
 0x140   : > { %5196 = vmatpush3.bf16.msra.mxu0 %v5718_v19 }
 0x141   : > { %5197 = vmatprep.subr.bf16.mxu0 %v5719_v39 }
 0x144   : > { %5198 = vmatpush3.bf16.msra.mxu0 %v5719_v39 }
 0x145   : > { %5199 = vmatprep.subr.bf16.mxu0 %v5720_v50 }
 0x148   : > { %5200 = vmatpush3.bf16.msra.mxu0 %v5720_v50 }
 0x149   : > { %5201 = vmatprep.subr.bf16.mxu0 %v5721_v53 }
 0x14c   : > { %5202 = vmatpush3.bf16.msra.mxu0 %v5721_v53 }
 0x14d   : > { %5203 = vmatprep.subr.bf16.mxu0 %v5722_v2 }
 0x150   : > { %5204 = vmatpush3.bf16.msra.mxu0 %v5722_v2  ;;  %v6447_v2 = vrot.slane %v2408_v25, 4 }
 0x151   : > { %5213 = vmatprep.subr.bf16.mxu0 %v5723_v3 }
 0x153   : > { %5206 = vmatmul.mubr.bf16.vlgmr.msra.gmra.mrb[0].mxu0 %v6217_v61  ;;  %v5727_v61 = vld [vmem:[#allocation4 + $0x1e0] sm:$0xff]  }
 0x154   : > { %5214 = vmatpush3.bf16.msra.mxu0 %v5723_v3  ;;  %5209 = vmatprep.mubr.bf16.mxu0 %v6241_v23  ;;  %v5728_v23 = vld [vmem:[#allocation4 + $0x1e8] sm:$0xff]   ;;  %v6449_v3 = vrot.slane %v2411_v33, 5 }
 0x155   : > { %5215 = vmatprep.subr.bf16.mxu0 %v5724_v10 }
 0x158   : > { %5216 = vmatpush3.bf16.msra.mxu0 %v5724_v10 }
 0x159   : > { %5217 = vmatprep.subr.bf16.mxu0 %v5725_v26 }
 0x15b   : > { %5210 = vmatmul.mubr.bf16.gmra.mrb[4].mxu0 %v4667_v28 }
 0x15c   : > { %5218 = vmatpush3.bf16.msra.mxu0 %v5725_v26  ;;  %5229 = vmatprep.mubr.bf16.mxu0 %v6297_v38  ;;  %v1658_v38 = vor.u32 %v1657_v4, %v1654_v40  ;;  %v2169_v26 = vld [vmem:[#allocation3 + $0x1c] sm:$0x1] }
 0x15d   : > { %5219 = vmatprep.subr.bf16.mxu0 %v5726_v29 }
 0x15e   : > { %v1659_v9 = vrot.slane %v1658_v38, 4 }
 0x160   : > { %5220 = vmatpush3.bf16.msra.mxu0 %v5726_v29  ;;  %v1664_v16 = vsel %vm6195_vm2, %v1659_v9, %v1663_v48 }
 0x161   : > { %5221 = vmatprep.subr.bf16.mxu0 %v5727_v61  ;;  %v4676_v27 = vcombine.low %v6390_v60, %v1664_v16  ;;  %v6434_v60 = vld [vmem:[#allocation8 + $0x40] sm:$0xff]  }
 0x164   : > { %5222 = vmatpush3.bf16.msra.mxu0 %v5727_v61 }
 0x165   : > { %5223 = vmatprep.subr.bf16.mxu0 %v5728_v23 }
 0x168   : > { %5224 = vmatpush3.bf16.msra.mxu0 %v5728_v23 }
 0x169   : > { %5225 = vmatprep.subr.bf16.mxu0 %v5729_v35 }
 0x16c   : > { %5226 = vmatpush3.bf16.msra.mxu0 %v5729_v35  ;;  %v2151_v35 = vld [vmem:[#allocation3 + $0x8] sm:$0xf] }
 0x16d   : > { %5227 = vmatprep.subr.bf16.mxu0 %v5731_v36 }
 0x170   : > { %5228 = vmatpush3.bf16.msra.mxu0 %v5731_v36 }
 0x171   : > { %5237 = vmatprep.subr.bf16.mxu0 %v5732_v8 }
 0x173   : > { %5230 = vmatmul.mubr.bf16.vlgmr.msra.gmra.mrb[0].mxu0 %v6309_v42  ;;  %v5737_v42 = vld [vmem:[#allocation4 + $0x228] sm:$0xff]  }
 0x174   : > { %5238 = vmatpush3.bf16.msra.mxu0 %v5732_v8  ;;  %5233 = vmatprep.mubr.bf16.mxu0 %v6323_v49  ;;  %v5738_v49 = vld [vmem:[#allocation4 + $0x230] sm:$0xff]   ;;  %v2157_v8 = vld [vmem:[#allocation3 + $0xc] sm:$0x1] }
 0x175   : > { %5239 = vmatprep.subr.bf16.mxu0 %v5733_v15 }
 0x178   : > { %5240 = vmatpush3.bf16.msra.mxu0 %v5733_v15 }
 0x179   : > { %5241 = vmatprep.subr.bf16.mxu0 %v5734_v20 }
 0x17b   : > { %5234 = vmatmul.mubr.bf16.gmra.mrb[4].mxu0 %v4676_v27 }
 0x17c   : > { %5242 = vmatpush3.bf16.msra.mxu0 %v5734_v20  ;;  %5253 = vmatprep.mubr.bf16.mxu0 %v6343_v12  ;;  %v1826_v12 = vsel %vm6256_vm5, %v4685_v51, %v1825_v58  ;;  %v2175_v58 = vld [vmem:[#allocation3 + $0x24] sm:$0x1] }
 0x17d   : > { %5243 = vmatprep.subr.bf16.mxu0 %v5735_v32  ;;  %v4686_v59 = vcombine.low %v6406_v31, %v1826_v12 }
 0x180   : > { %5244 = vmatpush3.bf16.msra.mxu0 %v5735_v32 }
 0x181   : > { %5245 = vmatprep.subr.bf16.mxu0 %v5736_v41 }
 0x184   : > { %5246 = vmatpush3.bf16.msra.mxu0 %v5736_v41  ;;  %v2172_v41 = vld [vmem:[#allocation3 + $0x20] sm:$0xf] }
 0x185   : > { %5247 = vmatprep.subr.bf16.mxu0 %v5737_v42 }
 0x188   : > { %5248 = vmatpush3.bf16.msra.mxu0 %v5737_v42 }
 0x189   : > { %5249 = vmatprep.subr.bf16.mxu0 %v5738_v49 }
 0x18c   : > { %5250 = vmatpush3.bf16.msra.mxu0 %v5738_v49 }
 0x18d   : > { %5251 = vmatprep.subr.bf16.mxu0 %v5739_v11 }
 0x190   : > { %5252 = vmatpush3.bf16.msra.mxu0 %v5739_v11 }
 0x193   : > { %5254 = vmatmul.mubr.bf16.vlgmr.msra.gmra.mrb[0].mxu0 %v6347_v18  ;;  %v5743_v18 = vld [vmem:[#allocation8 + $0x18] sm:$0xff]  }
 0x194   : > { %5257 = vmatprep.mubr.bf16.mxu0 %v6359_v30  ;;  %5267 = vmatprep.subr.bf16.mxu1 %v5743_v18  ;;  %v5744_v30 = vld [vmem:[#allocation8 + $0x20] sm:$0xff]  }
 0x195   : > { %5268 = vmatpush3.bf16.msra.mxu1 %v5743_v18 }
 0x196   : > { %5269 = vmatprep.subr.bf16.mxu1 %v5744_v30 }
 0x199   : > { %5270 = vmatpush3.bf16.msra.mxu1 %v5744_v30 }
 0x19a   : > { %5271 = vmatprep.subr.bf16.mxu1 %v5745_v54 }
 0x19b   : > { %5258 = vmatmul.mubr.bf16.gmra.mrb[4].mxu0 %v4686_v59 }
 0x19d   : > { %5272 = vmatpush3.bf16.msra.mxu1 %v5745_v54  ;;  %v2160_v54 = vld [vmem:[#allocation3 + $0x10] sm:$0xf] }
 0x19e   : > { %5273 = vmatprep.subr.bf16.mxu1 %v5746_v55 }
 0x1a1   : > { %5274 = vmatpush3.bf16.msra.mxu1 %v5746_v55  ;;  %v2163_v55 = vld [vmem:[#allocation3 + $0x14] sm:$0x1] }
 0x1a2   : > { %5275 = vmatprep.subr.bf16.mxu1 %v5747_v56 }
 0x1a5   : > { %5276 = vmatpush3.bf16.msra.mxu1 %v5747_v56 }
 0x1a6   : > { %5285 = vmatprep.subr.bf16.mxu1 %v6434_v60 }
 0x266   : > { %v5255_v0 = vpop.f32.mrb[0].mxu0 }
 0x267   : > { %v2001_v21 = vadd.f32 %v5255_v0, %v6437_v62  ;;  %v1937_v22 = vpop.f32.mrb[1].mxu0 }
 0x268   : > { %v1999_v24 = vadd.f32 %v6437_v62, %v1937_v22  ;;  %v5256_v6 = vpop.f32.mrb[2].mxu0 }
 0x269   : > { %v2009_v7 = vmax.f32 %v2001_v21, 0.0  ;;  %v2002_v13 = vadd.f32 %v5256_v6, %v6437_v62  ;;  %v1940_v46 = vpop.f32.mrb[3].mxu0 }
 0x26a   : > { %v2007_v44 = vmax.f32 %v1999_v24, 0.0  ;;  %v2000_v31 = vadd.f32 %v6437_v62, %v1940_v46 }
 0x26b   : > { %v4823_v37 = vpack.c.bf16 %v2009_v7, %v2009_v7  ;;  %v2010_v17 = vmax.f32 %v2002_v13, 0.0 }
 0x26c   : > { %v4821_v19 = vpack.c.bf16 %v2007_v44, %v2007_v44  ;;  %v2008_v39 = vmax.f32 %v2000_v31, 0.0 }
 0x26d   : > { %v2084_v50 = vshrl.u32 %v4823_v37, 16  ;;  %v4824_v53 = vpack.c.bf16 %v2010_v17, %v2010_v17  ;;  %v2087_v10 = vshll.u32 %v4823_v37, 16  ;;  %v2190_v17 = vld [vmem:[#allocation3 + $0x38] sm:$0xf] }
 0x26e   : > { %v2068_v28 = vshrl.u32 %v4821_v19, 16  ;;  %v2071_v29 = vshll.u32 %v4821_v19, 16  ;;  %v4822_v61 = vpack.c.bf16 %v2008_v39, %v2008_v39  ;;  %v5259_v23 = vpop.f32.mrb[4].mxu0  ;;  %v2193_v19 = vld [vmem:[#allocation3 + $0x3c] sm:$0x1] }
 0x26f   : > { %v2086_v34 = vrot.slane %v2084_v50, 7  ;;  %v2092_v40 = vshrl.u32 %v4824_v53, 16  ;;  %v2095_v4 = vshll.u32 %v4824_v53, 16  ;;  %v2005_v36 = vadd.f32 %v5259_v23, %v6437_v62  ;;  %v1953_v45 = vpop.f32.mrb[5].mxu0 }
 0x270   : > { %v2070_v5 = vrot.slane %v2068_v28, 7  ;;  %v2076_v9 = vshrl.u32 %v4822_v61, 16  ;;  %v2079_v48 = vshll.u32 %v4822_v61, 16  ;;  %v2003_v15 = vadd.f32 %v6437_v62, %v1953_v45  ;;  %v5260_v16 = vpop.f32.mrb[6].mxu0  ;;  %v6483_v28 = vld [vmem:[#allocation3 + $0x4] sm:$0x1] }
 0x271   : > { %v2089_v20 = vor.u32 %v2087_v10, %v2086_v34  ;;  %v2090_v27 = vrot.slane %v2086_v34, 4  ;;  %v2094_v32 = vrot.slane %v2092_v40, 7  ;;  %v2013_v42 = vmax.f32 %v2005_v36, 0.0  ;;  %v1956_v49 = vpop.f32.mrb[7].mxu0  ;;  %v2181_v61 = vld [vmem:[#allocation3 + $0x2c] sm:$0x1] }
 0x272   : > { %v2073_v11 = vor.u32 %v2071_v29, %v2070_v5  ;;  %v2074_v51 = vrot.slane %v2070_v5, 4  ;;  %v2078_v12 = vrot.slane %v2076_v9, 7  ;;  %v2011_v59 = vmax.f32 %v2003_v15, 0.0  ;;  %v2178_v29 = vld [vmem:[#allocation3 + $0x28] sm:$0xf] }
 0x273   : > { %v2167_v63 = vsel %vm6453_vm10, %v2089_v20, %v2166_v57  ;;  %v2170_v52 = vsel %vm6460_vm11, %v2090_v27, %v2169_v26  ;;  %v2097_v18 = vor.u32 %v2095_v4, %v2094_v32  ;;  %v2098_v30 = vrot.slane %v2094_v32, 4  ;;  %v2196_v32 = vld [vmem:[#allocation3 + $0x40] sm:$0xf] }
 0x274   : > { %2168 = vst [vmem:[#allocation3 + $0x18] sm:$0xf] %v2167_v63  ;;  %2171 = vst [vmem:[#allocation3 + $0x1c] sm:$0x1] %v2170_v52  ;;  %v2152_v56 = vsel %vm6453_vm10, %v2073_v11, %v2151_v35  ;;  %v2158_v0 = vsel %vm6460_vm11, %v2074_v51, %v2157_v8  ;;  %v2081_v21 = vor.u32 %v2079_v48, %v2078_v12  ;;  %v2082_v22 = vrot.slane %v2078_v12, 4 }
 0x275   : > { %2153 = vst [vmem:[#allocation3 + $0x8] sm:$0xf] %v2152_v56  ;;  %2159 = vst [vmem:[#allocation3 + $0xc] sm:$0x1] %v2158_v0  ;;  %v2173_v24 = vsel %vm6453_vm10, %v2097_v18, %v2172_v41  ;;  %v2176_v6 = vsel %vm6460_vm11, %v2098_v30, %v2175_v58  ;;  %v4827_v7 = vpack.c.bf16 %v2013_v42, %v2013_v42  ;;  %v2417_v35 = vshll.u32 %v6483_v28, 16 }
 0x276   : > { %v4825_v13 = vpack.c.bf16 %v2011_v59, %v2011_v59  ;;  %2174 = vst [vmem:[#allocation3 + $0x20] sm:$0xf] %v2173_v24  ;;  %2177 = vst [vmem:[#allocation3 + $0x24] sm:$0x1] %v2176_v6  ;;  %v2161_v46 = vsel %vm6453_vm10, %v2081_v21, %v2160_v54  ;;  %v2164_v25 = vsel %vm6460_vm11, %v2082_v22, %v2163_v55  ;;  %v2199_v41 = vld [vmem:[#allocation3 + $0x44] sm:$0x1] }
 0x277   : > { %v2006_v33 = vadd.f32 %v5260_v16, %v6437_v62  ;;  %v2004_v44 = vadd.f32 %v6437_v62, %v1956_v49  ;;  %2162 = vst [vmem:[#allocation3 + $0x10] sm:$0xf] %v2161_v46  ;;  %2165 = vst [vmem:[#allocation3 + $0x14] sm:$0x1] %v2164_v25  ;;  %v2116_v31 = vshrl.u32 %v4827_v7, 16  ;;  %v2119_v10 = vshll.u32 %v4827_v7, 16 }
 0x278   : > { %v2100_v37 = vshrl.u32 %v4825_v13, 16  ;;  %v2103_v26 = vshll.u32 %v4825_v13, 16  ;;  %v2414_v62 = vor.u32 %v6449_v3, %v6447_v2  ;;  %v2184_v42 = vld [vmem:[#allocation3 + $0x30] sm:$0xf]  ;;  %v2187_v59 = vld [vmem:[#allocation3 + $0x34] sm:$0x1] }
 0x279   : > { %v2014_v39 = vmax.f32 %v2006_v33, 0.0  ;;  %v2012_v50 = vmax.f32 %v2004_v44, 0.0  ;;  %v2118_v53 = vrot.slane %v2116_v31, 7  ;;  %v5751_v54 = vld [vmem:[#allocation8 + $0x48] sm:$0xff]   ;;  %v5753_v31 = vld [vmem:[#allocation8 + $0x50] sm:$0xff]   ;;  %v2419_v38 = vrot.slane %v2417_v35, 5 }
 0x27a   : > { %v2102_v57 = vrot.slane %v2100_v37, 7  ;;  %v2415_v24 = vrot.slane %v2414_v62, 4 }
 0x27b   : > { %v4828_v23 = vpack.c.bf16 %v2014_v39, %v2014_v39  ;;  %v4826_v34 = vpack.c.bf16 %v2012_v50, %v2012_v50  ;;  %v2121_v40 = vor.u32 %v2119_v10, %v2118_v53  ;;  %v2122_v4 = vrot.slane %v2118_v53, 4  ;;  %v6488_v5 = vld [vmem:[#allocation3 + $0x18] sm:$0xf] }
 0x27c   : > { %v2105_v36 = vor.u32 %v2103_v26, %v2102_v57  ;;  %v2106_v45 = vrot.slane %v2102_v57, 4  ;;  %v6490_v16 = vld [vmem:[#allocation3 + $0x8] sm:$0xf]  ;;  %v2450_v12 = vshrl.u32 %v6488_v5, 16  ;;  %v2453_v30 = vshll.u32 %v6488_v5, 16 }
 0x27d   : > { %v2124_v8 = vshrl.u32 %v4828_v23, 16  ;;  %v2127_v9 = vshll.u32 %v4828_v23, 16  ;;  %v2108_v48 = vshrl.u32 %v4826_v34, 16  ;;  %v2111_v15 = vshll.u32 %v4826_v34, 16  ;;  %v6513_v22 = vld [vmem:[#allocation3 + $0xc] sm:$0x1] }
 0x27e   : > { %v2191_v20 = vsel %vm6453_vm10, %v2121_v40, %v2190_v17  ;;  %v2194_v2 = vsel %vm6460_vm11, %v2122_v4, %v2193_v19  ;;  %v2179_v3 = vsel %vm6453_vm10, %v2105_v36, %v2178_v29  ;;  %v2182_v27 = vsel %vm6460_vm11, %v2106_v45, %v2181_v61  ;;  %v6502_v58 = vld [vmem:[#allocation3 + $0x10] sm:$0xf]  ;;  %v6524_v25 = vld [vmem:[#allocation3 + $0x20] sm:$0xf]  ;;  %v6539_v23 = vld [vmem:[#allocation3 + $0x1c] sm:$0x1] }
 0x27f   : > { %2192 = vst [vmem:[#allocation3 + $0x38] sm:$0xf] %v2191_v20  ;;  %2195 = vst [vmem:[#allocation3 + $0x3c] sm:$0x1] %v2194_v2  ;;  %v2126_v49 = vrot.slane %v2124_v8, 7  ;;  %v2110_v11 = vrot.slane %v2108_v48, 7  ;;  %v4704_v51 = vcombine.low %v6439_v1, %v6490_v16  ;;  %v6507_v63 = vcombine.low %v6502_v58, %v6488_v5 }
 0x280   : > { %2180 = vst [vmem:[#allocation3 + $0x28] sm:$0xf] %v2179_v3  ;;  %2183 = vst [vmem:[#allocation3 + $0x2c] sm:$0x1] %v2182_v27  ;;  %v2436_v52 = vshrl.u32 %v6502_v58, 16  ;;  %v2439_v18 = vshll.u32 %v6502_v58, 16  ;;  %v4748_v10 = vcombine.low %v6490_v16, %v6502_v58  ;;  %v4749_v57 = vcombine.low %v6488_v5, %v6524_v25 }
 0x281   : > { %v2129_v55 = vor.u32 %v2127_v9, %v2126_v49  ;;  %v2130_v56 = vrot.slane %v2126_v49, 4  ;;  %v2113_v0 = vor.u32 %v2111_v15, %v2110_v11  ;;  %v2114_v21 = vrot.slane %v2110_v11, 4  ;;  %5277 = vmatprep.mubr.bf16.mxu1 %v4704_v51  ;;  %v5755_v61 = vld [vmem:[#allocation8 + $0x58] sm:$0xff]   ;;  %v6541_v62 = vld [vmem:[#allocation3 + $0x24] sm:$0x1]  ;;  %v5756_v11 = vld [vmem:[#allocation8 + $0x60] sm:$0xff]  }
 0x282   : > { %5278 = vmatmul.mubr.bf16.vlgmr.msra.gmra.mrb[0].mxu1 %v6507_v63  ;;  %v2452_v33 = vrot.slane %v2450_v12, 4  ;;  %v2455_v44 = vrot.slane %v2453_v30, 5  ;;  %v2422_v37 = vshrl.u32 %v6490_v16, 16  ;;  %v2425_v14 = vshll.u32 %v6490_v16, 16  ;;  %v6547_v4 = vld [vmem:[#allocation3 + $0x14] sm:$0x1] }
 0x283   : > { %v2197_v6 = vsel %vm6453_vm10, %v2129_v55, %v2196_v32  ;;  %v2200_v7 = vsel %vm6460_vm11, %v2130_v56, %v2199_v41  ;;  %v2185_v13 = vsel %vm6453_vm10, %v2113_v0, %v2184_v42  ;;  %v2188_v46 = vsel %vm6460_vm11, %v2114_v21, %v2187_v59  ;;  %5286 = vmatpush3.bf16.msra.mxu1 %v6434_v60 }
 0x284   : > { %2198 = vst [vmem:[#allocation3 + $0x40] sm:$0xf] %v2197_v6  ;;  %2201 = vst [vmem:[#allocation3 + $0x44] sm:$0x1] %v2200_v7  ;;  %5287 = vmatprep.subr.bf16.mxu1 %v5751_v54  ;;  %v2438_v17 = vrot.slane %v2436_v52, 4  ;;  %v2441_v19 = vrot.slane %v2439_v18, 5  ;;  %v2456_v34 = vor.u32 %v2455_v44, %v2452_v33  ;;  %v2420_v40 = vsel %vm6195_vm2, %v2415_v24, %v2419_v38 }
 0x285   : > { %2186 = vst [vmem:[#allocation3 + $0x30] sm:$0xf] %v2185_v13  ;;  %2189 = vst [vmem:[#allocation3 + $0x34] sm:$0x1] %v2188_v46  ;;  %v2431_v39 = vshll.u32 %v6513_v22, 16  ;;  %v2424_v50 = vrot.slane %v2422_v37, 4 }
 0x286   : > { %v2427_v53 = vrot.slane %v2425_v14, 5  ;;  %v2464_v35 = vshrl.u32 %v6524_v25, 16  ;;  %v2442_v36 = vor.u32 %v2441_v19, %v2438_v17  ;;  %v2467_v45 = vshll.u32 %v6524_v25, 16  ;;  %v6551_v9 = vld [vmem:[#allocation3 + $0x38] sm:$0xf] }
 0x287   : > { %v6529_v60 = vld [vmem:[#allocation3 + $0x28] sm:$0xf]  ;;  %5288 = vmatpush3.bf16.msra.mxu1 %v5751_v54  ;;  %v2433_v15 = vrot.slane %v2431_v39, 5  ;;  %v2459_v27 = vshll.u32 %v6539_v23, 16  ;;  %v2473_v41 = vshll.u32 %v6541_v62, 16  ;;  %v2445_v51 = vshll.u32 %v6547_v4, 16 }
 0x288   : > { %v6537_v26 = vcombine.low %v6524_v25, %v6529_v60  ;;  %5289 = vmatprep.subr.bf16.mxu1 %v5753_v31  ;;  %v2428_v29 = vor.u32 %v2427_v53, %v2424_v50  ;;  %v2478_v8 = vshrl.u32 %v6529_v60, 16  ;;  %v2466_v20 = vrot.slane %v2464_v35, 4  ;;  %v6567_v59 = vld [vmem:[#allocation3 + $0x2c] sm:$0x1]  ;;  %v5757_v46 = vld [vmem:[#allocation8 + $0x68] sm:$0xff]   ;;  %v5758_v35 = vld [vmem:[#allocation8 + $0x70] sm:$0xff]  }
 0x289   : > { %v2481_v2 = vshll.u32 %v6529_v60, 16  ;;  %v2469_v32 = vrot.slane %v2467_v45, 5  ;;  %v2457_v12 = vrot.slane %v2456_v34, 4  ;;  %v2443_v55 = vrot.slane %v2442_v36, 4 }
 0x28a   : > { %5281 = vmatprep.mubr.bf16.mxu1 %v6537_v26  ;;  %v2429_v48 = vrot.slane %v2428_v29, 4  ;;  %v2480_v30 = vrot.slane %v2478_v8, 4  ;;  %v2461_v24 = vrot.slane %v2459_v27, 5  ;;  %v2475_v7 = vrot.slane %v2473_v41, 5 }
 0x28b   : > { %5290 = vmatpush3.bf16.msra.mxu1 %v5753_v31  ;;  %v2470_v18 = vor.u32 %v2469_v32, %v2466_v20  ;;  %v2483_v54 = vrot.slane %v2481_v2, 5  ;;  %v2487_v13 = vshll.u32 %v6567_v59, 16  ;;  %v2447_v33 = vrot.slane %v2445_v51, 5  ;;  %v5759_v51 = vld [vmem:[#allocation8 + $0x78] sm:$0xff]  }
 0x28c   : > { %v6554_v3 = vld [vmem:[#allocation3 + $0x30] sm:$0xf]  ;;  %v6564_v49 = vsel %vm6195_vm2, %v2429_v48, %v2433_v15  ;;  %5291 = vmatprep.subr.bf16.mxu1 %v5755_v61  ;;  %v2215_v56 = vld [vmem:[#allocation3 + $0x34] sm:$0x1]  ;;  %v6576_v37 = vsel %vm6195_vm2, %v2457_v12, %v2461_v24  ;;  %v4731_v38 = vrot.slane %v6488_v5, 9  ;;  %v4730_v53 = vrot.slane %v6502_v58, 9 }
 0x28d   : > { %v6560_v42 = vcombine.low %v6554_v3, %v6551_v9  ;;  %v4716_v52 = vcombine.low %v2420_v40, %v6564_v49  ;;  %v2492_v0 = vshrl.u32 %v6554_v3, 16  ;;  %v2495_v21 = vshll.u32 %v6554_v3, 16  ;;  %v6698_v58 = vld [vmem:[#allocation3 + $0x40] sm:$0xf]  ;;  %v5784_v5 = vld [vmem:[#allocation8 + $0x120] sm:$0xff]  }
 0x28e   : > { %v2471_v6 = vrot.slane %v2470_v18, 4  ;;  %v2484_v17 = vor.u32 %v2483_v54, %v2480_v30  ;;  %v2501_v19 = vshll.u32 %v2215_v56, 16  ;;  %v6588_v29 = vsel %vm6195_vm2, %v2443_v55, %v2447_v33  ;;  %v2217_v33 = vld [vmem:[#allocation3 + $0x3c] sm:$0x1] }
 0x28f   : > { %5282 = vmatmul.mubr.bf16.gmra.mrb[4].mxu1 %v6560_v42  ;;  %v2494_v44 = vrot.slane %v2492_v0, 4  ;;  %v2497_v31 = vrot.slane %v2495_v21, 5  ;;  %v2506_v34 = vshrl.u32 %v6551_v9, 16  ;;  %v2711_v36 = vrot.slane %v6539_v23, 5 }
 0x290   : > { %5301 = vmatprep.mubr.bf16.mxu1 %v4716_v52  ;;  %5292 = vmatpush3.bf16.msra.mxu1 %v5755_v61  ;;  %v6580_v14 = vsel %vm6195_vm2, %v2471_v6, %v2475_v7  ;;  %v2489_v61 = vrot.slane %v2487_v13, 5  ;;  %v4732_v45 = vrot.slane %v6524_v25, 9  ;;  %v2715_v8 = vrot.slane %v6541_v62, 5  ;;  %v5760_v7 = vld [vmem:[#allocation8 + $0x80] sm:$0xff]   ;;  %v5785_v25 = vld [vmem:[#allocation8 + $0x128] sm:$0xff]  }
 0x291   : > { %5293 = vmatprep.subr.bf16.mxu1 %v5756_v11  ;;  %v4761_v39 = vcombine.low %v6576_v37, %v6580_v14  ;;  %v2498_v50 = vor.u32 %v2497_v31, %v2494_v44  ;;  %v2485_v48 = vrot.slane %v2484_v17, 4  ;;  %v2503_v15 = vrot.slane %v2501_v19, 5  ;;  %v5761_v17 = vld [vmem:[#allocation8 + $0x88] sm:$0xff]  }
 0x292   : > { %v2509_v20 = vshll.u32 %v6551_v9, 16  ;;  %v2707_v2 = vrot.slane %v6547_v4, 5  ;;  %v4729_v27 = vrot.slane %v6490_v16, 9  ;;  %v2703_v32 = vrot.slane %v6513_v22, 5  ;;  %v5782_v16 = vld [vmem:[#allocation8 + $0x110] sm:$0xff]  }
 0x293   : > { %v2499_v40 = vrot.slane %v2498_v50, 4  ;;  %v6600_v41 = vsel %vm6256_vm5, %v4731_v38, %v2711_v36  ;;  %v6604_v23 = vsel %vm6256_vm5, %v4732_v45, %v2715_v8  ;;  %v2719_v4 = vrot.slane %v6567_v59, 5  ;;  %v5764_v8 = vld [vmem:[#allocation8 + $0xa0] sm:$0xff]  }
 0x294   : > { %5294 = vmatpush3.bf16.msra.mxu1 %v5756_v11  ;;  %v4733_v11 = vrot.slane %v6529_v60, 9  ;;  %v4774_v22 = vcombine.low %v6600_v41, %v6604_v23  ;;  %v4734_v12 = vrot.slane %v6554_v3, 9  ;;  %v2723_v52 = vrot.slane %v2215_v56, 5 }
 0x295   : > { %5295 = vmatprep.subr.bf16.mxu1 %v5757_v46  ;;  %v6608_v62 = vsel %vm6195_vm2, %v2499_v40, %v2503_v15  ;;  %v6617_v18 = vsel %vm6195_vm2, %v2485_v48, %v2489_v61  ;;  %v6621_v30 = vsel %vm6256_vm5, %v4730_v53, %v2707_v2  ;;  %v4750_v54 = vcombine.low %v6529_v60, %v6554_v3  ;;  %v5765_v48 = vld [vmem:[#allocation8 + $0xa8] sm:$0xff]   ;;  %v5766_v15 = vld [vmem:[#allocation8 + $0xb0] sm:$0xff]   ;;  %v5768_v2 = vld [vmem:[#allocation8 + $0xc0] sm:$0xff]  }
 0x296   : > { %v6627_v59 = vsel %vm6256_vm5, %v4734_v12, %v2723_v52  ;;  %v4760_v55 = vcombine.low %v6564_v49, %v6588_v29  ;;  %v4762_v56 = vcombine.low %v6617_v18, %v6608_v62  ;;  %v2508_v0 = vrot.slane %v2506_v34, 4  ;;  %v5762_v34 = vld [vmem:[#allocation8 + $0x90] sm:$0xff]   ;;  %v5787_v3 = vld [vmem:[#allocation8 + $0x138] sm:$0xff]   ;;  %v5788_v49 = vld [vmem:[#allocation8 + $0x140] sm:$0xff]  }
 0x297   : > { %v2511_v21 = vrot.slane %v2509_v20, 5  ;;  %v6635_v24 = vsel %vm6256_vm5, %v4729_v27, %v2703_v32  ;;  %v6639_v6 = vsel %vm6256_vm5, %v4733_v11, %v2719_v4  ;;  %v6647_v31 = vcombine.low %v6588_v29, %v6576_v37  ;;  %v5767_v20 = vld [vmem:[#allocation8 + $0xb8] sm:$0xff]   ;;  %v5769_v32 = vld [vmem:[#allocation8 + $0xc8] sm:$0xff]   ;;  %v5770_v12 = vld [vmem:[#allocation8 + $0xd0] sm:$0xff]  }
 0x298   : > { %5296 = vmatpush3.bf16.msra.mxu1 %v5757_v46  ;;  %v4773_v13 = vcombine.low %v6635_v24, %v6621_v30  ;;  %v4775_v46 = vcombine.low %v6639_v6, %v6627_v59  ;;  %v6651_v19 = vcombine.low %v6580_v14, %v6617_v18  ;;  %v2515_v38 = vshll.u32 %v2217_v33, 16  ;;  %v5786_v60 = vld [vmem:[#allocation8 + $0x130] sm:$0xff]   ;;  %v5792_v37 = vld [vmem:[#allocation8 + $0x160] sm:$0xff]   ;;  %v5793_v14 = vld [vmem:[#allocation8 + $0x168] sm:$0xff]  }
 0x299   : > { %5297 = vmatprep.subr.bf16.mxu1 %v5758_v35  ;;  %v2512_v44 = vor.u32 %v2511_v21, %v2508_v0  ;;  %v4728_v50 = vrot.slane %v6439_v1, 9  ;;  %v2699_v53 = vrot.slane %v6483_v28, 5  ;;  %v5763_v28 = vld [vmem:[#allocation8 + $0x98] sm:$0xff]   ;;  %v6671_v27 = vcombine.low %v6621_v30, %v6600_v41  ;;  %v2219_v29 = vld [vmem:[#allocation3 + $0x44] sm:$0x1]  ;;  %v5796_v18 = vld [vmem:[#allocation8 + $0x180] sm:$0xff]  }
 0x29a   : > { %v6675_v11 = vcombine.low %v6604_v23, %v6639_v6  ;;  %v4735_v4 = vrot.slane %v6551_v9, 9  ;;  %v5772_v21 = vld [vmem:[#allocation8 + $0xd8] sm:$0xff]   ;;  %v4772_v30 = vrot.slane %v6698_v58, 9  ;;  %v5800_v41 = vld [vmem:[#allocation8 + $0x1a0] sm:$0xff]   ;;  %v5801_v23 = vld [vmem:[#allocation8 + $0x1a8] sm:$0xff]  }
 0x29b   : > { %v2513_v61 = vrot.slane %v2512_v44, 4  ;;  %v2700_v40 = vsel %vm6256_vm5, %v4728_v50, %v2699_v53  ;;  %v5775_v44 = vld [vmem:[#allocation8 + $0xf0] sm:$0xff]   ;;  %v5780_v50 = vld [vmem:[#allocation8 + $0x108] sm:$0xff]   ;;  %v5783_v53 = vld [vmem:[#allocation8 + $0x118] sm:$0xff]  }
 0x29c   : > { %5298 = vmatpush3.bf16.msra.mxu1 %v5758_v35  ;;  %v2517_v35 = vrot.slane %v2515_v38, 5  ;;  %v4736_v45 = vcombine.low %v2700_v40, %v6635_v24  ;;  %v5778_v38 = vld [vmem:[#allocation8 + $0x100] sm:$0xff]   ;;  %v3243_v24 = vrot.slane %v2219_v29, 5 }
 0x29d   : > { %5299 = vmatprep.subr.bf16.mxu1 %v5759_v51  ;;  %v5804_v6 = vld [vmem:[#allocation8 + $0x1c0] sm:$0xff]  }
 0x29e   : > { %v6661_v36 = vsel %vm6195_vm2, %v2513_v61, %v2517_v35  ;;  %v5789_v35 = vld [vmem:[#allocation8 + $0x148] sm:$0xff]  }
 0x29f   : > { %v6665_v1 = vcombine.low %v6608_v62, %v6661_v36  ;;  %v5795_v62 = vld [vmem:[#allocation8 + $0x178] sm:$0xff]  }
 0x2a0   : > { %5300 = vmatpush3.bf16.msra.mxu1 %v5759_v51  ;;  %v2727_v51 = vrot.slane %v2217_v33, 5  ;;  %v5774_v33 = vld [vmem:[#allocation8 + $0xe8] sm:$0xff]  }
 0x2a1   : > { %5309 = vmatprep.subr.bf16.mxu1 %v5760_v7 }
 0x2a2   : > { %v6682_v52 = vsel %vm6256_vm5, %v4735_v4, %v2727_v51  ;;  %v5808_v51 = vld [vmem:[#allocation8 + $0x1d8] sm:$0xff]  }
 0x2a3   : > { %5302 = vmatmul.mubr.bf16.vlgmr.msra.gmra.mrb[0].mxu1 %v6647_v31  ;;  %v6686_v0 = vcombine.low %v6627_v59, %v6682_v52  ;;  %v5803_v59 = vld [vmem:[#allocation8 + $0x1b8] sm:$0xff]  }
 0x2a4   : > { %5305 = vmatprep.mubr.bf16.mxu1 %v6651_v19  ;;  %5310 = vmatpush3.bf16.msra.mxu1 %v5760_v7  ;;  %v5773_v7 = vld [vmem:[#allocation8 + $0xe0] sm:$0xff]  }
 0x2a5   : > { %5311 = vmatprep.subr.bf16.mxu1 %v5761_v17 }
 0x2a8   : > { %5312 = vmatpush3.bf16.msra.mxu1 %v5761_v17  ;;  %v5776_v17 = vld [vmem:[#allocation8 + $0xf8] sm:$0xff]  }
 0x2a9   : > { %5313 = vmatprep.subr.bf16.mxu1 %v5762_v34 }
 0x2ab   : > { %5306 = vmatmul.mubr.bf16.gmra.mrb[4].mxu1 %v6665_v1 }
 0x2ac   : > { %5314 = vmatpush3.bf16.msra.mxu1 %v5762_v34  ;;  %5325 = vmatprep.mubr.bf16.mxu1 %v4736_v45  ;;  %v3073_v34 = vshll.u32 %v2219_v29, 16  ;;  %v5790_v45 = vld [vmem:[#allocation8 + $0x150] sm:$0xff]   ;;  %v3942_v29 = vlaneseq }
 0x2ad   : > { %5315 = vmatprep.subr.bf16.mxu1 %v5763_v28 }
 0x2b0   : > { %5316 = vmatpush3.bf16.msra.mxu1 %v5763_v28  ;;  %v3075_v28 = vrot.slane %v3073_v34, 5 }
 0x2b1   : > { %5317 = vmatprep.subr.bf16.mxu1 %v5764_v8 }
 0x2b4   : > { %5318 = vmatpush3.bf16.msra.mxu1 %v5764_v8 }
 0x2b5   : > { %5319 = vmatprep.subr.bf16.mxu1 %v5765_v48 }
 0x2b8   : > { %5320 = vmatpush3.bf16.msra.mxu1 %v5765_v48 }
 0x2b9   : > { %5321 = vmatprep.subr.bf16.mxu1 %v5766_v15 }
 0x2bc   : > { %5322 = vmatpush3.bf16.msra.mxu1 %v5766_v15  ;;  %v5791_v15 = vld [vmem:[#allocation8 + $0x158] sm:$0xff]  }
 0x2bd   : > { %5323 = vmatprep.subr.bf16.mxu1 %v5767_v20 }
 0x2c0   : > { %5324 = vmatpush3.bf16.msra.mxu1 %v5767_v20 }
 0x2c1   : > { %5333 = vmatprep.subr.bf16.mxu1 %v5768_v2 }
 0x2c3   : > { %5326 = vmatmul.mubr.bf16.vlgmr.msra.gmra.mrb[0].mxu1 %v6671_v27 }
 0x2c4   : > { %5329 = vmatprep.mubr.bf16.mxu1 %v6675_v11  ;;  %5334 = vmatpush3.bf16.msra.mxu1 %v5768_v2  ;;  %v5799_v2 = vld [vmem:[#allocation8 + $0x198] sm:$0xff]  }
 0x2c5   : > { %5335 = vmatprep.subr.bf16.mxu1 %v5769_v32 }
 0x2c8   : > { %5336 = vmatpush3.bf16.msra.mxu1 %v5769_v32  ;;  %v6738_v32 = vld [vmem:[#allocation3 + $0x48] sm:$0xf] }
 0x2c9   : > { %5337 = vmatprep.subr.bf16.mxu1 %v5770_v12  ;;  %v4785_v4 = vcombine.low %v6698_v58, %v6738_v32 }
 0x2cb   : > { %5330 = vmatmul.mubr.bf16.gmra.mrb[4].mxu1 %v6686_v0 }
 0x2cc   : > { %5338 = vmatpush3.bf16.msra.mxu1 %v5770_v12  ;;  %5349 = vmatprep.mubr.bf16.mxu1 %v4748_v10  ;;  %v4751_v10 = vcombine.low %v6551_v9, %v6698_v58  ;;  %v3067_v9 = vshll.u32 %v6698_v58, 16  ;;  %v5809_v12 = vld [vmem:[#allocation8 + $0x1e0] sm:$0xff]  }
 0x2cd   : > { %5339 = vmatprep.subr.bf16.mxu1 %v5772_v21 }
 0x2ce   : > { %v3069_v61 = vrot.slane %v3067_v9, 5  ;;  %v4803_v9 = vrot.slane %v6738_v32, 9 }
 0x2d0   : > { %5340 = vmatpush3.bf16.msra.mxu1 %v5772_v21  ;;  %v3570_v21 = vshll.u32 %v6738_v32, 16 }
 0x2d1   : > { %5341 = vmatprep.subr.bf16.mxu1 %v5773_v7 }
 0x2d4   : > { %5342 = vmatpush3.bf16.msra.mxu1 %v5773_v7  ;;  %v5812_v7 = vld [vmem:[#allocation8 + $0x1f8] sm:$0xff]  }
 0x2d5   : > { %5343 = vmatprep.subr.bf16.mxu1 %v5774_v33 }
 0x2d8   : > { %5344 = vmatpush3.bf16.msra.mxu1 %v5774_v33 }
 0x2d9   : > { %5345 = vmatprep.subr.bf16.mxu1 %v5775_v44 }
 0x2dc   : > { %5346 = vmatpush3.bf16.msra.mxu1 %v5775_v44  ;;  %v3572_v44 = vrot.slane %v3570_v21, 5 }
 0x2dd   : > { %5347 = vmatprep.subr.bf16.mxu1 %v5776_v17 }
 0x2e0   : > { %5348 = vmatpush3.bf16.msra.mxu1 %v5776_v17  ;;  %v2221_v17 = vld [vmem:[#allocation3 + $0x4c] sm:$0x1] }
 0x2e1   : > { %5357 = vmatprep.subr.bf16.mxu1 %v5778_v38 }
 0x2e3   : > { %5350 = vmatmul.mubr.bf16.vlgmr.msra.gmra.mrb[0].mxu1 %v4749_v57  ;;  %v3064_v57 = vshrl.u32 %v6698_v58, 16 }
 0x2e4   : > { %5353 = vmatprep.mubr.bf16.mxu1 %v4750_v54  ;;  %5358 = vmatpush3.bf16.msra.mxu1 %v5778_v38 }
 0x2e5   : > { %5359 = vmatprep.subr.bf16.mxu1 %v5780_v50  ;;  %v3066_v54 = vrot.slane %v3064_v57, 4  ;;  %v5817_v57 = vld [vmem:[#allocation8 + $0x220] sm:$0xff]  }
 0x2e8   : > { %5360 = vmatpush3.bf16.msra.mxu1 %v5780_v50  ;;  %v3576_v50 = vshll.u32 %v2221_v17, 16 }
 0x2e9   : > { %5361 = vmatprep.subr.bf16.mxu1 %v5782_v16 }
 0x2eb   : > { %5354 = vmatmul.mubr.bf16.gmra.mrb[4].mxu1 %v4751_v10  ;;  %v3578_v10 = vrot.slane %v3576_v50, 5 }
 0x2ec   : > { %5362 = vmatpush3.bf16.msra.mxu1 %v5782_v16  ;;  %5373 = vmatprep.mubr.bf16.mxu1 %v4760_v55  ;;  %v3070_v55 = vor.u32 %v3069_v61, %v3066_v54  ;;  %v5814_v16 = vld [vmem:[#allocation8 + $0x208] sm:$0xff]   ;;  %v5960_v61 = vmov 1983009808  }
 0x2ed   : > { %5363 = vmatprep.subr.bf16.mxu1 %v5783_v53 }
 0x2ee   : > { %v3071_v40 = vrot.slane %v3070_v55, 4  ;;  %v6757_v55 = vld [vmem:[#allocation9] ss:$0 sm:$0xff] }
 0x2f0   : > { %5364 = vmatpush3.bf16.msra.mxu1 %v5783_v53  ;;  %v6715_v8 = vsel %vm6195_vm2, %v3071_v40, %v3075_v28  ;;  %v5815_v53 = vld [vmem:[#allocation8 + $0x210] sm:$0xff]  }
 0x2f1   : > { %5365 = vmatprep.subr.bf16.mxu1 %v5784_v5  ;;  %v4763_v48 = vcombine.low %v6661_v36, %v6715_v8  ;;  %v6731_v36 = vsel %vm6256_vm5, %v4772_v30, %v3243_v24 }
 0x2f2   : > { %v4776_v20 = vcombine.low %v6682_v52, %v6731_v36  ;;  %v3567_v52 = vshrl.u32 %v6738_v32, 16 }
 0x2f4   : > { %5366 = vmatpush3.bf16.msra.mxu1 %v5784_v5  ;;  %v3569_v33 = vrot.slane %v3567_v52, 4 }
 0x2f5   : > { %5367 = vmatprep.subr.bf16.mxu1 %v5785_v25 }
 0x2f6   : > { %v3573_v38 = vor.u32 %v3572_v44, %v3569_v33 }
 0x2f8   : > { %5368 = vmatpush3.bf16.msra.mxu1 %v5785_v25  ;;  %v3574_v58 = vrot.slane %v3573_v38, 4 }
 0x2f9   : > { %5369 = vmatprep.subr.bf16.mxu1 %v5786_v60 }
 0x2fa   : > { %v3579_v5 = vsel %vm6195_vm2, %v3574_v58, %v3578_v10 }
 0x2fb   : > { %v4794_v25 = vcombine.low %v6715_v8, %v3579_v5 }
 0x2fc   : > { %5370 = vmatpush3.bf16.msra.mxu1 %v5786_v60  ;;  %v5816_v60 = vld [vmem:[#allocation8 + $0x218] sm:$0xff]  }
 0x2fd   : > { %5371 = vmatprep.subr.bf16.mxu1 %v5787_v3 }
 0x300   : > { %5372 = vmatpush3.bf16.msra.mxu1 %v5787_v3  ;;  %v3740_v3 = vrot.slane %v2221_v17, 5 }
 0x301   : > { %5381 = vmatprep.subr.bf16.mxu1 %v5788_v49 }
 0x303   : > { %5374 = vmatmul.mubr.bf16.vlgmr.msra.gmra.mrb[0].mxu1 %v4761_v39  ;;  %v5794_v39 = vld [vmem:[#allocation8 + $0x170] sm:$0xff]  }
 0x304   : > { %5377 = vmatprep.mubr.bf16.mxu1 %v4762_v56  ;;  %5382 = vmatpush3.bf16.msra.mxu1 %v5788_v49  ;;  %v5797_v56 = vld [vmem:[#allocation8 + $0x188] sm:$0xff]   ;;  %v3940_v49 = vunpack.c.l.s4 %v5960_v61 }
 0x305   : > { %5383 = vmatprep.subr.bf16.mxu1 %v5789_v35 }
 0x306   : > { %v3941_v28 = vunpack.c.0.s8 %v3940_v49 }
 0x308   : > { %5384 = vmatpush3.bf16.msra.mxu1 %v5789_v35 }
 0x309   : > { %5385 = vmatprep.subr.bf16.mxu1 %v5790_v45 }
 0x30b   : > { %5378 = vmatmul.mubr.bf16.gmra.mrb[4].mxu1 %v4763_v48 }
 0x30c   : > { %5386 = vmatpush3.bf16.msra.mxu1 %v5790_v45  ;;  %5397 = vmatprep.mubr.bf16.mxu1 %v4773_v13  ;;  %v5798_v13 = vld [vmem:[#allocation8 + $0x190] sm:$0xff]   ;;  %v3943_v45 = vshrl.u32 %v3942_v29, 7 }
 0x30d   : > { %5387 = vmatprep.subr.bf16.mxu1 %v5791_v15 }
 0x310   : > { %5388 = vmatpush3.bf16.msra.mxu1 %v5791_v15 }
 0x311   : > { %5389 = vmatprep.subr.bf16.mxu1 %v5792_v37 }
 0x314   : > { %5390 = vmatpush3.bf16.msra.mxu1 %v5792_v37 }
 0x315   : > { %5391 = vmatprep.subr.bf16.mxu1 %v5793_v14 }
 0x318   : > { %5392 = vmatpush3.bf16.msra.mxu1 %v5793_v14  ;;  %v6763_v14 = vsub.s32 %v3941_v28, %v3943_v45 }
 0x319   : > { %5393 = vmatprep.subr.bf16.mxu1 %v5794_v39 }
 0x31c   : > { %5394 = vmatpush3.bf16.msra.mxu1 %v5794_v39 }
 0x31d   : > { %5395 = vmatprep.subr.bf16.mxu1 %v5795_v62 }
 0x320   : > { %5396 = vmatpush3.bf16.msra.mxu1 %v5795_v62 }
 0x321   : > { %5405 = vmatprep.subr.bf16.mxu1 %v5796_v18 }
 0x323   : > { %5398 = vmatmul.mubr.bf16.vlgmr.msra.gmra.mrb[0].mxu1 %v4774_v22  ;;  %v5802_v22 = vld [vmem:[#allocation8 + $0x1b0] sm:$0xff]  }
 0x324   : > { %5401 = vmatprep.mubr.bf16.mxu1 %v4775_v46  ;;  %5406 = vmatpush3.bf16.msra.mxu1 %v5796_v18  ;;  %v5805_v46 = vld [vmem:[#allocation8 + $0x1c8] sm:$0xff]  }
 0x325   : > { %5407 = vmatprep.subr.bf16.mxu1 %v5797_v56 }
 0x328   : > { %5408 = vmatpush3.bf16.msra.mxu1 %v5797_v56 }
 0x329   : > { %5409 = vmatprep.subr.bf16.mxu1 %v5798_v13 }
 0x32b   : > { %5402 = vmatmul.mubr.bf16.gmra.mrb[4].mxu1 %v4776_v20 }
 0x32c   : > { %5410 = vmatpush3.bf16.msra.mxu1 %v5798_v13  ;;  %5421 = vmatprep.mubr.bf16.mxu1 %v6507_v63  ;;  %v5807_v63 = vld [vmem:[#allocation8 + $0x1d0] sm:$0xff]  }
 0x32d   : > { %5411 = vmatprep.subr.bf16.mxu1 %v5799_v2 }
 0x330   : > { %5412 = vmatpush3.bf16.msra.mxu1 %v5799_v2 }
 0x331   : > { %5413 = vmatprep.subr.bf16.mxu1 %v5800_v41 }
 0x334   : > { %5414 = vmatpush3.bf16.msra.mxu1 %v5800_v41 }
 0x335   : > { %5415 = vmatprep.subr.bf16.mxu1 %v5801_v23 }
 0x338   : > { %5416 = vmatpush3.bf16.msra.mxu1 %v5801_v23 }
 0x339   : > { %5417 = vmatprep.subr.bf16.mxu1 %v5802_v22 }
 0x33c   : > { %5418 = vmatpush3.bf16.msra.mxu1 %v5802_v22 }
 0x33d   : > { %5419 = vmatprep.subr.bf16.mxu1 %v5803_v59 }
 0x340   : > { %5420 = vmatpush3.bf16.msra.mxu1 %v5803_v59 }
 0x341   : > { %5429 = vmatprep.subr.bf16.mxu1 %v5804_v6 }
 0x343   : > { %5422 = vmatmul.mubr.bf16.vlgmr.msra.gmra.mrb[0].mxu1 %v6537_v26  ;;  %v5810_v26 = vld [vmem:[#allocation8 + $0x1e8] sm:$0xff]  }
 0x344   : > { %5425 = vmatprep.mubr.bf16.mxu1 %v6560_v42  ;;  %5430 = vmatpush3.bf16.msra.mxu1 %v5804_v6  ;;  %v5811_v42 = vld [vmem:[#allocation8 + $0x1f0] sm:$0xff]  }
 0x345   : > { %5431 = vmatprep.subr.bf16.mxu1 %v5805_v46 }
 0x348   : > { %5432 = vmatpush3.bf16.msra.mxu1 %v5805_v46 }
 0x349   : > { %5433 = vmatprep.subr.bf16.mxu1 %v5807_v63 }
 0x34b   : > { %5426 = vmatmul.mubr.bf16.gmra.mrb[4].mxu1 %v4785_v4 }
 0x34c   : > { %5434 = vmatpush3.bf16.msra.mxu1 %v5807_v63  ;;  %5445 = vmatprep.mubr.bf16.mxu1 %v6647_v31  ;;  %v5813_v31 = vld [vmem:[#allocation8 + $0x200] sm:$0xff]  }
 0x34d   : > { %5435 = vmatprep.subr.bf16.mxu1 %v5808_v51 }
 0x350   : > { %5436 = vmatpush3.bf16.msra.mxu1 %v5808_v51 }
 0x351   : > { %5437 = vmatprep.subr.bf16.mxu1 %v5809_v12 }
 0x354   : > { %5438 = vmatpush3.bf16.msra.mxu1 %v5809_v12 }
 0x355   : > { %5439 = vmatprep.subr.bf16.mxu1 %v5810_v26 }
 0x358   : > { %5440 = vmatpush3.bf16.msra.mxu1 %v5810_v26 }
 0x359   : > { %5441 = vmatprep.subr.bf16.mxu1 %v5811_v42 }
 0x35c   : > { %5442 = vmatpush3.bf16.msra.mxu1 %v5811_v42 }
 0x35d   : > { %5443 = vmatprep.subr.bf16.mxu1 %v5812_v7 }
 0x360   : > { %5444 = vmatpush3.bf16.msra.mxu1 %v5812_v7 }
 0x361   : > { %5453 = vmatprep.subr.bf16.mxu1 %v5813_v31 }
 0x363   : > { %5446 = vmatmul.mubr.bf16.vlgmr.msra.gmra.mrb[0].mxu1 %v6651_v19  ;;  %v5818_v19 = vld [vmem:[#allocation8 + $0x228] sm:$0xff]  }
 0x364   : > { %5449 = vmatprep.mubr.bf16.mxu1 %v6665_v1  ;;  %5454 = vmatpush3.bf16.msra.mxu1 %v5813_v31  ;;  %v5819_v1 = vld [vmem:[#allocation8 + $0x230] sm:$0xff]  }
 0x365   : > { %5455 = vmatprep.subr.bf16.mxu1 %v5814_v16 }
 0x368   : > { %5456 = vmatpush3.bf16.msra.mxu1 %v5814_v16 }
 0x369   : > { %5457 = vmatprep.subr.bf16.mxu1 %v5815_v53 }
 0x36b   : > { %5450 = vmatmul.mubr.bf16.gmra.mrb[4].mxu1 %v4794_v25 }
 0x36c   : > { %5458 = vmatpush3.bf16.msra.mxu1 %v5815_v53  ;;  %5469 = vmatprep.mubr.bf16.mxu1 %v6671_v27  ;;  %v3741_v27 = vsel %vm6256_vm5, %v4803_v9, %v3740_v3 }
 0x36d   : > { %5459 = vmatprep.subr.bf16.mxu1 %v5816_v60  ;;  %v4804_v54 = vcombine.low %v6731_v36, %v3741_v27 }
 0x370   : > { %5460 = vmatpush3.bf16.msra.mxu1 %v5816_v60 }
 0x371   : > { %5461 = vmatprep.subr.bf16.mxu1 %v5817_v57 }
 0x374   : > { %5462 = vmatpush3.bf16.msra.mxu1 %v5817_v57 }
 0x375   : > { %5463 = vmatprep.subr.bf16.mxu1 %v5818_v19 }
 0x378   : > { %5464 = vmatpush3.bf16.msra.mxu1 %v5818_v19 }
 0x379   : > { %5465 = vmatprep.subr.bf16.mxu1 %v5819_v1 }
 0x37c   : > { %5466 = vmatpush3.bf16.msra.mxu1 %v5819_v1 }
 0x37d   : > { %5467 = vmatprep.subr.bf16.mxu1 %v5820_v47 }
 0x380   : > { %5468 = vmatpush3.bf16.msra.mxu1 %v5820_v47 }
 0x383   : > { %5470 = vmatmul.mubr.bf16.vlgmr.msra.gmra.mrb[0].mxu1 %v6675_v11 }
 0x384   : > { %5473 = vmatprep.mubr.bf16.mxu1 %v6686_v0 }
 0x38b   : > { %5474 = vmatmul.mubr.bf16.gmra.mrb[4].mxu1 %v4804_v54 }
 0x456   : > { %v5471_v34 = vpop.f32.mrb[0].mxu1 }
 0x457   : > { %v3916_v35 = vadd.f32 %v5471_v34, %v6757_v55  ;;  %v3852_v40 = vpop.f32.mrb[1].mxu1 }
 0x458   : > { %v3914_v11 = vadd.f32 %v6757_v55, %v3852_v40  ;;  %v5472_v0 = vpop.f32.mrb[2].mxu1 }
 0x459   : > { %v3917_v43 = vadd.f32 %v5472_v0, %v6757_v55  ;;  %v3855_v8 = vpop.f32.mrb[3].mxu1  ;;  %v3924_v15 = vmax.f32 %v3916_v35, 0.0 }
 0x45a   : > { %v3915_v48 = vadd.f32 %v6757_v55, %v3855_v8  ;;  %v3922_v39 = vmax.f32 %v3914_v11, 0.0 }
 0x45b   : > { %v3925_v37 = vmax.f32 %v3917_v43, 0.0 }
 0x45c   : > { %v3923_v62 = vmax.f32 %v3915_v48, 0.0 }
 0x45d   : > { %v3931_v18 = vmax.f32 %v3924_v15, %v3925_v37 }
 0x45e   : > { %v3930_v56 = vmax.f32 %v3922_v39, %v3923_v62  ;;  %v5475_v30 = vpop.f32.mrb[4].mxu1 }
 0x45f   : > { %v3955_v24 = vcombine.high %v3931_v18, %v3931_v18  ;;  %v3962_v13 = vrot.slane %v3931_v18, %v6763_v14  ;;  %v3868_v36 = vpop.f32.mrb[5].mxu1  ;;  %v6768_v41 = vadd.f32 %v5475_v30, %v6757_v55 }
 0x460   : > { %v3938_v20 = vcombine.high %v3930_v56, %v3930_v56  ;;  %v3945_v2 = vrot.slane %v3930_v56, %v6763_v14  ;;  %v6770_v23 = vpop.f32.mrb[6].mxu1  ;;  %v6775_v46 = vadd.f32 %v6757_v55, %v3868_v36 }
 0x461   : > { %v3969_v22 = vrot.slane %v3955_v24, %v6763_v14  ;;  %v3970_v59 = vcombine.high %v3962_v13, %v3962_v13  ;;  %v4051_v6 = vsel %vm4022_vm12, %v3962_v13, -inf  ;;  %v6777_v63 = vpop.f32.mrb[7].mxu1 }
 0x462   : > { %v4052_v32 = vrot.slane %v4051_v6, 4  ;;  %v3952_v4 = vrot.slane %v3938_v20, %v6763_v14  ;;  %v3953_v51 = vcombine.high %v3945_v2, %v3945_v2  ;;  %v4023_v12 = vsel %vm4022_vm12, %v3945_v2, -inf }
 0x463   : > { %v3971_v26 = vcombine.high %v3969_v22, %v3969_v22  ;;  %v4058_v42 = vsel %vm4022_vm12, %v3970_v59, -inf  ;;  %v4065_v52 = vsel %vm4022_vm12, %v3969_v22, -inf  ;;  %v4024_v21 = vrot.slane %v4023_v12, 4 }
 0x464   : > { %v4053_v7 = vmax.f32 %v4051_v6, %v4052_v32  ;;  %v4059_v33 = vrot.slane %v4058_v42, 4  ;;  %v4066_v44 = vrot.slane %v4065_v52, 4  ;;  %v3954_v31 = vcombine.high %v3952_v4, %v3952_v4 }
 0x465   : > { %v4072_v17 = vsel %vm4022_vm12, %v3971_v26, -inf  ;;  %v4025_v38 = vmax.f32 %v4023_v12, %v4024_v21  ;;  %v4030_v50 = vsel %vm4022_vm12, %v3953_v51, -inf  ;;  %v4037_v16 = vsel %vm4022_vm12, %v3952_v4, -inf }
 0x466   : > { %v4054_v58 = vrot.slane %v4053_v7, 2  ;;  %v4060_v10 = vmax.f32 %v4058_v42, %v4059_v33  ;;  %v4067_v53 = vmax.f32 %v4065_v52, %v4066_v44  ;;  %v4073_v5 = vrot.slane %v4072_v17, 4 }
 0x467   : > { %v4026_v25 = vrot.slane %v4025_v38, 2  ;;  %v4031_v60 = vrot.slane %v4030_v50, 4  ;;  %v4038_v57 = vrot.slane %v4037_v16, 4  ;;  %v4044_v19 = vsel %vm4022_vm12, %v3954_v31, -inf }
 0x468   : > { %v4055_v1 = vmax.f32 %v4053_v7, %v4054_v58  ;;  %v4061_v47 = vrot.slane %v4060_v10, 2  ;;  %v4068_v9 = vrot.slane %v4067_v53, 2  ;;  %v4074_v3 = vmax.f32 %v4072_v17, %v4073_v5 }
 0x469   : > { %v4027_v27 = vmax.f32 %v4025_v38, %v4026_v25  ;;  %v4032_v54 = vmax.f32 %v4030_v50, %v4031_v60  ;;  %v4039_v61 = vmax.f32 %v4037_v16, %v4038_v57  ;;  %v4045_v49 = vrot.slane %v4044_v19, 4 }
 0x46a   : > { %v4056_v29 = vrot.slane %v4055_v1, 1  ;;  %v4062_v34 = vmax.f32 %v4060_v10, %v4061_v47  ;;  %v4069_v35 = vmax.f32 %v4067_v53, %v4068_v9  ;;  %v4075_v40 = vrot.slane %v4074_v3, 2 }
 0x46b   : > { %v4028_v28 = vrot.slane %v4027_v27, 1  ;;  %v4033_v45 = vrot.slane %v4032_v54, 2  ;;  %v4040_v11 = vrot.slane %v4039_v61, 2  ;;  %v4046_v0 = vmax.f32 %v4044_v19, %v4045_v49 }
 0x46c   : > { %v4057_v43 = vmax.f32 %v4055_v1, %v4056_v29  ;;  %v4063_v8 = vrot.slane %v4062_v34, 1  ;;  %v4070_v48 = vrot.slane %v4069_v35, 1  ;;  %v4076_v15 = vmax.f32 %v4074_v3, %v4075_v40 }
 0x46d   : > { %v4029_v37 = vmax.f32 %v4027_v27, %v4028_v28  ;;  %v4034_v39 = vmax.f32 %v4032_v54, %v4033_v45  ;;  %v4041_v62 = vmax.f32 %v4039_v61, %v4040_v11  ;;  %v4047_v18 = vrot.slane %v4046_v0, 2 }
 0x46e   : > { %v4064_v56 = vmax.f32 %v4062_v34, %v4063_v8  ;;  %v4071_v30 = vmax.f32 %v4069_v35, %v4070_v48  ;;  %v4077_v24 = vrot.slane %v4076_v15, 1  ;;  %v4139_v13 = vpack.c.bf16 %v4057_v43, %v4057_v43 }
 0x46f   : > { %v4035_v36 = vrot.slane %v4034_v39, 1  ;;  %v4042_v20 = vrot.slane %v4041_v62, 1  ;;  %v4048_v2 = vmax.f32 %v4046_v0, %v4047_v18  ;;  %v4135_v22 = vpack.c.bf16 %v4029_v37, %v4029_v37 }
 0x470   : > { %v4078_v59 = vmax.f32 %v4076_v15, %v4077_v24  ;;  %v4140_v6 = vpack.c.bf16 %v4064_v56, %v4064_v56  ;;  %v4141_v32 = vpack.c.bf16 %v4071_v30, %v4071_v30  ;;  %v4201_v4 = vrot.slane %v4139_v13, %v6763_v14 }
 0x471   : > { %v4036_v51 = vmax.f32 %v4034_v39, %v4035_v36  ;;  %v4043_v12 = vmax.f32 %v4041_v62, %v4042_v20  ;;  %v4049_v26 = vrot.slane %v4048_v2, 1  ;;  %v4173_v42 = vrot.slane %v4135_v22, %v6763_v14 }
 0x472   : > { %v4142_v52 = vpack.c.bf16 %v4078_v59, %v4078_v59  ;;  %v4208_v21 = vrot.slane %v4140_v6, %v6763_v14  ;;  %v4215_v7 = vrot.slane %v4141_v32, %v6763_v14  ;;  %v4313_v33 = vrot.slane %v4201_v4, %v6763_v14 }
 0x473   : > { %v4050_v44 = vmax.f32 %v4048_v2, %v4049_v26  ;;  %v4136_v31 = vpack.c.bf16 %v4036_v51, %v4036_v51  ;;  %v4137_v17 = vpack.c.bf16 %v4043_v12, %v4043_v12  ;;  %v4285_v38 = vrot.slane %v4173_v42, %v6763_v14 }
 0x474   : > { %v4222_v50 = vrot.slane %v4142_v52, %v6763_v14  ;;  %v4320_v16 = vrot.slane %v4208_v21, %v6763_v14  ;;  %v4327_v58 = vrot.slane %v4215_v7, %v6763_v14  ;;  %v3928_v10 = vmax.f32 %v6768_v41, 0.0 }
 0x475   : > { %v4395_v53 = vunpack.c.l.b16 %v4313_v33  ;;  %v4138_v5 = vpack.c.bf16 %v4050_v44, %v4050_v44  ;;  %v4180_v25 = vrot.slane %v4136_v31, %v6763_v14  ;;  %v4187_v60 = vrot.slane %v4137_v17, %v6763_v14 }
 0x476   : > { %v4334_v57 = vrot.slane %v4222_v50, %v6763_v14  ;;  %v4396_v19 = vunpack.c.l.b16 %v4320_v16  ;;  %v4397_v1 = vunpack.c.l.b16 %v4327_v58  ;;  %v4391_v47 = vunpack.c.l.b16 %v4285_v38 }
 0x477   : > { %v4194_v9 = vrot.slane %v4138_v5, %v6763_v14  ;;  %v4292_v3 = vrot.slane %v4180_v25, %v6763_v14  ;;  %v4299_v27 = vrot.slane %v4187_v60, %v6763_v14  ;;  %v3921_v41 = vadd.f32 %v6770_v23, %v6757_v55 }
 0x478   : > { %v4398_v54 = vunpack.c.l.b16 %v4334_v57  ;;  %v4416_v61 = vrot.slane %v4396_v19, 7  ;;  %v4418_v49 = vrot.slane %v4397_v1, 6  ;;  %v3919_v29 = vadd.f32 %v6757_v55, %v6777_v63 }
 0x479   : > { %v4306_v34 = vrot.slane %v4194_v9, %v6763_v14  ;;  %v4392_v35 = vunpack.c.l.b16 %v4292_v3  ;;  %v4393_v40 = vunpack.c.l.b16 %v4299_v27  ;;  %v3929_v28 = vmax.f32 %v3921_v41, 0.0 }
 0x47a   : > { %v4417_v45 = vsel %vm4408_vm13, %v4416_v61, %v4395_v53  ;;  %v4420_v11 = vrot.slane %v4398_v54, 5  ;;  %v3926_v0 = vmax.f32 %v6775_v46, 0.0  ;;  %v3927_v43 = vmax.f32 %v3919_v29, 0.0 }
 0x47b   : > { %v4419_v23 = vsel %vm4411_vm14, %v4418_v49, %v4417_v45  ;;  %v4394_v8 = vunpack.c.l.b16 %v4306_v34  ;;  %v4407_v48 = vrot.slane %v4392_v35, 7  ;;  %v4410_v15 = vrot.slane %v4393_v40, 6 }
 0x47c   : > { %v4421_v55 = vsel %vm4414_vm15, %v4420_v11, %v4419_v23  ;;  %v3933_v63 = vmax.f32 %v3928_v10, %v3929_v28  ;;  %v3932_v37 = vmax.f32 %v3926_v0, %v3927_v43 }
 0x47d   : > { %v4435_v39 = vpack.c.b16 %v4421_v55, %v4421_v55  ;;  %v4409_v62 = vsel %vm4408_vm13, %v4407_v48, %v4391_v47  ;;  %v4413_v46 = vrot.slane %v4394_v8, 5 }
 0x47e   : > { %v4412_v18 = vsel %vm4411_vm14, %v4410_v15, %v4409_v62  ;;  %v3989_v56 = vcombine.high %v3933_v63, %v3933_v63  ;;  %v3996_v30 = vrot.slane %v3933_v63, %v6763_v14  ;;  %v3972_v24 = vcombine.high %v3932_v37, %v3932_v37 }
 0x47f   : > { %4815 = vst.sshfl [vmem:[%s6815_s21 + $0x2] sm:$0x3 pattern:$0x76325410] %v4435_v39  ;;  %v4415_v13 = vsel %vm4414_vm15, %v4413_v46, %v4412_v18  ;;  %v3979_v36 = vrot.slane %v3932_v37, %v6763_v14 }
 0x480   : > { %v4434_v20 = vpack.c.b16 %v4415_v13, %v4415_v13  ;;  %v4003_v2 = vrot.slane %v3989_v56, %v6763_v14  ;;  %v4004_v22 = vcombine.high %v3996_v30, %v3996_v30  ;;  %v4107_v59 = vsel %vm4022_vm12, %v3996_v30, -inf }
 0x481   : > { %v4108_v6 = vrot.slane %v4107_v59, 4  ;;  %v3986_v32 = vrot.slane %v3972_v24, %v6763_v14  ;;  %v3987_v4 = vcombine.high %v3979_v36, %v3979_v36  ;;  %v4079_v51 = vsel %vm4022_vm12, %v3979_v36, -inf }
 0x482   : > { %4814 = vst.sshfl [vmem:[%s6815_s21] sm:$0x3 pattern:$0x76325410] %v4434_v20  ;;  %v4005_v12 = vcombine.high %v4003_v2, %v4003_v2  ;;  %v4114_v26 = vsel %vm4022_vm12, %v4004_v22, -inf  ;;  %v4121_v42 = vsel %vm4022_vm12, %v4003_v2, -inf  ;;  %v4080_v52 = vrot.slane %v4079_v51, 4 }
 0x483   : > { %v4109_v21 = vmax.f32 %v4107_v59, %v4108_v6  ;;  %v4115_v7 = vrot.slane %v4114_v26, 4  ;;  %v4122_v33 = vrot.slane %v4121_v42, 4  ;;  %v3988_v44 = vcombine.high %v3986_v32, %v3986_v32 }
 0x484   : > { %v4128_v31 = vsel %vm4022_vm12, %v4005_v12, -inf  ;;  %v4081_v17 = vmax.f32 %v4079_v51, %v4080_v52  ;;  %v4086_v38 = vsel %vm4022_vm12, %v3987_v4, -inf  ;;  %v4093_v50 = vsel %vm4022_vm12, %v3986_v32, -inf }
 0x485   : > { %v4110_v16 = vrot.slane %v4109_v21, 2  ;;  %v4116_v58 = vmax.f32 %v4114_v26, %v4115_v7  ;;  %v4123_v10 = vmax.f32 %v4121_v42, %v4122_v33  ;;  %v4129_v53 = vrot.slane %v4128_v31, 4 }
 0x486   : > { %v4082_v5 = vrot.slane %v4081_v17, 2  ;;  %v4087_v25 = vrot.slane %v4086_v38, 4  ;;  %v4094_v60 = vrot.slane %v4093_v50, 4  ;;  %v4100_v57 = vsel %vm4022_vm12, %v3988_v44, -inf }
 0x487   : > { %v4111_v19 = vmax.f32 %v4109_v21, %v4110_v16  ;;  %v4117_v1 = vrot.slane %v4116_v58, 2  ;;  %v4124_v47 = vrot.slane %v4123_v10, 2  ;;  %v4130_v9 = vmax.f32 %v4128_v31, %v4129_v53 }
 0x488   : > { %v4083_v3 = vmax.f32 %v4081_v17, %v4082_v5  ;;  %v4088_v27 = vmax.f32 %v4086_v38, %v4087_v25  ;;  %v4095_v41 = vmax.f32 %v4093_v50, %v4094_v60  ;;  %v4101_v54 = vrot.slane %v4100_v57, 4 }
 0x489   : > { %v4112_v61 = vrot.slane %v4111_v19, 1  ;;  %v4118_v49 = vmax.f32 %v4116_v58, %v4117_v1  ;;  %v4125_v29 = vmax.f32 %v4123_v10, %v4124_v47  ;;  %v4131_v34 = vrot.slane %v4130_v9, 2 }
 0x48a   : > { %v4084_v35 = vrot.slane %v4083_v3, 1  ;;  %v4089_v40 = vrot.slane %v4088_v27, 2  ;;  %v4096_v28 = vrot.slane %v4095_v41, 2  ;;  %v4102_v45 = vmax.f32 %v4100_v57, %v4101_v54 }
 0x48b   : > { %v4113_v11 = vmax.f32 %v4111_v19, %v4112_v61  ;;  %v4119_v0 = vrot.slane %v4118_v49, 1  ;;  %v4126_v43 = vrot.slane %v4125_v29, 1  ;;  %v4132_v23 = vmax.f32 %v4130_v9, %v4131_v34 }
 0x48c   : > { %v4085_v8 = vmax.f32 %v4083_v3, %v4084_v35  ;;  %v4090_v48 = vmax.f32 %v4088_v27, %v4089_v40  ;;  %v4097_v15 = vmax.f32 %v4095_v41, %v4096_v28  ;;  %v4103_v55 = vrot.slane %v4102_v45, 2 }
 0x48d   : > { %v4120_v63 = vmax.f32 %v4118_v49, %v4119_v0  ;;  %v4127_v37 = vmax.f32 %v4125_v29, %v4126_v43  ;;  %v4133_v39 = vrot.slane %v4132_v23, 1  ;;  %v4147_v62 = vpack.c.bf16 %v4113_v11, %v4113_v11 }
 0x48e   : > { %v4091_v46 = vrot.slane %v4090_v48, 1  ;;  %v4098_v18 = vrot.slane %v4097_v15, 1  ;;  %v4104_v56 = vmax.f32 %v4102_v45, %v4103_v55  ;;  %v4143_v30 = vpack.c.bf16 %v4085_v8, %v4085_v8 }
 0x48f   : > { %v4134_v24 = vmax.f32 %v4132_v23, %v4133_v39  ;;  %v4148_v13 = vpack.c.bf16 %v4120_v63, %v4120_v63  ;;  %v4149_v36 = vpack.c.bf16 %v4127_v37, %v4127_v37  ;;  %v4257_v20 = vrot.slane %v4147_v62, %v6763_v14 }
 0x490   : > { %v4092_v2 = vmax.f32 %v4090_v48, %v4091_v46  ;;  %v4099_v22 = vmax.f32 %v4097_v15, %v4098_v18  ;;  %v4105_v59 = vrot.slane %v4104_v56, 1  ;;  %v4229_v51 = vrot.slane %v4143_v30, %v6763_v14 }
 0x491   : > { %v4150_v6 = vpack.c.bf16 %v4134_v24, %v4134_v24  ;;  %v4264_v32 = vrot.slane %v4148_v13, %v6763_v14  ;;  %v4271_v4 = vrot.slane %v4149_v36, %v6763_v14  ;;  %v4369_v21 = vrot.slane %v4257_v20, %v6763_v14 }
 0x492   : > { %v4106_v12 = vmax.f32 %v4104_v56, %v4105_v59  ;;  %v4144_v26 = vpack.c.bf16 %v4092_v2, %v4092_v2  ;;  %v4145_v42 = vpack.c.bf16 %v4099_v22, %v4099_v22  ;;  %v4341_v58 = vrot.slane %v4229_v51, %v6763_v14 }
 0x493   : > { %v4278_v52 = vrot.slane %v4150_v6, %v6763_v14  ;;  %v4376_v7 = vrot.slane %v4264_v32, %v6763_v14  ;;  %v4383_v33 = vrot.slane %v4271_v4, %v6763_v14  ;;  %v4403_v25 = vunpack.c.l.b16 %v4369_v21 }
 0x494   : > { %v4146_v44 = vpack.c.bf16 %v4106_v12, %v4106_v12  ;;  %v4236_v31 = vrot.slane %v4144_v26, %v6763_v14  ;;  %v4243_v17 = vrot.slane %v4145_v42, %v6763_v14  ;;  %v4399_v41 = vunpack.c.l.b16 %v4341_v58 }
 0x495   : > { %v4390_v38 = vrot.slane %v4278_v52, %v6763_v14  ;;  %v4404_v50 = vunpack.c.l.b16 %v4376_v7  ;;  %v4405_v16 = vunpack.c.l.b16 %v4383_v33 }
 0x496   : > { %v4250_v10 = vrot.slane %v4146_v44, %v6763_v14  ;;  %v4348_v53 = vrot.slane %v4236_v31, %v6763_v14  ;;  %v4355_v5 = vrot.slane %v4243_v17, %v6763_v14 }
 0x497   : > { %v4406_v60 = vunpack.c.l.b16 %v4390_v38  ;;  %v4428_v57 = vrot.slane %v4404_v50, 7  ;;  %v4430_v19 = vrot.slane %v4405_v16, 6 }
 0x498   : > { %v4362_v1 = vrot.slane %v4250_v10, %v6763_v14  ;;  %v4400_v47 = vunpack.c.l.b16 %v4348_v53  ;;  %v4401_v9 = vunpack.c.l.b16 %v4355_v5 }
 0x499   : > { %v4429_v3 = vsel %vm4408_vm13, %v4428_v57, %v4403_v25  ;;  %v4432_v27 = vrot.slane %v4406_v60, 5 }
 0x49a   : > { %v4431_v54 = vsel %vm4411_vm14, %v4430_v19, %v4429_v3  ;;  %v4402_v61 = vunpack.c.l.b16 %v4362_v1  ;;  %v4422_v49 = vrot.slane %v4400_v47, 7  ;;  %v4424_v29 = vrot.slane %v4401_v9, 6 }
 0x49b   : > { %v4433_v34 = vsel %vm4414_vm15, %v4432_v27, %v4431_v54 }
 0x49c   : > { %v4437_v35 = vpack.c.b16 %v4433_v34, %v4433_v34  ;;  %v4423_v40 = vsel %vm4408_vm13, %v4422_v49, %v4399_v41  ;;  %v4426_v28 = vrot.slane %v4402_v61, 5 }
 0x49d   : > { %v4425_v14 = vsel %vm4411_vm14, %v4424_v29, %v4423_v40 }
 0x49e   : > { %4817 = vst.sshfl [vmem:[%s6815_s21 + $0x6] sm:$0x3 pattern:$0x76325410] %v4437_v35  ;;  %v4427_v45 = vsel %vm4414_vm15, %v4426_v28, %v4425_v14 }
 0x49f   : > { %v4436_v11 = vpack.c.b16 %v4427_v45, %v4427_v45 }
 0x4a1   : > { %4816 = vst.sshfl [vmem:[%s6815_s21 + $0x4] sm:$0x3 pattern:$0x76325410] %v4436_v11 }
 0x4a2 PF: > { %s18_s18 = sadd.s32 1, %s5951_s18  }
 0x4a3   : > { %p15_p6 = scmp.ge.s32.totalorder %s18_s18, 4  }
 0x4a5   :  { %17 = sbr.rel (!%p15_p6) target bundleno = 3 (0x3), region = 104 }
 0x4ac   :  { %4495 = vsyncpa [#allocation5], 1 }
 0x4ad   :  { %4497 = vsyncpa [#allocation5 + $0x1], 1 }
 0x4ae   :  { %4498 = vsyncpa [#allocation7], 1 }
 0x4af   :  { %4499 = vsyncpa [#allocation10], 1 }

// kernel: heavynet_forward.3
= control target key start
LH: loop header
LB: loop body
LE: loop exit
PB: predicated region body
PF: predicated region fallthrough
CT: control target
= control target key end

     0   :  { %10 = vsyncpa [#allocation5], 0  ;;  %s15226_s0 = inlined_call_operand.vmem [shape: bf16[2,18,18,128], index: 0, kind: input, shape index: {}]   ;;  %s15227_s1 = inlined_call_operand.hbm [shape: bf16[9,128,128], index: 1, kind: input, shape index: {}]   ;;  %s15228_s2 = inlined_call_operand.hbm [shape: f32[1,128], index: 2, kind: input, shape index: {}]   ;;  %s15229_s3 = inlined_call_operand.hbm [shape: bf16[9,128,128], index: 3, kind: input, shape index: {}]   ;;  %s15230_s4 = inlined_call_operand.hbm [shape: f32[1,128], index: 4, kind: input, shape index: {}]   ;;  %s15231_s5 = inlined_call_operand.vmem [shape: bf16[2,8,8,128], index: 5, kind: output, shape index: {}]  }
   0x1   :  { %11 = vsyncpa [#allocation7], 0 }
   0x2   :  { %12 = vsyncpa [#allocation10], 0  ;;  %s12781_s18 = smov 0  }
   0x3 LB: > { %s12743_s19 = smov [#allocation6]   ;;  %s12787_s21 = sadd.s32 4294967295, %s12741_s18   ;;  %s12741_s18 = sphi %s12781_s18, %s18_s18  }
   0x4   : > { %s185_s20 = sshll.u32 %s12743_s19, 4  ;;  %p10028_p0 = scmp.ge.s32.totalorder %s12741_s18, 1  ;;  %s12792_s20 = int_to_ptr.vmem [resolvable:$true] %s185_s20 }
   0x5   : > { %p159_p1 = scmp.lt.s32.totalorder %s12741_s18, 3  ;;  %p15232_p2 = scmp.eq.s32.totalorder %s12787_s21, 0 }
   0x6   : > { %s12744_s23 = smov [#allocation4]   ;;  %s12745_s26 = smov [#allocation8]  }
   0x7   : > { %p12794_p3 = pnand %p10028_p0, %p159_p1  ;;  %s171_s24 = sshll.u32 %s12744_s23, 4  ;;  %s12800_s24 = int_to_ptr.vmem [resolvable:$true] %s171_s24 }
   0x8   : > { %s195_s27 = sshll.u32 %s12745_s26, 4  ;;  %s12746_s28 = smov [#allocation9]   ;;  %s12808_s27 = int_to_ptr.vmem [resolvable:$true] %s195_s27 }
   0x9   : > { %s15343_s22 = scalar_select %p12794_p3, 1, 0 }
   0xa   : > { %p12352_p4 = pneg %p12794_p3  ;;  %s12810_s29 = sshll.u32 %s12746_s28, 4  ;;  %s210_s29 = int_to_ptr.vmem [resolvable:$true] %s12810_s29 }
   0xb   : > { %s12611_s7 = scalar_lea.hbm %s15228_s2, 16 }
   0xc   : > { %p12804_p5 = pnand %p15232_p2, %p12352_p4  ;;  %p12612_p6 = scmp.ne.s32.totalorder %s15228_s2, %s12611_s7 }
   0xd   : > { %p12618_p10 = scmp.lt.u32.totalorder %s12611_s7, %s15228_s2 }
   0xe   : > { %p12820_p7 = pneg %p12804_p5 }
  0x10   : > { %p12614_p8 = pnand %p12820_p7, %p12612_p6 }
  0x12   : > { %p12615_p9 = pneg %p12614_p8 }
  0x14   : > { %p12620_p11 = pnand %p12618_p10, %p12615_p9 }
  0x16   : > { %12623 = shalt.err (!%p12620_p11)
}
  0x17   : > { %s12624_s13 = scalar_lea.vmem %s12792_s20, 16  ;;  %s12631_s14 = scalar_lea.vmem %s12792_s20, 32 }
  0x18   : > { %p12625_p12 = scmp.ne.s32.totalorder %s12792_s20, %s12624_s13  ;;  %p12632_p1 = scmp.lt.s32.totalorder %s12792_s20, %s12792_s20 }
  0x19   : > { %p12633_p4 = scmp.lt.s32.totalorder %s12631_s14, %s12624_s13 }
  0x1a   : > { %p12627_p13 = pnand %p12625_p12, %p12820_p7 }
  0x1b   : > { %p12634_p6 = por %p12633_p4, %p12632_p1 }
  0x1c   : > { %p12628_p0 = pneg %p12627_p13 }
  0x1e   : > { %p12635_p8 = pnand %p12634_p6, %p12628_p0 }
  0x20   : > { %12638 = shalt.err (!%p12635_p8)
}
  0x21   : > { %12358 = dma.hbm_to_vmem [thread:$0]  (!%p12804_p5), %s15228_s2, 16, %s12792_s20, [#allocation7]  }
  0x22   : > { %s12639_s23 = scalar_lea.hbm %s15227_s1, 9216 }
  0x23   : > { %p12640_p9 = scmp.ne.s32.totalorder %s15227_s1, %s12639_s23  ;;  %p12646_p12 = scmp.lt.u32.totalorder %s12639_s23, %s15227_s1 }
  0x25   : > { %p12642_p10 = pnand %p12640_p9, %p12820_p7 }
  0x27   : > { %p12643_p11 = pneg %p12642_p10 }
  0x29   : > { %p12648_p13 = pnand %p12646_p12, %p12643_p11 }
  0x2b   : > { %12651 = shalt.err (!%p12648_p13)
}
  0x2c   : > { %s12652_s20 = scalar_lea.vmem %s12800_s24, 9216  ;;  %p12660_p6 = scmp.lt.s32.totalorder %s12800_s24, %s12800_s24 }
  0x2d   : > { %p12653_p0 = scmp.ne.s32.totalorder %s12800_s24, %s12652_s20  ;;  %p12661_p8 = scmp.lt.s32.totalorder %s12652_s20, %s12652_s20 }
  0x2f   : > { %p12655_p1 = pnand %p12653_p0, %p12820_p7  ;;  %p12662_p9 = por %p12661_p8, %p12660_p6 }
  0x31   : > { %p12656_p4 = pneg %p12655_p1 }
  0x33   : > { %p12663_p10 = pnand %p12662_p9, %p12656_p4 }
  0x35   : > { %12666 = shalt.err (!%p12663_p10)
}
  0x36   : > { %s12747_s7 = smov 64   ;;  %s12748_s8 = smov 4  }
  0x37   : > { %12355 = dma.hbm_to_vmem [thread:$0]  (!%p12804_p5), %s15227_s1, 9216, %s12800_s24, [#allocation5], %s12747_s7, %s12747_s7, %s12748_s8  }
  0x38   : > { %s12667_s14 = scalar_lea.hbm %s15229_s3, 9216 }
  0x39   : > { %p12668_p11 = scmp.ne.s32.totalorder %s15229_s3, %s12667_s14  ;;  %p12674_p0 = scmp.lt.u32.totalorder %s12667_s14, %s15229_s3 }
  0x3b   : > { %p12670_p12 = pnand %p12668_p11, %p12820_p7 }
  0x3d   : > { %p12671_p13 = pneg %p12670_p12 }
  0x3f   : > { %p12676_p1 = pnand %p12674_p0, %p12671_p13 }
  0x41   : > { %12679 = shalt.err (!%p12676_p1)
}
  0x42   : > { %s12680_s24 = scalar_lea.vmem %s12808_s27, 9216  ;;  %p12688_p9 = scmp.lt.s32.totalorder %s12808_s27, %s12808_s27 }
  0x43   : > { %p12681_p4 = scmp.ne.s32.totalorder %s12808_s27, %s12680_s24  ;;  %p12689_p10 = scmp.lt.s32.totalorder %s12680_s24, %s12680_s24 }
  0x45   : > { %p12683_p6 = pnand %p12681_p4, %p12820_p7  ;;  %p12690_p11 = por %p12689_p10, %p12688_p9 }
  0x47   : > { %p12684_p8 = pneg %p12683_p6 }
  0x49   : > { %p12691_p12 = pnand %p12690_p11, %p12684_p8 }
  0x4b   : > { %12694 = shalt.err (!%p12691_p12)
}
  0x4c   : > { %12361 = dma.hbm_to_vmem [thread:$0]  (!%p12804_p5), %s15229_s3, 9216, %s12808_s27, [#allocation7], %s12747_s7, %s12747_s7, %s12748_s8  }
  0x4d   : > { %s12695_s6 = scalar_lea.hbm %s15230_s4, 16 }
  0x4e   : > { %p12696_p13 = scmp.ne.s32.totalorder %s15230_s4, %s12695_s6  ;;  %p12702_p4 = scmp.lt.u32.totalorder %s12695_s6, %s15230_s4 }
  0x50   : > { %p12698_p0 = pnand %p12696_p13, %p12820_p7 }
  0x52   : > { %p12699_p1 = pneg %p12698_p0 }
  0x54   : > { %p12704_p6 = pnand %p12702_p4, %p12699_p1 }
  0x56   : > { %12707 = shalt.err (!%p12704_p6)
}
  0x57   : > { %s12708_s13 = scalar_lea.vmem %s210_s29, 16  ;;  %s12715_s27 = scalar_lea.vmem %s210_s29, 32 }
  0x58   : > { %p12709_p8 = scmp.ne.s32.totalorder %s210_s29, %s12708_s13  ;;  %p12716_p11 = scmp.lt.s32.totalorder %s210_s29, %s210_s29 }
  0x59   : > { %p12717_p12 = scmp.lt.s32.totalorder %s12715_s27, %s12708_s13 }
  0x5a   : > { %p12711_p9 = pnand %p12709_p8, %p12820_p7 }
  0x5b   : > { %p12718_p2 = por %p12717_p12, %p12716_p11 }
  0x5c   : > { %p12712_p10 = pneg %p12711_p9 }
  0x5e   : > { %p12719_p3 = pnand %p12718_p2, %p12712_p10 }
  0x60   : > { %12722 = shalt.err (!%p12719_p3)
}
  0x61   : > { %12364 = dma.hbm_to_vmem [thread:$0]  (!%p12804_p5), %s15230_s4, 16, %s210_s29, [#allocation10]  }
  0x62   : > { %p15346_p13 = scmp.ne.s32.totalorder %s15343_s22, 0 }
  0x64   : > { %230 = sbr.rel (%p15346_p13) target bundleno = 1863 (0x747), region = 40 }
  0x6b   : > { %p15347_p0 = scmp.eq.s32.totalorder %s12787_s21, 0 }
  0x6d   : > { %12728 = dma.done.wait (%p15347_p0), [#allocation5], 9216   ;;  %p15348_p7 = pmov %p15347_p0 }
  0x6e   : > { %p15349_p1 = pmov %p15347_p0 }
  0x6f   : > { %12730 = vsyncadd (%p15348_p7), [#allocation5], 4294958080 }
  0x70   : > { %12732 = dma.done.wait (%p15349_p1), [#allocation7], 9232   ;;  %p15350_p2 = pmov %p15347_p0 }
  0x71   : > { %p15351_p3 = pmov %p15347_p0 }
  0x72   : > { %12734 = vsyncadd (%p15350_p2), [#allocation7], 4294958064 }
  0x73   : > { %12736 = dma.done.wait (%p15351_p3), [#allocation10], 16   ;;  %p15352_p5 = pmov %p15347_p0 }
  0x74   : > { %p270_p4 = scmp.lt.s32.totalorder %s12787_s21, 1  ;;  %v12389_v0 = vld [vmem:[#allocation4] sm:$0xff]   ;;  %v12390_v1 = vld [vmem:[#allocation4 + $0x8] sm:$0xff]   ;;  %v12391_v2 = vld [vmem:[#allocation4 + $0x10] sm:$0xff]   ;;  %vm784_vm0 = vsmask.f32 3328 }
  0x75   : > { %12738 = vsyncadd (%p15352_p5), [#allocation10], 4294967280  ;;  %10959 = vmatprep.subr.bf16.mxu0 %v12389_v0  ;;  %v12392_v3 = vld [vmem:[#allocation4 + $0x18] sm:$0xff]   ;;  %v12393_v7 = vld [vmem:[#allocation4 + $0x20] sm:$0xff]   ;;  %vm785_vm1 = vsmask.f32 7440 }
  0x76   : > { %s15558_s21 = smov (!%p270_p4, %s12787_s21), 1  ;;  %10960 = vmatpush3.bf16.msra.mxu0 %v12389_v0  ;;  %v12394_v10 = vld [vmem:[#allocation4 + $0x28] sm:$0xff]   ;;  %v12395_v13 = vld [vmem:[#allocation4 + $0x30] sm:$0xff]   ;;  %v12396_v15 = vld [vmem:[#allocation4 + $0x38] sm:$0xff]   ;;  %vm1573_vm3 = vcmask 1042432   ;;  %vm1574_vm4 = vcmask 1046532  }
  0x77   : > { %s12335_s22 = smul.u32 216, %s15558_s21  ;;  %10961 = vmatprep.subr.bf16.mxu0 %v12390_v1  ;;  %vm12949_vm2 = vmor %vm784_vm0, %vm785_vm1  ;;  %v12399_v23 = vld [vmem:[#allocation4 + $0x40] sm:$0xff]   ;;  %v12402_v31 = vld [vmem:[#allocation4 + $0x48] sm:$0xff]   ;;  %vm4675_vm6 = vcmask 1043456   ;;  %vm4676_vm7 = vsmask.f32 7938 }
  0x78   : > { %v12405_v40 = vld [vmem:[#allocation4 + $0x50] sm:$0xff]   ;;  %v12408_v51 = vld [vmem:[#allocation4 + $0x58] sm:$0xff]   ;;  %v12411_v60 = vld [vmem:[#allocation4 + $0x60] sm:$0xff]   ;;  %vm4351_vm8 = vsmask.f32 256  ;;  %vm4682_vm10 = vcmask 1040384  }
  0x79   : > { %s12929_s10 = scalar_lea.vmem %s15226_s0, %s12335_s22  ;;  %vm13341_vm5 = vmor %vm1573_vm3, %vm1574_vm4  ;;  %vm4352_vm9 = vsmask.f32 4368  ;;  %vm9074_vm14 = vcmask 1041408   ;;  %vm9843_vm15 = vcmask 1041409   ;;  %vm9845_vm0 = vcmask 1042434   ;;  %s10430_s14 = sshll.u32 %s15558_s21, 5 }
  0x7a   : > { %10962 = vmatpush3.bf16.msra.mxu0 %v12390_v1  ;;  %v12932_v4 = vld [vmem:[%s12929_s10] sm:$0xf]  ;;  %v12935_v5 = vld [vmem:[%s12929_s10 + $0x4] sm:$0xf]  ;;  %v12944_v18 = vld [vmem:[%s12929_s10 + $0xc] sm:$0xf]  ;;  %s14984_s16 = scalar_lea.vmem %s15231_s5, %s10430_s14 }
  0x7b   : > { %10963 = vmatprep.subr.bf16.mxu0 %v12391_v2  ;;  %v10042_v6 = vcombine.low %v12932_v4, %v12935_v5  ;;  %v788_v8 = vshrl.u32 %v12932_v4, 16  ;;  %v791_v9 = vshll.u32 %v12932_v4, 16  ;;  %v797_v16 = vshll.u32 %v12935_v5, 16  ;;  %v12947_v19 = vld [vmem:[%s12929_s10 + $0x10] sm:$0xf]  ;;  %vm13946_vm11 = vmand %vm4675_vm6, %vm4676_vm7 }
  0x7c   : > { %v801_v17 = vshrl.u32 %v12935_v5, 16  ;;  %v12954_v24 = vld [vmem:[%s12929_s10 + $0x18] sm:$0xf]  ;;  %v12957_v25 = vld [vmem:[%s12929_s10 + $0x1c] sm:$0xf]  ;;  %v12961_v27 = vcombine.low %v12944_v18, %v12947_v19  ;;  %v812_v28 = vshrl.u32 %v12944_v18, 16  ;;  %vm13953_vm12 = vmor %vm4351_vm8, %vm4352_vm9 }
  0x7d   : > { %10975 = vmatprep.mubr.bf16.mxu0 %v10042_v6  ;;  %v790_v11 = vrot.slane %v788_v8, 4  ;;  %v793_v12 = vrot.slane %v791_v9, 5  ;;  %v799_v22 = vrot.slane %v797_v16, 5  ;;  %15355 = vst [vmem:[#allocation14_spill] sm:$0xff] %v12954_v24  ;;  %15356 = vst [vmem:[#allocation15_spill] sm:$0xff] %v12957_v25  ;;  %v12968_v30 = vcombine.low %v12954_v24, %v12957_v25 }
  0x7e   : > { %10964 = vmatpush3.bf16.msra.mxu0 %v12391_v2  ;;  %v803_v26 = vrot.slane %v801_v17, 4  ;;  %15357 = vst [vmem:[#allocation16_spill] sm:$0xff] %v12961_v27  ;;  %v815_v32 = vshll.u32 %v12944_v18, 16  ;;  %v821_v33 = vshll.u32 %v12947_v19, 16  ;;  %v814_v34 = vrot.slane %v812_v28, 4  ;;  %vm13959_vm13 = vmand %vm4682_vm10, %vm4351_vm8 }
  0x7f   : > { %10965 = vmatprep.subr.bf16.mxu0 %v12392_v3  ;;  %v794_v14 = vor.u32 %v793_v12, %v790_v11  ;;  %15358 = vst [vmem:[#allocation17_spill] sm:$0xff] %v12968_v30  ;;  %v825_v35 = vshrl.u32 %v12947_v19, 16  ;;  %v15234_v37 = vrot.slane %v12947_v19, 5  ;;  %v12977_v38 = vld [vmem:[%s12929_s10 + $0x24] sm:$0xf]  ;;  %v836_v56 = vshrl.u32 %v12954_v24, 16 }
  0x80   : > { %v804_v36 = vor.u32 %v803_v26, %v799_v22  ;;  %15359 = vst [vmem:[#allocation18_spill] sm:$0xff] %v12977_v38  ;;  %v12980_v39 = vld [vmem:[%s12929_s10 + $0x28] sm:$0xf]  ;;  %v12983_v41 = vld [vmem:[%s12929_s10 + $0x30] sm:$0xf]  ;;  %v817_v43 = vrot.slane %v815_v32, 5 }
  0x81   : > { %v795_v21 = vrot.slane %v794_v14, 4  ;;  %v12986_v42 = vld [vmem:[%s12929_s10 + $0x34] sm:$0xf]  ;;  %v12988_v44 = vrot.slane %v821_v33, 5  ;;  %v12991_v45 = vld [vmem:[%s12929_s10 + $0x8] sm:$0x1]  ;;  %v12995_v47 = vcombine.low %v12977_v38, %v12980_v39 }
  0x82   : > { %10966 = vmatpush3.bf16.msra.mxu0 %v12392_v3  ;;  %v827_v46 = vrot.slane %v825_v35, 4  ;;  %v805_v48 = vrot.slane %v804_v36, 4  ;;  %v807_v49 = vshll.u32 %v12991_v45, 16  ;;  %v13000_v50 = vcombine.low %v12983_v41, %v12986_v42  ;;  %v13016_v62 = vld [vmem:[%s12929_s10 + $0x3c] sm:$0xf]  ;;  %v12417_v35 = vld [vmem:[#allocation4 + $0x70] sm:$0xff]  }
  0x83   : > { %10967 = vmatprep.subr.bf16.mxu0 %v12393_v7  ;;  %v800_v29 = vsel %vm12949_vm2, %v795_v21, %v799_v22  ;;  %15360 = vst [vmem:[#allocation19_spill] sm:$0xff] %v12995_v47  ;;  %v818_v57 = vor.u32 %v817_v43, %v814_v34  ;;  %v13009_v59 = vrot.slane %v15234_v37, 4  ;;  %v13019_v63 = vld [vmem:[%s12929_s10 + $0x40] sm:$0xf]  ;;  %v13022_v0 = vld [vmem:[%s12929_s10 + $0x48] sm:$0xf] }
  0x84   : > { %15361 = vst [vmem:[#allocation20_spill] sm:$0xff] %v13000_v50  ;;  %v809_v52 = vrot.slane %v807_v49, 5  ;;  %v828_v58 = vor.u32 %v827_v46, %v12988_v44  ;;  %v13027_v2 = vld [vmem:[%s12929_s10 + $0x4c] sm:$0xf]  ;;  %v839_v3 = vshll.u32 %v12954_v24, 16  ;;  %v849_v6 = vshrl.u32 %v12957_v25, 16 }
  0x85   : > { %v13033_v9 = vrot.slane %v818_v57, 4  ;;  %v13040_v12 = vcombine.low %v13016_v62, %v13019_v63  ;;  %v13045_v14 = vcombine.low %v13022_v0, %v13027_v2  ;;  %v13060_v32 = vld [vmem:[%s12929_s10 + $0x58] sm:$0xf]  ;;  %v13066_v36 = vld [vmem:[%s12929_s10 + $0x60] sm:$0xf]  ;;  %v12420_v37 = vld [vmem:[#allocation4 + $0x78] sm:$0xff]  }
  0x86   : > { %10968 = vmatpush3.bf16.msra.mxu0 %v12393_v7  ;;  %v810_v61 = vsel %vm12949_vm2, %v805_v48, %v809_v52  ;;  %v13074_v48 = vld [vmem:[%s12929_s10 + $0x6c] sm:$0xf]  ;;  %v13079_v52 = vld [vmem:[%s12929_s10 + $0x70] sm:$0xf]  ;;  %v13091_v55 = vld [vmem:[%s12929_s10 + $0x7c] sm:$0xf] }
  0x87   : > { %10969 = vmatprep.subr.bf16.mxu0 %v12394_v10  ;;  %v13024_v1 = vcombine.low %v800_v29, %v810_v61  ;;  %15362 = vst [vmem:[#allocation21_spill] sm:$0xff] %v13040_v12  ;;  %15363 = vst [vmem:[#allocation22_spill] sm:$0xff] %v13045_v14  ;;  %v13088_v61 = vld [vmem:[%s12929_s10 + $0x78] sm:$0xf]  ;;  %v13100_v57 = vld [vmem:[%s12929_s10 + $0x84] sm:$0xf]  ;;  %v13136_v43 = vcombine.low %v13074_v48, %v13079_v52 }
  0x88   : > { %v13105_v46 = vld [vmem:[%s12929_s10 + $0x88] sm:$0xf]  ;;  %v13110_v33 = vld [vmem:[%s12929_s10 + $0x90] sm:$0xf]  ;;  %v13113_v54 = vld [vmem:[%s12929_s10 + $0x94] sm:$0xf]  ;;  %v13144_v29 = vcombine.low %v13088_v61, %v13091_v55 }
  0x89   : > { %v13132_v26 = vld [vmem:[%s12929_s10 + $0xa8] sm:$0xf]  ;;  %15368 = vst [vmem:[#allocation27_spill] sm:$0xff] %v13136_v43  ;;  %v838_v34 = vrot.slane %v836_v56, 4  ;;  %v13151_v49 = vld [vmem:[%s12929_s10 + $0x14] sm:$0x1]  ;;  %v13190_v7 = vcombine.low %v13110_v33, %v13113_v54 }
  0x8a   : > { %10970 = vmatpush3.bf16.msra.mxu0 %v12394_v10  ;;  %v13035_v10 = vrot.slane %v828_v58, 4  ;;  %15367 = vst [vmem:[#allocation26_spill] sm:$0xff] %v13132_v26  ;;  %15369 = vst [vmem:[#allocation28_spill] sm:$0xff] %v13144_v29  ;;  %v13148_v58 = vld [vmem:[%s12929_s10 + $0xac] sm:$0xf]  ;;  %v845_v22 = vshll.u32 %v12957_v25, 16 }
  0x8b   : > { %10971 = vmatprep.subr.bf16.mxu0 %v12395_v13  ;;  %15370 = vst [vmem:[#allocation29_spill] sm:$0xff] %v13148_v58  ;;  %v13157_v17 = vld [vmem:[%s12929_s10 + $0xb4] sm:$0xf]  ;;  %v13167_v16 = vld [vmem:[%s12929_s10 + $0x20] sm:$0x1]  ;;  %v851_v11 = vrot.slane %v849_v6, 4  ;;  %v13186_v6 = vcombine.low %v13100_v57, %v13105_v46 }
  0x8c   : > { %15371 = vst [vmem:[#allocation30_spill] sm:$0xff] %v13167_v16  ;;  %v13171_v21 = vrot.slane %v845_v22, 5  ;;  %v869_v8 = vshll.u32 %v12980_v39, 16  ;;  %v855_v56 = vshll.u32 %v13167_v16, 16  ;;  %v893_v22 = vshll.u32 %v12986_v42, 16  ;;  %15375 = vst [vmem:[#allocation32_spill] sm:$0xff] %v13190_v7 }
  0x8d   : > { %15374 = vst [vmem:[#allocation31_spill] sm:$0xff] %v13186_v6  ;;  %v15381_v16 = vshrl.u32 %v13016_v62, 16  ;;  %v15382_v24 = vshll.u32 %v13016_v62, 16  ;;  %vm9847_vm1 = vcmask 1043459   ;;  %vm9851_vm3 = vcmask 1045509  }
  0x8e   : > { %10972 = vmatpush3.bf16.msra.mxu0 %v12395_v13  ;;  %vm9853_vm4 = vcmask 1046534  }
  0x8f   : > { %10973 = vmatprep.subr.bf16.mxu0 %v12396_v15  ;;  %v910_v25 = vrot.slane %v15381_v16, 4 }
  0x92   : > { %10974 = vmatpush3.bf16.msra.mxu0 %v12396_v15  ;;  %v12414_v15 = vld [vmem:[#allocation4 + $0x68] sm:$0xff]  }
  0x93   : > { %11007 = vmatprep.subr.bf16.mxu0 %v12399_v23 }
  0x95   : > { %10976 = vmatmul.mubr.bf16.vlgmr.msra.gmra.mrb[0].mxu0 %v12961_v27 }
  0x96   : > { %11008 = vmatpush3.bf16.msra.mxu0 %v12399_v23  ;;  %10979 = vmatprep.mubr.bf16.mxu0 %v12968_v30  ;;  %v13052_v23 = vld [vmem:[%s12929_s10 + $0x54] sm:$0xf] }
  0x97   : > { %11009 = vmatprep.subr.bf16.mxu0 %v12402_v31 }
  0x9a   : > { %11010 = vmatpush3.bf16.msra.mxu0 %v12402_v31  ;;  %v13127_v31 = vld [vmem:[%s12929_s10 + $0xa0] sm:$0xf] }
  0x9b   : > { %11011 = vmatprep.subr.bf16.mxu0 %v12405_v40 }
  0x9d   : > { %10980 = vmatmul.mubr.bf16.gmra.mrb[4].mxu0 %v12995_v47  ;;  %v824_v47 = vsel %vm12949_vm2, %v13033_v9, %v12988_v44  ;;  %v913_v44 = vrot.slane %v15382_v24, 5 }
  0x9e   : > { %10983 = vmatprep.mubr.bf16.mxu0 %v13000_v50  ;;  %11012 = vmatpush3.bf16.msra.mxu0 %v12405_v40  ;;  %v13069_v40 = vld [vmem:[%s12929_s10 + $0x64] sm:$0xf]  ;;  %v917_v50 = vshll.u32 %v13019_v63, 16 }
  0x9f   : > { %11013 = vmatprep.subr.bf16.mxu0 %v12408_v51  ;;  %v13095_v53 = vcombine.low %v13066_v36, %v13069_v40 }
  0xa0   : > { %v13235_v16 = vrot.slane %v917_v50, 5 }
  0xa1   : > { %15365 = vst [vmem:[#allocation24_spill] sm:$0xff] %v13095_v53 }
  0xa2   : > { %11014 = vmatpush3.bf16.msra.mxu0 %v12408_v51  ;;  %v13119_v51 = vld [vmem:[#allocation4 + $0x80] sm:$0xff]  }
  0xa3   : > { %11015 = vmatprep.subr.bf16.mxu0 %v12411_v60 }
  0xa5   : > { %10984 = vmatmul.mubr.bf16.gmra.mrb[8].mxu0 %v13040_v12 }
  0xa6   : > { %10987 = vmatprep.mubr.bf16.mxu0 %v13045_v14  ;;  %11016 = vmatpush3.bf16.msra.mxu0 %v12411_v60  ;;  %v13085_v60 = vcombine.low %v13052_v23, %v13060_v32  ;;  %v13196_v14 = vrot.slane %v869_v8, 5  ;;  %v15379_v8 = vshll.u32 %v12983_v41, 16 }
  0xa7   : > { %11017 = vmatprep.subr.bf16.mxu0 %v12414_v15 }
  0xa8   : > { %15364 = vst [vmem:[#allocation23_spill] sm:$0xff] %v13085_v60 }
  0xaa   : > { %11018 = vmatpush3.bf16.msra.mxu0 %v12414_v15  ;;  %v13117_v15 = vld [vmem:[%s12929_s10 + $0x9c] sm:$0xf] }
  0xab   : > { %11019 = vmatprep.subr.bf16.mxu0 %v12417_v35  ;;  %15366 = vst [vmem:[#allocation25_spill] sm:$0xff] %v13117_v15  ;;  %v13223_v9 = vcombine.low %v13117_v15, %v13127_v31 }
  0xad   : > { %10988 = vmatmul.mubr.bf16.gmra.mrb[12].mxu0 %v13085_v60  ;;  %v13193_v60 = vld [vmem:[%s12929_s10 + $0x2c] sm:$0x1]  ;;  %15383 = vst [vmem:[#allocation34_spill] sm:$0xff] %v13223_v9 }
  0xae   : > { %10991 = vmatprep.mubr.bf16.mxu0 %v13095_v53  ;;  %11020 = vmatpush3.bf16.msra.mxu0 %v12417_v35  ;;  %v841_v35 = vrot.slane %v839_v3, 5  ;;  %v13161_v3 = vld [vmem:[%s12929_s10 + $0xb8] sm:$0xf]  ;;  %15376 = vst [vmem:[#allocation33_spill] sm:$0xff] %v13193_v60  ;;  %v879_v24 = vshll.u32 %v13193_v60, 16 }
  0xaf   : > { %11021 = vmatprep.subr.bf16.mxu0 %v12420_v37  ;;  %v13249_v60 = vld [vmem:[%s12929_s10 + $0x50] sm:$0x1] }
  0xb0   : > { %v842_v13 = vor.u32 %v841_v35, %v838_v34  ;;  %v15373_v35 = vshll.u32 %v12977_v38, 16  ;;  %15388 = vst [vmem:[#allocation36_spill] sm:$0xff] %v13249_v60 }
  0xb2   : > { %11022 = vmatpush3.bf16.msra.mxu0 %v12420_v37  ;;  %v831_v37 = vshll.u32 %v13151_v49, 16  ;;  %v843_v53 = vrot.slane %v842_v13, 4  ;;  %v15378_v13 = vshrl.u32 %v12983_v41, 16  ;;  %v13227_v41 = vcombine.low %v13132_v26, %v13148_v58 }
  0xb3   : > { %11055 = vmatprep.subr.bf16.mxu0 %v13119_v51  ;;  %v15387_v26 = vshll.u32 %v13022_v0, 16 }
  0xb4   : > { %v833_v28 = vrot.slane %v831_v37, 5  ;;  %v13206_v37 = vld [vmem:[%s12929_s10 + $0x38] sm:$0x1]  ;;  %v886_v27 = vrot.slane %v15378_v13, 4  ;;  %15384 = vst [vmem:[#allocation35_spill] sm:$0xff] %v13227_v41 }
  0xb5   : > { %10992 = vmatmul.mubr.bf16.gmra.mrb[16].mxu0 %v13136_v43  ;;  %v15372_v43 = vshrl.u32 %v12977_v38, 16  ;;  %v13212_v38 = vrot.slane %v893_v22, 5  ;;  %v15385_v22 = vshrl.u32 %v13019_v63, 16  ;;  %v937_v15 = vrot.slane %v15387_v26, 5 }
  0xb6   : > { %10995 = vmatprep.mubr.bf16.mxu0 %v13144_v29  ;;  %v865_v29 = vrot.slane %v15373_v35, 5  ;;  %v15377_v35 = vshrl.u32 %v12980_v39, 16  ;;  %v15380_v39 = vshrl.u32 %v12986_v42, 16  ;;  %v13230_v42 = vld [vmem:[%s12929_s10 + $0x44] sm:$0x1]  ;;  %v903_v50 = vshll.u32 %v13206_v37, 16 }
  0xb7   : > { %v862_v34 = vrot.slane %v15372_v43, 4  ;;  %v852_v43 = vor.u32 %v851_v11, %v13171_v21  ;;  %v889_v11 = vrot.slane %v15379_v8, 5  ;;  %v923_v13 = vrot.slane %v15385_v22, 4 }
  0xb8   : > { %v875_v12 = vrot.slane %v15377_v35, 4  ;;  %v899_v35 = vrot.slane %v15380_v39, 4  ;;  %v848_v63 = vsel %vm12949_vm2, %v843_v53, %v13171_v21  ;;  %v951_v21 = vshll.u32 %v13249_v60, 16 }
  0xb9   : > { %v866_v30 = vor.u32 %v865_v29, %v862_v34  ;;  %v857_v29 = vrot.slane %v855_v56, 5  ;;  %v941_v34 = vshll.u32 %v13027_v2, 16  ;;  %v853_v62 = vrot.slane %v852_v43, 4 }
  0xba   : > { %v876_v8 = vor.u32 %v875_v12, %v13196_v14  ;;  %v890_v39 = vor.u32 %v889_v11, %v886_v27  ;;  %v15386_v56 = vshrl.u32 %v13022_v0, 16  ;;  %v900_v43 = vor.u32 %v899_v35, %v13212_v38 }
  0xbb   : > { %v13244_v58 = vrot.slane %v866_v30, 4  ;;  %v834_v27 = vsel %vm12949_vm2, %v13035_v10, %v833_v28  ;;  %v13257_v0 = vrot.slane %v941_v34, 5  ;;  %v15389_v30 = vshrl.u32 %v13027_v2, 16 }
  0xbc   : > { %v858_v26 = vsel %vm12949_vm2, %v853_v62, %v857_v29  ;;  %v13263_v11 = vrot.slane %v879_v24, 5  ;;  %v927_v35 = vshll.u32 %v13230_v42, 16  ;;  %v13267_v10 = vrot.slane %v876_v8, 4 }
  0xbd   : > { %10996 = vmatmul.mubr.bf16.gmra.mrb[20].mxu0 %v13186_v6  ;;  %v934_v6 = vrot.slane %v15386_v56, 4  ;;  %v947_v12 = vrot.slane %v15389_v30, 4  ;;  %v13269_v28 = vrot.slane %v890_v39, 4  ;;  %v13275_v2 = vrot.slane %v900_v43, 4  ;;  %v13293_v39 = vld [vmem:[%s12929_s10 + $0x68] sm:$0x1] }
  0xbe   : > { %10999 = vmatprep.mubr.bf16.mxu0 %v13190_v7  ;;  %v914_v7 = vor.u32 %v913_v44, %v910_v25  ;;  %v924_v25 = vor.u32 %v923_v13, %v13235_v16  ;;  %v13273_v44 = vld [vmem:[%s12929_s10 + $0x5c] sm:$0x1]  ;;  %v13277_v34 = vrot.slane %v903_v50, 5  ;;  %v965_v62 = vshll.u32 %v13060_v32, 16  ;;  %15394 = vst [vmem:[#allocation39_spill] sm:$0xff] %v13293_v39 }
  0xbf   : > { %v938_v53 = vor.u32 %v937_v15, %v934_v6  ;;  %15390 = vst [vmem:[#allocation37_spill] sm:$0xff] %v13273_v44  ;;  %v13285_v24 = vcombine.low %v13157_v17, %v13161_v3  ;;  %v948_v15 = vor.u32 %v947_v12, %v13257_v0  ;;  %v15392_v6 = vshrl.u32 %v13052_v23, 16 }
  0xc0   : > { %v13279_v29 = vrot.slane %v914_v7, 4  ;;  %v15393_v13 = vshll.u32 %v13052_v23, 16  ;;  %v13296_v7 = vcombine.low %v824_v47, %v834_v27  ;;  %v13298_v56 = vcombine.low %v848_v63, %v858_v26 }
  0xc1   : > { %15391 = vst [vmem:[#allocation38_spill] sm:$0xff] %v13285_v24  ;;  %v958_v22 = vrot.slane %v15392_v6, 4  ;;  %v13300_v43 = vrot.slane %v924_v25, 4  ;;  %v13302_v50 = vrot.slane %v927_v35, 5  ;;  %v13304_v30 = vrot.slane %v938_v53, 4 }
  0xc2   : > { %v961_v8 = vrot.slane %v15393_v13, 5  ;;  %15395 = vst [vmem:[#allocation40_spill] sm:$0xff] %v13296_v7  ;;  %15396 = vst [vmem:[#allocation41_spill] sm:$0xff] %v13298_v56  ;;  %v13306_v12 = vrot.slane %v951_v21, 5  ;;  %v15397_v6 = vshrl.u32 %v13060_v32, 16  ;;  %v989_v13 = vshll.u32 %v13069_v40, 16 }
  0xc3   : > { %v975_v47 = vshll.u32 %v13273_v44, 16  ;;  %v15398_v27 = vshrl.u32 %v13066_v36, 16  ;;  %v15399_v26 = vshll.u32 %v13066_v36, 16  ;;  %v872_v35 = vsel %vm12949_vm2, %v13244_v58, %v13196_v14  ;;  %v13333_v44 = vld [vmem:[%s12929_s10 + $0x74] sm:$0x1] }
  0xc4   : > { %v971_v23 = vrot.slane %v15397_v6, 4  ;;  %v13322_v32 = vrot.slane %v948_v15, 4  ;;  %v962_v53 = vor.u32 %v961_v8, %v958_v22  ;;  %v15400_v21 = vshrl.u32 %v13069_v40, 16  ;;  %15402 = vst [vmem:[#allocation42_spill] sm:$0xff] %v13333_v44 }
  0xc5   : > { %11000 = vmatmul.mubr.bf16.gmra.mrb[24].mxu0 %v13223_v9  ;;  %v13311_v9 = vrot.slane %v965_v62, 5  ;;  %v982_v63 = vrot.slane %v15398_v27, 4  ;;  %v985_v25 = vrot.slane %v15399_v26, 5  ;;  %v999_v6 = vshll.u32 %v13293_v39, 16 }
  0xc6   : > { %11003 = vmatprep.mubr.bf16.mxu0 %v13227_v41  ;;  %v995_v62 = vrot.slane %v15400_v21, 4  ;;  %v15401_v27 = vshrl.u32 %v13074_v48, 16  ;;  %v1013_v36 = vshll.u32 %v13079_v52, 16  ;;  %v13330_v26 = vrot.slane %v989_v13, 5 }
  0xc7   : > { %v15403_v14 = vrot.slane %v12935_v5, 5  ;;  %v1581_v40 = vrot.slane %v12991_v45, 5  ;;  %v972_v15 = vor.u32 %v971_v23, %v13311_v9  ;;  %v986_v22 = vor.u32 %v985_v25, %v982_v63 }
  0xc8   : > { %v1006_v41 = vrot.slane %v15401_v27, 4  ;;  %v15404_v8 = vshll.u32 %v13074_v48, 16  ;;  %v1588_v13 = vrot.slane %v13151_v49, 5  ;;  %v15407_v39 = vshrl.u32 %v13079_v52, 16 }
  0xc9   : > { %v1580_v58 = vrot.slane %v15403_v14, 4  ;;  %v13350_v14 = vld [vmem:[%s12929_s10 + $0x80] sm:$0x1]  ;;  %v1037_v45 = vshll.u32 %v13091_v55, 16  ;;  %v15409_v23 = vrot.slane %v12935_v5, 5  ;;  %v15410_v48 = vrot.slane %v12932_v4, 9 }
  0xca   : > { %v1009_v21 = vrot.slane %v15404_v8, 5  ;;  %v1019_v60 = vrot.slane %v15407_v39, 4  ;;  %15408 = vst [vmem:[#allocation43_spill] sm:$0xff] %v13350_v14  ;;  %v13366_v52 = vrot.slane %v1013_v36, 5  ;;  %v13369_v39 = vld [vmem:[%s12929_s10 + $0x8c] sm:$0x1] }
  0xcb   : > { %v13359_v63 = vsel %vm13341_vm5, %v15410_v48, %v15409_v23  ;;  %v13363_v49 = vsel %vm13341_vm5, %v1580_v58, %v1581_v40  ;;  %15411 = vst [vmem:[#allocation44_spill] sm:$0xff] %v13369_v39  ;;  %v15412_v5 = vrot.slane %v12947_v19, 5  ;;  %v15413_v4 = vrot.slane %v12944_v18, 9 }
  0xcc   : > { %v1589_v58 = vsel %vm13341_vm5, %v13009_v59, %v1588_v13  ;;  %v13382_v40 = vrot.slane %v975_v47, 5  ;;  %v15415_v23 = vshll.u32 %v13088_v61, 16  ;;  %v13390_v19 = vrot.slane %v962_v53, 4 }
  0xcd   : > { %11004 = vmatmul.mubr.bf16.gmra.mrb[28].mxu0 %v13285_v24  ;;  %v1586_v8 = vsel %vm13341_vm5, %v15413_v4, %v15412_v5  ;;  %v13392_v18 = vrot.slane %v972_v15, 4  ;;  %v996_v5 = vor.u32 %v995_v62, %v13330_v26  ;;  %v1023_v4 = vshll.u32 %v13333_v44, 16 }
  0xce   : > { %11023 = vmatprep.mubr.bf16.mxu0 %v13024_v1  ;;  %v15414_v1 = vshrl.u32 %v13088_v61, 16  ;;  %v1033_v48 = vrot.slane %v15415_v23, 5  ;;  %v13388_v25 = vcombine.low %v1586_v8, %v1589_v58  ;;  %v882_v59 = vsel %vm12949_vm2, %v13267_v10, %v13263_v11  ;;  %v12422_v58 = vld [vmem:[#allocation4 + $0x88] sm:$0xff]  }
  0xcf   : > { %v1010_v47 = vor.u32 %v1009_v21, %v1006_v41  ;;  %v13400_v13 = vrot.slane %v1037_v45, 5  ;;  %v15417_v61 = vshrl.u32 %v13091_v55, 16  ;;  %v13404_v53 = vrot.slane %v986_v22, 4  ;;  %v12423_v22 = vld [vmem:[#allocation4 + $0x90] sm:$0xff]  }
  0xd0   : > { %v1030_v36 = vrot.slane %v15414_v1, 4  ;;  %15416 = vst [vmem:[#allocation45_spill] sm:$0xff] %v13388_v25  ;;  %v13406_v15 = vrot.slane %v999_v6, 5  ;;  %v1020_v62 = vor.u32 %v1019_v60, %v13366_v52  ;;  %v1047_v1 = vshll.u32 %v13350_v14, 16  ;;  %v13499_v14 = vld [vmem:[%s12929_s10 + $0xbc] sm:$0x1] }
  0xd1   : > { %v1043_v8 = vrot.slane %v15417_v61, 4  ;;  %v1061_v24 = vshll.u32 %v13105_v46, 16  ;;  %v1071_v11 = vshll.u32 %v13369_v39, 16  ;;  %v13412_v41 = vcombine.low %v872_v35, %v882_v59  ;;  %v13496_v39 = vld [vmem:[%s12929_s10 + $0xb0] sm:$0x1]  ;;  %15433 = vst [vmem:[#allocation48_spill] sm:$0xff] %v13499_v14 }
  0xd2   : > { %v1034_v23 = vor.u32 %v1033_v48, %v1030_v36  ;;  %v896_v55 = vsel %vm12949_vm2, %v13269_v28, %v13212_v38  ;;  %v13418_v10 = vrot.slane %v996_v5, 4  ;;  %v13420_v6 = vrot.slane %v1023_v4, 5 }
  0xd3   : > { %15418 = vst [vmem:[#allocation46_spill] sm:$0xff] %v13412_v41  ;;  %v906_v60 = vsel %vm12949_vm2, %v13275_v2, %v13277_v34  ;;  %v13427_v21 = vrot.slane %v1010_v47, 4  ;;  %v1044_v35 = vor.u32 %v1043_v8, %v13400_v13  ;;  %v15419_v45 = vshrl.u32 %v13100_v57, 16 }
  0xd4   : > { %v13436_v38 = vrot.slane %v1020_v62, 4  ;;  %v13438_v28 = vrot.slane %v1047_v1, 5  ;;  %v15420_v2 = vshll.u32 %v13100_v57, 16  ;;  %v1085_v48 = vshll.u32 %v13113_v54, 16 }
  0xd5   : > { %11024 = vmatmul.mubr.bf16.vlgmr.msra.gmra.mrb[0].mxu0 %v13296_v7  ;;  %v13432_v36 = vrot.slane %v15419_v45, 4  ;;  %v13443_v5 = vrot.slane %v1034_v23, 4  ;;  %v13445_v4 = vrot.slane %v1061_v24, 5  ;;  %v15421_v59 = vshrl.u32 %v13105_v46, 16  ;;  %v12424_v46 = vld [vmem:[#allocation4 + $0x98] sm:$0xff]  }
  0xd6   : > { %11056 = vmatpush3.bf16.msra.mxu0 %v13119_v51  ;;  %11027 = vmatprep.mubr.bf16.mxu0 %v13298_v56  ;;  %v1057_v34 = vrot.slane %v15420_v2, 5  ;;  %v13449_v47 = vrot.slane %v1071_v11, 5  ;;  %v920_v61 = vsel %vm12949_vm2, %v13279_v29, %v13235_v16  ;;  %v930_v57 = vsel %vm12949_vm2, %v13300_v43, %v13302_v50  ;;  %v13465_v23 = vld [vmem:[%s12929_s10 + $0x98] sm:$0x1] }
  0xd7   : > { %11057 = vmatprep.subr.bf16.mxu0 %v12422_v58  ;;  %v1067_v51 = vrot.slane %v15421_v59, 4  ;;  %v15422_v8 = vshrl.u32 %v13110_v33, 16  ;;  %v1109_v62 = vshll.u32 %v13127_v31, 16  ;;  %v13462_v1 = vrot.slane %v1044_v35, 4  ;;  %15423 = vst [vmem:[#allocation47_spill] sm:$0xff] %v13465_v23  ;;  %v15426_v2 = vld [vmem:[#allocation29_spill] sm:$0xff] }
  0xd8   : > { %v15424_v11 = vshll.u32 %v13110_v33, 16  ;;  %v15425_v16 = vshrl.u32 %v13113_v54, 16  ;;  %v1133_v43 = vshll.u32 %v15426_v2, 16  ;;  %v13472_v50 = vcombine.low %v896_v55, %v906_v60  ;;  %v13483_v54 = vld [vmem:[%s12929_s10 + $0xa4] sm:$0x1] }
  0xd9   : > { %v1078_v24 = vrot.slane %v15422_v8, 4  ;;  %v13474_v59 = vrot.slane %v1085_v48, 5  ;;  %v15428_v8 = vld [vmem:[#allocation25_spill] sm:$0xff]  ;;  %v944_v33 = vsel %vm12949_vm2, %v13304_v30, %v13257_v0  ;;  %v13488_v55 = vcombine.low %v920_v61, %v930_v57  ;;  %v15434_v0 = vld [vmem:[#allocation26_spill] sm:$0xff] }
  0xda   : > { %v1081_v45 = vrot.slane %v15424_v11, 5  ;;  %v1091_v29 = vrot.slane %v15425_v16, 4  ;;  %11058 = vmatpush3.bf16.msra.mxu0 %v12422_v58  ;;  %15427 = vst [vmem:[#allocation29_spill] sm:$0xff] %v13472_v50  ;;  %v15429_v35 = vshrl.u32 %v15428_v8, 16  ;;  %v15430_v11 = vshll.u32 %v15428_v8, 16  ;;  %15432 = vst [vmem:[#allocation25_spill] sm:$0xff] %v13496_v39 }
  0xdb   : > { %11059 = vmatprep.subr.bf16.mxu0 %v12423_v22  ;;  %v1157_v58 = vshll.u32 %v13161_v3, 16  ;;  %v1058_v60 = vor.u32 %v1057_v34, %v13432_v36  ;;  %v13491_v48 = vrot.slane %v1109_v62, 5  ;;  %v15435_v30 = vshrl.u32 %v15434_v0, 16 }
  0xdc   : > { %v1102_v56 = vrot.slane %v15429_v35, 4  ;;  %v1105_v16 = vrot.slane %v15430_v11, 5  ;;  %v15431_v35 = vshrl.u32 %v13127_v31, 16  ;;  %v15436_v11 = vshll.u32 %v15434_v0, 16  ;;  %v12425_v31 = vld [vmem:[#allocation4 + $0xa0] sm:$0xff]  }
  0xdd   : > { %11028 = vmatmul.mubr.bf16.gmra.mrb[4].mxu0 %v13412_v41  ;;  %v1126_v8 = vrot.slane %v15435_v30, 4  ;;  %v13506_v57 = vrot.slane %v1133_v43, 5  ;;  %v15437_v36 = vshrl.u32 %v15426_v2, 16  ;;  %v1068_v62 = vor.u32 %v1067_v51, %v13445_v4 }
  0xde   : > { %v1115_v7 = vrot.slane %v15431_v35, 4  ;;  %v1129_v61 = vrot.slane %v15436_v11, 5  ;;  %11031 = vmatprep.mubr.bf16.mxu0 %v13472_v50  ;;  %11060 = vmatpush3.bf16.msra.mxu0 %v12423_v22  ;;  %v1095_v35 = vshll.u32 %v13465_v23, 16  ;;  %v15438_v41 = vshrl.u32 %v13157_v17, 16 }
  0xdf   : > { %v1139_v34 = vrot.slane %v15437_v36, 4  ;;  %v15439_v30 = vshll.u32 %v13157_v17, 16  ;;  %v954_v2 = vsel %vm12949_vm2, %v13322_v32, %v13306_v12  ;;  %11061 = vmatprep.subr.bf16.mxu0 %v12424_v46  ;;  %v1082_v43 = vor.u32 %v1081_v45, %v1078_v24 }
  0xe0   : > { %v1150_v44 = vrot.slane %v15438_v41, 4  ;;  %v13521_v11 = vrot.slane %v1157_v58, 5  ;;  %v15440_v22 = vshrl.u32 %v13161_v3, 16  ;;  %v1092_v36 = vor.u32 %v1091_v29, %v13474_v59 }
  0xe1   : > { %v1153_v0 = vrot.slane %v15439_v30, 5  ;;  %v1106_v50 = vor.u32 %v1105_v16, %v1102_v56  ;;  %v1116_v41 = vor.u32 %v1115_v7, %v13491_v48  ;;  %v1119_v17 = vshll.u32 %v13483_v54, 16  ;;  %v12426_v30 = vld [vmem:[#allocation4 + $0xa8] sm:$0xff]  }
  0xe2   : > { %v1163_v51 = vrot.slane %v15440_v22, 4  ;;  %v1130_v23 = vor.u32 %v1129_v61, %v1126_v8  ;;  %v1140_v25 = vor.u32 %v1139_v34, %v13506_v57  ;;  %v1143_v12 = vshll.u32 %v13496_v39, 16  ;;  %11062 = vmatpush3.bf16.msra.mxu0 %v12424_v46  ;;  %v12427_v34 = vld [vmem:[#allocation4 + $0xb0] sm:$0xff]  }
  0xe3   : > { %v1167_v32 = vshll.u32 %v13499_v14, 16  ;;  %v13531_v24 = vcombine.low %v944_v33, %v954_v2  ;;  %v1059_v3 = vrot.slane %v1058_v60, 4  ;;  %v1069_v45 = vrot.slane %v1068_v62, 4  ;;  %11063 = vmatprep.subr.bf16.mxu0 %v12425_v31  ;;  %v15442_v62 = vld [vmem:[#allocation15_spill] sm:$0xff] }
  0xe4   : > { %v1154_v58 = vor.u32 %v1153_v0, %v1150_v44  ;;  %v1083_v56 = vrot.slane %v1082_v43, 4  ;;  %v1097_v29 = vrot.slane %v1095_v35, 5  ;;  %v1164_v7 = vor.u32 %v1163_v51, %v13521_v11  ;;  %v15444_v43 = vld [vmem:[#allocation18_spill] sm:$0xff] }
  0xe5   : > { %v1093_v16 = vrot.slane %v1092_v36, 4  ;;  %v1107_v22 = vrot.slane %v1106_v50, 4  ;;  %v1117_v8 = vrot.slane %v1116_v41, 4  ;;  %v1121_v61 = vrot.slane %v1119_v17, 5  ;;  %11032 = vmatmul.mubr.bf16.gmra.mrb[8].mxu0 %v13488_v55 }
  0xe6   : > { %v1131_v39 = vrot.slane %v1130_v23, 4  ;;  %v1141_v14 = vrot.slane %v1140_v25, 4  ;;  %v1145_v33 = vrot.slane %v1143_v12, 5  ;;  %v13535_v2 = vrot.slane %v1167_v32, 5  ;;  %11035 = vmatprep.mubr.bf16.mxu0 %v13531_v24  ;;  %11064 = vmatpush3.bf16.msra.mxu0 %v12425_v31  ;;  %v15441_v23 = vld [vmem:[#allocation14_spill] sm:$0xff] }
  0xe7   : > { %v968_v44 = vsel %vm12949_vm2, %v13390_v19, %v13311_v9  ;;  %v978_v46 = vsel %vm12949_vm2, %v13392_v18, %v13382_v40  ;;  %v13546_v50 = vrot.slane %v1154_v58, 4  ;;  %v10092_v25 = vrot.slane %v15441_v23, 9  ;;  %11065 = vmatprep.subr.bf16.mxu0 %v12426_v30  ;;  %v12428_v18 = vld [vmem:[#allocation4 + $0xb8] sm:$0xff]  }
  0xe8   : > { %v992_v60 = vsel %vm12949_vm2, %v13404_v53, %v13330_v26  ;;  %v1002_v9 = vsel %vm12949_vm2, %v13418_v10, %v13406_v15  ;;  %v1165_v19 = vrot.slane %v1164_v7, 4  ;;  %v1592_v35 = vrot.slane %v15442_v62, 5  ;;  %v13563_v26 = vld [vmem:[#allocation4 + $0xc0] sm:$0xff]   ;;  %v12570_v58 = vld [vmem:[%s12929_s10 + $0x30] sm:$0xf] }
  0xe9   : > { %v13558_v40 = vcombine.low %v968_v44, %v978_v46  ;;  %v13560_v31 = vcombine.low %v992_v60, %v1002_v9  ;;  %v15443_v53 = vld [vmem:[#allocation30_spill] sm:$0xff]  ;;  %v10093_v15 = vrot.slane %v15444_v43, 9  ;;  %v1016_v10 = vsel %vm12949_vm2, %v13427_v21, %v13366_v52  ;;  %v12575_v9 = vld [vmem:[%s12929_s10 + $0x4c] sm:$0xf] }
  0xea   : > { %11066 = vmatpush3.bf16.msra.mxu0 %v12426_v30  ;;  %v1595_v0 = vrot.slane %v15443_v53, 5  ;;  %v1026_v51 = vsel %vm12949_vm2, %v13436_v38, %v13420_v6  ;;  %v1040_v36 = vsel %vm12949_vm2, %v13443_v5, %v13400_v13  ;;  %v1050_v41 = vsel %vm12949_vm2, %v13462_v1, %v13438_v28  ;;  %v12569_v6 = vld [vmem:[%s12929_s10 + $0x28] sm:$0xf]  ;;  %v15445_v13 = vld [vmem:[#allocation33_spill] sm:$0xff] }
  0xeb   : > { %11067 = vmatprep.subr.bf16.mxu0 %v12427_v34  ;;  %v13584_v17 = vcombine.low %v1016_v10, %v1026_v51  ;;  %v13586_v52 = vcombine.low %v1040_v36, %v1050_v41  ;;  %v1599_v21 = vrot.slane %v12569_v6, 5  ;;  %v1602_v38 = vrot.slane %v15445_v13, 5  ;;  %v12430_v10 = vld [vmem:[#allocation4 + $0xc8] sm:$0xff]   ;;  %v15447_v51 = vld [vmem:[#allocation45_spill] sm:$0xff]  ;;  %v12431_v36 = vld [vmem:[#allocation4 + $0xd0] sm:$0xff]  }
  0xec   : > { %v1064_v28 = vsel %vm12949_vm2, %v1059_v3, %v13445_v4  ;;  %v1074_v5 = vsel %vm12949_vm2, %v1069_v45, %v13449_v47  ;;  %v1088_v1 = vsel %vm12949_vm2, %v1083_v56, %v13474_v59  ;;  %v1098_v30 = vsel %vm12949_vm2, %v1093_v16, %v1097_v29  ;;  %v12571_v4 = vld [vmem:[%s12929_s10 + $0x34] sm:$0xf]  ;;  %v15448_v6 = vld [vmem:[#allocation36_spill] sm:$0xff] }
  0xed   : > { %11036 = vmatmul.mubr.bf16.gmra.mrb[12].mxu0 %v13558_v40  ;;  %v13604_v12 = vcombine.low %v1064_v28, %v1074_v5  ;;  %v13606_v32 = vcombine.low %v1088_v1, %v1098_v30  ;;  %v10094_v7 = vrot.slane %v12570_v58, 9  ;;  %v1606_v3 = vrot.slane %v12571_v4, 5  ;;  %v12577_v5 = vld [vmem:[%s12929_s10 + $0x64] sm:$0xf]  ;;  %v12433_v30 = vld [vmem:[#allocation4 + $0xe0] sm:$0xff]  }
  0xee   : > { %11039 = vmatprep.mubr.bf16.mxu0 %v13560_v31  ;;  %11068 = vmatpush3.bf16.msra.mxu0 %v12427_v34  ;;  %v1112_v47 = vsel %vm12949_vm2, %v1107_v22, %v13491_v48  ;;  %v1122_v59 = vsel %vm12949_vm2, %v1117_v8, %v1121_v61  ;;  %v1136_v45 = vsel %vm12949_vm2, %v1131_v39, %v13506_v57  ;;  %v1601_v39 = vrot.slane %v1599_v21, 4  ;;  %v12572_v61 = vld [vmem:[%s12929_s10 + $0x3c] sm:$0xf]  ;;  %v12578_v4 = vld [vmem:[%s12929_s10 + $0x54] sm:$0xf] }
  0xef   : > { %11069 = vmatprep.subr.bf16.mxu0 %v12428_v18  ;;  %v1146_v56 = vsel %vm12949_vm2, %v1141_v14, %v1145_v33  ;;  %v13622_v29 = vcombine.low %v1112_v47, %v1122_v59  ;;  %v1160_v48 = vsel %vm12949_vm2, %v13546_v50, %v13521_v11  ;;  %v1170_v22 = vsel %vm12949_vm2, %v1165_v19, %v13535_v2  ;;  %v12573_v33 = vld [vmem:[%s12929_s10 + $0x40] sm:$0xf]  ;;  %v12574_v50 = vld [vmem:[%s12929_s10 + $0x48] sm:$0xf]  ;;  %v15449_v59 = vld [vmem:[#allocation37_spill] sm:$0xff] }
  0xf0   : > { %v13624_v16 = vcombine.low %v1136_v45, %v1146_v56  ;;  %v1594_v14 = vrot.slane %v1592_v35, 4  ;;  %v1608_v57 = vrot.slane %v1606_v3, 4  ;;  %v1609_v8 = vrot.slane %v13206_v37, 5  ;;  %v12579_v56 = vld [vmem:[%s12929_s10 + $0x60] sm:$0xf] }
  0xf1   : > { %v10095_v34 = vrot.slane %v12572_v61, 9  ;;  %v1613_v44 = vrot.slane %v12573_v33, 5  ;;  %v13640_v46 = vcombine.low %v1160_v48, %v1170_v22  ;;  %v1616_v2 = vrot.slane %v13230_v42, 5 }
  0xf2   : > { %11070 = vmatpush3.bf16.msra.mxu0 %v12428_v18  ;;  %v10096_v60 = vrot.slane %v12574_v50, 9  ;;  %v1620_v19 = vrot.slane %v12575_v9, 5  ;;  %v15446_v18 = vcombine.low %v13359_v63, %v13363_v49  ;;  %v1593_v37 = vsel %vm13341_vm5, %v10092_v25, %v1592_v35 }
  0xf3   : > { %11103 = vmatprep.subr.bf16.mxu0 %v13563_v26  ;;  %v1615_v11 = vrot.slane %v1613_v44, 4  ;;  %v1596_v53 = vsel %vm13341_vm5, %v1594_v14, %v1595_v0  ;;  %v1623_v63 = vrot.slane %v15448_v6, 5  ;;  %v1600_v49 = vsel %vm13341_vm5, %v10093_v15, %v1599_v21  ;;  %v12576_v21 = vld [vmem:[%s12929_s10 + $0x58] sm:$0xf]  ;;  %v15450_v14 = vld [vmem:[#allocation39_spill] sm:$0xff] }
  0xf4   : > { %v13657_v42 = vcombine.low %v1593_v37, %v1596_v53  ;;  %v1622_v41 = vrot.slane %v1620_v19, 4  ;;  %v1603_v23 = vsel %vm13341_vm5, %v1601_v39, %v1602_v38  ;;  %v1607_v25 = vsel %vm13341_vm5, %v10094_v7, %v1606_v3 }
  0xf5   : > { %11040 = vmatmul.mubr.bf16.gmra.mrb[16].mxu0 %v13584_v17  ;;  %v1610_v62 = vsel %vm13341_vm5, %v1608_v57, %v1609_v8  ;;  %v13673_v35 = vcombine.low %v1600_v49, %v1603_v23  ;;  %v1614_v43 = vsel %vm13341_vm5, %v10095_v34, %v1613_v44  ;;  %v1617_v15 = vsel %vm13341_vm5, %v1615_v11, %v1616_v2  ;;  %v12434_v57 = vld [vmem:[#allocation4 + $0xe8] sm:$0xff]   ;;  %v12580_v34 = vld [vmem:[%s12929_s10 + $0x70] sm:$0xf]  ;;  %v12581_v2 = vld [vmem:[%s12929_s10 + $0x7c] sm:$0xf] }
  0xf6   : > { %11043 = vmatprep.mubr.bf16.mxu0 %v13586_v52  ;;  %v13675_v0 = vcombine.low %v1607_v25, %v1610_v62  ;;  %v1627_v13 = vrot.slane %v12576_v21, 5  ;;  %v1621_v38 = vsel %vm13341_vm5, %v10096_v60, %v1620_v19  ;;  %v1624_v28 = vsel %vm13341_vm5, %v1622_v41, %v1623_v63  ;;  %v12435_v60 = vld [vmem:[#allocation4 + $0xf0] sm:$0xff]   ;;  %v12583_v41 = vld [vmem:[%s12929_s10 + $0x78] sm:$0xf]  ;;  %v12436_v25 = vld [vmem:[#allocation4 + $0xf8] sm:$0xff]  }
  0xf7   : > { %v1634_v1 = vrot.slane %v12577_v5, 5  ;;  %v13689_v58 = vcombine.low %v1614_v43, %v1617_v15  ;;  %v13691_v7 = vcombine.low %v1621_v38, %v1624_v28  ;;  %v10097_v3 = vrot.slane %v12578_v4, 9  ;;  %v15452_v49 = vld [vmem:[#allocation43_spill] sm:$0xff]  ;;  %v12585_v38 = vld [vmem:[%s12929_s10 + $0x94] sm:$0xf]  ;;  %v12437_v5 = vld [vmem:[#allocation4 + $0x100] sm:$0xff]  }
  0xf8   : > { %v1629_v47 = vrot.slane %v1627_v13, 4  ;;  %v1630_v45 = vrot.slane %v15449_v59, 5  ;;  %v10098_v48 = vrot.slane %v12579_v56, 9  ;;  %v1637_v39 = vrot.slane %v15450_v14, 5  ;;  %v12584_v43 = vld [vmem:[%s12929_s10 + $0x88] sm:$0xf] }
  0xf9   : > { %v1636_v22 = vrot.slane %v1634_v1, 4  ;;  %v1628_v8 = vsel %vm13341_vm5, %v10097_v3, %v1627_v13  ;;  %v1641_v33 = vrot.slane %v12580_v34, 5  ;;  %v1648_v50 = vrot.slane %v12581_v2, 5  ;;  %v12586_v4 = vld [vmem:[%s12929_s10 + $0x84] sm:$0xf]  ;;  %v15453_v59 = vld [vmem:[#allocation44_spill] sm:$0xff] }
  0xfa   : > { %v1631_v61 = vsel %vm13341_vm5, %v1629_v47, %v1630_v45  ;;  %v1635_v44 = vsel %vm13341_vm5, %v10098_v48, %v1634_v1  ;;  %v10100_v6 = vrot.slane %v12583_v41, 9  ;;  %v1651_v23 = vrot.slane %v15452_v49, 5  ;;  %v12587_v56 = vld [vmem:[%s12929_s10 + $0x90] sm:$0xf]  ;;  %v15454_v14 = vld [vmem:[#allocation47_spill] sm:$0xff] }
  0xfb   : > { %v1638_v11 = vsel %vm13341_vm5, %v1636_v22, %v1637_v39  ;;  %v13709_v9 = vcombine.low %v1628_v8, %v1631_v61  ;;  %v1643_v53 = vrot.slane %v1641_v33, 4  ;;  %v1650_v63 = vrot.slane %v1648_v50, 4  ;;  %v12588_v61 = vld [vmem:[%s12929_s10 + $0xa0] sm:$0xf] }
  0xfc   : > { %v13711_v19 = vcombine.low %v1635_v44, %v1638_v11  ;;  %v1655_v15 = vrot.slane %v12584_v43, 5  ;;  %v1649_v21 = vsel %vm13341_vm5, %v10100_v6, %v1648_v50  ;;  %v1662_v28 = vrot.slane %v12585_v38, 5  ;;  %v12589_v11 = vld [vmem:[%s12929_s10 + $0xac] sm:$0xf] }
  0xfd   : > { %11044 = vmatmul.mubr.bf16.gmra.mrb[20].mxu0 %v13604_v12  ;;  %v1652_v13 = vsel %vm13341_vm5, %v1650_v63, %v1651_v23  ;;  %v10101_v3 = vrot.slane %v12586_v4, 9  ;;  %v1658_v45 = vrot.slane %v15453_v59, 5  ;;  %v10102_v48 = vrot.slane %v12587_v56, 9  ;;  %v15455_v63 = vld [vmem:[#allocation25_spill] sm:$0xff]  ;;  %v15456_v4 = vld [vmem:[#allocation48_spill] sm:$0xff] }
  0xfe   : > { %11047 = vmatprep.mubr.bf16.mxu0 %v13606_v32  ;;  %v1657_v47 = vrot.slane %v1655_v15, 4  ;;  %v1664_v22 = vrot.slane %v1662_v28, 4  ;;  %v1665_v39 = vrot.slane %v15454_v14, 5  ;;  %v1669_v34 = vrot.slane %v12588_v61, 5  ;;  %v15457_v56 = vld [vmem:[#allocation16_spill] sm:$0xff]  ;;  %v15459_v14 = vld [vmem:[#allocation19_spill] sm:$0xff] }
  0xff   : > { %v1676_v2 = vrot.slane %v12589_v11, 5  ;;  %v1679_v49 = vrot.slane %v15455_v63, 5  ;;  %v15461_v61 = vld [vmem:[#allocation21_spill] sm:$0xff]  ;;  %v12443_v11 = vld [vmem:[#allocation4 + $0x130] sm:$0xff]  }
 0x100   : > { %v1659_v8 = vsel %vm13341_vm5, %v1657_v47, %v1658_v45  ;;  %v1666_v44 = vsel %vm13341_vm5, %v1664_v22, %v1665_v39  ;;  %v15458_v22 = vld [vmem:[#allocation17_spill] sm:$0xff]  ;;  %v12439_v39 = vld [vmem:[#allocation4 + $0x110] sm:$0xff]  }
 0x101   : > { %v1678_v6 = vrot.slane %v1676_v2, 4  ;;  %v15470_v63 = vld [vmem:[#allocation35_spill] sm:$0xff] }
 0x103   : > { %v1680_v43 = vsel %vm13341_vm5, %v1678_v6, %v1679_v49  ;;  %v15469_v6 = vld [vmem:[#allocation34_spill] sm:$0xff] }
 0x104   : > { %v15471_v49 = vld [vmem:[#allocation38_spill] sm:$0xff] }
 0x105   : > { %11048 = vmatmul.mubr.bf16.gmra.mrb[24].mxu0 %v13622_v29 }
 0x106   : > { %11051 = vmatprep.mubr.bf16.mxu0 %v13624_v16 }
 0x10d   : > { %11052 = vmatmul.mubr.bf16.gmra.mrb[28].mxu0 %v13640_v46 }
 0x10e   : > { %11071 = vmatprep.mubr.bf16.mxu0 %v15446_v18  ;;  %v12582_v18 = vld [vmem:[%s12929_s10 + $0x6c] sm:$0xf] }
 0x10f   : > { %v10099_v37 = vrot.slane %v12582_v18, 9  ;;  %v12590_v18 = vld [vmem:[%s12929_s10 + $0x9c] sm:$0xf] }
 0x111   : > { %v1642_v62 = vsel %vm13341_vm5, %v10099_v37, %v1641_v33  ;;  %v1663_v33 = vsel %vm13341_vm5, %v10102_v48, %v1662_v28  ;;  %v10103_v37 = vrot.slane %v12590_v18, 9  ;;  %v12438_v48 = vld [vmem:[#allocation4 + $0x108] sm:$0xff]   ;;  %v15464_v18 = vld [vmem:[#allocation24_spill] sm:$0xff] }
 0x113   : > { %v1670_v23 = vsel %vm13341_vm5, %v10103_v37, %v1669_v34  ;;  %v15465_v37 = vld [vmem:[#allocation27_spill] sm:$0xff] }
 0x115   : > { %11072 = vmatmul.mubr.bf16.vlgmr.msra.gmra.mrb[0].mxu0 %v15447_v51 }
 0x116   : > { %11104 = vmatpush3.bf16.msra.mxu0 %v13563_v26  ;;  %11075 = vmatprep.mubr.bf16.mxu0 %v13657_v42  ;;  %v12432_v26 = vld [vmem:[#allocation4 + $0xd8] sm:$0xff]  }
 0x117   : > { %11105 = vmatprep.subr.bf16.mxu0 %v12430_v10 }
 0x11a   : > { %11106 = vmatpush3.bf16.msra.mxu0 %v12430_v10  ;;  %v15451_v10 = vld [vmem:[#allocation42_spill] sm:$0xff] }
 0x11b   : > { %11107 = vmatprep.subr.bf16.mxu0 %v12431_v36 }
 0x11d   : > { %11076 = vmatmul.mubr.bf16.gmra.mrb[4].mxu0 %v13673_v35 }
 0x11e   : > { %11079 = vmatprep.mubr.bf16.mxu0 %v13675_v0  ;;  %11108 = vmatpush3.bf16.msra.mxu0 %v12431_v36  ;;  %v1644_v36 = vrot.slane %v15451_v10, 5  ;;  %v1672_v10 = vrot.slane %v13483_v54, 5 }
 0x11f   : > { %11109 = vmatprep.subr.bf16.mxu0 %v12432_v26 }
 0x122   : > { %11110 = vmatpush3.bf16.msra.mxu0 %v12432_v26  ;;  %v1645_v26 = vsel %vm13341_vm5, %v1643_v53, %v1644_v36  ;;  %v1671_v53 = vrot.slane %v1669_v34, 4  ;;  %v12591_v36 = vld [vmem:[%s12929_s10 + $0xa8] sm:$0xf]  ;;  %v12441_v34 = vld [vmem:[#allocation4 + $0x120] sm:$0xff]  }
 0x123   : > { %11111 = vmatprep.subr.bf16.mxu0 %v12433_v30  ;;  %v13729_v1 = vcombine.low %v1642_v62, %v1645_v26  ;;  %v10104_v41 = vrot.slane %v12591_v36, 9  ;;  %v12592_v62 = vld [vmem:[%s12929_s10 + $0xb8] sm:$0xf]  ;;  %v15467_v36 = vld [vmem:[#allocation31_spill] sm:$0xff] }
 0x124   : > { %v1683_v26 = vrot.slane %v12592_v62, 5 }
 0x125   : > { %11080 = vmatmul.mubr.bf16.gmra.mrb[8].mxu0 %v13689_v58  ;;  %v1677_v54 = vsel %vm13341_vm5, %v10104_v41, %v1676_v2  ;;  %v12445_v2 = vld [vmem:[#allocation4 + $0x138] sm:$0xff]  }
 0x126   : > { %11083 = vmatprep.mubr.bf16.mxu0 %v13691_v7  ;;  %11112 = vmatpush3.bf16.msra.mxu0 %v12433_v30  ;;  %v13731_v30 = vcombine.low %v1649_v21, %v1652_v13  ;;  %v13770_v21 = vcombine.low %v1677_v54, %v1680_v43  ;;  %v12593_v13 = vld [vmem:[%s12929_s10 + $0xb4] sm:$0xf]  ;;  %v1685_v28 = vrot.slane %v1683_v26, 4  ;;  %v15468_v41 = vld [vmem:[#allocation32_spill] sm:$0xff]  ;;  %v12447_v54 = vld [vmem:[#allocation4 + $0x148] sm:$0xff]  }
 0x127   : > { %11113 = vmatprep.subr.bf16.mxu0 %v12434_v57  ;;  %v10105_v38 = vrot.slane %v12593_v13, 9  ;;  %v15473_v43 = vld [vmem:[#allocation41_spill] sm:$0xff]  ;;  %v15474_v13 = vld [vmem:[#allocation46_spill] sm:$0xff] }
 0x129   : > { %v1684_v47 = vsel %vm13341_vm5, %v10105_v38, %v1683_v26  ;;  %v15472_v26 = vld [vmem:[#allocation40_spill] sm:$0xff] }
 0x12a   : > { %11114 = vmatpush3.bf16.msra.mxu0 %v12434_v57  ;;  %v1656_v57 = vsel %vm13341_vm5, %v10101_v3, %v1655_v15  ;;  %v1686_v3 = vrot.slane %v15456_v4, 5  ;;  %v12448_v38 = vld [vmem:[#allocation4 + $0x150] sm:$0xff]   ;;  %v15475_v4 = vld [vmem:[#allocation29_spill] sm:$0xff] }
 0x12b   : > { %11115 = vmatprep.subr.bf16.mxu0 %v12435_v60  ;;  %v13749_v50 = vcombine.low %v1656_v57, %v1659_v8  ;;  %v12440_v57 = vld [vmem:[#allocation4 + $0x118] sm:$0xff]  }
 0x12c   : > { %v1687_v59 = vsel %vm13341_vm5, %v1685_v28, %v1686_v3  ;;  %v15460_v8 = vld [vmem:[#allocation20_spill] sm:$0xff]  ;;  %v12450_v3 = vld [vmem:[#allocation4 + $0x160] sm:$0xff]  }
 0x12d   : > { %11084 = vmatmul.mubr.bf16.gmra.mrb[12].mxu0 %v13709_v9  ;;  %v13780_v45 = vcombine.low %v1684_v47, %v1687_v59  ;;  %v12449_v28 = vld [vmem:[#allocation4 + $0x158] sm:$0xff]   ;;  %v12451_v47 = vld [vmem:[#allocation4 + $0x168] sm:$0xff]   ;;  %v12452_v59 = vld [vmem:[#allocation4 + $0x170] sm:$0xff]  }
 0x12e   : > { %11087 = vmatprep.mubr.bf16.mxu0 %v13711_v19  ;;  %11116 = vmatpush3.bf16.msra.mxu0 %v12435_v60  ;;  %v13751_v60 = vcombine.low %v1663_v33, %v1666_v44  ;;  %v12442_v33 = vld [vmem:[#allocation4 + $0x128] sm:$0xff]  }
 0x12f   : > { %11117 = vmatprep.subr.bf16.mxu0 %v12436_v25  ;;  %v15462_v44 = vld [vmem:[#allocation22_spill] sm:$0xff] }
 0x132   : > { %11118 = vmatpush3.bf16.msra.mxu0 %v12436_v25  ;;  %v1673_v25 = vsel %vm13341_vm5, %v1671_v53, %v1672_v10  ;;  %v12446_v53 = vld [vmem:[#allocation4 + $0x140] sm:$0xff]   ;;  %v15466_v10 = vld [vmem:[#allocation28_spill] sm:$0xff] }
 0x133   : > { %11151 = vmatprep.subr.bf16.mxu0 %v12437_v5  ;;  %v13768_v15 = vcombine.low %v1670_v23, %v1673_v25  ;;  %v13799_v23 = vld [vmem:[%s12929_s10 + $0xc0] sm:$0xf]  ;;  %v13802_v25 = vld [vmem:[%s12929_s10 + $0xc4] sm:$0xf] }
 0x134   : > { %v13806_v62 = vcombine.low %v13799_v23, %v13802_v25 }
 0x135   : > { %11088 = vmatmul.mubr.bf16.gmra.mrb[16].mxu0 %v13729_v1 }
 0x136   : > { %11091 = vmatprep.mubr.bf16.mxu0 %v13731_v30 }
 0x13d   : > { %11092 = vmatmul.mubr.bf16.gmra.mrb[20].mxu0 %v13749_v50 }
 0x13e   : > { %11095 = vmatprep.mubr.bf16.mxu0 %v13751_v60 }
 0x145   : > { %11096 = vmatmul.mubr.bf16.gmra.mrb[24].mxu0 %v13768_v15 }
 0x146   : > { %11099 = vmatprep.mubr.bf16.mxu0 %v13770_v21 }
 0x14d   : > { %11100 = vmatmul.mubr.bf16.gmra.mrb[28].mxu0 %v13780_v45 }
 0x14e   : > { %11119 = vmatprep.mubr.bf16.mxu0 %v15457_v56  ;;  %v12453_v56 = vld [vmem:[#allocation4 + $0x178] sm:$0xff]  }
 0x155   : > { %11120 = vmatmul.mubr.bf16.vlgmr.msra.gmra.mrb[0].mxu0 %v15458_v22 }
 0x156   : > { %11152 = vmatpush3.bf16.msra.mxu0 %v12437_v5  ;;  %11123 = vmatprep.mubr.bf16.mxu0 %v15459_v14  ;;  %v15463_v5 = vld [vmem:[#allocation23_spill] sm:$0xff] }
 0x157   : > { %11153 = vmatprep.subr.bf16.mxu0 %v12438_v48 }
 0x15a   : > { %11154 = vmatpush3.bf16.msra.mxu0 %v12438_v48  ;;  %v12454_v48 = vld [vmem:[#allocation4 + $0x180] sm:$0xff]  }
 0x15b   : > { %11155 = vmatprep.subr.bf16.mxu0 %v12439_v39 }
 0x15d   : > { %11124 = vmatmul.mubr.bf16.gmra.mrb[4].mxu0 %v15460_v8 }
 0x15e   : > { %11127 = vmatprep.mubr.bf16.mxu0 %v15461_v61  ;;  %11156 = vmatpush3.bf16.msra.mxu0 %v12439_v39  ;;  %v2403_v39 = vshrl.u32 %v13799_v23, 16 }
 0x15f   : > { %11157 = vmatprep.subr.bf16.mxu0 %v12440_v57 }
 0x162   : > { %11158 = vmatpush3.bf16.msra.mxu0 %v12440_v57  ;;  %v2406_v57 = vshll.u32 %v13799_v23, 16 }
 0x163   : > { %11159 = vmatprep.subr.bf16.mxu0 %v12441_v34 }
 0x165   : > { %11128 = vmatmul.mubr.bf16.gmra.mrb[8].mxu0 %v15462_v44 }
 0x166   : > { %11131 = vmatprep.mubr.bf16.mxu0 %v15463_v5  ;;  %11160 = vmatpush3.bf16.msra.mxu0 %v12441_v34  ;;  %v2416_v34 = vshrl.u32 %v13802_v25, 16 }
 0x167   : > { %11161 = vmatprep.subr.bf16.mxu0 %v12442_v33 }
 0x16a   : > { %11162 = vmatpush3.bf16.msra.mxu0 %v12442_v33  ;;  %v2412_v33 = vshll.u32 %v13802_v25, 16 }
 0x16b   : > { %11163 = vmatprep.subr.bf16.mxu0 %v12443_v11 }
 0x16d   : > { %11132 = vmatmul.mubr.bf16.gmra.mrb[12].mxu0 %v15464_v18 }
 0x16e   : > { %11135 = vmatprep.mubr.bf16.mxu0 %v15465_v37  ;;  %11164 = vmatpush3.bf16.msra.mxu0 %v12443_v11  ;;  %v2405_v11 = vrot.slane %v2403_v39, 4 }
 0x16f   : > { %11165 = vmatprep.subr.bf16.mxu0 %v12445_v2 }
 0x172   : > { %11166 = vmatpush3.bf16.msra.mxu0 %v12445_v2  ;;  %v2408_v2 = vrot.slane %v2406_v57, 5 }
 0x173   : > { %11199 = vmatprep.subr.bf16.mxu0 %v12446_v53 }
 0x175   : > { %11136 = vmatmul.mubr.bf16.gmra.mrb[16].mxu0 %v15466_v10 }
 0x176   : > { %11139 = vmatprep.mubr.bf16.mxu0 %v15467_v36 }
 0x17d   : > { %11140 = vmatmul.mubr.bf16.gmra.mrb[20].mxu0 %v15468_v41 }
 0x17e   : > { %11143 = vmatprep.mubr.bf16.mxu0 %v15469_v6 }
 0x185   : > { %11144 = vmatmul.mubr.bf16.gmra.mrb[24].mxu0 %v15470_v63 }
 0x186   : > { %11147 = vmatprep.mubr.bf16.mxu0 %v15471_v49 }
 0x18d   : > { %11148 = vmatmul.mubr.bf16.gmra.mrb[28].mxu0 %v13806_v62 }
 0x18e   : > { %11167 = vmatprep.mubr.bf16.mxu0 %v15472_v26  ;;  %v2418_v26 = vrot.slane %v2416_v34, 4 }
 0x195   : > { %11168 = vmatmul.mubr.bf16.vlgmr.msra.gmra.mrb[0].mxu0 %v15473_v43 }
 0x196   : > { %11200 = vmatpush3.bf16.msra.mxu0 %v12446_v53  ;;  %11171 = vmatprep.mubr.bf16.mxu0 %v15474_v13  ;;  %v2414_v53 = vrot.slane %v2412_v33, 5  ;;  %v12455_v33 = vld [vmem:[#allocation4 + $0x188] sm:$0xff]  }
 0x197   : > { %11201 = vmatprep.subr.bf16.mxu0 %v12447_v54 }
 0x19a   : > { %11202 = vmatpush3.bf16.msra.mxu0 %v12447_v54  ;;  %v331_v54 = vld [vmem:[%s12929_s10 + $0xc8] sm:$0x1] }
 0x19b   : > { %11203 = vmatprep.subr.bf16.mxu0 %v12448_v38 }
 0x19d   : > { %11172 = vmatmul.mubr.bf16.gmra.mrb[4].mxu0 %v15475_v4 }
 0x19e   : > { %11175 = vmatprep.mubr.bf16.mxu0 %v13488_v55  ;;  %11204 = vmatpush3.bf16.msra.mxu0 %v12448_v38  ;;  %v2409_v38 = vor.u32 %v2408_v2, %v2405_v11  ;;  %v12456_v11 = vld [vmem:[#allocation4 + $0x190] sm:$0xff]   ;;  %v12457_v2 = vld [vmem:[#allocation4 + $0x198] sm:$0xff]  }
 0x19f   : > { %11205 = vmatprep.subr.bf16.mxu0 %v12449_v28 }
 0x1a2   : > { %11206 = vmatpush3.bf16.msra.mxu0 %v12449_v28  ;;  %v2419_v28 = vor.u32 %v2418_v26, %v2414_v53  ;;  %v12461_v26 = vld [vmem:[#allocation4 + $0x1b8] sm:$0xff]  }
 0x1a3   : > { %11207 = vmatprep.subr.bf16.mxu0 %v12450_v3 }
 0x1a5   : > { %11176 = vmatmul.mubr.bf16.gmra.mrb[8].mxu0 %v13531_v24 }
 0x1a6   : > { %11179 = vmatprep.mubr.bf16.mxu0 %v13558_v40  ;;  %11208 = vmatpush3.bf16.msra.mxu0 %v12450_v3  ;;  %v2422_v3 = vshll.u32 %v331_v54, 16 }
 0x1a7   : > { %11209 = vmatprep.subr.bf16.mxu0 %v12451_v47 }
 0x1aa   : > { %11210 = vmatpush3.bf16.msra.mxu0 %v12451_v47  ;;  %v2410_v47 = vrot.slane %v2409_v38, 4  ;;  %v12462_v38 = vld [vmem:[#allocation4 + $0x1c0] sm:$0xff]  }
 0x1ab   : > { %11211 = vmatprep.subr.bf16.mxu0 %v12452_v59 }
 0x1ac   : > { %v2415_v39 = vsel %vm12949_vm2, %v2410_v47, %v2414_v53  ;;  %v12458_v53 = vld [vmem:[#allocation4 + $0x1a0] sm:$0xff]  }
 0x1ad   : > { %11180 = vmatmul.mubr.bf16.gmra.mrb[12].mxu0 %v13560_v31 }
 0x1ae   : > { %11183 = vmatprep.mubr.bf16.mxu0 %v13584_v17  ;;  %11212 = vmatpush3.bf16.msra.mxu0 %v12452_v59  ;;  %v2420_v59 = vrot.slane %v2419_v28, 4  ;;  %v2755_v28 = vrot.slane %v13802_v25, 5  ;;  %v12463_v25 = vld [vmem:[#allocation4 + $0x1c8] sm:$0xff]  }
 0x1af   : > { %11213 = vmatprep.subr.bf16.mxu0 %v12453_v56 }
 0x1b0   : > { %v2757_v47 = vrot.slane %v2755_v28, 4 }
 0x1b2   : > { %11214 = vmatpush3.bf16.msra.mxu0 %v12453_v56  ;;  %v2424_v56 = vrot.slane %v2422_v3, 5  ;;  %v10148_v3 = vrot.slane %v13799_v23, 9  ;;  %v12464_v23 = vld [vmem:[#allocation4 + $0x1d0] sm:$0xff]  }
 0x1b3   : > { %11247 = vmatprep.subr.bf16.mxu0 %v12454_v48 }
 0x1b4   : > { %v2425_v57 = vsel %vm12949_vm2, %v2420_v59, %v2424_v56  ;;  %v2758_v59 = vrot.slane %v331_v54, 5  ;;  %v2756_v56 = vsel %vm13341_vm5, %v10148_v3, %v2755_v28  ;;  %v12465_v54 = vld [vmem:[#allocation4 + $0x1d8] sm:$0xff]  }
 0x1b5   : > { %11184 = vmatmul.mubr.bf16.gmra.mrb[16].mxu0 %v13586_v52  ;;  %v13833_v34 = vcombine.low %v2415_v39, %v2425_v57 }
 0x1b6   : > { %11187 = vmatprep.mubr.bf16.mxu0 %v13604_v12  ;;  %v2759_v39 = vsel %vm13341_vm5, %v2757_v47, %v2758_v59 }
 0x1b7   : > { %v13857_v57 = vcombine.low %v2756_v56, %v2759_v39 }
 0x1bd   : > { %11188 = vmatmul.mubr.bf16.gmra.mrb[20].mxu0 %v13606_v32 }
 0x1be   : > { %11191 = vmatprep.mubr.bf16.mxu0 %v13622_v29 }
 0x1c5   : > { %11192 = vmatmul.mubr.bf16.gmra.mrb[24].mxu0 %v13624_v16 }
 0x1c6   : > { %11195 = vmatprep.mubr.bf16.mxu0 %v13640_v46 }
 0x1cd   : > { %11196 = vmatmul.mubr.bf16.gmra.mrb[28].mxu0 %v13833_v34 }
 0x1ce   : > { %11215 = vmatprep.mubr.bf16.mxu0 %v15447_v51  ;;  %v12459_v51 = vld [vmem:[#allocation4 + $0x1a8] sm:$0xff]  }
 0x1d5   : > { %11216 = vmatmul.mubr.bf16.vlgmr.msra.gmra.mrb[0].mxu0 %v13657_v42 }
 0x1d6   : > { %11248 = vmatpush3.bf16.msra.mxu0 %v12454_v48  ;;  %11219 = vmatprep.mubr.bf16.mxu0 %v13673_v35  ;;  %v12460_v48 = vld [vmem:[#allocation4 + $0x1b0] sm:$0xff]  }
 0x1d7   : > { %11249 = vmatprep.subr.bf16.mxu0 %v12455_v33 }
 0x1da   : > { %11250 = vmatpush3.bf16.msra.mxu0 %v12455_v33  ;;  %v12466_v33 = vld [vmem:[#allocation4 + $0x1e0] sm:$0xff]  }
 0x1db   : > { %11251 = vmatprep.subr.bf16.mxu0 %v12456_v11 }
 0x1dd   : > { %11220 = vmatmul.mubr.bf16.gmra.mrb[4].mxu0 %v13675_v0 }
 0x1de   : > { %11223 = vmatprep.mubr.bf16.mxu0 %v13689_v58  ;;  %11252 = vmatpush3.bf16.msra.mxu0 %v12456_v11 }
 0x1df   : > { %11253 = vmatprep.subr.bf16.mxu0 %v12457_v2 }
 0x1e2   : > { %11254 = vmatpush3.bf16.msra.mxu0 %v12457_v2 }
 0x1e3   : > { %11255 = vmatprep.subr.bf16.mxu0 %v12458_v53 }
 0x1e5   : > { %11224 = vmatmul.mubr.bf16.gmra.mrb[8].mxu0 %v13691_v7 }
 0x1e6   : > { %11227 = vmatprep.mubr.bf16.mxu0 %v13709_v9  ;;  %11256 = vmatpush3.bf16.msra.mxu0 %v12458_v53 }
 0x1e7   : > { %11257 = vmatprep.subr.bf16.mxu0 %v12459_v51 }
 0x1ea   : > { %11258 = vmatpush3.bf16.msra.mxu0 %v12459_v51 }
 0x1eb   : > { %11259 = vmatprep.subr.bf16.mxu0 %v12460_v48 }
 0x1ed   : > { %11228 = vmatmul.mubr.bf16.gmra.mrb[12].mxu0 %v13711_v19 }
 0x1ee   : > { %11231 = vmatprep.mubr.bf16.mxu0 %v13729_v1  ;;  %11260 = vmatpush3.bf16.msra.mxu0 %v12460_v48 }
 0x1ef   : > { %11261 = vmatprep.subr.bf16.mxu0 %v12461_v26 }
 0x1f2   : > { %11262 = vmatpush3.bf16.msra.mxu0 %v12461_v26 }
 0x1f3   : > { %11295 = vmatprep.subr.bf16.mxu0 %v12462_v38 }
 0x1f5   : > { %11232 = vmatmul.mubr.bf16.gmra.mrb[16].mxu0 %v13731_v30 }
 0x1f6   : > { %11235 = vmatprep.mubr.bf16.mxu0 %v13749_v50 }
 0x1fd   : > { %11236 = vmatmul.mubr.bf16.gmra.mrb[20].mxu0 %v13751_v60 }
 0x1fe   : > { %11239 = vmatprep.mubr.bf16.mxu0 %v13768_v15 }
 0x205   : > { %11240 = vmatmul.mubr.bf16.gmra.mrb[24].mxu0 %v13770_v21 }
 0x206   : > { %11243 = vmatprep.mubr.bf16.mxu0 %v13780_v45 }
 0x20d   : > { %11244 = vmatmul.mubr.bf16.gmra.mrb[28].mxu0 %v13857_v57 }
 0x20e   : > { %11263 = vmatprep.mubr.bf16.mxu0 %v15458_v22  ;;  %v12467_v22 = vld [vmem:[#allocation4 + $0x1e8] sm:$0xff]  }
 0x215   : > { %11264 = vmatmul.mubr.bf16.vlgmr.msra.gmra.mrb[0].mxu0 %v15459_v14  ;;  %v12468_v14 = vld [vmem:[#allocation4 + $0x1f0] sm:$0xff]  }
 0x216   : > { %11296 = vmatpush3.bf16.msra.mxu0 %v12462_v38  ;;  %11267 = vmatprep.mubr.bf16.mxu0 %v15460_v8  ;;  %v12470_v8 = vld [vmem:[#allocation4 + $0x1f8] sm:$0xff]  }
 0x217   : > { %11297 = vmatprep.subr.bf16.mxu0 %v12463_v25 }
 0x21a   : > { %11298 = vmatpush3.bf16.msra.mxu0 %v12463_v25 }
 0x21b   : > { %11299 = vmatprep.subr.bf16.mxu0 %v12464_v23 }
 0x21d   : > { %11268 = vmatmul.mubr.bf16.gmra.mrb[4].mxu0 %v15461_v61  ;;  %v12471_v61 = vld [vmem:[#allocation4 + $0x200] sm:$0xff]  }
 0x21e   : > { %11271 = vmatprep.mubr.bf16.mxu0 %v15462_v44  ;;  %11300 = vmatpush3.bf16.msra.mxu0 %v12464_v23  ;;  %v13876_v44 = vld [vmem:[%s12929_s10 + $0xcc] sm:$0xf] }
 0x21f   : > { %11301 = vmatprep.subr.bf16.mxu0 %v12465_v54 }
 0x222   : > { %11302 = vmatpush3.bf16.msra.mxu0 %v12465_v54 }
 0x223   : > { %11303 = vmatprep.subr.bf16.mxu0 %v12466_v33 }
 0x225   : > { %11272 = vmatmul.mubr.bf16.gmra.mrb[8].mxu0 %v15463_v5  ;;  %v13879_v5 = vld [vmem:[%s12929_s10 + $0xd0] sm:$0xf] }
 0x226   : > { %11275 = vmatprep.mubr.bf16.mxu0 %v15464_v18  ;;  %11304 = vmatpush3.bf16.msra.mxu0 %v12466_v33  ;;  %v10158_v18 = vcombine.low %v13876_v44, %v13879_v5 }
 0x227   : > { %11305 = vmatprep.subr.bf16.mxu0 %v12467_v22 }
 0x22a   : > { %11306 = vmatpush3.bf16.msra.mxu0 %v12467_v22 }
 0x22b   : > { %11307 = vmatprep.subr.bf16.mxu0 %v12468_v14 }
 0x22d   : > { %11276 = vmatmul.mubr.bf16.gmra.mrb[12].mxu0 %v15465_v37  ;;  %v12479_v37 = vld [vmem:[#allocation8] sm:$0xff]  }
 0x22e   : > { %11279 = vmatprep.mubr.bf16.mxu0 %v15466_v10  ;;  %11308 = vmatpush3.bf16.msra.mxu0 %v12468_v14  ;;  %v12480_v10 = vld [vmem:[#allocation8 + $0x8] sm:$0xff]  }
 0x22f   : > { %11309 = vmatprep.subr.bf16.mxu0 %v12470_v8  ;;  %11391 = vmatprep.subr.bf16.mxu1 %v12479_v37 }
 0x230   : > { %11392 = vmatpush3.bf16.msra.mxu1 %v12479_v37 }
 0x231   : > { %11393 = vmatprep.subr.bf16.mxu1 %v12480_v10 }
 0x232   : > { %11310 = vmatpush3.bf16.msra.mxu0 %v12470_v8 }
 0x233   : > { %11343 = vmatprep.subr.bf16.mxu0 %v12471_v61 }
 0x234   : > { %11394 = vmatpush3.bf16.msra.mxu1 %v12480_v10  ;;  %v13937_v10 = vld [vmem:[#allocation6] ss:$0 sm:$0xff] }
 0x235   : > { %11280 = vmatmul.mubr.bf16.gmra.mrb[16].mxu0 %v15467_v36  ;;  %v12472_v36 = vld [vmem:[#allocation4 + $0x208] sm:$0xff]  }
 0x236   : > { %11283 = vmatprep.mubr.bf16.mxu0 %v15468_v41  ;;  %v12473_v41 = vld [vmem:[#allocation4 + $0x210] sm:$0xff]  }
 0x23d   : > { %11284 = vmatmul.mubr.bf16.gmra.mrb[20].mxu0 %v15469_v6  ;;  %v12474_v6 = vld [vmem:[#allocation4 + $0x218] sm:$0xff]  }
 0x23e   : > { %11287 = vmatprep.mubr.bf16.mxu0 %v15470_v63  ;;  %v12475_v63 = vld [vmem:[#allocation4 + $0x220] sm:$0xff]  }
 0x245   : > { %11288 = vmatmul.mubr.bf16.gmra.mrb[24].mxu0 %v15471_v49  ;;  %v12476_v49 = vld [vmem:[#allocation4 + $0x228] sm:$0xff]  }
 0x246   : > { %11291 = vmatprep.mubr.bf16.mxu0 %v13806_v62  ;;  %v12477_v62 = vld [vmem:[#allocation4 + $0x230] sm:$0xff]  }
 0x24d   : > { %11292 = vmatmul.mubr.bf16.gmra.mrb[28].mxu0 %v10158_v18 }
 0x24e   : > { %11311 = vmatprep.mubr.bf16.mxu0 %v15473_v43  ;;  %v12478_v43 = vld [vmem:[#allocation4 + $0x238] sm:$0xff]  }
 0x255   : > { %11312 = vmatmul.mubr.bf16.vlgmr.msra.gmra.mrb[0].mxu0 %v15474_v13 }
 0x256   : > { %11344 = vmatpush3.bf16.msra.mxu0 %v12471_v61  ;;  %11315 = vmatprep.mubr.bf16.mxu0 %v15475_v4 }
 0x257   : > { %11345 = vmatprep.subr.bf16.mxu0 %v12472_v36 }
 0x25a   : > { %11346 = vmatpush3.bf16.msra.mxu0 %v12472_v36 }
 0x25b   : > { %11347 = vmatprep.subr.bf16.mxu0 %v12473_v41 }
 0x25d   : > { %11316 = vmatmul.mubr.bf16.gmra.mrb[4].mxu0 %v13488_v55  ;;  %v3415_v55 = vshrl.u32 %v13876_v44, 16 }
 0x25e   : > { %11319 = vmatprep.mubr.bf16.mxu0 %v13531_v24  ;;  %11348 = vmatpush3.bf16.msra.mxu0 %v12473_v41  ;;  %v3418_v24 = vshll.u32 %v13876_v44, 16 }
 0x25f   : > { %11349 = vmatprep.subr.bf16.mxu0 %v12474_v6  ;;  %v3417_v13 = vrot.slane %v3415_v55, 4 }
 0x260   : > { %v3420_v4 = vrot.slane %v3418_v24, 5 }
 0x262   : > { %11350 = vmatpush3.bf16.msra.mxu0 %v12474_v6 }
 0x263   : > { %11351 = vmatprep.subr.bf16.mxu0 %v12475_v63 }
 0x265   : > { %11320 = vmatmul.mubr.bf16.gmra.mrb[8].mxu0 %v13558_v40  ;;  %v3428_v40 = vshrl.u32 %v13879_v5, 16 }
 0x266   : > { %11323 = vmatprep.mubr.bf16.mxu0 %v13560_v31  ;;  %11352 = vmatpush3.bf16.msra.mxu0 %v12475_v63  ;;  %v3424_v31 = vshll.u32 %v13879_v5, 16 }
 0x267   : > { %11353 = vmatprep.subr.bf16.mxu0 %v12476_v49  ;;  %v3430_v11 = vrot.slane %v3428_v40, 4 }
 0x26a   : > { %11354 = vmatpush3.bf16.msra.mxu0 %v12476_v49 }
 0x26b   : > { %11355 = vmatprep.subr.bf16.mxu0 %v12477_v62 }
 0x26d   : > { %11324 = vmatmul.mubr.bf16.gmra.mrb[12].mxu0 %v13584_v17  ;;  %v3426_v17 = vrot.slane %v3424_v31, 5 }
 0x26e   : > { %11327 = vmatprep.mubr.bf16.mxu0 %v13586_v52  ;;  %11356 = vmatpush3.bf16.msra.mxu0 %v12477_v62  ;;  %v334_v52 = vld [vmem:[%s12929_s10 + $0xd4] sm:$0x1] }
 0x26f   : > { %11357 = vmatprep.subr.bf16.mxu0 %v12478_v43  ;;  %v3431_v2 = vor.u32 %v3430_v11, %v3426_v17  ;;  %v3434_v53 = vshll.u32 %v334_v52, 16 }
 0x271   : > { %v3432_v48 = vrot.slane %v3431_v2, 4  ;;  %v3436_v26 = vrot.slane %v3434_v53, 5 }
 0x272   : > { %11358 = vmatpush3.bf16.msra.mxu0 %v12478_v43 }
 0x273   : > { %v3437_v38 = vsel %vm12949_vm2, %v3432_v48, %v3436_v26 }
 0x275   : > { %11328 = vmatmul.mubr.bf16.gmra.mrb[16].mxu0 %v13604_v12  ;;  %v3421_v12 = vor.u32 %v3420_v4, %v3417_v13 }
 0x276   : > { %11331 = vmatprep.mubr.bf16.mxu0 %v13606_v32 }
 0x277   : > { %v3422_v51 = vrot.slane %v3421_v12, 4 }
 0x279   : > { %v3427_v32 = vsel %vm12949_vm2, %v3422_v51, %v3426_v17 }
 0x27a   : > { %v10167_v28 = vcombine.low %v3427_v32, %v3437_v38 }
 0x27d   : > { %11332 = vmatmul.mubr.bf16.gmra.mrb[20].mxu0 %v13622_v29  ;;  %v3767_v29 = vrot.slane %v13879_v5, 5 }
 0x27e   : > { %11335 = vmatprep.mubr.bf16.mxu0 %v13624_v16  ;;  %v10176_v16 = vrot.slane %v13876_v44, 9 }
 0x285   : > { %11336 = vmatmul.mubr.bf16.gmra.mrb[24].mxu0 %v13640_v46  ;;  %v3769_v46 = vrot.slane %v3767_v29, 4 }
 0x286   : > { %11339 = vmatprep.mubr.bf16.mxu0 %v13833_v34  ;;  %v13928_v34 = vld [vmem:[#allocation8 + $0x40] sm:$0xff]  }
 0x28d   : > { %11340 = vmatmul.mubr.bf16.gmra.mrb[28].mxu0 %v10167_v28 }
 0x28e   : > { %11359 = vmatprep.mubr.bf16.mxu0 %v13657_v42  ;;  %v3770_v42 = vrot.slane %v334_v52, 5 }
 0x295   : > { %11360 = vmatmul.mubr.bf16.vlgmr.msra.gmra.mrb[0].mxu0 %v13673_v35  ;;  %v3768_v35 = vsel %vm13341_vm5, %v10176_v16, %v3767_v29 }
 0x296   : > { %11363 = vmatprep.mubr.bf16.mxu0 %v13675_v0  ;;  %v3771_v0 = vsel %vm13341_vm5, %v3769_v46, %v3770_v42 }
 0x29d   : > { %11364 = vmatmul.mubr.bf16.gmra.mrb[4].mxu0 %v13689_v58  ;;  %v10177_v58 = vcombine.low %v3768_v35, %v3771_v0 }
 0x29e   : > { %11367 = vmatprep.mubr.bf16.mxu0 %v13691_v7  ;;  %v12481_v7 = vld [vmem:[#allocation8 + $0x10] sm:$0xff]  }
 0x29f   : > { %11395 = vmatprep.subr.bf16.mxu1 %v12481_v7 }
 0x2a0   : > { %11396 = vmatpush3.bf16.msra.mxu1 %v12481_v7 }
 0x2a5   : > { %11368 = vmatmul.mubr.bf16.gmra.mrb[8].mxu0 %v13709_v9  ;;  %v12749_v9 = vmov 0  }
 0x2a6   : > { %11371 = vmatprep.mubr.bf16.mxu0 %v13711_v19  ;;  %4207 = vst [vmem:[#allocation3 + $0x18] sm:$0xf] %v12749_v9  ;;  %4201 = vst [vmem:[#allocation3] sm:$0xf] %v12749_v9  ;;  %v12482_v19 = vld [vmem:[#allocation8 + $0x18] sm:$0xff]  }
 0x2a7   : > { %4202 = vst [vmem:[#allocation3 + $0x4] sm:$0xf] %v12749_v9  ;;  %4203 = vst [vmem:[#allocation3 + $0x8] sm:$0x1] %v12749_v9  ;;  %11397 = vmatprep.subr.bf16.mxu1 %v12482_v19 }
 0x2a8   : > { %4204 = vst [vmem:[#allocation3 + $0xc] sm:$0xf] %v12749_v9  ;;  %4205 = vst [vmem:[#allocation3 + $0x10] sm:$0xf] %v12749_v9  ;;  %11398 = vmatpush3.bf16.msra.mxu1 %v12482_v19 }
 0x2a9   : > { %4206 = vst [vmem:[#allocation3 + $0x14] sm:$0x1] %v12749_v9  ;;  %4208 = vst [vmem:[#allocation3 + $0x1c] sm:$0xf] %v12749_v9 }
 0x2aa   : > { %4209 = vst [vmem:[#allocation3 + $0x20] sm:$0x1] %v12749_v9  ;;  %4210 = vst [vmem:[#allocation3 + $0x24] sm:$0xf] %v12749_v9 }
 0x2ab   : > { %4211 = vst [vmem:[#allocation3 + $0x28] sm:$0xf] %v12749_v9  ;;  %4212 = vst [vmem:[#allocation3 + $0x2c] sm:$0x1] %v12749_v9 }
 0x2ac   : > { %4213 = vst [vmem:[#allocation3 + $0x30] sm:$0xf] %v12749_v9  ;;  %4214 = vst [vmem:[#allocation3 + $0x34] sm:$0xf] %v12749_v9 }
 0x2ad   : > { %11372 = vmatmul.mubr.bf16.gmra.mrb[12].mxu0 %v13729_v1  ;;  %4215 = vst [vmem:[#allocation3 + $0x38] sm:$0x1] %v12749_v9  ;;  %4216 = vst [vmem:[#allocation3 + $0x3c] sm:$0xf] %v12749_v9  ;;  %v12483_v1 = vld [vmem:[#allocation8 + $0x20] sm:$0xff]  }
 0x2ae   : > { %11375 = vmatprep.mubr.bf16.mxu0 %v13731_v30  ;;  %4217 = vst [vmem:[#allocation3 + $0x40] sm:$0xf] %v12749_v9  ;;  %4218 = vst [vmem:[#allocation3 + $0x44] sm:$0x1] %v12749_v9  ;;  %11399 = vmatprep.subr.bf16.mxu1 %v12483_v1  ;;  %v12484_v30 = vld [vmem:[#allocation8 + $0x28] sm:$0xff]  }
 0x2af   : > { %4219 = vst [vmem:[#allocation3 + $0x48] sm:$0xf] %v12749_v9  ;;  %4220 = vst [vmem:[#allocation3 + $0x4c] sm:$0xf] %v12749_v9  ;;  %11400 = vmatpush3.bf16.msra.mxu1 %v12483_v1  ;;  %v4794_v54 = vld [vmem:[#allocation3 + $0x8] sm:$0x1] }
 0x2b0   : > { %4221 = vst [vmem:[#allocation3 + $0x50] sm:$0x1] %v12749_v9  ;;  %4222 = vst [vmem:[#allocation3 + $0x54] sm:$0xf] %v12749_v9  ;;  %11401 = vmatprep.subr.bf16.mxu1 %v12484_v30  ;;  %v5315_v14 = vshll.u32 %v4794_v54, 16 }
 0x2b1   : > { %4223 = vst [vmem:[#allocation3 + $0x58] sm:$0xf] %v12749_v9  ;;  %4224 = vst [vmem:[#allocation3 + $0x5c] sm:$0x1] %v12749_v9  ;;  %v4687_v46 = vld [vmem:[#allocation3 + $0x18] sm:$0xf] }
 0x2b2   : > { %4225 = vst [vmem:[#allocation3 + $0x60] sm:$0xf] %v12749_v9  ;;  %4226 = vst [vmem:[#allocation3 + $0x64] sm:$0xf] %v12749_v9  ;;  %v5317_v44 = vrot.slane %v5315_v14, 5 }
 0x2b3   : > { %4227 = vst [vmem:[#allocation3 + $0x68] sm:$0x1] %v12749_v9  ;;  %4228 = vst [vmem:[#allocation3 + $0x6c] sm:$0xf] %v12749_v9  ;;  %11402 = vmatpush3.bf16.msra.mxu1 %v12484_v30  ;;  %v4678_v1 = vld [vmem:[#allocation3 + $0xc] sm:$0xf] }
 0x2b4   : > { %4229 = vst [vmem:[#allocation3 + $0x70] sm:$0xf] %v12749_v9  ;;  %4230 = vst [vmem:[#allocation3 + $0x74] sm:$0x1] %v12749_v9 }
 0x2b5   : > { %11376 = vmatmul.mubr.bf16.gmra.mrb[16].mxu0 %v13749_v50  ;;  %4231 = vst [vmem:[#allocation3 + $0x78] sm:$0xf] %v12749_v9  ;;  %4232 = vst [vmem:[#allocation3 + $0x7c] sm:$0xf] %v12749_v9  ;;  %v12485_v50 = vld [vmem:[#allocation8 + $0x30] sm:$0xff]  }
 0x2b6   : > { %11379 = vmatprep.mubr.bf16.mxu0 %v13751_v60  ;;  %4233 = vst [vmem:[#allocation3 + $0x80] sm:$0x1] %v12749_v9  ;;  %4234 = vst [vmem:[#allocation3 + $0x84] sm:$0xf] %v12749_v9  ;;  %11403 = vmatprep.subr.bf16.mxu1 %v12485_v50  ;;  %v12486_v60 = vld [vmem:[#allocation8 + $0x38] sm:$0xff]  }
 0x2b7   : > { %4235 = vst [vmem:[#allocation3 + $0x88] sm:$0xf] %v12749_v9  ;;  %4236 = vst [vmem:[#allocation3 + $0x8c] sm:$0x1] %v12749_v9  ;;  %11404 = vmatpush3.bf16.msra.mxu1 %v12485_v50 }
 0x2b8   : > { %4237 = vst [vmem:[#allocation3 + $0x90] sm:$0xf] %v12749_v9  ;;  %4238 = vst [vmem:[#allocation3 + $0x94] sm:$0xf] %v12749_v9  ;;  %11405 = vmatprep.subr.bf16.mxu1 %v12486_v60 }
 0x2b9   : > { %4239 = vst [vmem:[#allocation3 + $0x98] sm:$0x1] %v12749_v9  ;;  %4240 = vst [vmem:[#allocation3 + $0x9c] sm:$0xf] %v12749_v9 }
 0x2ba   : > { %4241 = vst [vmem:[#allocation3 + $0xa0] sm:$0xf] %v12749_v9  ;;  %4242 = vst [vmem:[#allocation3 + $0xa4] sm:$0x1] %v12749_v9 }
 0x2bb   : > { %4243 = vst [vmem:[#allocation3 + $0xa8] sm:$0xf] %v12749_v9  ;;  %4244 = vst [vmem:[#allocation3 + $0xac] sm:$0xf] %v12749_v9  ;;  %11406 = vmatpush3.bf16.msra.mxu1 %v12486_v60 }
 0x2bc   : > { %4245 = vst [vmem:[#allocation3 + $0xb0] sm:$0x1] %v12749_v9  ;;  %4246 = vst [vmem:[#allocation3 + $0xb4] sm:$0xf] %v12749_v9  ;;  %11439 = vmatprep.subr.bf16.mxu1 %v13928_v34 }
 0x2bd   : > { %11380 = vmatmul.mubr.bf16.gmra.mrb[20].mxu0 %v13768_v15  ;;  %4247 = vst [vmem:[#allocation3 + $0xb8] sm:$0xf] %v12749_v9  ;;  %4248 = vst [vmem:[#allocation3 + $0xbc] sm:$0x1] %v12749_v9  ;;  %v4792_v15 = vld [vmem:[#allocation3] sm:$0xf] }
 0x2be   : > { %11383 = vmatprep.mubr.bf16.mxu0 %v13770_v21  ;;  %4249 = vst [vmem:[#allocation3 + $0xc0] sm:$0xf] %v12749_v9  ;;  %4250 = vst [vmem:[#allocation3 + $0xc4] sm:$0xf] %v12749_v9  ;;  %v4793_v21 = vld [vmem:[#allocation3 + $0x4] sm:$0xf] }
 0x2bf   : > { %4251 = vst [vmem:[#allocation3 + $0xc8] sm:$0x1] %v12749_v9  ;;  %4252 = vst [vmem:[#allocation3 + $0xcc] sm:$0xf] %v12749_v9  ;;  %v5296_v3 = vshrl.u32 %v4792_v15, 16  ;;  %v5299_v47 = vshll.u32 %v4792_v15, 16 }
 0x2c0   : > { %4253 = vst [vmem:[#allocation3 + $0xd0] sm:$0xf] %v12749_v9  ;;  %4254 = vst [vmem:[#allocation3 + $0xd4] sm:$0x1] %v12749_v9  ;;  %v5305_v59 = vshll.u32 %v4793_v21, 16  ;;  %v5309_v56 = vshrl.u32 %v4793_v21, 16 }
 0x2c1   : > { %v5298_v39 = vrot.slane %v5296_v3, 4 }
 0x2c2   : > { %v5307_v25 = vrot.slane %v5305_v59, 5  ;;  %v5311_v23 = vrot.slane %v5309_v56, 4 }
 0x2c4   : > { %v5312_v22 = vor.u32 %v5311_v23, %v5307_v25  ;;  %v4684_v23 = vld [vmem:[#allocation3 + $0x14] sm:$0x1] }
 0x2c5   : > { %11384 = vmatmul.mubr.bf16.gmra.mrb[24].mxu0 %v13780_v45  ;;  %v10219_v45 = vcombine.low %v4792_v15, %v4793_v21 }
 0x2c6   : > { %11387 = vmatprep.mubr.bf16.mxu0 %v13857_v57  ;;  %v5301_v57 = vrot.slane %v5299_v47, 5  ;;  %v5313_v61 = vrot.slane %v5312_v22, 4  ;;  %v4691_v47 = vld [vmem:[#allocation3 + $0x20] sm:$0x1] }
 0x2c7   : > { %11407 = vmatprep.mubr.bf16.mxu1 %v10219_v45 }
 0x2c8   : > { %v5302_v33 = vor.u32 %v5301_v57, %v5298_v39  ;;  %v5318_v18 = vsel %vm12949_vm2, %v5313_v61, %v5317_v44 }
 0x2ca   : > { %v5303_v8 = vrot.slane %v5302_v33, 4 }
 0x2cc   : > { %v5308_v5 = vsel %vm12949_vm2, %v5303_v8, %v5307_v25 }
 0x2cd   : > { %11388 = vmatmul.mubr.bf16.gmra.mrb[28].mxu0 %v10177_v58  ;;  %v13935_v37 = vcombine.low %v5308_v5, %v5318_v18 }
 0x368   : > { %v11361_v36 = vpop.f32.mrb[0].mxu0 }
 0x369   : > { %v4139_v41 = vadd.f32 %v11361_v36, %v13937_v10  ;;  %v3907_v6 = vpop.f32.mrb[1].mxu0 }
 0x36a   : > { %v4137_v63 = vadd.f32 %v13937_v10, %v3907_v6  ;;  %v11362_v49 = vpop.f32.mrb[2].mxu0 }
 0x36b   : > { %v4171_v62 = vmax.f32 %v4139_v41, 0.0  ;;  %v4140_v43 = vadd.f32 %v11362_v49, %v13937_v10  ;;  %v3910_v55 = vpop.f32.mrb[3].mxu0 }
 0x36c   : > { %v4169_v24 = vmax.f32 %v4137_v63, 0.0  ;;  %v4138_v40 = vadd.f32 %v13937_v10, %v3910_v55 }
 0x36d   : > { %v10433_v31 = vpack.c.bf16 %v4171_v62, %v4171_v62  ;;  %v4172_v13 = vmax.f32 %v4140_v43, 0.0 }
 0x36e   : > { %v10431_v4 = vpack.c.bf16 %v4169_v24, %v4169_v24  ;;  %v4170_v17 = vmax.f32 %v4138_v40, 0.0  ;;  %v4701_v40 = vld [vmem:[#allocation3 + $0x30] sm:$0xf] }
 0x36f   : > { %v4372_v11 = vshrl.u32 %v10433_v31, 16  ;;  %v10434_v52 = vpack.c.bf16 %v4172_v13, %v4172_v13  ;;  %v4375_v12 = vshll.u32 %v10433_v31, 16 }
 0x370   : > { %v4355_v2 = vshrl.u32 %v10431_v4, 16  ;;  %v4358_v53 = vshll.u32 %v10431_v4, 16  ;;  %v10432_v51 = vpack.c.bf16 %v4170_v17, %v4170_v17  ;;  %v11365_v48 = vpop.f32.mrb[4].mxu0 }
 0x371   : > { %v4374_v26 = vrot.slane %v4372_v11, 7  ;;  %v4380_v32 = vshrl.u32 %v10434_v52, 16  ;;  %v4383_v38 = vshll.u32 %v10434_v52, 16  ;;  %v4143_v28 = vadd.f32 %v11365_v48, %v13937_v10  ;;  %v3923_v29 = vpop.f32.mrb[5].mxu0 }
 0x372   : > { %v4357_v42 = vrot.slane %v4355_v2, 7  ;;  %v4363_v35 = vshrl.u32 %v10432_v51, 16  ;;  %v4366_v0 = vshll.u32 %v10432_v51, 16  ;;  %v4141_v58 = vadd.f32 %v13937_v10, %v3923_v29  ;;  %v11366_v7 = vpop.f32.mrb[6].mxu0 }
 0x373   : > { %v4377_v9 = vor.u32 %v4375_v12, %v4374_v26  ;;  %v4378_v19 = vrot.slane %v4374_v26, 4  ;;  %v4382_v50 = vrot.slane %v4380_v32, 7  ;;  %v4175_v60 = vmax.f32 %v4143_v28, 0.0  ;;  %v3926_v15 = vpop.f32.mrb[7].mxu0  ;;  %v4694_v12 = vld [vmem:[#allocation3 + $0x24] sm:$0xf] }
 0x374   : > { %v4360_v21 = vor.u32 %v4358_v53, %v4357_v42  ;;  %v4361_v45 = vrot.slane %v4357_v42, 4  ;;  %v4365_v59 = vrot.slane %v4363_v35, 7  ;;  %v4173_v56 = vmax.f32 %v4141_v58, 0.0 }
 0x375   : > { %v4688_v39 = vsel %vm13946_vm11, %v4377_v9, %v4687_v46  ;;  %v4385_v57 = vor.u32 %v4383_v38, %v4382_v50  ;;  %v4387_v25 = vrot.slane %v4382_v50, 4  ;;  %v10437_v54 = vpack.c.bf16 %v4175_v60, %v4175_v60  ;;  %v4705_v60 = vld [vmem:[#allocation3 + $0x38] sm:$0x1] }
 0x376   : > { %4689 = vst [vmem:[#allocation3 + $0x18] sm:$0xf] %v4688_v39  ;;  %v4679_v33 = vsel %vm13946_vm11, %v4360_v21, %v4678_v1  ;;  %v4368_v22 = vor.u32 %v4366_v0, %v4365_v59  ;;  %v4370_v14 = vrot.slane %v4365_v59, 4  ;;  %v10435_v8 = vpack.c.bf16 %v4173_v56, %v4173_v56 }
 0x377   : > { %4680 = vst [vmem:[#allocation3 + $0xc] sm:$0xf] %v4679_v33  ;;  %v4386_v61 = vsel %vm13953_vm12, %v4378_v19, %v4385_v57  ;;  %v4692_v44 = vsel %vm13959_vm13, %v4387_v25, %v4691_v47  ;;  %v4406_v5 = vshrl.u32 %v10437_v54, 16  ;;  %v4409_v41 = vshll.u32 %v10437_v54, 16 }
 0x378   : > { %4690 = vst [vmem:[#allocation3 + $0x1c] sm:$0xf] %v4386_v61  ;;  %4693 = vst [vmem:[#allocation3 + $0x20] sm:$0x1] %v4692_v44  ;;  %v4369_v18 = vsel %vm13953_vm12, %v4361_v45, %v4368_v22  ;;  %v4685_v36 = vsel %vm13959_vm13, %v4370_v14, %v4684_v23  ;;  %v4389_v6 = vshrl.u32 %v10435_v8, 16  ;;  %v11369_v63 = vpop.f32.mrb[8].mxu0  ;;  %v4144_v62 = vadd.f32 %v11366_v7, %v13937_v10 }
 0x379   : > { %4681 = vst [vmem:[#allocation3 + $0x10] sm:$0xf] %v4369_v18  ;;  %4686 = vst [vmem:[#allocation3 + $0x14] sm:$0x1] %v4685_v36  ;;  %v13975_v49 = vrot.slane %v4406_v5, 7  ;;  %v4142_v43 = vadd.f32 %v13937_v10, %v3926_v15  ;;  %v4147_v55 = vadd.f32 %v11369_v63, %v13937_v10  ;;  %v3939_v24 = vpop.f32.mrb[9].mxu0 }
 0x37a   : > { %v4391_v31 = vrot.slane %v4389_v6, 7  ;;  %v4392_v13 = vshll.u32 %v10435_v8, 16  ;;  %v4145_v4 = vadd.f32 %v13937_v10, %v3939_v24  ;;  %v11370_v17 = vpop.f32.mrb[10].mxu0  ;;  %v4176_v2 = vmax.f32 %v4144_v62, 0.0  ;;  %v4698_v15 = vld [vmem:[#allocation3 + $0x2c] sm:$0x1] }
 0x37b   : > { %v4411_v11 = vor.u32 %v4409_v41, %v13975_v49  ;;  %v4412_v52 = vrot.slane %v13975_v49, 4  ;;  %v4174_v53 = vmax.f32 %v4142_v43, 0.0  ;;  %v3942_v51 = vpop.f32.mrb[11].mxu0  ;;  %v4179_v32 = vmax.f32 %v4147_v55, 0.0  ;;  %v4715_v22 = vld [vmem:[#allocation3 + $0x48] sm:$0xf] }
 0x37c   : > { %v4394_v48 = vor.u32 %v4392_v13, %v4391_v31  ;;  %v4395_v26 = vrot.slane %v4391_v31, 4  ;;  %v4177_v38 = vmax.f32 %v4145_v4, 0.0  ;;  %v10438_v29 = vpack.c.bf16 %v4176_v2, %v4176_v2  ;;  %v4708_v6 = vld [vmem:[#allocation3 + $0x3c] sm:$0xf] }
 0x37d   : > { %v4702_v28 = vsel %vm13946_vm11, %v4411_v11, %v4701_v40  ;;  %v10436_v46 = vpack.c.bf16 %v4174_v53, %v4174_v53  ;;  %v4148_v42 = vadd.f32 %v11370_v17, %v13937_v10  ;;  %v10441_v0 = vpack.c.bf16 %v4179_v32, %v4179_v32 }
 0x37e   : > { %4703 = vst [vmem:[#allocation3 + $0x30] sm:$0xf] %v4702_v28  ;;  %v4695_v35 = vsel %vm13946_vm11, %v4394_v48, %v4694_v12  ;;  %v10439_v58 = vpack.c.bf16 %v4177_v38, %v4177_v38  ;;  %v4146_v7 = vadd.f32 %v13937_v10, %v3942_v51  ;;  %v4414_v9 = vshrl.u32 %v10438_v29, 16 }
 0x37f   : > { %4696 = vst [vmem:[#allocation3 + $0x24] sm:$0xf] %v4695_v35  ;;  %v4417_v19 = vshll.u32 %v10438_v29, 16  ;;  %v4397_v1 = vshrl.u32 %v10436_v46, 16  ;;  %v4400_v50 = vshll.u32 %v10436_v46, 16  ;;  %v4440_v21 = vshrl.u32 %v10441_v0, 16 }
 0x380   : > { %v4443_v45 = vshll.u32 %v10441_v0, 16  ;;  %v4423_v47 = vshrl.u32 %v10439_v58, 16  ;;  %v4426_v59 = vshll.u32 %v10439_v58, 16  ;;  %v11373_v56 = vpop.f32.mrb[12].mxu0  ;;  %v4416_v39 = vrot.slane %v4414_v9, 7 }
 0x381   : > { %v4399_v57 = vrot.slane %v4397_v1, 7  ;;  %v4180_v25 = vmax.f32 %v4148_v42, 0.0  ;;  %v4178_v23 = vmax.f32 %v4146_v7, 0.0  ;;  %v3955_v54 = vpop.f32.mrb[13].mxu0  ;;  %v13989_v33 = vrot.slane %v4440_v21, 7  ;;  %v12492_v21 = vld [vmem:[#allocation8 + $0x48] sm:$0xff]  }
 0x382   : > { %v13991_v14 = vrot.slane %v4423_v47, 7  ;;  %v4151_v8 = vadd.f32 %v11373_v56, %v13937_v10  ;;  %v4149_v61 = vadd.f32 %v13937_v10, %v3955_v54  ;;  %v11374_v44 = vpop.f32.mrb[14].mxu0  ;;  %v4419_v5 = vor.u32 %v4417_v19, %v4416_v39  ;;  %v14012_v51 = vld [vmem:[#allocation3 + $0x10] sm:$0xf]  ;;  %v4712_v46 = vld [vmem:[#allocation3 + $0x44] sm:$0x1] }
 0x383   : > { %v4421_v18 = vrot.slane %v4416_v39, 4  ;;  %v4402_v36 = vor.u32 %v4400_v50, %v4399_v57  ;;  %v4404_v41 = vrot.slane %v4399_v57, 4  ;;  %v3958_v63 = vpop.f32.mrb[15].mxu0  ;;  %v4445_v49 = vor.u32 %v4443_v45, %v13989_v33  ;;  %v4719_v29 = vld [vmem:[#allocation3 + $0x50] sm:$0x1] }
 0x384   : > { %v4446_v62 = vrot.slane %v13989_v33, 4  ;;  %v4428_v43 = vor.u32 %v4426_v59, %v13991_v14  ;;  %v4420_v55 = vsel %vm13953_vm12, %v4412_v52, %v4419_v5  ;;  %v10442_v17 = vpack.c.bf16 %v4180_v25, %v4180_v25  ;;  %v14017_v7 = vld [vmem:[#allocation3 + $0xc] sm:$0xf] }
 0x385   : > { %v4706_v24 = vsel %vm13959_vm13, %v4421_v18, %v4705_v60  ;;  %v4403_v40 = vsel %vm13953_vm12, %v4395_v26, %v4402_v36  ;;  %v4699_v31 = vsel %vm13959_vm13, %v4404_v41, %v4698_v15  ;;  %4704 = vst [vmem:[#allocation3 + $0x34] sm:$0xf] %v4420_v55  ;;  %v4716_v13 = vsel %vm13946_vm11, %v4445_v49, %v4715_v22  ;;  %v4729_v36 = vld [vmem:[#allocation3 + $0x60] sm:$0xf]  ;;  %v4722_v41 = vld [vmem:[#allocation3 + $0x54] sm:$0xf] }
 0x386   : > { %4707 = vst [vmem:[#allocation3 + $0x38] sm:$0x1] %v4706_v24  ;;  %4697 = vst [vmem:[#allocation3 + $0x28] sm:$0xf] %v4403_v40  ;;  %v4709_v4 = vsel %vm13946_vm11, %v4428_v43, %v4708_v6  ;;  %v10440_v11 = vpack.c.bf16 %v4178_v23, %v4178_v23  ;;  %v4183_v52 = vmax.f32 %v4151_v8, 0.0  ;;  %v4181_v12 = vmax.f32 %v4149_v61, 0.0 }
 0x387   : > { %4700 = vst [vmem:[#allocation3 + $0x2c] sm:$0x1] %v4699_v31  ;;  %4717 = vst [vmem:[#allocation3 + $0x48] sm:$0xf] %v4716_v13  ;;  %v4152_v2 = vadd.f32 %v11374_v44, %v13937_v10  ;;  %v4150_v53 = vadd.f32 %v13937_v10, %v3958_v63  ;;  %v4429_v48 = vrot.slane %v13991_v14, 4  ;;  %v4448_v26 = vshrl.u32 %v10442_v17, 16 }
 0x388   : > { %4710 = vst [vmem:[#allocation3 + $0x3c] sm:$0xf] %v4709_v4  ;;  %v4451_v32 = vshll.u32 %v10442_v17, 16  ;;  %v4431_v38 = vshrl.u32 %v10440_v11, 16  ;;  %v14015_v28 = vpop.f32.mrb[16].mxu0  ;;  %v10445_v42 = vpack.c.bf16 %v4183_v52, %v4183_v52  ;;  %v10443_v35 = vpack.c.bf16 %v4181_v12, %v4181_v12  ;;  %v12495_v6 = vld [vmem:[#allocation8 + $0x50] sm:$0xff]  }
 0x389   : > { %v4184_v0 = vmax.f32 %v4152_v2, 0.0  ;;  %v4182_v58 = vmax.f32 %v4150_v53, 0.0  ;;  %v14019_v9 = vpop.f32.mrb[17].mxu0  ;;  %v4450_v19 = vrot.slane %v4448_v26, 7  ;;  %v4434_v50 = vshll.u32 %v10440_v11, 16  ;;  %v12498_v53 = vld [vmem:[#allocation8 + $0x58] sm:$0xff]  }
 0x38a   : > { %v4433_v1 = vrot.slane %v4431_v38, 7  ;;  %v14023_v60 = vcombine.low %v14017_v7, %v14012_v51  ;;  %v14025_v15 = vpop.f32.mrb[18].mxu0  ;;  %v4474_v45 = vshrl.u32 %v10445_v42, 16  ;;  %v4477_v47 = vshll.u32 %v10445_v42, 16  ;;  %v14039_v43 = vld [vmem:[#allocation3 + $0x1c] sm:$0xf] }
 0x38b   : > { %v4457_v59 = vshrl.u32 %v10443_v35, 16  ;;  %v4460_v56 = vshll.u32 %v10443_v35, 16  ;;  %v14027_v39 = vpop.f32.mrb[19].mxu0  ;;  %v4453_v57 = vor.u32 %v4451_v32, %v4450_v19  ;;  %v4455_v25 = vrot.slane %v4450_v19, 4  ;;  %v4733_v31 = vld [vmem:[#allocation3 + $0x68] sm:$0x1] }
 0x38c   : > { %15482 = vst [vmem:[#allocation26_spill] sm:$0xff] %v14023_v60  ;;  %v4436_v23 = vor.u32 %v4434_v50, %v4433_v1  ;;  %v4438_v54 = vrot.slane %v4433_v1, 4  ;;  %11408 = vmatmul.mubr.bf16.vlgmr.msra.gmra.mrb[0].mxu1 %v14023_v60  ;;  %v4476_v33 = vrot.slane %v4474_v45, 7  ;;  %v10446_v14 = vpack.c.bf16 %v4184_v0, %v4184_v0  ;;  %v14047_v13 = vld [vmem:[#allocation3 + $0x18] sm:$0xf] }
 0x38d   : > { %v4459_v22 = vrot.slane %v4457_v59, 7  ;;  %v10444_v8 = vpack.c.bf16 %v4182_v58, %v4182_v58  ;;  %11440 = vmatpush3.bf16.msra.mxu1 %v13928_v34  ;;  %v4454_v61 = vsel %vm13953_vm12, %v4446_v62, %v4453_v57  ;;  %v4720_v44 = vsel %vm13959_vm13, %v4455_v25, %v4719_v29  ;;  %v4726_v32 = vld [vmem:[#allocation3 + $0x5c] sm:$0x1]  ;;  %v14074_v57 = vld [vmem:[#allocation3 + $0x24] sm:$0xf] }
 0x38e   : > { %v4437_v5 = vsel %vm13953_vm12, %v4429_v48, %v4436_v23  ;;  %v4713_v18 = vsel %vm13959_vm13, %v4438_v54, %v4712_v46  ;;  %11441 = vmatprep.subr.bf16.mxu1 %v12492_v21  ;;  %4718 = vst [vmem:[#allocation3 + $0x4c] sm:$0xf] %v4454_v61  ;;  %4721 = vst [vmem:[#allocation3 + $0x50] sm:$0x1] %v4720_v44  ;;  %v4479_v34 = vor.u32 %v4477_v47, %v4476_v33  ;;  %v12501_v45 = vld [vmem:[#allocation8 + $0x60] sm:$0xff]  }
 0x38f   : > { %4711 = vst [vmem:[#allocation3 + $0x40] sm:$0xf] %v4437_v5  ;;  %4714 = vst [vmem:[#allocation3 + $0x44] sm:$0x1] %v4713_v18  ;;  %v4462_v63 = vor.u32 %v4460_v56, %v4459_v22  ;;  %v4482_v49 = vshrl.u32 %v10446_v14, 16  ;;  %v4465_v62 = vshrl.u32 %v10444_v8, 16  ;;  %v14053_v38 = vcombine.low %v14047_v13, %v14039_v43 }
 0x390   : > { %v14041_v55 = vpop.f32.mrb[20].mxu0  ;;  %v4730_v24 = vsel %vm13946_vm11, %v4479_v34, %v4729_v36  ;;  %v4485_v11 = vshll.u32 %v10446_v14, 16  ;;  %v4468_v12 = vshll.u32 %v10444_v8, 16  ;;  %v4480_v48 = vrot.slane %v4476_v33, 4  ;;  %v14076_v25 = vld [vmem:[#allocation3 + $0x34] sm:$0xf] }
 0x391   : > { %v4723_v40 = vsel %vm13946_vm11, %v4462_v63, %v4722_v41  ;;  %11442 = vmatpush3.bf16.msra.mxu1 %v12492_v21  ;;  %v3987_v4 = vpop.f32.mrb[21].mxu0  ;;  %4731 = vst [vmem:[#allocation3 + $0x60] sm:$0xf] %v4730_v24  ;;  %v4484_v17 = vrot.slane %v4482_v49, 7  ;;  %v4467_v52 = vrot.slane %v4465_v62, 7  ;;  %v4463_v26 = vrot.slane %v4459_v22, 4  ;;  %11411 = vmatprep.mubr.bf16.mxu1 %v14053_v38 }
 0x392   : > { %4724 = vst [vmem:[#allocation3 + $0x54] sm:$0xf] %v4723_v40  ;;  %v14049_v2 = vpop.f32.mrb[22].mxu0  ;;  %11443 = vmatprep.subr.bf16.mxu1 %v12495_v6  ;;  %15483 = vst [vmem:[#allocation14_spill] sm:$0xff] %v14053_v38  ;;  %v14066_v21 = vld [vmem:[#allocation3 + $0x28] sm:$0xf]  ;;  %v4155_v47 = vadd.f32 %v14015_v28, %v13937_v10  ;;  %v4153_v59 = vadd.f32 %v13937_v10, %v14019_v9  ;;  %v4156_v56 = vadd.f32 %v14025_v15, %v13937_v10 }
 0x393   : > { %v14055_v29 = vpop.f32.mrb[23].mxu0  ;;  %v4487_v46 = vor.u32 %v4485_v11, %v4484_v17  ;;  %v4489_v42 = vrot.slane %v4484_v17, 4  ;;  %v4470_v35 = vor.u32 %v4468_v12, %v4467_v52  ;;  %v4472_v0 = vrot.slane %v4467_v52, 4  ;;  %v12504_v9 = vld [vmem:[#allocation8 + $0x68] sm:$0xff]   ;;  %v14088_v8 = vld [vmem:[#allocation3 + $0x30] sm:$0xf] }
 0x394   : > { %v4154_v54 = vadd.f32 %v13937_v10, %v14027_v39  ;;  %v14084_v33 = vcombine.low %v14074_v57, %v14066_v21  ;;  %v4187_v22 = vmax.f32 %v4155_v47, 0.0  ;;  %v4185_v14 = vmax.f32 %v4153_v59, 0.0  ;;  %v4743_v17 = vld [vmem:[#allocation3 + $0x78] sm:$0xf]  ;;  %v4736_v11 = vld [vmem:[#allocation3 + $0x6c] sm:$0xf] }
 0x395   : > { %11444 = vmatpush3.bf16.msra.mxu1 %v12495_v6  ;;  %v4488_v58 = vsel %vm13953_vm12, %v4480_v48, %v4487_v46  ;;  %v4734_v19 = vsel %vm13959_vm13, %v4489_v42, %v4733_v31  ;;  %v4471_v1 = vsel %vm13953_vm12, %v4463_v26, %v4470_v35  ;;  %v4727_v50 = vsel %vm13959_vm13, %v4472_v0, %v4726_v32  ;;  %v12507_v31 = vld [vmem:[#allocation8 + $0x70] sm:$0xff]   ;;  %v4747_v35 = vld [vmem:[#allocation3 + $0x80] sm:$0x1] }
 0x396   : > { %11445 = vmatprep.subr.bf16.mxu1 %v12498_v53  ;;  %4732 = vst [vmem:[#allocation3 + $0x64] sm:$0xf] %v4488_v58  ;;  %4735 = vst [vmem:[#allocation3 + $0x68] sm:$0x1] %v4734_v19  ;;  %v4188_v15 = vmax.f32 %v4156_v56, 0.0  ;;  %v4186_v44 = vmax.f32 %v4154_v54, 0.0  ;;  %11412 = vmatmul.mubr.bf16.gmra.mrb[4].mxu1 %v14084_v33  ;;  %v14095_v39 = vcombine.low %v14088_v8, %v14076_v25 }
 0x397   : > { %4725 = vst [vmem:[#allocation3 + $0x58] sm:$0xf] %v4471_v1  ;;  %4728 = vst [vmem:[#allocation3 + $0x5c] sm:$0x1] %v4727_v50  ;;  %v10449_v18 = vpack.c.bf16 %v4187_v22, %v4187_v22  ;;  %v10447_v36 = vpack.c.bf16 %v4185_v14, %v4185_v14  ;;  %v4159_v34 = vadd.f32 %v14041_v55, %v13937_v10  ;;  %v4740_v56 = vld [vmem:[#allocation3 + $0x74] sm:$0x1] }
 0x398   : > { %v14078_v23 = vpop.f32.mrb[24].mxu0  ;;  %15484 = vst [vmem:[#allocation15_spill] sm:$0xff] %v14084_v33  ;;  %15485 = vst [vmem:[#allocation30_spill] sm:$0xff] %v14095_v39  ;;  %v10450_v41 = vpack.c.bf16 %v4188_v15, %v4188_v15  ;;  %v10448_v6 = vpack.c.bf16 %v4186_v44, %v4186_v44  ;;  %11415 = vmatprep.mubr.bf16.mxu1 %v14095_v39  ;;  %v4157_v63 = vadd.f32 %v13937_v10, %v3987_v4  ;;  %v12510_v22 = vld [vmem:[#allocation8 + $0x78] sm:$0xff]  }
 0x399   : > { %v14086_v28 = vpop.f32.mrb[25].mxu0  ;;  %11446 = vmatpush3.bf16.msra.mxu1 %v12498_v53  ;;  %v4508_v49 = vshrl.u32 %v10449_v18, 16  ;;  %v4511_v62 = vshll.u32 %v10449_v18, 16  ;;  %v4491_v24 = vshrl.u32 %v10447_v36, 16  ;;  %v4494_v40 = vshll.u32 %v10447_v36, 16 }
 0x39a   : > { %v14090_v61 = vpop.f32.mrb[26].mxu0  ;;  %11447 = vmatprep.subr.bf16.mxu1 %v12501_v45  ;;  %v4516_v52 = vshrl.u32 %v10450_v41, 16  ;;  %v4519_v12 = vshll.u32 %v10450_v41, 16  ;;  %v4499_v53 = vshrl.u32 %v10448_v6, 16  ;;  %v4502_v48 = vshll.u32 %v10448_v6, 16 }
 0x39b   : > { %v14097_v5 = vpop.f32.mrb[27].mxu0  ;;  %v4510_v26 = vrot.slane %v4508_v49, 7  ;;  %v4493_v32 = vrot.slane %v4491_v24, 7  ;;  %v4191_v46 = vmax.f32 %v4159_v34, 0.0  ;;  %v4189_v42 = vmax.f32 %v4157_v63, 0.0 }
 0x39c   : > { %v4518_v4 = vrot.slane %v4516_v52, 7  ;;  %v4501_v0 = vrot.slane %v4499_v53, 7  ;;  %v4160_v58 = vadd.f32 %v14049_v2, %v13937_v10  ;;  %v4158_v19 = vadd.f32 %v13937_v10, %v14055_v29  ;;  %v14119_v6 = vld [vmem:[#allocation3 + $0x40] sm:$0xf] }
 0x39d   : > { %11448 = vmatpush3.bf16.msra.mxu1 %v12501_v45  ;;  %v4513_v50 = vor.u32 %v4511_v62, %v4510_v26  ;;  %v4514_v45 = vrot.slane %v4510_v26, 4  ;;  %v4496_v47 = vor.u32 %v4494_v40, %v4493_v32  ;;  %v4497_v59 = vrot.slane %v4493_v32, 4 }
 0x39e   : > { %11449 = vmatprep.subr.bf16.mxu1 %v12504_v9  ;;  %v4521_v14 = vor.u32 %v4519_v12, %v4518_v4  ;;  %v4523_v15 = vrot.slane %v4518_v4, 4  ;;  %v4504_v44 = vor.u32 %v4502_v48, %v4501_v0  ;;  %v4506_v18 = vrot.slane %v4501_v0, 4  ;;  %v14137_v48 = vld [vmem:[#allocation8 + $0x80] sm:$0xff]   ;;  %v4757_v4 = vld [vmem:[#allocation3 + $0x90] sm:$0xf] }
 0x39f   : > { %v4744_v29 = vsel %vm13946_vm11, %v4513_v50, %v4743_v17  ;;  %v10453_v36 = vpack.c.bf16 %v4191_v46, %v4191_v46  ;;  %v10451_v41 = vpack.c.bf16 %v4189_v42, %v4189_v42  ;;  %v14129_v17 = vld [vmem:[#allocation3 + $0x3c] sm:$0xf]  ;;  %v4192_v52 = vmax.f32 %v4160_v58, 0.0  ;;  %v14139_v42 = vld [vmem:[#allocation3 + $0x48] sm:$0xf] }
 0x3a0   : > { %v14103_v55 = vpop.f32.mrb[28].mxu0  ;;  %4745 = vst [vmem:[#allocation3 + $0x78] sm:$0xf] %v4744_v29  ;;  %v4522_v34 = vsel %vm13953_vm12, %v4514_v45, %v4521_v14  ;;  %v4748_v63 = vsel %vm13959_vm13, %v4523_v15, %v4747_v35  ;;  %v4505_v49 = vsel %vm13953_vm12, %v4497_v59, %v4504_v44  ;;  %v4741_v62 = vsel %vm13959_vm13, %v4506_v18, %v4740_v56  ;;  %v4750_v35 = vld [vmem:[#allocation3 + $0x84] sm:$0xf] }
 0x3a1   : > { %v14109_v1 = vpop.f32.mrb[29].mxu0  ;;  %11450 = vmatpush3.bf16.msra.mxu1 %v12504_v9  ;;  %v4737_v9 = vsel %vm13946_vm11, %v4496_v47, %v4736_v11  ;;  %4746 = vst [vmem:[#allocation3 + $0x7c] sm:$0xf] %v4522_v34  ;;  %4749 = vst [vmem:[#allocation3 + $0x80] sm:$0x1] %v4748_v63  ;;  %v4542_v24 = vshrl.u32 %v10453_v36, 16  ;;  %v14135_v53 = vcombine.low %v14129_v17, %v14119_v6 }
 0x3a2   : > { %v14111_v54 = vpop.f32.mrb[30].mxu0  ;;  %11451 = vmatprep.subr.bf16.mxu1 %v12507_v31  ;;  %4738 = vst [vmem:[#allocation3 + $0x6c] sm:$0xf] %v4737_v9  ;;  %4739 = vst [vmem:[#allocation3 + $0x70] sm:$0xf] %v4505_v49  ;;  %v4525_v40 = vshrl.u32 %v10451_v41, 16  ;;  %v10454_v0 = vpack.c.bf16 %v4192_v52, %v4192_v52  ;;  %v4163_v34 = vadd.f32 %v14078_v23, %v13937_v10 }
 0x3a3   : > { %v14113_v2 = vpop.f32.mrb[31].mxu0  ;;  %4742 = vst [vmem:[#allocation3 + $0x74] sm:$0x1] %v4741_v62  ;;  %v14131_v11 = vld [vmem:[#allocation3 + $0x4c] sm:$0xf]  ;;  %v4190_v12 = vmax.f32 %v4158_v19, 0.0  ;;  %11416 = vmatmul.mubr.bf16.gmra.mrb[8].mxu1 %v14135_v53  ;;  %v4161_v63 = vadd.f32 %v13937_v10, %v14086_v28  ;;  %v4164_v52 = vadd.f32 %v14090_v61, %v13937_v10 }
 0x3a4   : > { %15486 = vst [vmem:[#allocation18_spill] sm:$0xff] %v14135_v53  ;;  %v4545_v26 = vshll.u32 %v10453_v36, 16  ;;  %v4527_v32 = vrot.slane %v4525_v40, 7  ;;  %v4528_v46 = vshll.u32 %v10451_v41, 16  ;;  %v14144_v58 = vcombine.low %v14139_v42, %v14131_v11  ;;  %v14149_v44 = vld [vmem:[#allocation3 + $0x58] sm:$0xf] }
 0x3a5   : > { %11452 = vmatpush3.bf16.msra.mxu1 %v12507_v31  ;;  %v4544_v31 = vrot.slane %v4542_v24, 7  ;;  %v10452_v50 = vpack.c.bf16 %v4190_v12, %v4190_v12  ;;  %v5320_v19 = vshrl.u32 %v14017_v7, 16  ;;  %v5323_v59 = vshll.u32 %v14017_v7, 16  ;;  %v14160_v49 = vld [vmem:[#allocation3 + $0x54] sm:$0xf] }
 0x3a6   : > { %11453 = vmatprep.subr.bf16.mxu1 %v12510_v22  ;;  %15487 = vst [vmem:[#allocation33_spill] sm:$0xff] %v14144_v58  ;;  %v4530_v47 = vor.u32 %v4528_v46, %v4527_v32  ;;  %v4550_v14 = vshrl.u32 %v10454_v0, 16  ;;  %11419 = vmatprep.mubr.bf16.mxu1 %v14144_v58  ;;  %v4553_v9 = vshll.u32 %v10454_v0, 16  ;;  %v4531_v62 = vrot.slane %v4527_v32, 4  ;;  %v4761_v24 = vld [vmem:[#allocation3 + $0x98] sm:$0x1] }
 0x3a7   : > { %v4547_v45 = vor.u32 %v4545_v26, %v4544_v31  ;;  %v4548_v56 = vrot.slane %v4544_v31, 4  ;;  %v4533_v15 = vshrl.u32 %v10452_v50, 16  ;;  %v4536_v36 = vshll.u32 %v10452_v50, 16  ;;  %v4754_v40 = vld [vmem:[#allocation3 + $0x8c] sm:$0x1] }
 0x3a8   : > { %v4751_v29 = vsel %vm13946_vm11, %v4530_v47, %v4750_v35  ;;  %v4162_v12 = vadd.f32 %v13937_v10, %v14097_v5  ;;  %v14168_v31 = vcombine.low %v14160_v49, %v14149_v44  ;;  %v4195_v28 = vmax.f32 %v4163_v34, 0.0  ;;  %v14170_v50 = vld [vmem:[#allocation3 + $0x64] sm:$0xf] }
 0x3a9   : > { %11454 = vmatpush3.bf16.msra.mxu1 %v12510_v22  ;;  %v4758_v18 = vsel %vm13946_vm11, %v4547_v45, %v4757_v4  ;;  %4752 = vst [vmem:[#allocation3 + $0x84] sm:$0xf] %v4751_v29  ;;  %v4552_v22 = vrot.slane %v4550_v14, 7  ;;  %v4535_v41 = vrot.slane %v4533_v15, 7  ;;  %v4193_v35 = vmax.f32 %v4161_v63, 0.0 }
 0x3aa   : > { %11487 = vmatprep.subr.bf16.mxu1 %v14137_v48  ;;  %4759 = vst [vmem:[#allocation3 + $0x90] sm:$0xf] %v4758_v18  ;;  %15488 = vst [vmem:[#allocation45_spill] sm:$0xff] %v14168_v31  ;;  %v4196_v0 = vmax.f32 %v4164_v52, 0.0  ;;  %v4194_v32 = vmax.f32 %v4162_v12, 0.0  ;;  %v10457_v14 = vpack.c.bf16 %v4195_v28, %v4195_v28 }
 0x3ab   : > { %v4555_v26 = vor.u32 %v4553_v9, %v4552_v22  ;;  %v4557_v23 = vrot.slane %v4552_v22, 4  ;;  %v4538_v46 = vor.u32 %v4536_v36, %v4535_v41  ;;  %v4540_v4 = vrot.slane %v4535_v41, 4  ;;  %11420 = vmatmul.mubr.bf16.gmra.mrb[12].mxu1 %v14168_v31 }
 0x3ac   : > { %v10455_v15 = vpack.c.bf16 %v4193_v35, %v4193_v35  ;;  %v10458_v18 = vpack.c.bf16 %v4196_v0, %v4196_v0  ;;  %v10456_v29 = vpack.c.bf16 %v4194_v32, %v4194_v32  ;;  %v14187_v36 = vrot.slane %v5320_v19, 4 }
 0x3ad   : > { %v4556_v61 = vsel %vm13953_vm12, %v4548_v56, %v4555_v26  ;;  %v4762_v5 = vsel %vm13959_vm13, %v4557_v23, %v4761_v24  ;;  %v4539_v45 = vsel %vm13953_vm12, %v4531_v62, %v4538_v46  ;;  %v4755_v47 = vsel %vm13959_vm13, %v4540_v4, %v4754_v40  ;;  %v14181_v56 = vld [vmem:[#allocation3 + $0x60] sm:$0xf]  ;;  %v4771_v46 = vld [vmem:[#allocation3 + $0xa8] sm:$0xf]  ;;  %v4764_v4 = vld [vmem:[#allocation3 + $0x9c] sm:$0xf] }
 0x3ae   : > { %4760 = vst [vmem:[#allocation3 + $0x94] sm:$0xf] %v4556_v61  ;;  %4763 = vst [vmem:[#allocation3 + $0x98] sm:$0x1] %v4762_v5  ;;  %v14185_v9 = vcombine.low %v14181_v56, %v14170_v50  ;;  %v14189_v22 = vrot.slane %v5323_v59, 5  ;;  %v4576_v41 = vshrl.u32 %v10457_v14, 16  ;;  %v4167_v19 = vadd.f32 %v14103_v55, %v13937_v10 }
 0x3af   : > { %4753 = vst [vmem:[#allocation3 + $0x88] sm:$0xf] %v4539_v45  ;;  %4756 = vst [vmem:[#allocation3 + $0x8c] sm:$0x1] %v4755_v47  ;;  %v4559_v34 = vshrl.u32 %v10455_v15, 16  ;;  %v4579_v63 = vshll.u32 %v10457_v14, 16  ;;  %v4165_v59 = vadd.f32 %v13937_v10, %v14109_v1 }
 0x3b0   : > { %15489 = vst [vmem:[#allocation36_spill] sm:$0xff] %v14185_v9  ;;  %v4562_v62 = vshll.u32 %v10455_v15, 16  ;;  %v4584_v24 = vshrl.u32 %v10458_v18, 16  ;;  %v4567_v40 = vshrl.u32 %v10456_v29, 16  ;;  %11423 = vmatprep.mubr.bf16.mxu1 %v14185_v9  ;;  %v4578_v52 = vrot.slane %v4576_v41, 7 }
 0x3b1   : > { %v4561_v12 = vrot.slane %v4559_v34, 7  ;;  %v4587_v26 = vshll.u32 %v10458_v18, 16  ;;  %v4570_v23 = vshll.u32 %v10456_v29, 16  ;;  %v4775_v45 = vld [vmem:[#allocation3 + $0xb0] sm:$0x1]  ;;  %v4199_v55 = vmax.f32 %v4167_v19, 0.0 }
 0x3b2   : > { %v4586_v28 = vrot.slane %v4584_v24, 7  ;;  %v4569_v35 = vrot.slane %v4567_v40, 7  ;;  %v4581_v0 = vor.u32 %v4579_v63, %v4578_v52  ;;  %v4582_v32 = vrot.slane %v4578_v52, 4  ;;  %v4768_v47 = vld [vmem:[#allocation3 + $0xa4] sm:$0x1] }
 0x3b3   : > { %v4564_v61 = vor.u32 %v4562_v62, %v4561_v12  ;;  %v4565_v5 = vrot.slane %v4561_v12, 4  ;;  %v4197_v24 = vmax.f32 %v4165_v59, 0.0  ;;  %v14200_v40 = vld [vmem:[#allocation3 + $0x70] sm:$0xf]  ;;  %v10461_v12 = vpack.c.bf16 %v4199_v55, %v4199_v55 }
 0x3b4   : > { %v4589_v14 = vor.u32 %v4587_v26, %v4586_v28  ;;  %v4591_v15 = vrot.slane %v4586_v28, 4  ;;  %v4572_v18 = vor.u32 %v4570_v23, %v4569_v35  ;;  %v4574_v29 = vrot.slane %v4569_v35, 4  ;;  %v14216_v28 = vld [vmem:[#allocation3 + $0x7c] sm:$0xf] }
 0x3b5   : > { %v4772_v41 = vsel %vm13946_vm11, %v4581_v0, %v4771_v46  ;;  %v4765_v34 = vsel %vm13946_vm11, %v4564_v61, %v4764_v4  ;;  %v10459_v26 = vpack.c.bf16 %v4197_v24, %v4197_v24  ;;  %v4168_v23 = vadd.f32 %v14111_v54, %v13937_v10  ;;  %v14214_v4 = vld [vmem:[#allocation3 + $0x6c] sm:$0xf]  ;;  %v14224_v61 = vld [vmem:[#allocation3 + $0x78] sm:$0xf] }
 0x3b6   : > { %4773 = vst [vmem:[#allocation3 + $0xa8] sm:$0xf] %v4772_v41  ;;  %4766 = vst [vmem:[#allocation3 + $0x9c] sm:$0xf] %v4765_v34  ;;  %v4590_v1 = vsel %vm13953_vm12, %v4582_v32, %v4589_v14  ;;  %v4776_v63 = vsel %vm13959_vm13, %v4591_v15, %v4775_v45  ;;  %v4573_v62 = vsel %vm13953_vm12, %v4565_v5, %v4572_v18  ;;  %v5329_v19 = vshll.u32 %v14012_v51, 16 }
 0x3b7   : > { %v4769_v52 = vsel %vm13959_vm13, %v4574_v29, %v4768_v47  ;;  %4774 = vst [vmem:[#allocation3 + $0xac] sm:$0xf] %v4590_v1  ;;  %4777 = vst [vmem:[#allocation3 + $0xb0] sm:$0x1] %v4776_v63  ;;  %v4166_v46 = vadd.f32 %v13937_v10, %v14113_v2  ;;  %v14220_v35 = vcombine.low %v14214_v4, %v14200_v40  ;;  %v5333_v59 = vshrl.u32 %v14012_v51, 16 }
 0x3b8   : > { %4767 = vst [vmem:[#allocation3 + $0xa0] sm:$0xf] %v4573_v62  ;;  %4770 = vst [vmem:[#allocation3 + $0xa4] sm:$0x1] %v4769_v52  ;;  %v4610_v0 = vshrl.u32 %v10461_v12, 16  ;;  %v4593_v32 = vshrl.u32 %v10459_v26, 16  ;;  %v5326_v54 = vor.u32 %v14189_v22, %v14187_v36  ;;  %v14231_v5 = vcombine.low %v14224_v61, %v14216_v28 }
 0x3b9   : > { %15490 = vst [vmem:[#allocation37_spill] sm:$0xff] %v14220_v35  ;;  %v4200_v10 = vmax.f32 %v4168_v23, 0.0  ;;  %v4198_v2 = vmax.f32 %v4166_v46, 0.0  ;;  %11424 = vmatmul.mubr.bf16.gmra.mrb[16].mxu1 %v14220_v35  ;;  %v4613_v47 = vshll.u32 %v10461_v12, 16  ;;  %v4596_v15 = vshll.u32 %v10459_v26, 16 }
 0x3ba   : > { %15491 = vst [vmem:[#allocation39_spill] sm:$0xff] %v14231_v5  ;;  %v4612_v45 = vrot.slane %v4610_v0, 7  ;;  %v4595_v14 = vrot.slane %v4593_v32, 7  ;;  %v14233_v18 = vld [vmem:[#allocation3 + $0x88] sm:$0xf]  ;;  %11427 = vmatprep.mubr.bf16.mxu1 %v14231_v5  ;;  %v14236_v36 = vrot.slane %v5329_v19, 5 }
 0x3bb   : > { %v4785_v29 = vld [vmem:[#allocation3 + $0xc0] sm:$0xf]  ;;  %v4778_v41 = vld [vmem:[#allocation3 + $0xb4] sm:$0xf]  ;;  %v10462_v34 = vpack.c.bf16 %v4200_v10, %v4200_v10  ;;  %v10460_v55 = vpack.c.bf16 %v4198_v2, %v4198_v2  ;;  %v5335_v22 = vrot.slane %v5333_v59, 4  ;;  %v5327_v23 = vrot.slane %v5326_v54, 4 }
 0x3bc   : > { %v4615_v24 = vor.u32 %v4613_v47, %v4612_v45  ;;  %v4598_v1 = vor.u32 %v4596_v15, %v4595_v14  ;;  %v14238_v63 = vld [vmem:[#allocation3 + $0x84] sm:$0xf]  ;;  %v14244_v26 = vld [vmem:[#allocation3 + $0x94] sm:$0xf]  ;;  %v14250_v2 = vld [vmem:[#allocation3 + $0x90] sm:$0xf] }
 0x3bd   : > { %v4618_v62 = vshrl.u32 %v10462_v34, 16  ;;  %v4601_v52 = vshrl.u32 %v10460_v55, 16  ;;  %v14242_v12 = vcombine.low %v14238_v63, %v14233_v18  ;;  %15493 = vst [vmem:[#allocation43_spill] sm:$0xff] %v14244_v26  ;;  %v4621_v0 = vshll.u32 %v10462_v34, 16  ;;  %v4789_v35 = vld [vmem:[#allocation3 + $0xc8] sm:$0x1] }
 0x3be   : > { %v4786_v46 = vsel %vm13946_vm11, %v4615_v24, %v4785_v29  ;;  %v4779_v19 = vsel %vm13946_vm11, %v4598_v1, %v4778_v41  ;;  %v4604_v10 = vshll.u32 %v10460_v55, 16  ;;  %v5336_v47 = vor.u32 %v5335_v22, %v14236_v36  ;;  %v4782_v54 = vld [vmem:[#allocation3 + $0xbc] sm:$0x1]  ;;  %v14258_v34 = vld [vmem:[#allocation3 + $0x14] sm:$0x1] }
 0x3bf   : > { %15492 = vst [vmem:[#allocation42_spill] sm:$0xff] %v14242_v12  ;;  %4787 = vst [vmem:[#allocation3 + $0xc0] sm:$0xf] %v4786_v46  ;;  %v4620_v59 = vrot.slane %v4618_v62, 7  ;;  %v4603_v32 = vrot.slane %v4601_v52, 7  ;;  %v4616_v15 = vrot.slane %v4612_v45, 4  ;;  %v14255_v29 = vcombine.low %v14250_v2, %v14244_v26 }
 0x3c0   : > { %4780 = vst [vmem:[#allocation3 + $0xb4] sm:$0xf] %v4779_v19  ;;  %v4599_v5 = vrot.slane %v4595_v14, 4  ;;  %v14261_v55 = vld [vmem:[#allocation3 + $0xa0] sm:$0xf]  ;;  %v5337_v52 = vrot.slane %v5336_v47, 4 }
 0x3c1   : > { %15494 = vst [vmem:[#allocation44_spill] sm:$0xff] %v14255_v29  ;;  %v4623_v16 = vor.u32 %v4621_v0, %v4620_v59  ;;  %v4625_v41 = vrot.slane %v4620_v59, 4  ;;  %v4606_v24 = vor.u32 %v4604_v10, %v4603_v32  ;;  %v4608_v1 = vrot.slane %v4603_v32, 4  ;;  %11428 = vmatmul.mubr.bf16.gmra.mrb[20].mxu1 %v14242_v12  ;;  %v14272_v19 = vld [vmem:[#allocation3 + $0x9c] sm:$0xf] }
 0x3c2   : > { %11431 = vmatprep.mubr.bf16.mxu1 %v14255_v29  ;;  %v5357_v46 = vshrl.u32 %v14039_v43, 16  ;;  %v5332_v59 = vsel %vm12949_vm2, %v5327_v23, %v14236_v36  ;;  %v14280_v30 = vcombine.low %v14272_v19, %v14261_v55  ;;  %v14282_v3 = vld [vmem:[#allocation3 + $0xac] sm:$0xf]  ;;  %v15299_v0 = vrot.slane %v14012_v51, 5  ;;  %v14286_v10 = vld [vmem:[#allocation3] sm:$0xf] }
 0x3c3   : > { %v4624_v45 = vsel %vm13953_vm12, %v4616_v15, %v4623_v16  ;;  %v4790_v14 = vsel %vm13959_vm13, %v4625_v41, %v4789_v35  ;;  %v4607_v22 = vsel %vm13953_vm12, %v4599_v5, %v4606_v24  ;;  %v4783_v62 = vsel %vm13959_vm13, %v4608_v1, %v4782_v54  ;;  %v14289_v15 = vld [vmem:[#allocation3 + $0x4] sm:$0xf]  ;;  %v14294_v16 = vld [vmem:[#allocation3 + $0xa8] sm:$0xf] }
 0x3c4   : > { %4788 = vst [vmem:[#allocation3 + $0xc4] sm:$0xf] %v4624_v45  ;;  %4791 = vst [vmem:[#allocation3 + $0xc8] sm:$0x1] %v4790_v14  ;;  %v5339_v35 = vshll.u32 %v14258_v34, 16  ;;  %v5353_v5 = vshll.u32 %v14039_v43, 16  ;;  %v14298_v43 = vcombine.low %v14294_v16, %v14282_v3 }
 0x3c5   : > { %4781 = vst [vmem:[#allocation3 + $0xb8] sm:$0xf] %v4607_v22  ;;  %4784 = vst [vmem:[#allocation3 + $0xbc] sm:$0x1] %v4783_v62  ;;  %v5344_v23 = vshrl.u32 %v14047_v13, 16  ;;  %v5347_v54 = vshll.u32 %v14047_v13, 16 }
 0x3c6   : > { %15495 = vst [vmem:[#allocation47_spill] sm:$0xff] %v14280_v30  ;;  %v5341_v32 = vrot.slane %v5339_v35, 5  ;;  %15496 = vst [vmem:[#allocation25_spill] sm:$0xff] %v14298_v43  ;;  %v14302_v24 = vrot.slane %v5353_v5, 5  ;;  %v5359_v1 = vrot.slane %v5357_v46, 4  ;;  %v5381_v14 = vshrl.u32 %v14066_v21, 16 }
 0x3c7   : > { %v5377_v13 = vshll.u32 %v14066_v21, 16  ;;  %v14312_v62 = vrot.slane %v15299_v0, 4  ;;  %v5368_v35 = vshrl.u32 %v14074_v57, 16  ;;  %v5392_v46 = vshrl.u32 %v14088_v8, 16  ;;  %v14318_v5 = vld [vmem:[#allocation3 + $0x20] sm:$0x1] }
 0x3c8   : > { %v5342_v41 = vsel %vm12949_vm2, %v5337_v52, %v5341_v32  ;;  %v5371_v52 = vshll.u32 %v14074_v57, 16  ;;  %v5395_v32 = vshll.u32 %v14088_v8, 16  ;;  %v5346_v21 = vrot.slane %v5344_v23, 4  ;;  %v14327_v36 = vld [vmem:[#allocation3 + $0xb4] sm:$0xf] }
 0x3c9   : > { %11432 = vmatmul.mubr.bf16.gmra.mrb[24].mxu1 %v14280_v30  ;;  %v14307_v22 = vcombine.low %v5332_v59, %v5342_v41  ;;  %v5405_v59 = vshrl.u32 %v14076_v25, 16  ;;  %v5349_v45 = vrot.slane %v5347_v54, 5  ;;  %v5416_v0 = vshrl.u32 %v14129_v17, 16 }
 0x3ca   : > { %11435 = vmatprep.mubr.bf16.mxu1 %v14298_v43  ;;  %v5419_v47 = vshll.u32 %v14129_v17, 16  ;;  %v5429_v57 = vshrl.u32 %v14119_v6, 16  ;;  %v5360_v43 = vor.u32 %v5359_v1, %v14302_v24  ;;  %v14334_v8 = vrot.slane %v5377_v13, 5 }
 0x3cb   : > { %15497 = vst [vmem:[#allocation48_spill] sm:$0xff] %v14307_v22  ;;  %v5383_v29 = vrot.slane %v5381_v14, 4  ;;  %v5401_v23 = vshll.u32 %v14076_v25, 16  ;;  %v5440_v54 = vshrl.u32 %v14139_v42, 16  ;;  %v5443_v12 = vshll.u32 %v14139_v42, 16 }
 0x3cc   : > { %v14322_v41 = vld [vmem:[#allocation3 + $0xb8] sm:$0xf]  ;;  %v5453_v17 = vshrl.u32 %v14131_v11, 16  ;;  %v5350_v31 = vor.u32 %v5349_v45, %v5346_v21  ;;  %v5363_v1 = vshll.u32 %v14318_v5, 16  ;;  %v5370_v58 = vrot.slane %v5368_v35, 4 }
 0x3cd   : > { %v14332_v30 = vcombine.low %v14327_v36, %v14322_v41  ;;  %v5373_v53 = vrot.slane %v5371_v52, 5  ;;  %v14344_v14 = vld [vmem:[#allocation3 + $0x2c] sm:$0x1]  ;;  %v5394_v25 = vrot.slane %v5392_v46, 4  ;;  %v5397_v33 = vrot.slane %v5395_v32, 5 }
 0x3ce   : > { %v5361_v42 = vrot.slane %v5360_v43, 4  ;;  %v5384_v38 = vor.u32 %v5383_v29, %v14334_v8  ;;  %v14348_v60 = vrot.slane %v5401_v23, 5  ;;  %v5407_v45 = vrot.slane %v5405_v59, 4  ;;  %v14359_v21 = vld [vmem:[#allocation3 + $0x38] sm:$0x1] }
 0x3cf   : > { %15498 = vst [vmem:[#allocation16_spill] sm:$0xff] %v14332_v30  ;;  %v5425_v13 = vshll.u32 %v14119_v6, 16  ;;  %v5351_v46 = vrot.slane %v5350_v31, 4  ;;  %v5365_v32 = vrot.slane %v5363_v1, 5  ;;  %v5374_v39 = vor.u32 %v5373_v53, %v5370_v58 }
 0x3d0   : > { %v5387_v43 = vshll.u32 %v14344_v14, 16  ;;  %v5398_v35 = vor.u32 %v5397_v33, %v5394_v25  ;;  %v5408_v6 = vor.u32 %v5407_v45, %v14348_v60  ;;  %v5449_v31 = vshll.u32 %v14131_v11, 16  ;;  %v12512_v33 = vld [vmem:[#allocation8 + $0x88] sm:$0xff]  }
 0x3d1   : > { %11436 = vmatmul.mubr.bf16.gmra.mrb[28].mxu1 %v14332_v30  ;;  %v5366_v52 = vsel %vm12949_vm2, %v5361_v42, %v5365_v32  ;;  %v5418_v53 = vrot.slane %v5416_v0, 4  ;;  %v5421_v58 = vrot.slane %v5419_v47, 5  ;;  %v14365_v1 = vrot.slane %v5425_v13, 5 }
 0x3d2   : > { %11455 = vmatprep.mubr.bf16.mxu1 %v13935_v37  ;;  %v5385_v37 = vrot.slane %v5384_v38, 4  ;;  %v5431_v29 = vrot.slane %v5429_v57, 4  ;;  %v5356_v23 = vsel %vm12949_vm2, %v5351_v46, %v14302_v24  ;;  %v5375_v59 = vrot.slane %v5374_v39, 4  ;;  %v14378_v57 = vld [vmem:[#allocation3 + $0x44] sm:$0x1] }
 0x3d3   : > { %v5389_v9 = vrot.slane %v5387_v43, 5  ;;  %v5411_v25 = vshll.u32 %v14359_v21, 16  ;;  %v14373_v45 = vcombine.low %v5356_v23, %v5366_v52  ;;  %v5399_v11 = vrot.slane %v5398_v35, 4  ;;  %v12513_v23 = vld [vmem:[#allocation8 + $0x90] sm:$0xff]  }
 0x3d4   : > { %v5409_v47 = vrot.slane %v5408_v6, 4  ;;  %v14380_v39 = vrot.slane %v5449_v31, 5  ;;  %v5455_v24 = vrot.slane %v5453_v17, 4  ;;  %v5422_v13 = vor.u32 %v5421_v58, %v5418_v53 }
 0x3d5   : > { %15499 = vst [vmem:[#allocation17_spill] sm:$0xff] %v14373_v45  ;;  %v5390_v0 = vsel %vm12949_vm2, %v5385_v37, %v5389_v9  ;;  %v5432_v52 = vor.u32 %v5431_v29, %v14365_v1  ;;  %v5442_v46 = vrot.slane %v5440_v54, 4  ;;  %v5445_v35 = vrot.slane %v5443_v12, 5  ;;  %v14389_v37 = vld [vmem:[#allocation3 + $0x50] sm:$0x1] }
 0x3d6   : > { %v5380_v9 = vsel %vm12949_vm2, %v5375_v59, %v14334_v8  ;;  %v5413_v43 = vrot.slane %v5411_v25, 5  ;;  %v5473_v17 = vshll.u32 %v14149_v44, 16  ;;  %v5435_v12 = vshll.u32 %v14378_v57, 16 }
 0x3d7   : > { %v14394_v29 = vcombine.low %v5380_v9, %v5390_v0  ;;  %v5404_v54 = vsel %vm12949_vm2, %v5399_v11, %v14348_v60  ;;  %v5456_v59 = vor.u32 %v5455_v24, %v14380_v39  ;;  %v5497_v31 = vshll.u32 %v14170_v50, 16 }
 0x3d8   : > { %v5414_v8 = vsel %vm12949_vm2, %v5409_v47, %v5413_v43  ;;  %v5423_v53 = vrot.slane %v5422_v13, 4  ;;  %v5433_v58 = vrot.slane %v5432_v52, 4  ;;  %v5446_v25 = vor.u32 %v5445_v35, %v5442_v46  ;;  %v12514_v43 = vld [vmem:[#allocation8 + $0x98] sm:$0xff]   ;;  %v14415_v13 = vld [vmem:[#allocation3 + $0x5c] sm:$0x1] }
 0x3d9   : > { %11456 = vmatmul.mubr.bf16.vlgmr.msra.gmra.mrb[0].mxu1 %v14307_v22  ;;  %15500 = vst [vmem:[#allocation19_spill] sm:$0xff] %v14394_v29  ;;  %v5459_v0 = vshll.u32 %v14389_v37, 16  ;;  %v15501_v9 = vshrl.u32 %v14160_v49, 16  ;;  %v14409_v11 = vrot.slane %v5473_v17, 5  ;;  %v15503_v47 = vshrl.u32 %v14149_v44, 16 }
 0x3da   : > { %11459 = vmatprep.mubr.bf16.mxu1 %v14373_v45  ;;  %11488 = vmatpush3.bf16.msra.mxu1 %v14137_v48  ;;  %v15502_v48 = vshll.u32 %v14160_v49, 16  ;;  %v14413_v42 = vcombine.low %v5404_v54, %v5414_v8  ;;  %v15505_v52 = vshrl.u32 %v14181_v56, 16  ;;  %v15506_v35 = vshll.u32 %v14181_v56, 16 }
 0x3db   : > { %11489 = vmatprep.subr.bf16.mxu1 %v12512_v33  ;;  %v5466_v6 = vrot.slane %v15501_v9, 4  ;;  %v5479_v24 = vrot.slane %v15503_v47, 4  ;;  %v5457_v49 = vrot.slane %v5456_v59, 4  ;;  %v14422_v17 = vrot.slane %v5497_v31, 5 }
 0x3dc   : > { %v5469_v60 = vrot.slane %v15502_v48, 5  ;;  %15504 = vst [vmem:[#allocation20_spill] sm:$0xff] %v14413_v42  ;;  %v5490_v46 = vrot.slane %v15505_v52, 4  ;;  %v5493_v9 = vrot.slane %v15506_v35, 5  ;;  %v15507_v44 = vshrl.u32 %v14170_v50, 16 }
 0x3dd   : > { %v5521_v54 = vshll.u32 %v14200_v40, 16  ;;  %v5447_v47 = vrot.slane %v5446_v25, 4  ;;  %v5461_v52 = vrot.slane %v5459_v0, 5  ;;  %v5480_v31 = vor.u32 %v5479_v24, %v14409_v11 }
 0x3de   : > { %11490 = vmatpush3.bf16.msra.mxu1 %v12512_v33  ;;  %v5437_v33 = vrot.slane %v5435_v12, 5  ;;  %v5503_v48 = vrot.slane %v15507_v44, 4  ;;  %v5470_v59 = vor.u32 %v5469_v60, %v5466_v6  ;;  %v5483_v35 = vshll.u32 %v14415_v13, 16  ;;  %v12515_v44 = vld [vmem:[#allocation8 + $0xa0] sm:$0xff]   ;;  %v14438_v12 = vld [vmem:[#allocation3 + $0x68] sm:$0x1] }
 0x3df   : > { %11491 = vmatprep.subr.bf16.mxu1 %v12513_v23  ;;  %v5428_v8 = vsel %vm12949_vm2, %v5423_v53, %v14365_v1  ;;  %v5494_v25 = vor.u32 %v5493_v9, %v5490_v46  ;;  %v5462_v6 = vsel %vm12949_vm2, %v5457_v49, %v5461_v52  ;;  %v14444_v0 = vrot.slane %v5521_v54, 5  ;;  %v12516_v52 = vld [vmem:[#allocation8 + $0xa8] sm:$0xff]  }
 0x3e0   : > { %v5438_v56 = vsel %vm12949_vm2, %v5433_v58, %v5437_v33  ;;  %v5504_v58 = vor.u32 %v5503_v48, %v14422_v17  ;;  %v15508_v60 = vshrl.u32 %v14200_v40, 16  ;;  %v5452_v1 = vsel %vm12949_vm2, %v5447_v47, %v14380_v39 }
 0x3e1   : > { %11460 = vmatmul.mubr.bf16.gmra.mrb[4].mxu1 %v14394_v29  ;;  %v14448_v33 = vcombine.low %v5428_v8, %v5438_v56  ;;  %v15510_v53 = vshrl.u32 %v14214_v4, 16  ;;  %v15511_v9 = vshll.u32 %v14214_v4, 16  ;;  %v5471_v48 = vrot.slane %v5470_v59, 4 }
 0x3e2   : > { %11463 = vmatprep.mubr.bf16.mxu1 %v14413_v42  ;;  %11492 = vmatpush3.bf16.msra.mxu1 %v12513_v23  ;;  %v5545_v23 = vshll.u32 %v14216_v28, 16  ;;  %v5527_v24 = vrot.slane %v15508_v60, 4  ;;  %v5481_v54 = vrot.slane %v5480_v31, 4  ;;  %v5485_v38 = vrot.slane %v5483_v35, 5  ;;  %v14458_v60 = vld [vmem:[#allocation3 + $0x74] sm:$0x1] }
 0x3e3   : > { %11493 = vmatprep.subr.bf16.mxu1 %v12514_v43  ;;  %15509 = vst [vmem:[#allocation21_spill] sm:$0xff] %v14448_v33  ;;  %v5514_v46 = vrot.slane %v15510_v53, 4  ;;  %v5517_v49 = vrot.slane %v15511_v9, 5  ;;  %v5507_v32 = vshll.u32 %v14438_v12, 16  ;;  %v14460_v8 = vcombine.low %v5452_v1, %v5462_v6 }
 0x3e4   : > { %v5495_v56 = vrot.slane %v5494_v25, 4  ;;  %v14462_v39 = vrot.slane %v5545_v23, 5  ;;  %v5505_v53 = vrot.slane %v5504_v58, 4  ;;  %v5528_v59 = vor.u32 %v5527_v24, %v14444_v0 }
 0x3e5   : > { %15512 = vst [vmem:[#allocation22_spill] sm:$0xff] %v14460_v8  ;;  %v15514_v31 = vshrl.u32 %v14224_v61, 16  ;;  %v15515_v9 = vshll.u32 %v14224_v61, 16  ;;  %v5597_v6 = vshrl.u32 %v14244_v26, 16  ;;  %v5518_v23 = vor.u32 %v5517_v49, %v5514_v46 }
 0x3e6   : > { %11494 = vmatpush3.bf16.msra.mxu1 %v12514_v43  ;;  %v15513_v43 = vshrl.u32 %v14216_v28, 16  ;;  %v5531_v1 = vshll.u32 %v14458_v60, 16  ;;  %v5486_v24 = vsel %vm12949_vm2, %v5481_v54, %v5485_v38  ;;  %v5621_v25 = vshrl.u32 %v14261_v55, 16 }
 0x3e7   : > { %11495 = vmatprep.subr.bf16.mxu1 %v12515_v44  ;;  %v5538_v35 = vrot.slane %v15514_v31, 4  ;;  %v5541_v42 = vrot.slane %v15515_v9, 5  ;;  %v14479_v31 = vld [vmem:[#allocation3 + $0x80] sm:$0x1]  ;;  %v5569_v9 = vshll.u32 %v14233_v18, 16  ;;  %v5476_v46 = vsel %vm12949_vm2, %v5471_v48, %v14409_v11  ;;  %v12518_v11 = vld [vmem:[#allocation8 + $0xb8] sm:$0xff]  }
 0x3e8   : > { %v5551_v47 = vrot.slane %v15513_v43, 4  ;;  %v5509_v43 = vrot.slane %v5507_v32, 5  ;;  %v5593_v49 = vshll.u32 %v14244_v26, 16  ;;  %v5500_v38 = vsel %vm12949_vm2, %v5495_v56, %v14422_v17  ;;  %v14496_v48 = vld [vmem:[#allocation3 + $0x8c] sm:$0x1] }
 0x3e9   : > { %11464 = vmatmul.mubr.bf16.gmra.mrb[8].mxu1 %v14448_v33  ;;  %v12517_v33 = vld [vmem:[#allocation8 + $0xb0] sm:$0xff]   ;;  %v5529_v54 = vrot.slane %v5528_v59, 4  ;;  %v5542_v58 = vor.u32 %v5541_v42, %v5538_v35  ;;  %v5519_v29 = vrot.slane %v5518_v23, 4  ;;  %v5533_v45 = vrot.slane %v5531_v1, 5 }
 0x3ea   : > { %11467 = vmatprep.mubr.bf16.mxu1 %v14460_v8  ;;  %11496 = vmatpush3.bf16.msra.mxu1 %v12515_v44  ;;  %v5552_v44 = vor.u32 %v5551_v47, %v14462_v39  ;;  %v5510_v32 = vsel %vm12949_vm2, %v5505_v53, %v5509_v43  ;;  %v14493_v8 = vcombine.low %v5476_v46, %v5486_v24  ;;  %v5555_v22 = vshll.u32 %v14479_v31, 16 }
 0x3eb   : > { %11497 = vmatprep.subr.bf16.mxu1 %v12516_v52  ;;  %v15517_v47 = vshrl.u32 %v14238_v63, 16  ;;  %v15518_v17 = vshll.u32 %v14238_v63, 16  ;;  %v14502_v26 = vrot.slane %v5569_v9, 5  ;;  %v15519_v42 = vshrl.u32 %v14233_v18, 16 }
 0x3ec   : > { %15516 = vst [vmem:[#allocation23_spill] sm:$0xff] %v14493_v8  ;;  %v14506_v59 = vcombine.low %v5500_v38, %v5510_v32  ;;  %v5553_v35 = vrot.slane %v5552_v44, 4  ;;  %v14508_v23 = vrot.slane %v5593_v49, 5  ;;  %v5632_v1 = vshrl.u32 %v14294_v16, 16 }
 0x3ed   : > { %v5562_v30 = vrot.slane %v15517_v47, 4  ;;  %v5565_v56 = vrot.slane %v15518_v17, 5  ;;  %v5575_v53 = vrot.slane %v15519_v42, 4  ;;  %v5635_v24 = vshll.u32 %v14294_v16, 16  ;;  %v14522_v47 = vld [vmem:[#allocation3 + $0x98] sm:$0x1] }
 0x3ee   : > { %11498 = vmatpush3.bf16.msra.mxu1 %v12516_v52  ;;  %15520 = vst [vmem:[#allocation24_spill] sm:$0xff] %v14506_v59  ;;  %v5599_v52 = vrot.slane %v5597_v6, 4  ;;  %v5534_v43 = vsel %vm12949_vm2, %v5529_v54, %v5533_v45  ;;  %v5543_v9 = vrot.slane %v5542_v58, 4  ;;  %v5645_v46 = vshrl.u32 %v14282_v3, 16  ;;  %v14528_v42 = vld [vmem:[#allocation8 + $0xc0] sm:$0xff]  }
 0x3ef   : > { %11499 = vmatprep.subr.bf16.mxu1 %v12517_v33  ;;  %v5524_v44 = vsel %vm12949_vm2, %v5519_v29, %v14444_v0  ;;  %v5557_v49 = vrot.slane %v5555_v22, 5  ;;  %v5579_v6 = vshll.u32 %v14496_v48, 16  ;;  %v5566_v38 = vor.u32 %v5565_v56, %v5562_v30 }
 0x3f0   : > { %v5576_v32 = vor.u32 %v5575_v53, %v14502_v26  ;;  %v15521_v45 = vshrl.u32 %v14250_v2, 16  ;;  %v15522_v54 = vshll.u32 %v14250_v2, 16  ;;  %v5600_v30 = vor.u32 %v5599_v52, %v14508_v23 }
 0x3f1   : > { %11468 = vmatmul.mubr.bf16.gmra.mrb[12].mxu1 %v14493_v8  ;;  %v5558_v22 = vsel %vm12949_vm2, %v5553_v35, %v5557_v49  ;;  %v5617_v29 = vshll.u32 %v14261_v55, 16  ;;  %v5548_v0 = vsel %vm12949_vm2, %v5543_v9, %v14462_v39  ;;  %v15523_v56 = vrot.slane %v14289_v15, 5 }
 0x3f2   : > { %11471 = vmatprep.mubr.bf16.mxu1 %v14506_v59  ;;  %11500 = vmatpush3.bf16.msra.mxu1 %v12517_v33  ;;  %v5586_v58 = vrot.slane %v15521_v45, 4  ;;  %v5589_v17 = vrot.slane %v15522_v54, 5  ;;  %v14530_v59 = vcombine.low %v5524_v44, %v5534_v43  ;;  %v5641_v33 = vshll.u32 %v14282_v3, 16  ;;  %v12596_v45 = vld [vmem:[#allocation3 + $0x8] sm:$0x1] }
 0x3f3   : > { %11501 = vmatprep.subr.bf16.mxu1 %v12518_v11  ;;  %v15524_v53 = vrot.slane %v14286_v10, 9  ;;  %v15525_v35 = vmov %v15523_v56  ;;  %v5581_v52 = vrot.slane %v5579_v6, 5  ;;  %v5603_v49 = vshll.u32 %v14522_v47, 16 }
 0x3f4   : > { %v6085_v44 = vrot.slane %v15525_v35, 4  ;;  %v6086_v54 = vrot.slane %v12596_v45, 5  ;;  %v15526_v39 = vrot.slane %v14012_v51, 5  ;;  %v15527_v9 = vrot.slane %v14017_v7, 9 }
 0x3f5   : > { %v14546_v43 = vsel %vm13341_vm5, %v15524_v53, %v15523_v56  ;;  %v14557_v8 = vcombine.low %v5548_v0, %v5558_v22  ;;  %v5577_v56 = vrot.slane %v5576_v32, 4  ;;  %v5590_v53 = vor.u32 %v5589_v17, %v5586_v58 }
 0x3f6   : > { %11502 = vmatpush3.bf16.msra.mxu1 %v12518_v11  ;;  %v6091_v10 = vsel %vm13341_vm5, %v15527_v9, %v15526_v39  ;;  %v6093_v15 = vrot.slane %v14258_v34, 5  ;;  %v5601_v6 = vrot.slane %v5600_v30, 4  ;;  %v5619_v35 = vrot.slane %v5617_v29, 5  ;;  %v14583_v9 = vld [vmem:[#allocation3 + $0xb0] sm:$0x1] }
 0x3f7   : > { %15528 = vst [vmem:[#allocation27_spill] sm:$0xff] %v14557_v8  ;;  %11535 = vmatprep.subr.bf16.mxu1 %v14528_v42  ;;  %v5623_v11 = vrot.slane %v5621_v25, 4  ;;  %v14563_v45 = vsel %vm13341_vm5, %v6085_v44, %v6086_v54  ;;  %v5643_v51 = vrot.slane %v5641_v33, 5  ;;  %v5647_v7 = vrot.slane %v5645_v46, 4  ;;  %v14578_v33 = vld [vmem:[#allocation3 + $0xa4] sm:$0x1] }
 0x3f8   : > { %v6094_v34 = vsel %vm13341_vm5, %v14312_v62, %v6093_v15  ;;  %v5567_v32 = vrot.slane %v5566_v38, 4  ;;  %v15529_v25 = vshrl.u32 %v14272_v19, 16  ;;  %v15530_v17 = vshll.u32 %v14272_v19, 16 }
 0x3f9   : > { %11472 = vmatmul.mubr.bf16.gmra.mrb[16].mxu1 %v14530_v59  ;;  %v14576_v29 = vcombine.low %v6091_v10, %v6094_v34  ;;  %v5591_v0 = vrot.slane %v5590_v53, 4  ;;  %v5605_v46 = vrot.slane %v5603_v49, 5  ;;  %v5634_v44 = vrot.slane %v5632_v1, 4 }
 0x3fa   : > { %11475 = vmatprep.mubr.bf16.mxu1 %v14557_v8  ;;  %v5610_v58 = vrot.slane %v15529_v25, 4  ;;  %v5613_v30 = vrot.slane %v15530_v17, 5  ;;  %v5637_v54 = vrot.slane %v5635_v24, 5  ;;  %v5669_v39 = vshrl.u32 %v14322_v41, 16 }
 0x3fb   : > { %v5582_v62 = vsel %vm12949_vm2, %v5577_v56, %v5581_v52  ;;  %v5624_v38 = vor.u32 %v5623_v11, %v5619_v35  ;;  %v5665_v15 = vshll.u32 %v14322_v41, 16  ;;  %v5656_v25 = vshrl.u32 %v14327_v36, 16 }
 0x3fc   : > { %v5606_v10 = vsel %vm12949_vm2, %v5601_v6, %v5605_v46  ;;  %v5648_v49 = vor.u32 %v5647_v7, %v5643_v51  ;;  %v5659_v53 = vshll.u32 %v14327_v36, 16  ;;  %v5572_v1 = vsel %vm12949_vm2, %v5567_v32, %v14502_v26 }
 0x3fd   : > { %v5614_v24 = vor.u32 %v5613_v30, %v5610_v58  ;;  %v5627_v52 = vshll.u32 %v14578_v33, 16  ;;  %v14594_v56 = vcombine.low %v5572_v1, %v5582_v62  ;;  %v5596_v11 = vsel %vm12949_vm2, %v5591_v0, %v14508_v23  ;;  %v14604_v23 = vld [vmem:[#allocation3 + $0xbc] sm:$0x1] }
 0x3fe   : > { %v5638_v34 = vor.u32 %v5637_v54, %v5634_v44  ;;  %v5651_v17 = vshll.u32 %v14583_v9, 16  ;;  %v14600_v6 = vcombine.low %v5596_v11, %v5606_v10  ;;  %v5625_v7 = vrot.slane %v5624_v38, 4 }
 0x3ff   : > { %v5667_v46 = vrot.slane %v5665_v15, 5  ;;  %v5671_v22 = vrot.slane %v5669_v39, 4  ;;  %v5649_v26 = vrot.slane %v5648_v49, 4  ;;  %v5615_v32 = vrot.slane %v5614_v24, 4  ;;  %v12597_v24 = vld [vmem:[#allocation3 + $0x1c] sm:$0xf] }
 0x400   : > { %v5629_v58 = vrot.slane %v5627_v52, 5  ;;  %v5658_v30 = vrot.slane %v5656_v25, 4  ;;  %v5661_v62 = vrot.slane %v5659_v53, 5  ;;  %v5639_v1 = vrot.slane %v5638_v34, 4 }
 0x401   : > { %11476 = vmatmul.mubr.bf16.gmra.mrb[20].mxu1 %v14594_v56  ;;  %v5653_v8 = vrot.slane %v5651_v17, 5  ;;  %v5672_v44 = vor.u32 %v5671_v22, %v5667_v46  ;;  %v5620_v39 = vsel %vm12949_vm2, %v5615_v32, %v5619_v35  ;;  %v5675_v15 = vshll.u32 %v14604_v23, 16  ;;  %v14628_v17 = vld [vmem:[#allocation3 + $0xc0] sm:$0xf] }
 0x402   : > { %11479 = vmatprep.mubr.bf16.mxu1 %v14600_v6  ;;  %v5630_v0 = vsel %vm12949_vm2, %v5625_v7, %v5629_v58  ;;  %v5662_v38 = vor.u32 %v5661_v62, %v5658_v30  ;;  %v5644_v25 = vsel %vm12949_vm2, %v5639_v1, %v5643_v51  ;;  %v6097_v52 = vrot.slane %v12597_v24, 5  ;;  %v14630_v7 = vld [vmem:[#allocation3 + $0xc4] sm:$0xf]  ;;  %v14636_v58 = vld [vmem:[#allocation3 + $0xc8] sm:$0x1] }
 0x403   : > { %v5654_v54 = vsel %vm12949_vm2, %v5649_v26, %v5653_v8  ;;  %v14613_v10 = vcombine.low %v5620_v39, %v5630_v0  ;;  %v5673_v53 = vrot.slane %v5672_v44, 4  ;;  %v5677_v8 = vrot.slane %v5675_v15, 5  ;;  %v12598_v30 = vld [vmem:[#allocation3 + $0x28] sm:$0xf]  ;;  %v12599_v0 = vld [vmem:[#allocation3 + $0x18] sm:$0xf] }
 0x404   : > { %v14617_v49 = vcombine.low %v5644_v25, %v5654_v54  ;;  %v5663_v22 = vrot.slane %v5662_v38, 4  ;;  %v6099_v51 = vrot.slane %v6097_v52, 4  ;;  %v15531_v26 = vcombine.low %v14546_v43, %v14563_v45  ;;  %v12600_v39 = vld [vmem:[#allocation3 + $0x34] sm:$0xf]  ;;  %v12520_v25 = vld [vmem:[#allocation8 + $0xc8] sm:$0xff]  }
 0x405   : > { %v5678_v35 = vsel %vm12949_vm2, %v5673_v53, %v5677_v8  ;;  %v6100_v32 = vrot.slane %v14318_v5, 5  ;;  %v6104_v62 = vrot.slane %v12598_v30, 5  ;;  %v7260_v1 = vrot.slane %v14630_v7, 5 }
 0x406   : > { %v5668_v11 = vsel %vm12949_vm2, %v5663_v22, %v5667_v46  ;;  %v10325_v46 = vrot.slane %v14628_v17, 9  ;;  %v10269_v44 = vrot.slane %v12599_v0, 9  ;;  %v6111_v38 = vrot.slane %v12600_v39, 5  ;;  %v12603_v0 = vld [vmem:[#allocation3 + $0x30] sm:$0xf] }
 0x407   : > { %v14625_v34 = vcombine.low %v5668_v11, %v5678_v35  ;;  %v6101_v54 = vsel %vm13341_vm5, %v6099_v51, %v6100_v32  ;;  %v7262_v45 = vrot.slane %v7260_v1, 4  ;;  %v7263_v5 = vrot.slane %v14636_v58, 5  ;;  %v12521_v51 = vld [vmem:[#allocation8 + $0xd0] sm:$0xff]  }
 0x408   : > { %v7261_v43 = vsel %vm13341_vm5, %v10325_v46, %v7260_v1  ;;  %v6098_v15 = vsel %vm13341_vm5, %v10269_v44, %v6097_v52  ;;  %v6106_v22 = vrot.slane %v6104_v62, 4  ;;  %v6113_v35 = vrot.slane %v6111_v38, 4  ;;  %v12602_v46 = vld [vmem:[#allocation3 + $0x40] sm:$0xf]  ;;  %v12604_v39 = vld [vmem:[#allocation3 + $0x4c] sm:$0xf] }
 0x409   : > { %11480 = vmatmul.mubr.bf16.gmra.mrb[24].mxu1 %v14613_v10  ;;  %v14647_v53 = vcombine.low %v6098_v15, %v6101_v54  ;;  %v7264_v8 = vsel %vm13341_vm5, %v7262_v45, %v7263_v5  ;;  %v6107_v11 = vrot.slane %v14344_v14, 5  ;;  %v6114_v52 = vrot.slane %v14359_v21, 5  ;;  %v12522_v45 = vld [vmem:[#allocation8 + $0xd8] sm:$0xff]  }
 0x40a   : > { %11483 = vmatprep.mubr.bf16.mxu1 %v14617_v49  ;;  %v14652_v24 = vcombine.low %v7261_v43, %v7264_v8  ;;  %v6118_v1 = vrot.slane %v12602_v46, 5  ;;  %v10271_v44 = vrot.slane %v12603_v0, 9  ;;  %v6121_v8 = vrot.slane %v14378_v57, 5 }
 0x40b   : > { %v6108_v30 = vsel %vm13341_vm5, %v6106_v22, %v6107_v11  ;;  %v6115_v54 = vsel %vm13341_vm5, %v6113_v35, %v6114_v52  ;;  %v12605_v35 = vld [vmem:[#allocation3 + $0x3c] sm:$0xf]  ;;  %v12606_v52 = vld [vmem:[#allocation3 + $0x58] sm:$0xf]  ;;  %v6139_v0 = vrot.slane %v14170_v50, 5  ;;  %v6135_v50 = vrot.slane %v14415_v13, 5 }
 0x40c   : > { %v6112_v43 = vsel %vm13341_vm5, %v10271_v44, %v6111_v38  ;;  %v6120_v15 = vrot.slane %v6118_v1, 4  ;;  %v10272_v11 = vrot.slane %v12605_v35, 9  ;;  %v12524_v44 = vld [vmem:[#allocation8 + $0xe8] sm:$0xff]  }
 0x40d   : > { %v14668_v5 = vcombine.low %v6112_v43, %v6115_v54  ;;  %v12525_v43 = vld [vmem:[#allocation8 + $0xf0] sm:$0xff]  }
 0x40e   : > { %v6122_v38 = vsel %vm13341_vm5, %v6120_v15, %v6121_v8  ;;  %v6119_v57 = vsel %vm13341_vm5, %v10272_v11, %v6118_v1  ;;  %v6142_v1 = vrot.slane %v14438_v12, 5  ;;  %v12609_v8 = vld [vmem:[#allocation3 + $0x60] sm:$0xf]  ;;  %v6153_v11 = vrot.slane %v14216_v28, 5 }
 0x40f   : > { %v6149_v28 = vrot.slane %v14458_v60, 5 }
 0x411   : > { %11484 = vmatmul.mubr.bf16.gmra.mrb[28].mxu1 %v14625_v34 }
 0x412   : > { %11503 = vmatprep.mubr.bf16.mxu1 %v15531_v26  ;;  %v12601_v26 = vld [vmem:[#allocation3 + $0x24] sm:$0xf] }
 0x413   : > { %v10270_v32 = vrot.slane %v12601_v26, 9  ;;  %v6132_v26 = vrot.slane %v12606_v52, 5 }
 0x415   : > { %v6105_v14 = vsel %vm13341_vm5, %v10270_v32, %v6104_v62  ;;  %v6128_v62 = vrot.slane %v14389_v37, 5  ;;  %v12607_v32 = vld [vmem:[#allocation3 + $0x48] sm:$0xf]  ;;  %v14681_v37 = vcombine.low %v6119_v57, %v6122_v38  ;;  %v12526_v38 = vld [vmem:[#allocation8 + $0xf8] sm:$0xff]   ;;  %v6160_v57 = vrot.slane %v14233_v18, 5 }
 0x416   : > { %v14664_v21 = vcombine.low %v6105_v14, %v6108_v30  ;;  %v10273_v30 = vrot.slane %v12607_v32, 9  ;;  %v6141_v14 = vrot.slane %v6139_v0, 4  ;;  %v6155_v32 = vrot.slane %v6153_v11, 4 }
 0x417   : > { %v6162_v18 = vrot.slane %v6160_v57, 4 }
 0x418   : > { %v6143_v35 = vsel %vm13341_vm5, %v6141_v14, %v6142_v1  ;;  %v6163_v1 = vrot.slane %v14496_v48, 5 }
 0x419   : > { %11504 = vmatmul.mubr.bf16.vlgmr.msra.gmra.mrb[0].mxu1 %v14576_v29 }
 0x41a   : > { %11507 = vmatprep.mubr.bf16.mxu1 %v14647_v53  ;;  %11536 = vmatpush3.bf16.msra.mxu1 %v14528_v42  ;;  %v6125_v42 = vrot.slane %v12604_v39, 5  ;;  %v6134_v39 = vrot.slane %v6132_v26, 4 }
 0x41b   : > { %11537 = vmatprep.subr.bf16.mxu1 %v12520_v25 }
 0x41c   : > { %v6127_v22 = vrot.slane %v6125_v42, 4 }
 0x41e   : > { %11538 = vmatpush3.bf16.msra.mxu1 %v12520_v25  ;;  %v12523_v25 = vld [vmem:[#allocation8 + $0xe0] sm:$0xff]   ;;  %v6129_v46 = vsel %vm13341_vm5, %v6127_v22, %v6128_v62  ;;  %v6146_v22 = vrot.slane %v14200_v40, 5  ;;  %v10275_v62 = vrot.slane %v12609_v8, 9 }
 0x41f   : > { %11539 = vmatprep.subr.bf16.mxu1 %v12521_v51 }
 0x420   : > { %v6148_v40 = vrot.slane %v6146_v22, 4 }
 0x421   : > { %11508 = vmatmul.mubr.bf16.gmra.mrb[4].mxu1 %v14664_v21 }
 0x422   : > { %11511 = vmatprep.mubr.bf16.mxu1 %v14668_v5  ;;  %11540 = vmatpush3.bf16.msra.mxu1 %v12521_v51  ;;  %v6126_v51 = vsel %vm13341_vm5, %v10273_v30, %v6125_v42  ;;  %v6136_v42 = vsel %vm13341_vm5, %v6134_v39, %v6135_v50  ;;  %v12527_v30 = vld [vmem:[#allocation8 + $0x100] sm:$0xff]   ;;  %v15532_v39 = vld [vmem:[#allocation43_spill] sm:$0xff] }
 0x423   : > { %11541 = vmatprep.subr.bf16.mxu1 %v12522_v45  ;;  %v14685_v54 = vcombine.low %v6126_v51, %v6129_v46  ;;  %v10276_v46 = vrot.slane %v14214_v4, 9  ;;  %v10277_v51 = vrot.slane %v14224_v61, 9  ;;  %v6167_v14 = vrot.slane %v15532_v39, 5  ;;  %v15534_v39 = vld [vmem:[#allocation14_spill] sm:$0xff] }
 0x425   : > { %v6147_v60 = vsel %vm13341_vm5, %v10276_v46, %v6146_v22  ;;  %v6154_v4 = vsel %vm13341_vm5, %v10277_v51, %v6153_v11  ;;  %v6169_v61 = vrot.slane %v6167_v14, 4  ;;  %v10279_v22 = vrot.slane %v14250_v2, 9  ;;  %v15533_v51 = vld [vmem:[#allocation26_spill] sm:$0xff] }
 0x426   : > { %11542 = vmatpush3.bf16.msra.mxu1 %v12522_v45  ;;  %v12608_v45 = vld [vmem:[#allocation3 + $0x54] sm:$0xf]  ;;  %v6177_v2 = vrot.slane %v14578_v33, 5 }
 0x427   : > { %11543 = vmatprep.subr.bf16.mxu1 %v12523_v25  ;;  %v10274_v15 = vrot.slane %v12608_v45, 9  ;;  %v10278_v45 = vrot.slane %v14238_v63, 9  ;;  %v6168_v63 = vsel %vm13341_vm5, %v10279_v22, %v6167_v14  ;;  %v15535_v14 = vld [vmem:[#allocation15_spill] sm:$0xff]  ;;  %v12536_v22 = vld [vmem:[#allocation8 + $0x140] sm:$0xff]  }
 0x429   : > { %11512 = vmatmul.mubr.bf16.gmra.mrb[8].mxu1 %v14681_v37  ;;  %v6133_v13 = vsel %vm13341_vm5, %v10274_v15, %v6132_v26  ;;  %v6156_v26 = vrot.slane %v14479_v31, 5  ;;  %v6164_v15 = vsel %vm13341_vm5, %v6162_v18, %v6163_v1  ;;  %v12531_v18 = vld [vmem:[#allocation8 + $0x120] sm:$0xff]  }
 0x42a   : > { %11515 = vmatprep.mubr.bf16.mxu1 %v14685_v54  ;;  %11544 = vmatpush3.bf16.msra.mxu1 %v12523_v25  ;;  %v14699_v12 = vcombine.low %v6133_v13, %v6136_v42  ;;  %v6140_v25 = vsel %vm13341_vm5, %v10275_v62, %v6139_v0  ;;  %v6150_v0 = vsel %vm13341_vm5, %v6148_v40, %v6149_v28  ;;  %v6174_v42 = vrot.slane %v14261_v55, 5  ;;  %v15538_v1 = vld [vmem:[#allocation33_spill] sm:$0xff] }
 0x42b   : > { %11545 = vmatprep.subr.bf16.mxu1 %v12524_v44  ;;  %v14703_v52 = vcombine.low %v6140_v25, %v6143_v35  ;;  %v14719_v31 = vcombine.low %v6147_v60, %v6150_v0  ;;  %v6181_v62 = vrot.slane %v14282_v3, 5  ;;  %v6161_v35 = vsel %vm13341_vm5, %v10278_v45, %v6160_v57  ;;  %v15536_v60 = vld [vmem:[#allocation30_spill] sm:$0xff]  ;;  %v12535_v45 = vld [vmem:[#allocation8 + $0x138] sm:$0xff]  }
 0x42c   : > { %v14739_v48 = vcombine.low %v6161_v35, %v6164_v15  ;;  %v6176_v11 = vrot.slane %v6174_v42, 4  ;;  %v6184_v3 = vrot.slane %v14583_v9, 5  ;;  %v10280_v13 = vrot.slane %v14272_v19, 9  ;;  %v15540_v15 = vld [vmem:[#allocation36_spill] sm:$0xff] }
 0x42d   : > { %v6183_v55 = vrot.slane %v6181_v62, 4  ;;  %v10281_v40 = vrot.slane %v14294_v16, 9  ;;  %v6191_v16 = vrot.slane %v14604_v23, 5  ;;  %v12530_v23 = vld [vmem:[#allocation8 + $0x118] sm:$0xff]  }
 0x42e   : > { %11546 = vmatpush3.bf16.msra.mxu1 %v12524_v44  ;;  %v6157_v44 = vsel %vm13341_vm5, %v6155_v32, %v6156_v26  ;;  %v6178_v25 = vsel %vm13341_vm5, %v6176_v11, %v6177_v2  ;;  %v6175_v28 = vsel %vm13341_vm5, %v10280_v13, %v6174_v42  ;;  %v15541_v42 = vld [vmem:[#allocation37_spill] sm:$0xff]  ;;  %v15544_v35 = vld [vmem:[#allocation44_spill] sm:$0xff]  ;;  %v14792_v2 = vcombine.low %v14628_v17, %v14630_v7  ;;  %v12537_v13 = vld [vmem:[#allocation8 + $0x148] sm:$0xff]  }
 0x42f   : > { %11547 = vmatprep.subr.bf16.mxu1 %v12525_v43  ;;  %v14723_v50 = vcombine.low %v6154_v4, %v6157_v44  ;;  %v6185_v32 = vsel %vm13341_vm5, %v6183_v55, %v6184_v3  ;;  %v14758_v26 = vcombine.low %v6175_v28, %v6178_v25  ;;  %v6182_v33 = vsel %vm13341_vm5, %v10281_v40, %v6181_v62  ;;  %v12528_v44 = vld [vmem:[#allocation8 + $0x108] sm:$0xff]   ;;  %v15546_v11 = vld [vmem:[#allocation25_spill] sm:$0xff]  ;;  %v15547_v55 = vld [vmem:[#allocation16_spill] sm:$0xff] }
 0x430   : > { %v14762_v9 = vcombine.low %v6182_v33, %v6185_v32  ;;  %v15537_v4 = vld [vmem:[#allocation18_spill] sm:$0xff]  ;;  %v15548_v3 = vld [vmem:[#allocation48_spill] sm:$0xff]  ;;  %v15549_v25 = vld [vmem:[#allocation17_spill] sm:$0xff] }
 0x431   : > { %11516 = vmatmul.mubr.bf16.gmra.mrb[12].mxu1 %v14699_v12  ;;  %v15543_v62 = vld [vmem:[#allocation42_spill] sm:$0xff]  ;;  %v12538_v40 = vld [vmem:[#allocation8 + $0x150] sm:$0xff]   ;;  %v12539_v32 = vld [vmem:[#allocation8 + $0x158] sm:$0xff]  }
 0x432   : > { %11519 = vmatprep.mubr.bf16.mxu1 %v14703_v52  ;;  %11548 = vmatpush3.bf16.msra.mxu1 %v12525_v43  ;;  %v6170_v43 = vrot.slane %v14522_v47, 5  ;;  %v15551_v28 = vld [vmem:[#allocation20_spill] sm:$0xff]  ;;  %v15552_v33 = vld [vmem:[#allocation21_spill] sm:$0xff] }
 0x433   : > { %11549 = vmatprep.subr.bf16.mxu1 %v12526_v38 }
 0x434   : > { %v6171_v8 = vsel %vm13341_vm5, %v6169_v61, %v6170_v43  ;;  %v12532_v61 = vld [vmem:[#allocation8 + $0x128] sm:$0xff]   ;;  %v15539_v43 = vld [vmem:[#allocation45_spill] sm:$0xff] }
 0x435   : > { %v14743_v47 = vcombine.low %v6168_v63, %v6171_v8  ;;  %v15542_v8 = vld [vmem:[#allocation39_spill] sm:$0xff] }
 0x436   : > { %11550 = vmatpush3.bf16.msra.mxu1 %v12526_v38  ;;  %v6188_v38 = vrot.slane %v14322_v41, 5  ;;  %v10282_v41 = vrot.slane %v14327_v36, 9  ;;  %v12529_v36 = vld [vmem:[#allocation8 + $0x110] sm:$0xff]  }
 0x437   : > { %11583 = vmatprep.subr.bf16.mxu1 %v12527_v30  ;;  %v15545_v63 = vld [vmem:[#allocation47_spill] sm:$0xff] }
 0x438   : > { %v6190_v19 = vrot.slane %v6188_v38, 4  ;;  %v6189_v0 = vsel %vm13341_vm5, %v10282_v41, %v6188_v38  ;;  %v15550_v38 = vld [vmem:[#allocation19_spill] sm:$0xff]  ;;  %v15553_v41 = vld [vmem:[#allocation22_spill] sm:$0xff] }
 0x439   : > { %11520 = vmatmul.mubr.bf16.gmra.mrb[16].mxu1 %v14719_v31 }
 0x43a   : > { %11523 = vmatprep.mubr.bf16.mxu1 %v14723_v50  ;;  %v6192_v46 = vsel %vm13341_vm5, %v6190_v19, %v6191_v16  ;;  %v12540_v19 = vld [vmem:[#allocation8 + $0x160] sm:$0xff]   ;;  %v12541_v16 = vld [vmem:[#allocation8 + $0x168] sm:$0xff]  }
 0x43b   : > { %v14772_v57 = vcombine.low %v6189_v0, %v6192_v46  ;;  %v15554_v46 = vld [vmem:[#allocation23_spill] sm:$0xff] }
 0x43c   : > { %v12542_v0 = vld [vmem:[#allocation8 + $0x170] sm:$0xff]  }
 0x441   : > { %11524 = vmatmul.mubr.bf16.gmra.mrb[20].mxu1 %v14739_v48 }
 0x442   : > { %11527 = vmatprep.mubr.bf16.mxu1 %v14743_v47 }
 0x449   : > { %11528 = vmatmul.mubr.bf16.gmra.mrb[24].mxu1 %v14758_v26 }
 0x44a   : > { %11531 = vmatprep.mubr.bf16.mxu1 %v14762_v9 }
 0x451   : > { %11532 = vmatmul.mubr.bf16.gmra.mrb[28].mxu1 %v14772_v57 }
 0x452   : > { %11551 = vmatprep.mubr.bf16.mxu1 %v15533_v51  ;;  %v12543_v51 = vld [vmem:[#allocation8 + $0x178] sm:$0xff]  }
 0x459   : > { %11552 = vmatmul.mubr.bf16.vlgmr.msra.gmra.mrb[0].mxu1 %v15534_v39 }
 0x45a   : > { %11555 = vmatprep.mubr.bf16.mxu1 %v15535_v14  ;;  %11584 = vmatpush3.bf16.msra.mxu1 %v12527_v30  ;;  %v12533_v30 = vld [vmem:[#allocation8 + $0x130] sm:$0xff]  }
 0x45b   : > { %11585 = vmatprep.subr.bf16.mxu1 %v12528_v44 }
 0x45e   : > { %11586 = vmatpush3.bf16.msra.mxu1 %v12528_v44  ;;  %v15555_v44 = vld [vmem:[#allocation24_spill] sm:$0xff] }
 0x45f   : > { %11587 = vmatprep.subr.bf16.mxu1 %v12529_v36 }
 0x461   : > { %11556 = vmatmul.mubr.bf16.gmra.mrb[4].mxu1 %v15536_v60 }
 0x462   : > { %11559 = vmatprep.mubr.bf16.mxu1 %v15537_v4  ;;  %11588 = vmatpush3.bf16.msra.mxu1 %v12529_v36  ;;  %v12544_v36 = vld [vmem:[#allocation8 + $0x180] sm:$0xff]  }
 0x463   : > { %11589 = vmatprep.subr.bf16.mxu1 %v12530_v23 }
 0x466   : > { %11590 = vmatpush3.bf16.msra.mxu1 %v12530_v23  ;;  %v15556_v23 = vld [vmem:[#allocation27_spill] sm:$0xff] }
 0x467   : > { %11591 = vmatprep.subr.bf16.mxu1 %v12531_v18 }
 0x469   : > { %11560 = vmatmul.mubr.bf16.gmra.mrb[8].mxu1 %v15538_v1 }
 0x46a   : > { %11563 = vmatprep.mubr.bf16.mxu1 %v15539_v43  ;;  %11592 = vmatpush3.bf16.msra.mxu1 %v12531_v18  ;;  %v6921_v18 = vshrl.u32 %v14630_v7, 16 }
 0x46b   : > { %11593 = vmatprep.subr.bf16.mxu1 %v12532_v61 }
 0x46e   : > { %11594 = vmatpush3.bf16.msra.mxu1 %v12532_v61  ;;  %v6917_v61 = vshll.u32 %v14630_v7, 16 }
 0x46f   : > { %11595 = vmatprep.subr.bf16.mxu1 %v12533_v30 }
 0x471   : > { %11564 = vmatmul.mubr.bf16.gmra.mrb[12].mxu1 %v15540_v15 }
 0x472   : > { %11567 = vmatprep.mubr.bf16.mxu1 %v15541_v42  ;;  %11596 = vmatpush3.bf16.msra.mxu1 %v12533_v30  ;;  %v6908_v30 = vshrl.u32 %v14628_v17, 16 }
 0x473   : > { %11597 = vmatprep.subr.bf16.mxu1 %v12535_v45 }
 0x476   : > { %11598 = vmatpush3.bf16.msra.mxu1 %v12535_v45  ;;  %v6911_v45 = vshll.u32 %v14628_v17, 16 }
 0x477   : > { %11631 = vmatprep.subr.bf16.mxu1 %v12536_v22 }
 0x479   : > { %11568 = vmatmul.mubr.bf16.gmra.mrb[16].mxu1 %v15542_v8 }
 0x47a   : > { %11571 = vmatprep.mubr.bf16.mxu1 %v15543_v62 }
 0x481   : > { %11572 = vmatmul.mubr.bf16.gmra.mrb[20].mxu1 %v15544_v35 }
 0x482   : > { %11575 = vmatprep.mubr.bf16.mxu1 %v15545_v63 }
 0x489   : > { %11576 = vmatmul.mubr.bf16.gmra.mrb[24].mxu1 %v15546_v11 }
 0x48a   : > { %11579 = vmatprep.mubr.bf16.mxu1 %v15547_v55 }
 0x491   : > { %11580 = vmatmul.mubr.bf16.gmra.mrb[28].mxu1 %v14792_v2 }
 0x492   : > { %11599 = vmatprep.mubr.bf16.mxu1 %v15548_v3  ;;  %v6923_v3 = vrot.slane %v6921_v18, 4 }
 0x499   : > { %11600 = vmatmul.mubr.bf16.vlgmr.msra.gmra.mrb[0].mxu1 %v15549_v25 }
 0x49a   : > { %11603 = vmatprep.mubr.bf16.mxu1 %v15550_v38  ;;  %11632 = vmatpush3.bf16.msra.mxu1 %v12536_v22  ;;  %v6919_v22 = vrot.slane %v6917_v61, 5 }
 0x49b   : > { %11633 = vmatprep.subr.bf16.mxu1 %v12537_v13 }
 0x49e   : > { %11634 = vmatpush3.bf16.msra.mxu1 %v12537_v13  ;;  %v6910_v13 = vrot.slane %v6908_v30, 4  ;;  %v12546_v30 = vld [vmem:[#allocation8 + $0x190] sm:$0xff]  }
 0x49f   : > { %11635 = vmatprep.subr.bf16.mxu1 %v12538_v40 }
 0x4a1   : > { %11604 = vmatmul.mubr.bf16.gmra.mrb[4].mxu1 %v15551_v28 }
 0x4a2   : > { %11607 = vmatprep.mubr.bf16.mxu1 %v15552_v33  ;;  %11636 = vmatpush3.bf16.msra.mxu1 %v12538_v40  ;;  %v6913_v40 = vrot.slane %v6911_v45, 5  ;;  %v12547_v45 = vld [vmem:[#allocation8 + $0x198] sm:$0xff]  }
 0x4a3   : > { %11637 = vmatprep.subr.bf16.mxu1 %v12539_v32 }
 0x4a6   : > { %11638 = vmatpush3.bf16.msra.mxu1 %v12539_v32  ;;  %v6924_v32 = vor.u32 %v6923_v3, %v6919_v22  ;;  %v12551_v3 = vld [vmem:[#allocation8 + $0x1b8] sm:$0xff]  }
 0x4a7   : > { %11639 = vmatprep.subr.bf16.mxu1 %v12540_v19 }
 0x4a9   : > { %11608 = vmatmul.mubr.bf16.gmra.mrb[8].mxu1 %v15553_v41 }
 0x4aa   : > { %11611 = vmatprep.mubr.bf16.mxu1 %v15554_v46  ;;  %11640 = vmatpush3.bf16.msra.mxu1 %v12540_v19  ;;  %v6914_v19 = vor.u32 %v6913_v40, %v6910_v13  ;;  %v12552_v13 = vld [vmem:[#allocation8 + $0x1c0] sm:$0xff]   ;;  %v12553_v40 = vld [vmem:[#allocation8 + $0x1c8] sm:$0xff]  }
 0x4ab   : > { %11641 = vmatprep.subr.bf16.mxu1 %v12541_v16 }
 0x4ac   : > { %v6915_v7 = vrot.slane %v6914_v19, 4  ;;  %v12555_v19 = vld [vmem:[#allocation8 + $0x1d8] sm:$0xff]  }
 0x4ae   : > { %11642 = vmatpush3.bf16.msra.mxu1 %v12541_v16  ;;  %v6927_v16 = vshll.u32 %v14636_v58, 16  ;;  %v6920_v18 = vsel %vm12949_vm2, %v6915_v7, %v6919_v22  ;;  %v12545_v58 = vld [vmem:[#allocation8 + $0x188] sm:$0xff]   ;;  %v12548_v22 = vld [vmem:[#allocation8 + $0x1a0] sm:$0xff]  }
 0x4af   : > { %11643 = vmatprep.subr.bf16.mxu1 %v12542_v0 }
 0x4b1   : > { %11612 = vmatmul.mubr.bf16.gmra.mrb[12].mxu1 %v15555_v44 }
 0x4b2   : > { %11615 = vmatprep.mubr.bf16.mxu1 %v14530_v59  ;;  %11644 = vmatpush3.bf16.msra.mxu1 %v12542_v0  ;;  %v6925_v0 = vrot.slane %v6924_v32, 4  ;;  %v12554_v32 = vld [vmem:[#allocation8 + $0x1d0] sm:$0xff]  }
 0x4b3   : > { %11645 = vmatprep.subr.bf16.mxu1 %v12543_v51 }
 0x4b6   : > { %11646 = vmatpush3.bf16.msra.mxu1 %v12543_v51  ;;  %v6929_v51 = vrot.slane %v6927_v16, 5  ;;  %v12556_v16 = vld [vmem:[#allocation8 + $0x1e0] sm:$0xff]  }
 0x4b7   : > { %11679 = vmatprep.subr.bf16.mxu1 %v12544_v36 }
 0x4b8   : > { %v6930_v17 = vsel %vm12949_vm2, %v6925_v0, %v6929_v51 }
 0x4b9   : > { %11616 = vmatmul.mubr.bf16.gmra.mrb[16].mxu1 %v15556_v23  ;;  %v14819_v61 = vcombine.low %v6920_v18, %v6930_v17 }
 0x4ba   : > { %11619 = vmatprep.mubr.bf16.mxu1 %v14594_v56 }
 0x4c1   : > { %11620 = vmatmul.mubr.bf16.gmra.mrb[20].mxu1 %v14600_v6 }
 0x4c2   : > { %11623 = vmatprep.mubr.bf16.mxu1 %v14613_v10 }
 0x4c9   : > { %11624 = vmatmul.mubr.bf16.gmra.mrb[24].mxu1 %v14617_v49 }
 0x4ca   : > { %11627 = vmatprep.mubr.bf16.mxu1 %v14625_v34 }
 0x4d1   : > { %11628 = vmatmul.mubr.bf16.gmra.mrb[28].mxu1 %v14819_v61 }
 0x4d2   : > { %11647 = vmatprep.mubr.bf16.mxu1 %v14576_v29  ;;  %v12549_v29 = vld [vmem:[#allocation8 + $0x1a8] sm:$0xff]  }
 0x4d9   : > { %11648 = vmatmul.mubr.bf16.vlgmr.msra.gmra.mrb[0].mxu1 %v14647_v53 }
 0x4da   : > { %11651 = vmatprep.mubr.bf16.mxu1 %v14664_v21  ;;  %11680 = vmatpush3.bf16.msra.mxu1 %v12544_v36  ;;  %v12550_v36 = vld [vmem:[#allocation8 + $0x1b0] sm:$0xff]  }
 0x4db   : > { %11681 = vmatprep.subr.bf16.mxu1 %v12545_v58 }
 0x4de   : > { %11682 = vmatpush3.bf16.msra.mxu1 %v12545_v58 }
 0x4df   : > { %11683 = vmatprep.subr.bf16.mxu1 %v12546_v30 }
 0x4e1   : > { %11652 = vmatmul.mubr.bf16.gmra.mrb[4].mxu1 %v14668_v5 }
 0x4e2   : > { %11655 = vmatprep.mubr.bf16.mxu1 %v14681_v37  ;;  %11684 = vmatpush3.bf16.msra.mxu1 %v12546_v30 }
 0x4e3   : > { %11685 = vmatprep.subr.bf16.mxu1 %v12547_v45 }
 0x4e6   : > { %11686 = vmatpush3.bf16.msra.mxu1 %v12547_v45 }
 0x4e7   : > { %11687 = vmatprep.subr.bf16.mxu1 %v12548_v22 }
 0x4e9   : > { %11656 = vmatmul.mubr.bf16.gmra.mrb[8].mxu1 %v14685_v54 }
 0x4ea   : > { %11659 = vmatprep.mubr.bf16.mxu1 %v14699_v12  ;;  %11688 = vmatpush3.bf16.msra.mxu1 %v12548_v22 }
 0x4eb   : > { %11689 = vmatprep.subr.bf16.mxu1 %v12549_v29 }
 0x4ee   : > { %11690 = vmatpush3.bf16.msra.mxu1 %v12549_v29 }
 0x4ef   : > { %11691 = vmatprep.subr.bf16.mxu1 %v12550_v36 }
 0x4f1   : > { %11660 = vmatmul.mubr.bf16.gmra.mrb[12].mxu1 %v14703_v52 }
 0x4f2   : > { %11663 = vmatprep.mubr.bf16.mxu1 %v14719_v31  ;;  %11692 = vmatpush3.bf16.msra.mxu1 %v12550_v36 }
 0x4f3   : > { %11693 = vmatprep.subr.bf16.mxu1 %v12551_v3 }
 0x4f6   : > { %11694 = vmatpush3.bf16.msra.mxu1 %v12551_v3 }
 0x4f7   : > { %11727 = vmatprep.subr.bf16.mxu1 %v12552_v13 }
 0x4f9   : > { %11664 = vmatmul.mubr.bf16.gmra.mrb[16].mxu1 %v14723_v50 }
 0x4fa   : > { %11667 = vmatprep.mubr.bf16.mxu1 %v14739_v48 }
 0x501   : > { %11668 = vmatmul.mubr.bf16.gmra.mrb[20].mxu1 %v14743_v47 }
 0x502   : > { %11671 = vmatprep.mubr.bf16.mxu1 %v14758_v26 }
 0x509   : > { %11672 = vmatmul.mubr.bf16.gmra.mrb[24].mxu1 %v14762_v9 }
 0x50a   : > { %11675 = vmatprep.mubr.bf16.mxu1 %v14772_v57 }
 0x511   : > { %11676 = vmatmul.mubr.bf16.gmra.mrb[28].mxu1 %v14652_v24 }
 0x512   : > { %11695 = vmatprep.mubr.bf16.mxu1 %v15534_v39  ;;  %v12557_v39 = vld [vmem:[#allocation8 + $0x1e8] sm:$0xff]  }
 0x519   : > { %11696 = vmatmul.mubr.bf16.vlgmr.msra.gmra.mrb[0].mxu1 %v15535_v14  ;;  %v12558_v14 = vld [vmem:[#allocation8 + $0x1f0] sm:$0xff]  }
 0x51a   : > { %11699 = vmatprep.mubr.bf16.mxu1 %v15536_v60  ;;  %11728 = vmatpush3.bf16.msra.mxu1 %v12552_v13  ;;  %v12560_v60 = vld [vmem:[#allocation8 + $0x1f8] sm:$0xff]  }
 0x51b   : > { %11729 = vmatprep.subr.bf16.mxu1 %v12553_v40 }
 0x51e   : > { %11730 = vmatpush3.bf16.msra.mxu1 %v12553_v40 }
 0x51f   : > { %11731 = vmatprep.subr.bf16.mxu1 %v12554_v32 }
 0x521   : > { %11700 = vmatmul.mubr.bf16.gmra.mrb[4].mxu1 %v15537_v4  ;;  %v12561_v4 = vld [vmem:[#allocation8 + $0x200] sm:$0xff]  }
 0x522   : > { %11703 = vmatprep.mubr.bf16.mxu1 %v15538_v1  ;;  %11732 = vmatpush3.bf16.msra.mxu1 %v12554_v32  ;;  %v14853_v1 = vld [vmem:[#allocation3 + $0xcc] sm:$0xf] }
 0x523   : > { %11733 = vmatprep.subr.bf16.mxu1 %v12555_v19 }
 0x526   : > { %11734 = vmatpush3.bf16.msra.mxu1 %v12555_v19 }
 0x527   : > { %11735 = vmatprep.subr.bf16.mxu1 %v12556_v16 }
 0x529   : > { %11704 = vmatmul.mubr.bf16.gmra.mrb[8].mxu1 %v15539_v43  ;;  %v14855_v43 = vld [vmem:[#allocation3 + $0xd0] sm:$0xf] }
 0x52a   : > { %11707 = vmatprep.mubr.bf16.mxu1 %v15540_v15  ;;  %11736 = vmatpush3.bf16.msra.mxu1 %v12556_v16  ;;  %v10335_v15 = vcombine.low %v14853_v1, %v14855_v43  ;;  %v8272_v20 = vrot.slane %v14855_v43, 5 }
 0x52b   : > { %11737 = vmatprep.subr.bf16.mxu1 %v12557_v39 }
 0x52e   : > { %11738 = vmatpush3.bf16.msra.mxu1 %v12557_v39 }
 0x52f   : > { %11739 = vmatprep.subr.bf16.mxu1 %v12558_v14 }
 0x531   : > { %11708 = vmatmul.mubr.bf16.gmra.mrb[12].mxu1 %v15541_v42  ;;  %v12562_v42 = vld [vmem:[#allocation8 + $0x208] sm:$0xff]  }
 0x532   : > { %11711 = vmatprep.mubr.bf16.mxu1 %v15542_v8  ;;  %11740 = vmatpush3.bf16.msra.mxu1 %v12558_v14  ;;  %v12563_v8 = vld [vmem:[#allocation8 + $0x210] sm:$0xff]  }
 0x533   : > { %11741 = vmatprep.subr.bf16.mxu1 %v12560_v60 }
 0x536   : > { %11742 = vmatpush3.bf16.msra.mxu1 %v12560_v60 }
 0x537   : > { %11775 = vmatprep.subr.bf16.mxu1 %v12561_v4 }
 0x539   : > { %11712 = vmatmul.mubr.bf16.gmra.mrb[16].mxu1 %v15543_v62  ;;  %v12564_v62 = vld [vmem:[#allocation8 + $0x218] sm:$0xff]  }
 0x53a   : > { %11715 = vmatprep.mubr.bf16.mxu1 %v15544_v35  ;;  %v12565_v35 = vld [vmem:[#allocation8 + $0x220] sm:$0xff]  }
 0x541   : > { %11716 = vmatmul.mubr.bf16.gmra.mrb[20].mxu1 %v15545_v63  ;;  %v12566_v63 = vld [vmem:[#allocation8 + $0x228] sm:$0xff]  }
 0x542   : > { %11719 = vmatprep.mubr.bf16.mxu1 %v15546_v11  ;;  %v12567_v11 = vld [vmem:[#allocation8 + $0x230] sm:$0xff]  }
 0x549   : > { %11720 = vmatmul.mubr.bf16.gmra.mrb[24].mxu1 %v15547_v55  ;;  %v12568_v55 = vld [vmem:[#allocation8 + $0x238] sm:$0xff]  }
 0x54a   : > { %11723 = vmatprep.mubr.bf16.mxu1 %v14792_v2  ;;  %v7920_v2 = vshrl.u32 %v14853_v1, 16 }
 0x551   : > { %11724 = vmatmul.mubr.bf16.gmra.mrb[28].mxu1 %v10335_v15 }
 0x552   : > { %11743 = vmatprep.mubr.bf16.mxu1 %v15549_v25  ;;  %v7923_v25 = vshll.u32 %v14853_v1, 16 }
 0x559   : > { %11744 = vmatmul.mubr.bf16.vlgmr.msra.gmra.mrb[0].mxu1 %v15550_v38  ;;  %v7933_v38 = vshrl.u32 %v14855_v43, 16 }
 0x55a   : > { %11747 = vmatprep.mubr.bf16.mxu1 %v15551_v28  ;;  %11776 = vmatpush3.bf16.msra.mxu1 %v12561_v4  ;;  %v7929_v28 = vshll.u32 %v14855_v43, 16 }
 0x55b   : > { %11777 = vmatprep.subr.bf16.mxu1 %v12562_v42 }
 0x55e   : > { %11778 = vmatpush3.bf16.msra.mxu1 %v12562_v42 }
 0x55f   : > { %11779 = vmatprep.subr.bf16.mxu1 %v12563_v8 }
 0x561   : > { %11748 = vmatmul.mubr.bf16.gmra.mrb[4].mxu1 %v15552_v33  ;;  %v7922_v33 = vrot.slane %v7920_v2, 4 }
 0x562   : > { %11751 = vmatprep.mubr.bf16.mxu1 %v15553_v41  ;;  %11780 = vmatpush3.bf16.msra.mxu1 %v12563_v8  ;;  %v7925_v41 = vrot.slane %v7923_v25, 5 }
 0x563   : > { %11781 = vmatprep.subr.bf16.mxu1 %v12564_v62 }
 0x566   : > { %11782 = vmatpush3.bf16.msra.mxu1 %v12564_v62 }
 0x567   : > { %11783 = vmatprep.subr.bf16.mxu1 %v12565_v35 }
 0x569   : > { %11752 = vmatmul.mubr.bf16.gmra.mrb[8].mxu1 %v15554_v46  ;;  %v7935_v46 = vrot.slane %v7933_v38, 4 }
 0x56a   : > { %11755 = vmatprep.mubr.bf16.mxu1 %v15555_v44  ;;  %11784 = vmatpush3.bf16.msra.mxu1 %v12565_v35  ;;  %v4845_v44 = vld [vmem:[#allocation3 + $0xd4] sm:$0x1] }
 0x56b   : > { %11785 = vmatprep.subr.bf16.mxu1 %v12566_v63  ;;  %v7939_v0 = vshll.u32 %v4845_v44, 16 }
 0x56d   : > { %v7941_v17 = vrot.slane %v7939_v0, 5 }
 0x56e   : > { %11786 = vmatpush3.bf16.msra.mxu1 %v12566_v63 }
 0x56f   : > { %11787 = vmatprep.subr.bf16.mxu1 %v12567_v11 }
 0x571   : > { %11756 = vmatmul.mubr.bf16.gmra.mrb[12].mxu1 %v14530_v59  ;;  %v7931_v59 = vrot.slane %v7929_v28, 5 }
 0x572   : > { %11759 = vmatprep.mubr.bf16.mxu1 %v15556_v23  ;;  %11788 = vmatpush3.bf16.msra.mxu1 %v12567_v11 }
 0x573   : > { %11789 = vmatprep.subr.bf16.mxu1 %v12568_v55  ;;  %v7936_v23 = vor.u32 %v7935_v46, %v7931_v59 }
 0x575   : > { %v7937_v51 = vrot.slane %v7936_v23, 4 }
 0x576   : > { %11790 = vmatpush3.bf16.msra.mxu1 %v12568_v55 }
 0x577   : > { %v7942_v18 = vsel %vm12949_vm2, %v7937_v51, %v7941_v17 }
 0x579   : > { %11760 = vmatmul.mubr.bf16.gmra.mrb[16].mxu1 %v14594_v56  ;;  %v7926_v56 = vor.u32 %v7925_v41, %v7922_v33 }
 0x57a   : > { %11763 = vmatprep.mubr.bf16.mxu1 %v14600_v6 }
 0x57b   : > { %v7927_v7 = vrot.slane %v7926_v56, 4 }
 0x57d   : > { %v7932_v6 = vsel %vm12949_vm2, %v7927_v7, %v7931_v59  ;;  %vm9849_vm2 = vcmask 1044484  }
 0x57e   : > { %v10344_v58 = vcombine.low %v7932_v6, %v7942_v18 }
 0x581   : > { %11764 = vmatmul.mubr.bf16.gmra.mrb[20].mxu1 %v14613_v10  ;;  %v10353_v10 = vrot.slane %v14853_v1, 9 }
 0x582   : > { %11767 = vmatprep.mubr.bf16.mxu1 %v14617_v49  ;;  %v8274_v49 = vrot.slane %v8272_v20, 4 }
 0x589   : > { %11768 = vmatmul.mubr.bf16.gmra.mrb[24].mxu1 %v14625_v34  ;;  %v8275_v34 = vrot.slane %v4845_v44, 5 }
 0x58a   : > { %11771 = vmatprep.mubr.bf16.mxu1 %v14819_v61 }
 0x591   : > { %11772 = vmatmul.mubr.bf16.gmra.mrb[28].mxu1 %v10344_v58 }
 0x592   : > { %11791 = vmatprep.mubr.bf16.mxu1 %v14647_v53  ;;  %v8273_v53 = vsel %vm13341_vm5, %v10353_v10, %v8272_v20 }
 0x599   : > { %11792 = vmatmul.mubr.bf16.vlgmr.msra.gmra.mrb[0].mxu1 %v14664_v21  ;;  %v8276_v21 = vsel %vm13341_vm5, %v8274_v49, %v8275_v34  ;;  %vm9855_vm5 = vcmask 1047559  }
 0x59a   : > { %11795 = vmatprep.mubr.bf16.mxu1 %v14668_v5  ;;  %v10354_v5 = vcombine.low %v8273_v53, %v8276_v21 }
 0x5a1   : > { %11796 = vmatmul.mubr.bf16.gmra.mrb[4].mxu1 %v14681_v37  ;;  %v12750_v37 = vmov 1983009808  }
 0x5a2   : > { %11799 = vmatprep.mubr.bf16.mxu1 %v14685_v54  ;;  %v8740_v54 = vunpack.c.l.s4 %v12750_v37 }
 0x5a9   : > { %11800 = vmatmul.mubr.bf16.gmra.mrb[8].mxu1 %v14699_v12  ;;  %v8742_v12 = vlaneseq }
 0x5aa   : > { %11803 = vmatprep.mubr.bf16.mxu1 %v14703_v52  ;;  %v14903_v52 = vld [vmem:[#allocation9] ss:$0 sm:$0xff] }
 0x5b1   : > { %11804 = vmatmul.mubr.bf16.gmra.mrb[12].mxu1 %v14719_v31 }
 0x5b2   : > { %11807 = vmatprep.mubr.bf16.mxu1 %v14723_v50  ;;  %v8741_v50 = vunpack.c.0.s8 %v8740_v54 }
 0x5b9   : > { %11808 = vmatmul.mubr.bf16.gmra.mrb[16].mxu1 %v14739_v48  ;;  %v8743_v48 = vshrl.u32 %v8742_v12, 7 }
 0x5ba   : > { %11811 = vmatprep.mubr.bf16.mxu1 %v14743_v47 }
 0x5bb   : > { %v14908_v45 = vsub.s32 %v8741_v50, %v8743_v48 }
 0x5c1   : > { %11812 = vmatmul.mubr.bf16.gmra.mrb[20].mxu1 %v14758_v26 }
 0x5c2   : > { %11815 = vmatprep.mubr.bf16.mxu1 %v14762_v9 }
 0x5c9   : > { %11816 = vmatmul.mubr.bf16.gmra.mrb[24].mxu1 %v14772_v57 }
 0x5ca   : > { %11819 = vmatprep.mubr.bf16.mxu1 %v14652_v24 }
 0x5d1   : > { %11820 = vmatmul.mubr.bf16.gmra.mrb[28].mxu1 %v10354_v5 }
 0x66c   : > { %v11793_v31 = vpop.f32.mrb[0].mxu1 }
 0x66d   : > { %v8644_v47 = vadd.f32 %v11793_v31, %v14903_v52  ;;  %v8412_v26 = vpop.f32.mrb[1].mxu1 }
 0x66e   : > { %v8642_v24 = vadd.f32 %v14903_v52, %v8412_v26  ;;  %v11794_v9 = vpop.f32.mrb[2].mxu1 }
 0x66f   : > { %v8676_v57 = vmax.f32 %v8644_v47, 0.0  ;;  %v8645_v27 = vadd.f32 %v11794_v9, %v14903_v52  ;;  %v8415_v61 = vpop.f32.mrb[3].mxu1 }
 0x670   : > { %v8674_v30 = vmax.f32 %v8642_v24, 0.0  ;;  %v8643_v22 = vadd.f32 %v14903_v52, %v8415_v61 }
 0x671   : > { %v8677_v29 = vmax.f32 %v8645_v27, 0.0 }
 0x672   : > { %v8706_v36 = vmax.f32 %v8674_v30, %v8676_v57  ;;  %v8675_v3 = vmax.f32 %v8643_v22, 0.0 }
 0x674   : > { %v8738_v13 = vcombine.high %v8706_v36, %v8706_v36  ;;  %v8745_v40 = vrot.slane %v8706_v36, %v14908_v45  ;;  %v8707_v32 = vmax.f32 %v8675_v3, %v8677_v29  ;;  %v11797_v19 = vpop.f32.mrb[4].mxu1 }
 0x675   : > { %v14913_v16 = vadd.f32 %v11797_v19, %v14903_v52  ;;  %v8428_v39 = vpop.f32.mrb[5].mxu1 }
 0x676   : > { %v8752_v14 = vrot.slane %v8738_v13, %v14908_v45  ;;  %v8753_v60 = vcombine.high %v8745_v40, %v8745_v40  ;;  %v9075_v4 = vsel %vm9074_vm14, %v8745_v40, -inf  ;;  %v8755_v1 = vcombine.high %v8707_v32, %v8707_v32  ;;  %v14917_v43 = vpop.f32.mrb[6].mxu1 }
 0x677   : > { %v9076_v15 = vrot.slane %v9075_v4, 4  ;;  %v8762_v42 = vrot.slane %v8707_v32, %v14908_v45  ;;  %v8680_v8 = vmax.f32 %v14913_v16, 0.0  ;;  %v14922_v62 = vadd.f32 %v14903_v52, %v8428_v39  ;;  %v14924_v35 = vpop.f32.mrb[7].mxu1 }
 0x678   : > { %v8754_v63 = vcombine.high %v8752_v14, %v8752_v14  ;;  %v9082_v11 = vsel %vm9074_vm14, %v8753_v60, -inf  ;;  %v9089_v55 = vsel %vm9074_vm14, %v8752_v14, -inf  ;;  %v8769_v2 = vrot.slane %v8755_v1, %v14908_v45 }
 0x679   : > { %v9077_v25 = vmax.f32 %v9075_v4, %v9076_v15  ;;  %v9083_v38 = vrot.slane %v9082_v11, 4  ;;  %v9090_v28 = vrot.slane %v9089_v55, 4  ;;  %v8770_v33 = vcombine.high %v8762_v42, %v8762_v42 }
 0x67a   : > { %v9096_v41 = vsel %vm9074_vm14, %v8754_v63, -inf  ;;  %v8771_v59 = vcombine.high %v8769_v2, %v8769_v2  ;;  %v9103_v46 = vsel %vm9074_vm14, %v8762_v42, -inf  ;;  %v9117_v44 = vsel %vm9074_vm14, %v8769_v2, -inf }
 0x67b   : > { %v9078_v56 = vrot.slane %v9077_v25, 2  ;;  %v9084_v23 = vmax.f32 %v9082_v11, %v9083_v38  ;;  %v9091_v0 = vmax.f32 %v9089_v55, %v9090_v28  ;;  %v9097_v7 = vrot.slane %v9096_v41, 4 }
 0x67c   : > { %v9104_v51 = vrot.slane %v9103_v46, 4  ;;  %v9110_v17 = vsel %vm9074_vm14, %v8770_v33, -inf  ;;  %v9118_v6 = vrot.slane %v9117_v44, 4  ;;  %v9124_v18 = vsel %vm9074_vm14, %v8771_v59, -inf  ;;  %v14934_v58 = vpop.f32.mrb[8].mxu1 }
 0x67d   : > { %v9079_v20 = vmax.f32 %v9077_v25, %v9078_v56  ;;  %v9085_v10 = vrot.slane %v9084_v23, 2  ;;  %v9092_v49 = vrot.slane %v9091_v0, 2  ;;  %v9098_v34 = vmax.f32 %v9096_v41, %v9097_v7  ;;  %v14936_v53 = vpop.f32.mrb[9].mxu1 }
 0x67e   : > { %v9105_v21 = vmax.f32 %v9103_v46, %v9104_v51  ;;  %v9111_v5 = vrot.slane %v9110_v17, 4  ;;  %v9119_v37 = vmax.f32 %v9117_v44, %v9118_v6  ;;  %v9125_v54 = vrot.slane %v9124_v18, 4  ;;  %v14938_v12 = vpop.f32.mrb[10].mxu1 }
 0x67f   : > { %v9080_v31 = vrot.slane %v9079_v20, 1  ;;  %v9086_v50 = vmax.f32 %v9084_v23, %v9085_v10  ;;  %v9093_v48 = vmax.f32 %v9091_v0, %v9092_v49  ;;  %v9099_v47 = vrot.slane %v9098_v34, 2  ;;  %v14940_v26 = vpop.f32.mrb[11].mxu1 }
 0x680   : > { %v9106_v24 = vrot.slane %v9105_v21, 2  ;;  %v9112_v9 = vmax.f32 %v9110_v17, %v9111_v5  ;;  %v9120_v57 = vrot.slane %v9119_v37, 2  ;;  %v9126_v27 = vmax.f32 %v9124_v18, %v9125_v54 }
 0x681   : > { %v9081_v61 = vmax.f32 %v9079_v20, %v9080_v31  ;;  %v9087_v30 = vrot.slane %v9086_v50, 1  ;;  %v9094_v22 = vrot.slane %v9093_v48, 1  ;;  %v9100_v29 = vmax.f32 %v9098_v34, %v9099_v47 }
 0x682   : > { %v9107_v36 = vmax.f32 %v9105_v21, %v9106_v24  ;;  %v9113_v3 = vrot.slane %v9112_v9, 2  ;;  %v9121_v13 = vmax.f32 %v9119_v37, %v9120_v57  ;;  %v9127_v40 = vrot.slane %v9126_v27, 2 }
 0x683   : > { %v9088_v32 = vmax.f32 %v9086_v50, %v9087_v30  ;;  %v9095_v19 = vmax.f32 %v9093_v48, %v9094_v22  ;;  %v9101_v39 = vrot.slane %v9100_v29, 1  ;;  %v10463_v14 = vpack.c.bf16 %v9081_v61, %v9081_v61 }
 0x684   : > { %v9108_v60 = vrot.slane %v9107_v36, 1  ;;  %v9114_v4 = vmax.f32 %v9112_v9, %v9113_v3  ;;  %v9122_v1 = vrot.slane %v9121_v13, 1  ;;  %v9128_v15 = vmax.f32 %v9126_v27, %v9127_v40  ;;  %v14942_v42 = vpop.f32.mrb[12].mxu1 }
 0x685   : > { %v9102_v63 = vmax.f32 %v9100_v29, %v9101_v39  ;;  %v10464_v11 = vpack.c.bf16 %v9088_v32, %v9088_v32  ;;  %v10465_v55 = vpack.c.bf16 %v9095_v19, %v9095_v19  ;;  %v9779_v2 = vunpack.c.l.b16 %v10463_v14  ;;  %v14944_v25 = vpop.f32.mrb[13].mxu1 }
 0x686   : > { %v9109_v38 = vmax.f32 %v9107_v36, %v9108_v60  ;;  %v9115_v28 = vrot.slane %v9114_v4, 1  ;;  %v9123_v33 = vmax.f32 %v9121_v13, %v9122_v1  ;;  %v9129_v41 = vrot.slane %v9128_v15, 1  ;;  %v14946_v59 = vpop.f32.mrb[14].mxu1 }
 0x687   : > { %v10466_v46 = vpack.c.bf16 %v9102_v63, %v9102_v63  ;;  %v9780_v44 = vunpack.c.l.b16 %v10464_v11  ;;  %v9781_v56 = vunpack.c.l.b16 %v10465_v55  ;;  %v8678_v23 = vmax.f32 %v14922_v62, 0.0  ;;  %v14949_v0 = vpop.f32.mrb[15].mxu1 }
 0x688   : > { %v9116_v7 = vmax.f32 %v9114_v4, %v9115_v28  ;;  %v9130_v51 = vmax.f32 %v9128_v15, %v9129_v41  ;;  %v10467_v17 = vpack.c.bf16 %v9109_v38, %v9109_v38  ;;  %v10469_v6 = vpack.c.bf16 %v9123_v33, %v9123_v33 }
 0x689   : > { %v9782_v18 = vunpack.c.l.b16 %v10466_v46  ;;  %v9844_v20 = vsel %vm9843_vm15, %v9780_v44, %v9779_v2  ;;  %v8708_v10 = vmax.f32 %v8678_v23, %v8680_v8  ;;  %v8649_v49 = vadd.f32 %v14917_v43, %v14903_v52 }
 0x68a   : > { %v9846_v34 = vsel %vm9845_vm0, %v9781_v56, %v9844_v20  ;;  %v10468_v21 = vpack.c.bf16 %v9116_v7, %v9116_v7  ;;  %v10470_v62 = vpack.c.bf16 %v9130_v51, %v9130_v51  ;;  %v9783_v5 = vunpack.c.l.b16 %v10467_v17 }
 0x68b   : > { %v9785_v37 = vunpack.c.l.b16 %v10469_v6  ;;  %v9848_v54 = vsel %vm9847_vm1, %v9782_v18, %v9846_v34  ;;  %v8772_v31 = vcombine.high %v8708_v10, %v8708_v10  ;;  %v8779_v50 = vrot.slane %v8708_v10, %v14908_v45 }
 0x68c   : > { %v9784_v48 = vunpack.c.l.b16 %v10468_v21  ;;  %v9786_v47 = vunpack.c.l.b16 %v10470_v62  ;;  %v9850_v16 = vsel %vm9849_vm2, %v9783_v5, %v9848_v54  ;;  %v8681_v24 = vmax.f32 %v8649_v49, 0.0  ;;  %v14960_v8 = vpop.f32.mrb[16].mxu1 }
 0x68d   : > { %v8786_v43 = vrot.slane %v8772_v31, %v14908_v45  ;;  %v8787_v9 = vcombine.high %v8779_v50, %v8779_v50  ;;  %v9131_v57 = vsel %vm9074_vm14, %v8779_v50, -inf  ;;  %v8647_v27 = vadd.f32 %v14903_v52, %v14924_v35  ;;  %v14967_v61 = vpop.f32.mrb[17].mxu1 }
 0x68e   : > { %v9852_v30 = vsel %vm9851_vm3, %v9784_v48, %v9850_v16  ;;  %v9132_v22 = vrot.slane %v9131_v57, 4  ;;  %v8652_v29 = vadd.f32 %v14934_v58, %v14903_v52  ;;  %v8650_v36 = vadd.f32 %v14903_v52, %v14936_v53  ;;  %v14974_v3 = vpop.f32.mrb[18].mxu1 }
 0x68f   : > { %v9854_v13 = vsel %vm9853_vm4, %v9785_v37, %v9852_v30  ;;  %v8788_v40 = vcombine.high %v8786_v43, %v8786_v43  ;;  %v9138_v32 = vsel %vm9074_vm14, %v8787_v9, -inf  ;;  %v9145_v35 = vsel %vm9074_vm14, %v8786_v43, -inf  ;;  %v14979_v19 = vpop.f32.mrb[19].mxu1 }
 0x690   : > { %v9856_v58 = vsel %vm9855_vm5, %v9786_v47, %v9854_v13  ;;  %v9133_v53 = vmax.f32 %v9131_v57, %v9132_v22  ;;  %v9139_v39 = vrot.slane %v9138_v32, 4  ;;  %v9146_v14 = vrot.slane %v9145_v35, 4 }
 0x691   : > { %v9906_v60 = vpack.c.b16 %v9856_v58, %v9856_v58  ;;  %v9152_v4 = vsel %vm9074_vm14, %v8788_v40, -inf  ;;  %v8679_v1 = vmax.f32 %v8647_v27, 0.0  ;;  %v8684_v15 = vmax.f32 %v8652_v29, 0.0 }
 0x692   : > { %v9134_v63 = vrot.slane %v9133_v53, 2  ;;  %v9140_v11 = vmax.f32 %v9138_v32, %v9139_v39  ;;  %v9147_v55 = vmax.f32 %v9145_v35, %v9146_v14  ;;  %v9153_v2 = vrot.slane %v9152_v4, 4 }
 0x693   : > { %9922 = vst [vmem:[%s14984_s16] sm:$0xf] %v9906_v60  ;;  %v8709_v38 = vmax.f32 %v8679_v1, %v8681_v24  ;;  %v8682_v28 = vmax.f32 %v8650_v36, 0.0  ;;  %v14991_v33 = vadd.f32 %v14938_v12, %v14903_v52  ;;  %v14995_v41 = vadd.f32 %v14903_v52, %v14940_v26 }
 0x694   : > { %v9135_v46 = vmax.f32 %v9133_v53, %v9134_v63  ;;  %v9141_v44 = vrot.slane %v9140_v11, 2  ;;  %v9148_v56 = vrot.slane %v9147_v55, 2  ;;  %v9154_v23 = vmax.f32 %v9152_v4, %v9153_v2  ;;  %v14997_v7 = vpop.f32.mrb[20].mxu1 }
 0x695   : > { %v8789_v51 = vcombine.high %v8709_v38, %v8709_v38  ;;  %v8796_v17 = vrot.slane %v8709_v38, %v14908_v45  ;;  %v8710_v6 = vmax.f32 %v8682_v28, %v8684_v15  ;;  %v8685_v18 = vmax.f32 %v14991_v33, 0.0  ;;  %v15001_v20 = vpop.f32.mrb[21].mxu1 }
 0x696   : > { %v9136_v12 = vrot.slane %v9135_v46, 1  ;;  %v9142_v10 = vmax.f32 %v9140_v11, %v9141_v44  ;;  %v9149_v49 = vmax.f32 %v9147_v55, %v9148_v56  ;;  %v9155_v34 = vrot.slane %v9154_v23, 2  ;;  %v15003_v26 = vpop.f32.mrb[22].mxu1 }
 0x697   : > { %v8803_v21 = vrot.slane %v8789_v51, %v14908_v45  ;;  %v8804_v62 = vcombine.high %v8796_v17, %v8796_v17  ;;  %v9159_v5 = vsel %vm9074_vm14, %v8796_v17, -inf  ;;  %v8806_v37 = vcombine.high %v8710_v6, %v8710_v6  ;;  %v15007_v54 = vpop.f32.mrb[23].mxu1 }
 0x698   : > { %v9137_v31 = vmax.f32 %v9135_v46, %v9136_v12  ;;  %v9143_v50 = vrot.slane %v9142_v10, 1  ;;  %v9150_v48 = vrot.slane %v9149_v49, 1  ;;  %v9156_v47 = vmax.f32 %v9154_v23, %v9155_v34 }
 0x699   : > { %v8805_v16 = vcombine.high %v8803_v21, %v8803_v21  ;;  %v9160_v24 = vrot.slane %v9159_v5, 4  ;;  %v9166_v43 = vsel %vm9074_vm14, %v8804_v62, -inf  ;;  %v9173_v9 = vsel %vm9074_vm14, %v8803_v21, -inf }
 0x69a   : > { %v9144_v57 = vmax.f32 %v9142_v10, %v9143_v50  ;;  %v9151_v27 = vmax.f32 %v9149_v49, %v9150_v48  ;;  %v9157_v30 = vrot.slane %v9156_v47, 1  ;;  %v10471_v22 = vpack.c.bf16 %v9137_v31, %v9137_v31 }
 0x69b   : > { %v9161_v29 = vmax.f32 %v9159_v5, %v9160_v24  ;;  %v9167_v36 = vrot.slane %v9166_v43, 4  ;;  %v9174_v13 = vrot.slane %v9173_v9, 4  ;;  %v9180_v40 = vsel %vm9074_vm14, %v8805_v16, -inf }
 0x69c   : > { %v9158_v32 = vmax.f32 %v9156_v47, %v9157_v30  ;;  %v10472_v35 = vpack.c.bf16 %v9144_v57, %v9144_v57  ;;  %v10473_v58 = vpack.c.bf16 %v9151_v27, %v9151_v27  ;;  %v9787_v53 = vunpack.c.l.b16 %v10471_v22  ;;  %v15012_v39 = vpop.f32.mrb[24].mxu1 }
 0x69d   : > { %v9162_v14 = vrot.slane %v9161_v29, 2  ;;  %v9168_v60 = vmax.f32 %v9166_v43, %v9167_v36  ;;  %v9175_v4 = vmax.f32 %v9173_v9, %v9174_v13  ;;  %v9181_v1 = vrot.slane %v9180_v40, 4  ;;  %v15014_v15 = vpop.f32.mrb[25].mxu1 }
 0x69e   : > { %v10474_v63 = vpack.c.bf16 %v9158_v32, %v9158_v32  ;;  %v9788_v11 = vunpack.c.l.b16 %v10472_v35  ;;  %v9789_v55 = vunpack.c.l.b16 %v10473_v58  ;;  %v8813_v2 = vrot.slane %v8710_v6, %v14908_v45  ;;  %v15017_v38 = vpop.f32.mrb[26].mxu1 }
 0x69f   : > { %v9163_v28 = vmax.f32 %v9161_v29, %v9162_v14  ;;  %v9169_v46 = vrot.slane %v9168_v60, 2  ;;  %v9176_v44 = vrot.slane %v9175_v4, 2  ;;  %v9182_v56 = vmax.f32 %v9180_v40, %v9181_v1  ;;  %v15019_v23 = vpop.f32.mrb[27].mxu1 }
 0x6a0   : > { %v9790_v51 = vunpack.c.l.b16 %v10474_v63  ;;  %v9857_v17 = vsel %vm9843_vm15, %v9788_v11, %v9787_v53  ;;  %v8820_v12 = vrot.slane %v8806_v37, %v14908_v45  ;;  %v8821_v10 = vcombine.high %v8813_v2, %v8813_v2 }
 0x6a1   : > { %v9858_v49 = vsel %vm9845_vm0, %v9789_v55, %v9857_v17  ;;  %v9164_v34 = vrot.slane %v9163_v28, 1  ;;  %v9170_v21 = vmax.f32 %v9168_v60, %v9169_v46  ;;  %v9177_v62 = vmax.f32 %v9175_v4, %v9176_v44 }
 0x6a2   : > { %v9183_v6 = vrot.slane %v9182_v56, 2  ;;  %v9859_v5 = vsel %vm9847_vm1, %v9790_v51, %v9858_v49  ;;  %v8822_v31 = vcombine.high %v8820_v12, %v8820_v12  ;;  %v9187_v50 = vsel %vm9074_vm14, %v8813_v2, -inf }
 0x6a3   : > { %v9165_v48 = vmax.f32 %v9163_v28, %v9164_v34  ;;  %v9171_v47 = vrot.slane %v9170_v21, 1  ;;  %v9178_v16 = vrot.slane %v9177_v62, 1  ;;  %v9188_v24 = vrot.slane %v9187_v50, 4 }
 0x6a4   : > { %v9184_v43 = vmax.f32 %v9182_v56, %v9183_v6  ;;  %v9194_v9 = vsel %vm9074_vm14, %v8821_v10, -inf  ;;  %v9201_v37 = vsel %vm9074_vm14, %v8820_v12, -inf  ;;  %v9208_v57 = vsel %vm9074_vm14, %v8822_v31, -inf  ;;  %v15029_v27 = vpop.f32.mrb[28].mxu1 }
 0x6a5   : > { %v9172_v30 = vmax.f32 %v9170_v21, %v9171_v47  ;;  %v9179_v22 = vmax.f32 %v9177_v62, %v9178_v16  ;;  %v10475_v29 = vpack.c.bf16 %v9165_v48, %v9165_v48  ;;  %v9189_v36 = vmax.f32 %v9187_v50, %v9188_v24  ;;  %v15031_v13 = vpop.f32.mrb[29].mxu1 }
 0x6a6   : > { %v9185_v40 = vrot.slane %v9184_v43, 1  ;;  %v9195_v32 = vrot.slane %v9194_v9, 4  ;;  %v9202_v35 = vrot.slane %v9201_v37, 4  ;;  %v9209_v58 = vrot.slane %v9208_v57, 4  ;;  %v15033_v53 = vpop.f32.mrb[30].mxu1 }
 0x6a7   : > { %v10476_v14 = vpack.c.bf16 %v9172_v30, %v9172_v30  ;;  %v10477_v60 = vpack.c.bf16 %v9179_v22, %v9179_v22  ;;  %v9791_v4 = vunpack.c.l.b16 %v10475_v29  ;;  %v9190_v1 = vrot.slane %v9189_v36, 2  ;;  %v15035_v63 = vpop.f32.mrb[31].mxu1 }
 0x6a8   : > { %v9186_v11 = vmax.f32 %v9184_v43, %v9185_v40  ;;  %v9196_v55 = vmax.f32 %v9194_v9, %v9195_v32  ;;  %v9203_v2 = vmax.f32 %v9201_v37, %v9202_v35  ;;  %v9210_v28 = vmax.f32 %v9208_v57, %v9209_v58 }
 0x6a9   : > { %v9792_v46 = vunpack.c.l.b16 %v10476_v14  ;;  %v9793_v44 = vunpack.c.l.b16 %v10477_v60  ;;  %v9860_v56 = vsel %vm9849_vm2, %v9791_v4, %v9859_v5  ;;  %v9191_v51 = vmax.f32 %v9189_v36, %v9190_v1 }
 0x6aa   : > { %v10478_v17 = vpack.c.bf16 %v9186_v11, %v9186_v11  ;;  %v9197_v12 = vrot.slane %v9196_v55, 2  ;;  %v9204_v10 = vrot.slane %v9203_v2, 2  ;;  %v9211_v49 = vrot.slane %v9210_v28, 2 }
 0x6ab   : > { %v9861_v34 = vsel %vm9851_vm3, %v9792_v46, %v9860_v56  ;;  %v9192_v21 = vrot.slane %v9191_v51, 1  ;;  %v8683_v62 = vmax.f32 %v14995_v41, 0.0  ;;  %v8656_v6 = vadd.f32 %v14942_v42, %v14903_v52 }
 0x6ac   : > { %v9794_v31 = vunpack.c.l.b16 %v10478_v17  ;;  %v9862_v50 = vsel %vm9853_vm4, %v9793_v44, %v9861_v34  ;;  %v9198_v48 = vmax.f32 %v9196_v55, %v9197_v12  ;;  %v9205_v47 = vmax.f32 %v9203_v2, %v9204_v10 }
 0x6ad   : > { %v9193_v16 = vmax.f32 %v9191_v51, %v9192_v21  ;;  %v9212_v5 = vmax.f32 %v9210_v28, %v9211_v49  ;;  %v8711_v24 = vmax.f32 %v8683_v62, %v8685_v18  ;;  %v8688_v43 = vmax.f32 %v8656_v6, 0.0 }
 0x6ae   : > { %v9863_v9 = vsel %vm9855_vm5, %v9794_v31, %v9862_v50  ;;  %v9199_v37 = vrot.slane %v9198_v48, 1  ;;  %v9206_v57 = vrot.slane %v9205_v47, 1  ;;  %v8654_v41 = vadd.f32 %v14903_v52, %v14944_v25 }
 0x6af   : > { %v9907_v42 = vpack.c.b16 %v9863_v9, %v9863_v9  ;;  %v9213_v30 = vrot.slane %v9212_v5, 1  ;;  %v10479_v22 = vpack.c.bf16 %v9193_v16, %v9193_v16  ;;  %v8823_v29 = vcombine.high %v8711_v24, %v8711_v24 }
 0x6b0   : > { %v9200_v36 = vmax.f32 %v9198_v48, %v9199_v37  ;;  %v9207_v40 = vmax.f32 %v9205_v47, %v9206_v57  ;;  %v8830_v32 = vrot.slane %v8711_v24, %v14908_v45  ;;  %v8686_v35 = vmax.f32 %v8654_v41, 0.0 }
 0x6b1   : > { %9923 = vst [vmem:[%s14984_s16 + $0x4] sm:$0xf] %v9907_v42  ;;  %v9214_v33 = vmax.f32 %v9212_v5, %v9213_v30  ;;  %v9795_v18 = vunpack.c.l.b16 %v10479_v22  ;;  %v8837_v58 = vrot.slane %v8823_v29, %v14908_v45  ;;  %v15053_v14 = vadd.f32 %v14946_v59, %v14903_v52 }
 0x6b2   : > { %v10480_v60 = vpack.c.bf16 %v9200_v36, %v9200_v36  ;;  %v10481_v25 = vpack.c.bf16 %v9207_v40, %v9207_v40  ;;  %v8838_v4 = vcombine.high %v8830_v32, %v8830_v32  ;;  %v9215_v1 = vsel %vm9074_vm14, %v8830_v32, -inf }
 0x6b3   : > { %v10482_v11 = vpack.c.bf16 %v9214_v33, %v9214_v33  ;;  %v8839_v55 = vcombine.high %v8837_v58, %v8837_v58  ;;  %v9216_v2 = vrot.slane %v9215_v1, 4  ;;  %v9229_v28 = vsel %vm9074_vm14, %v8837_v58, -inf }
 0x6b4   : > { %v9796_v46 = vunpack.c.l.b16 %v10480_v60  ;;  %v9797_v44 = vunpack.c.l.b16 %v10481_v25  ;;  %v9222_v56 = vsel %vm9074_vm14, %v8838_v4, -inf  ;;  %v9230_v51 = vrot.slane %v9229_v28, 4 }
 0x6b5   : > { %v9798_v17 = vunpack.c.l.b16 %v10482_v11  ;;  %v9217_v12 = vmax.f32 %v9215_v1, %v9216_v2  ;;  %v9223_v10 = vrot.slane %v9222_v56, 4  ;;  %v9236_v59 = vsel %vm9074_vm14, %v8839_v55, -inf }
 0x6b6   : > { %v9864_v49 = vsel %vm9843_vm15, %v9796_v46, %v9795_v18  ;;  %v9231_v34 = vmax.f32 %v9229_v28, %v9230_v51  ;;  %v9237_v21 = vrot.slane %v9236_v59, 4  ;;  %v8712_v62 = vmax.f32 %v8686_v35, %v8688_v43 }
 0x6b7   : > { %v9865_v6 = vsel %vm9845_vm0, %v9797_v44, %v9864_v49  ;;  %v9218_v31 = vrot.slane %v9217_v12, 2  ;;  %v9224_v50 = vmax.f32 %v9222_v56, %v9223_v10  ;;  %v8689_v48 = vmax.f32 %v15053_v14, 0.0 }
 0x6b8   : > { %v9232_v47 = vrot.slane %v9231_v34, 2  ;;  %v9238_v16 = vmax.f32 %v9236_v59, %v9237_v21  ;;  %v9866_v5 = vsel %vm9847_vm1, %v9798_v17, %v9865_v6  ;;  %v8840_v24 = vcombine.high %v8712_v62, %v8712_v62 }
 0x6b9   : > { %v9219_v9 = vmax.f32 %v9217_v12, %v9218_v31  ;;  %v9225_v37 = vrot.slane %v9224_v50, 2  ;;  %v8847_v57 = vrot.slane %v8712_v62, %v14908_v45  ;;  %v8655_v41 = vadd.f32 %v14903_v52, %v14949_v0 }
 0x6ba   : > { %v9233_v42 = vmax.f32 %v9231_v34, %v9232_v47  ;;  %v9239_v43 = vrot.slane %v9238_v16, 2  ;;  %v8854_v30 = vrot.slane %v8840_v24, %v14908_v45  ;;  %v15069_v22 = vadd.f32 %v14960_v8, %v14903_v52 }
 0x6bb   : > { %v9220_v29 = vrot.slane %v9219_v9, 1  ;;  %v9226_v36 = vmax.f32 %v9224_v50, %v9225_v37  ;;  %v8855_v40 = vcombine.high %v8847_v57, %v8847_v57  ;;  %v9243_v32 = vsel %vm9074_vm14, %v8847_v57, -inf }
 0x6bc   : > { %v9234_v35 = vrot.slane %v9233_v42, 1  ;;  %v9240_v33 = vmax.f32 %v9238_v16, %v9239_v43  ;;  %v8856_v18 = vcombine.high %v8854_v30, %v8854_v30  ;;  %v9244_v58 = vrot.slane %v9243_v32, 4 }
 0x6bd   : > { %v9221_v14 = vmax.f32 %v9219_v9, %v9220_v29  ;;  %v9227_v60 = vrot.slane %v9226_v36, 1  ;;  %v9250_v0 = vsel %vm9074_vm14, %v8855_v40, -inf  ;;  %v9257_v25 = vsel %vm9074_vm14, %v8854_v30, -inf }
 0x6be   : > { %v9235_v4 = vmax.f32 %v9233_v42, %v9234_v35  ;;  %v9241_v1 = vrot.slane %v9240_v33, 1  ;;  %v9245_v11 = vmax.f32 %v9243_v32, %v9244_v58  ;;  %v9251_v8 = vrot.slane %v9250_v0, 4 }
 0x6bf   : > { %v9228_v55 = vmax.f32 %v9226_v36, %v9227_v60  ;;  %v10483_v2 = vpack.c.bf16 %v9221_v14, %v9221_v14  ;;  %v9258_v28 = vrot.slane %v9257_v25, 4  ;;  %v9264_v46 = vsel %vm9074_vm14, %v8856_v18, -inf }
 0x6c0   : > { %v9242_v44 = vmax.f32 %v9240_v33, %v9241_v1  ;;  %v10485_v56 = vpack.c.bf16 %v9235_v4, %v9235_v4  ;;  %v9246_v51 = vrot.slane %v9245_v11, 2  ;;  %v9252_v17 = vmax.f32 %v9250_v0, %v9251_v8 }
 0x6c1   : > { %v10484_v12 = vpack.c.bf16 %v9228_v55, %v9228_v55  ;;  %v9799_v10 = vunpack.c.l.b16 %v10483_v2  ;;  %v9259_v59 = vmax.f32 %v9257_v25, %v9258_v28  ;;  %v9265_v49 = vrot.slane %v9264_v46, 4 }
 0x6c2   : > { %v10486_v34 = vpack.c.bf16 %v9242_v44, %v9242_v44  ;;  %v9801_v21 = vunpack.c.l.b16 %v10485_v56  ;;  %v9247_v62 = vmax.f32 %v9245_v11, %v9246_v51  ;;  %v9253_v6 = vrot.slane %v9252_v17, 2 }
 0x6c3   : > { %v9800_v31 = vunpack.c.l.b16 %v10484_v12  ;;  %v9867_v50 = vsel %vm9849_vm2, %v9799_v10, %v9866_v5  ;;  %v9260_v47 = vrot.slane %v9259_v59, 2  ;;  %v9266_v16 = vmax.f32 %v9264_v46, %v9265_v49 }
 0x6c4   : > { %v9802_v24 = vunpack.c.l.b16 %v10486_v34  ;;  %v9248_v9 = vrot.slane %v9247_v62, 1  ;;  %v9254_v37 = vmax.f32 %v9252_v17, %v9253_v6  ;;  %v8687_v57 = vmax.f32 %v8655_v41, 0.0 }
 0x6c5   : > { %v9868_v42 = vsel %vm9851_vm3, %v9800_v31, %v9867_v50  ;;  %v9261_v43 = vmax.f32 %v9259_v59, %v9260_v47  ;;  %v9267_v30 = vrot.slane %v9266_v16, 2  ;;  %v8692_v29 = vmax.f32 %v15069_v22, 0.0 }
 0x6c6   : > { %v9869_v36 = vsel %vm9853_vm4, %v9801_v21, %v9868_v42  ;;  %v9249_v40 = vmax.f32 %v9247_v62, %v9248_v9  ;;  %v9255_v32 = vrot.slane %v9254_v37, 1  ;;  %v8713_v35 = vmax.f32 %v8687_v57, %v8689_v48 }
 0x6c7   : > { %v9870_v5 = vsel %vm9855_vm5, %v9802_v24, %v9869_v36  ;;  %v9262_v33 = vrot.slane %v9261_v43, 1  ;;  %v9268_v18 = vmax.f32 %v9266_v16, %v9267_v30  ;;  %v8658_v58 = vadd.f32 %v14903_v52, %v14967_v61 }
 0x6c8   : > { %v9908_v41 = vpack.c.b16 %v9870_v5, %v9870_v5  ;;  %v9256_v14 = vmax.f32 %v9254_v37, %v9255_v32  ;;  %v10487_v60 = vpack.c.bf16 %v9249_v40, %v9249_v40  ;;  %v8857_v0 = vcombine.high %v8713_v35, %v8713_v35 }
 0x6c9   : > { %v9263_v25 = vmax.f32 %v9261_v43, %v9262_v33  ;;  %v9269_v4 = vrot.slane %v9268_v18, 1  ;;  %v8864_v22 = vrot.slane %v8713_v35, %v14908_v45  ;;  %v8690_v1 = vmax.f32 %v8658_v58, 0.0 }
 0x6ca   : > { %9924 = vst [vmem:[%s14984_s16 + $0x8] sm:$0xf] %v9908_v41  ;;  %v10488_v11 = vpack.c.bf16 %v9256_v14, %v9256_v14  ;;  %v9803_v8 = vunpack.c.l.b16 %v10487_v60  ;;  %v8871_v48 = vrot.slane %v8857_v0, %v14908_v45  ;;  %v8661_v55 = vadd.f32 %v14974_v3, %v14903_v52 }
 0x6cb   : > { %v9270_v2 = vmax.f32 %v9268_v18, %v9269_v4  ;;  %v10489_v28 = vpack.c.bf16 %v9263_v25, %v9263_v25  ;;  %v8872_v61 = vcombine.high %v8864_v22, %v8864_v22  ;;  %v9271_v46 = vsel %vm9074_vm14, %v8864_v22, -inf }
 0x6cc   : > { %v9804_v44 = vunpack.c.l.b16 %v10488_v11  ;;  %v8873_v56 = vcombine.high %v8871_v48, %v8871_v48  ;;  %v9272_v51 = vrot.slane %v9271_v46, 4  ;;  %v9285_v17 = vsel %vm9074_vm14, %v8871_v48, -inf }
 0x6cd   : > { %v10490_v12 = vpack.c.bf16 %v9270_v2, %v9270_v2  ;;  %v9805_v10 = vunpack.c.l.b16 %v10489_v28  ;;  %v9278_v59 = vsel %vm9074_vm14, %v8872_v61, -inf  ;;  %v9286_v49 = vrot.slane %v9285_v17, 4 }
 0x6ce   : > { %v9871_v34 = vsel %vm9843_vm15, %v9804_v44, %v9803_v8  ;;  %v9273_v21 = vmax.f32 %v9271_v46, %v9272_v51  ;;  %v9279_v62 = vrot.slane %v9278_v59, 4  ;;  %v9292_v3 = vsel %vm9074_vm14, %v8873_v56, -inf }
 0x6cf   : > { %v9806_v6 = vunpack.c.l.b16 %v10490_v12  ;;  %v9872_v31 = vsel %vm9845_vm0, %v9805_v10, %v9871_v34  ;;  %v9287_v50 = vmax.f32 %v9285_v17, %v9286_v49  ;;  %v9293_v47 = vrot.slane %v9292_v3, 4 }
 0x6d0   : > { %v9274_v16 = vrot.slane %v9273_v21, 2  ;;  %v9280_v24 = vmax.f32 %v9278_v59, %v9279_v62  ;;  %v8714_v9 = vmax.f32 %v8690_v1, %v8692_v29  ;;  %v8693_v37 = vmax.f32 %v8661_v55, 0.0 }
 0x6d1   : > { %v9288_v57 = vrot.slane %v9287_v50, 2  ;;  %v9294_v42 = vmax.f32 %v9292_v3, %v9293_v47  ;;  %v9873_v43 = vsel %vm9847_vm1, %v9806_v6, %v9872_v31  ;;  %v8659_v30 = vadd.f32 %v14903_v52, %v14979_v19 }
 0x6d2   : > { %v9275_v36 = vmax.f32 %v9273_v21, %v9274_v16  ;;  %v9281_v40 = vrot.slane %v9280_v24, 2  ;;  %v8874_v32 = vcombine.high %v8714_v9, %v8714_v9  ;;  %v8881_v35 = vrot.slane %v8714_v9, %v14908_v45 }
 0x6d3   : > { %v9289_v5 = vmax.f32 %v9287_v50, %v9288_v57  ;;  %v9295_v33 = vrot.slane %v9294_v42, 2  ;;  %v8691_v18 = vmax.f32 %v8659_v30, 0.0  ;;  %v15099_v58 = vadd.f32 %v14997_v7, %v14903_v52 }
 0x6d4   : > { %v9276_v29 = vrot.slane %v9275_v36, 1  ;;  %v9282_v41 = vmax.f32 %v9280_v24, %v9281_v40  ;;  %v8888_v14 = vrot.slane %v8874_v32, %v14908_v45  ;;  %v8889_v60 = vcombine.high %v8881_v35, %v8881_v35 }
 0x6d5   : > { %v9290_v0 = vrot.slane %v9289_v5, 1  ;;  %v9296_v25 = vmax.f32 %v9294_v42, %v9295_v33  ;;  %v9299_v19 = vsel %vm9074_vm14, %v8881_v35, -inf  ;;  %v8715_v4 = vmax.f32 %v8691_v18, %v8693_v37 }
 0x6d6   : > { %v9277_v22 = vmax.f32 %v9275_v36, %v9276_v29  ;;  %v9283_v1 = vrot.slane %v9282_v41, 1  ;;  %v8890_v11 = vcombine.high %v8888_v14, %v8888_v14  ;;  %v9300_v8 = vrot.slane %v9299_v19, 4 }
 0x6d7   : > { %v9291_v48 = vmax.f32 %v9289_v5, %v9290_v0  ;;  %v9297_v55 = vrot.slane %v9296_v25, 1  ;;  %v9306_v2 = vsel %vm9074_vm14, %v8889_v60, -inf  ;;  %v9313_v52 = vsel %vm9074_vm14, %v8888_v14, -inf }
 0x6d8   : > { %v9284_v7 = vmax.f32 %v9282_v41, %v9283_v1  ;;  %v10491_v28 = vpack.c.bf16 %v9277_v22, %v9277_v22  ;;  %v9301_v61 = vmax.f32 %v9299_v19, %v9300_v8  ;;  %v9307_v46 = vrot.slane %v9306_v2, 4 }
 0x6d9   : > { %v9298_v44 = vmax.f32 %v9296_v25, %v9297_v55  ;;  %v10493_v56 = vpack.c.bf16 %v9291_v48, %v9291_v48  ;;  %v9314_v51 = vrot.slane %v9313_v52, 4  ;;  %v9320_v17 = vsel %vm9074_vm14, %v8890_v11, -inf }
 0x6da   : > { %v10492_v12 = vpack.c.bf16 %v9284_v7, %v9284_v7  ;;  %v9807_v10 = vunpack.c.l.b16 %v10491_v28  ;;  %v9302_v59 = vrot.slane %v9301_v61, 2  ;;  %v9308_v49 = vmax.f32 %v9306_v2, %v9307_v46 }
 0x6db   : > { %v10494_v34 = vpack.c.bf16 %v9298_v44, %v9298_v44  ;;  %v9809_v21 = vunpack.c.l.b16 %v10493_v56  ;;  %v9315_v62 = vmax.f32 %v9313_v52, %v9314_v51  ;;  %v9321_v3 = vrot.slane %v9320_v17, 4 }
 0x6dc   : > { %v9808_v6 = vunpack.c.l.b16 %v10492_v12  ;;  %v9874_v31 = vsel %vm9849_vm2, %v9807_v10, %v9873_v43  ;;  %v9303_v50 = vmax.f32 %v9301_v61, %v9302_v59  ;;  %v9309_v47 = vrot.slane %v9308_v49, 2 }
 0x6dd   : > { %v9810_v16 = vunpack.c.l.b16 %v10494_v34  ;;  %v9316_v24 = vrot.slane %v9315_v62, 2  ;;  %v9322_v9 = vmax.f32 %v9320_v17, %v9321_v3  ;;  %v8891_v37 = vcombine.high %v8715_v4, %v8715_v4 }
 0x6de   : > { %v9875_v57 = vsel %vm9851_vm3, %v9808_v6, %v9874_v31  ;;  %v9304_v42 = vrot.slane %v9303_v50, 1  ;;  %v9310_v30 = vmax.f32 %v9308_v49, %v9309_v47  ;;  %v8898_v36 = vrot.slane %v8715_v4, %v14908_v45  ;;  %v15119_v6 = vld [vmem:[#allocation9] ss:$0 sm:$0xff] }
 0x6df   : > { %v9876_v40 = vsel %vm9853_vm4, %v9809_v21, %v9875_v57  ;;  %v9317_v32 = vmax.f32 %v9315_v62, %v9316_v24  ;;  %v9323_v35 = vrot.slane %v9322_v9, 2  ;;  %v8905_v5 = vrot.slane %v8891_v37, %v14908_v45 }
 0x6e0   : > { %v9877_v43 = vsel %vm9855_vm5, %v9810_v16, %v9876_v40  ;;  %v9305_v33 = vmax.f32 %v9303_v50, %v9304_v42  ;;  %v9311_v18 = vrot.slane %v9310_v30, 1  ;;  %v8906_v29 = vcombine.high %v8898_v36, %v8898_v36 }
 0x6e1   : > { %v9909_v41 = vpack.c.b16 %v9877_v43, %v9877_v43  ;;  %v9318_v14 = vrot.slane %v9317_v32, 1  ;;  %v9324_v60 = vmax.f32 %v9322_v9, %v9323_v35  ;;  %v8907_v0 = vcombine.high %v8905_v5, %v8905_v5 }
 0x6e2   : > { %v9312_v25 = vmax.f32 %v9310_v30, %v9311_v18  ;;  %v10495_v19 = vpack.c.bf16 %v9305_v33, %v9305_v33  ;;  %v9327_v4 = vsel %vm9074_vm14, %v8898_v36, -inf  ;;  %v9334_v22 = vsel %vm9074_vm14, %v8906_v29, -inf }
 0x6e3   : > { %9925 = vst [vmem:[%s14984_s16 + $0xc] sm:$0xf] %v9909_v41  ;;  %v9319_v1 = vmax.f32 %v9317_v32, %v9318_v14  ;;  %v9325_v11 = vrot.slane %v9324_v60, 1  ;;  %v9328_v8 = vrot.slane %v9327_v4, 4  ;;  %v9335_v48 = vrot.slane %v9334_v22, 4 }
 0x6e4   : > { %v10496_v55 = vpack.c.bf16 %v9312_v25, %v9312_v25  ;;  %v9811_v2 = vunpack.c.l.b16 %v10495_v19  ;;  %v9341_v52 = vsel %vm9074_vm14, %v8905_v5, -inf  ;;  %v9348_v7 = vsel %vm9074_vm14, %v8907_v0, -inf }
 0x6e5   : > { %v9326_v28 = vmax.f32 %v9324_v60, %v9325_v11  ;;  %v10497_v61 = vpack.c.bf16 %v9319_v1, %v9319_v1  ;;  %v9329_v46 = vmax.f32 %v9327_v4, %v9328_v8  ;;  %v9336_v44 = vmax.f32 %v9334_v22, %v9335_v48 }
 0x6e6   : > { %v9812_v56 = vunpack.c.l.b16 %v10496_v55  ;;  %v9342_v51 = vrot.slane %v9341_v52, 4  ;;  %v9349_v17 = vrot.slane %v9348_v7, 4  ;;  %v8696_v12 = vmax.f32 %v15099_v58, 0.0 }
 0x6e7   : > { %v10498_v10 = vpack.c.bf16 %v9326_v28, %v9326_v28  ;;  %v9813_v59 = vunpack.c.l.b16 %v10497_v61  ;;  %v9330_v49 = vrot.slane %v9329_v46, 2  ;;  %v9337_v34 = vrot.slane %v9336_v44, 2 }
 0x6e8   : > { %v9878_v21 = vsel %vm9843_vm15, %v9812_v56, %v9811_v2  ;;  %v9343_v62 = vmax.f32 %v9341_v52, %v9342_v51  ;;  %v9350_v3 = vmax.f32 %v9348_v7, %v9349_v17  ;;  %v8662_v31 = vadd.f32 %v15119_v6, %v15001_v20 }
 0x6e9   : > { %v9814_v50 = vunpack.c.l.b16 %v10498_v10  ;;  %v9879_v47 = vsel %vm9845_vm0, %v9813_v59, %v9878_v21  ;;  %v9331_v16 = vmax.f32 %v9329_v46, %v9330_v49  ;;  %v9338_v24 = vmax.f32 %v9336_v44, %v9337_v34 }
 0x6ea   : > { %v9344_v9 = vrot.slane %v9343_v62, 2  ;;  %v9351_v58 = vrot.slane %v9350_v3, 2  ;;  %v8694_v37 = vmax.f32 %v8662_v31, 0.0  ;;  %v8665_v57 = vadd.f32 %v15119_v6, %v15003_v26 }
 0x6eb   : > { %v9332_v42 = vrot.slane %v9331_v16, 1  ;;  %v9339_v30 = vrot.slane %v9338_v24, 1  ;;  %v9880_v36 = vsel %vm9847_vm1, %v9814_v50, %v9879_v47  ;;  %v8663_v40 = vadd.f32 %v15119_v6, %v15007_v54 }
 0x6ec   : > { %v9345_v32 = vmax.f32 %v9343_v62, %v9344_v9  ;;  %v9352_v20 = vmax.f32 %v9350_v3, %v9351_v58  ;;  %v8716_v35 = vmax.f32 %v8694_v37, %v8696_v12  ;;  %v8697_v5 = vmax.f32 %v8665_v57, 0.0 }
 0x6ed   : > { %v9333_v43 = vmax.f32 %v9331_v16, %v9332_v42  ;;  %v9340_v33 = vmax.f32 %v9338_v24, %v9339_v30  ;;  %v8695_v18 = vmax.f32 %v8663_v40, 0.0  ;;  %v15131_v29 = vadd.f32 %v15119_v6, %v15012_v39 }
 0x6ee   : > { %v9346_v41 = vrot.slane %v9345_v32, 1  ;;  %v9353_v26 = vrot.slane %v9352_v20, 1  ;;  %v8908_v14 = vcombine.high %v8716_v35, %v8716_v35  ;;  %v8915_v60 = vrot.slane %v8716_v35, %v14908_v45 }
 0x6ef   : > { %v10499_v0 = vpack.c.bf16 %v9333_v43, %v9333_v43  ;;  %v10500_v25 = vpack.c.bf16 %v9340_v33, %v9340_v33  ;;  %v8717_v19 = vmax.f32 %v8695_v18, %v8697_v5  ;;  %v8700_v54 = vmax.f32 %v15131_v29, 0.0 }
 0x6f0   : > { %v9347_v4 = vmax.f32 %v9345_v32, %v9346_v41  ;;  %v9354_v22 = vmax.f32 %v9352_v20, %v9353_v26  ;;  %v8922_v1 = vrot.slane %v8908_v14, %v14908_v45  ;;  %v8923_v11 = vcombine.high %v8915_v60, %v8915_v60 }
 0x6f1   : > { %v9815_v8 = vunpack.c.l.b16 %v10499_v0  ;;  %v9816_v48 = vunpack.c.l.b16 %v10500_v25  ;;  %v9355_v39 = vsel %vm9074_vm14, %v8915_v60, -inf  ;;  %v8925_v55 = vcombine.high %v8717_v19, %v8717_v19 }
 0x6f2   : > { %v10501_v2 = vpack.c.bf16 %v9347_v4, %v9347_v4  ;;  %v10502_v52 = vpack.c.bf16 %v9354_v22, %v9354_v22  ;;  %v8924_v7 = vcombine.high %v8922_v1, %v8922_v1  ;;  %v9356_v28 = vrot.slane %v9355_v39, 4 }
 0x6f3   : > { %v9881_v61 = vsel %vm9849_vm2, %v9815_v8, %v9880_v36  ;;  %v9362_v46 = vsel %vm9074_vm14, %v8923_v11, -inf  ;;  %v9369_v44 = vsel %vm9074_vm14, %v8922_v1, -inf  ;;  %v8932_v56 = vrot.slane %v8717_v19, %v14908_v45 }
 0x6f4   : > { %v9817_v51 = vunpack.c.l.b16 %v10501_v2  ;;  %v9818_v17 = vunpack.c.l.b16 %v10502_v52  ;;  %v9882_v12 = vsel %vm9851_vm3, %v9816_v48, %v9881_v61  ;;  %v9357_v10 = vmax.f32 %v9355_v39, %v9356_v28 }
 0x6f5   : > { %v9363_v59 = vrot.slane %v9362_v46, 4  ;;  %v9370_v49 = vrot.slane %v9369_v44, 4  ;;  %v9376_v34 = vsel %vm9074_vm14, %v8924_v7, -inf  ;;  %v8939_v21 = vrot.slane %v8925_v55, %v14908_v45 }
 0x6f6   : > { %v9883_v62 = vsel %vm9853_vm4, %v9817_v51, %v9882_v12  ;;  %v9358_v3 = vrot.slane %v9357_v10, 2  ;;  %v9377_v31 = vrot.slane %v9376_v34, 4  ;;  %v8940_v50 = vcombine.high %v8932_v56, %v8932_v56 }
 0x6f7   : > { %v9884_v47 = vsel %vm9855_vm5, %v9818_v17, %v9883_v62  ;;  %v9364_v16 = vmax.f32 %v9362_v46, %v9363_v59  ;;  %v9371_v24 = vmax.f32 %v9369_v44, %v9370_v49  ;;  %v8941_v9 = vcombine.high %v8939_v21, %v8939_v21 }
 0x6f8   : > { %v9910_v58 = vpack.c.b16 %v9884_v47, %v9884_v47  ;;  %v9359_v37 = vmax.f32 %v9357_v10, %v9358_v3  ;;  %v9378_v57 = vmax.f32 %v9376_v34, %v9377_v31  ;;  %v9383_v42 = vsel %vm9074_vm14, %v8932_v56, -inf }
 0x6f9   : > { %v9365_v30 = vrot.slane %v9364_v16, 2  ;;  %v9372_v36 = vrot.slane %v9371_v24, 2  ;;  %v9384_v40 = vrot.slane %v9383_v42, 4  ;;  %v9390_v32 = vsel %vm9074_vm14, %v8940_v50, -inf }
 0x6fa   : > { %9926 = vst [vmem:[%s14984_s16 + $0x10] sm:$0xf] %v9910_v58  ;;  %v9360_v20 = vrot.slane %v9359_v37, 1  ;;  %v9379_v35 = vrot.slane %v9378_v57, 2  ;;  %v9391_v5 = vrot.slane %v9390_v32, 4  ;;  %v9397_v43 = vsel %vm9074_vm14, %v8939_v21, -inf }
 0x6fb   : > { %v9366_v33 = vmax.f32 %v9364_v16, %v9365_v30  ;;  %v9373_v18 = vmax.f32 %v9371_v24, %v9372_v36  ;;  %v9385_v41 = vmax.f32 %v9383_v42, %v9384_v40  ;;  %v9398_v26 = vrot.slane %v9397_v43, 4 }
 0x6fc   : > { %v9361_v14 = vmax.f32 %v9359_v37, %v9360_v20  ;;  %v9380_v60 = vmax.f32 %v9378_v57, %v9379_v35  ;;  %v9392_v0 = vmax.f32 %v9390_v32, %v9391_v5  ;;  %v9404_v25 = vsel %vm9074_vm14, %v8941_v9, -inf }
 0x6fd   : > { %v9367_v19 = vrot.slane %v9366_v33, 1  ;;  %v9374_v4 = vrot.slane %v9373_v18, 1  ;;  %v9386_v22 = vrot.slane %v9385_v41, 2  ;;  %v9399_v1 = vmax.f32 %v9397_v43, %v9398_v26 }
 0x6fe   : > { %v9381_v11 = vrot.slane %v9380_v60, 1  ;;  %v10503_v8 = vpack.c.bf16 %v9361_v14, %v9361_v14  ;;  %v9393_v48 = vrot.slane %v9392_v0, 2  ;;  %v9405_v39 = vrot.slane %v9404_v25, 4 }
 0x6ff   : > { %v9368_v55 = vmax.f32 %v9366_v33, %v9367_v19  ;;  %v9375_v2 = vmax.f32 %v9373_v18, %v9374_v4  ;;  %v9387_v52 = vmax.f32 %v9385_v41, %v9386_v22  ;;  %v9400_v7 = vrot.slane %v9399_v1, 2 }
 0x700   : > { %v9382_v28 = vmax.f32 %v9380_v60, %v9381_v11  ;;  %v9819_v61 = vunpack.c.l.b16 %v10503_v8  ;;  %v9394_v46 = vmax.f32 %v9392_v0, %v9393_v48  ;;  %v9406_v44 = vmax.f32 %v9404_v25, %v9405_v39 }
 0x701   : > { %v10504_v56 = vpack.c.bf16 %v9368_v55, %v9368_v55  ;;  %v10505_v51 = vpack.c.bf16 %v9375_v2, %v9375_v2  ;;  %v9388_v17 = vrot.slane %v9387_v52, 1  ;;  %v9401_v12 = vmax.f32 %v9399_v1, %v9400_v7 }
 0x702   : > { %v10506_v10 = vpack.c.bf16 %v9382_v28, %v9382_v28  ;;  %v9395_v59 = vrot.slane %v9394_v46, 1  ;;  %v9407_v49 = vrot.slane %v9406_v44, 2  ;;  %v8666_v34 = vadd.f32 %v15119_v6, %v15014_v15 }
 0x703   : > { %v9820_v21 = vunpack.c.l.b16 %v10504_v56  ;;  %v9821_v62 = vunpack.c.l.b16 %v10505_v51  ;;  %v9389_v3 = vmax.f32 %v9387_v52, %v9388_v17  ;;  %v9402_v31 = vrot.slane %v9401_v12, 1 }
 0x704   : > { %v9822_v50 = vunpack.c.l.b16 %v10506_v10  ;;  %v9396_v47 = vmax.f32 %v9394_v46, %v9395_v59  ;;  %v9408_v16 = vmax.f32 %v9406_v44, %v9407_v49  ;;  %v8698_v24 = vmax.f32 %v8666_v34, 0.0 }
 0x705   : > { %v9885_v9 = vsel %vm9843_vm15, %v9820_v21, %v9819_v61  ;;  %v9403_v58 = vmax.f32 %v9401_v12, %v9402_v31  ;;  %v10507_v37 = vpack.c.bf16 %v9389_v3, %v9389_v3  ;;  %v8669_v57 = vadd.f32 %v15119_v6, %v15017_v38 }
 0x706   : > { %v9886_v42 = vsel %vm9845_vm0, %v9821_v62, %v9885_v9  ;;  %v9409_v30 = vrot.slane %v9408_v16, 1  ;;  %v10508_v36 = vpack.c.bf16 %v9396_v47, %v9396_v47  ;;  %v8718_v15 = vmax.f32 %v8698_v24, %v8700_v54 }
 0x707   : > { %v10509_v40 = vpack.c.bf16 %v9403_v58, %v9403_v58  ;;  %v9823_v32 = vunpack.c.l.b16 %v10507_v37  ;;  %v9887_v20 = vsel %vm9847_vm1, %v9822_v50, %v9886_v42  ;;  %v8701_v35 = vmax.f32 %v8669_v57, 0.0 }
 0x708   : > { %v9410_v5 = vmax.f32 %v9408_v16, %v9409_v30  ;;  %v9824_v43 = vunpack.c.l.b16 %v10508_v36  ;;  %v8942_v33 = vcombine.high %v8718_v15, %v8718_v15  ;;  %v8949_v18 = vrot.slane %v8718_v15, %v14908_v45 }
 0x709   : > { %v9825_v41 = vunpack.c.l.b16 %v10509_v40  ;;  %v9888_v38 = vsel %vm9849_vm2, %v9823_v32, %v9887_v20  ;;  %v8667_v26 = vadd.f32 %v15119_v6, %v15019_v23  ;;  %v15166_v29 = vadd.f32 %v15119_v6, %v15029_v27 }
 0x70a   : > { %v10510_v54 = vpack.c.bf16 %v9410_v5, %v9410_v5  ;;  %v9889_v14 = vsel %vm9851_vm3, %v9824_v43, %v9888_v38  ;;  %v8956_v60 = vrot.slane %v8942_v33, %v14908_v45  ;;  %v8957_v0 = vcombine.high %v8949_v18, %v8949_v18 }
 0x70b   : > { %v9890_v25 = vsel %vm9853_vm4, %v9825_v41, %v9889_v14  ;;  %v9411_v19 = vsel %vm9074_vm14, %v8949_v18, -inf  ;;  %v8699_v4 = vmax.f32 %v8667_v26, 0.0  ;;  %v8704_v22 = vmax.f32 %v15166_v29, 0.0 }
 0x70c   : > { %v9826_v1 = vunpack.c.l.b16 %v10510_v54  ;;  %v8958_v11 = vcombine.high %v8956_v60, %v8956_v60  ;;  %v9412_v23 = vrot.slane %v9411_v19, 4  ;;  %v9418_v8 = vsel %vm9074_vm14, %v8957_v0, -inf }
 0x70d   : > { %v9419_v27 = vrot.slane %v9418_v8, 4  ;;  %v9425_v48 = vsel %vm9074_vm14, %v8956_v60, -inf  ;;  %v8719_v39 = vmax.f32 %v8699_v4, %v8701_v35  ;;  %v8670_v55 = vadd.f32 %v15119_v6, %v15031_v13 }
 0x70e   : > { %v9891_v2 = vsel %vm9855_vm5, %v9826_v1, %v9890_v25  ;;  %v9413_v52 = vmax.f32 %v9411_v19, %v9412_v23  ;;  %v9426_v7 = vrot.slane %v9425_v48, 4  ;;  %v9432_v28 = vsel %vm9074_vm14, %v8958_v11, -inf }
 0x70f   : > { %v9911_v61 = vpack.c.b16 %v9891_v2, %v9891_v2  ;;  %v9420_v46 = vmax.f32 %v9418_v8, %v9419_v27  ;;  %v9433_v44 = vrot.slane %v9432_v28, 4  ;;  %v8959_v56 = vcombine.high %v8719_v39, %v8719_v39 }
 0x710   : > { %v9414_v51 = vrot.slane %v9413_v52, 2  ;;  %v9427_v17 = vmax.f32 %v9425_v48, %v9426_v7  ;;  %v8966_v12 = vrot.slane %v8719_v39, %v14908_v45  ;;  %v8702_v10 = vmax.f32 %v8670_v55, 0.0 }
 0x711   : > { %9927 = vst [vmem:[%s14984_s16 + $0x14] sm:$0xf] %v9911_v61  ;;  %v9421_v59 = vrot.slane %v9420_v46, 2  ;;  %v9434_v49 = vmax.f32 %v9432_v28, %v9433_v44  ;;  %v8973_v13 = vrot.slane %v8959_v56, %v14908_v45  ;;  %v15184_v34 = vadd.f32 %v15119_v6, %v15033_v53 }
 0x712   : > { %v9415_v21 = vmax.f32 %v9413_v52, %v9414_v51  ;;  %v9428_v62 = vrot.slane %v9427_v17, 2  ;;  %v8974_v3 = vcombine.high %v8966_v12, %v8966_v12  ;;  %v9439_v31 = vsel %vm9074_vm14, %v8966_v12, -inf }
 0x713   : > { %v9422_v50 = vmax.f32 %v9420_v46, %v9421_v59  ;;  %v9435_v47 = vrot.slane %v9434_v49, 2  ;;  %v8975_v16 = vcombine.high %v8973_v13, %v8973_v13  ;;  %v9440_v24 = vrot.slane %v9439_v31, 4 }
 0x714   : > { %v9416_v9 = vrot.slane %v9415_v21, 1  ;;  %v9429_v58 = vmax.f32 %v9427_v17, %v9428_v62  ;;  %v9446_v37 = vsel %vm9074_vm14, %v8974_v3, -inf  ;;  %v9453_v57 = vsel %vm9074_vm14, %v8973_v13, -inf }
 0x715   : > { %v9423_v42 = vrot.slane %v9422_v50, 1  ;;  %v9436_v30 = vmax.f32 %v9434_v49, %v9435_v47  ;;  %v9441_v36 = vmax.f32 %v9439_v31, %v9440_v24  ;;  %v9447_v53 = vrot.slane %v9446_v37, 4 }
 0x716   : > { %v9417_v15 = vmax.f32 %v9415_v21, %v9416_v9  ;;  %v9430_v40 = vrot.slane %v9429_v58, 1  ;;  %v9454_v32 = vrot.slane %v9453_v57, 4  ;;  %v9460_v20 = vsel %vm9074_vm14, %v8975_v16, -inf }
 0x717   : > { %v9424_v35 = vmax.f32 %v9422_v50, %v9423_v42  ;;  %v9437_v5 = vrot.slane %v9436_v30, 1  ;;  %v9442_v43 = vrot.slane %v9441_v36, 2  ;;  %v9448_v33 = vmax.f32 %v9446_v37, %v9447_v53 }
 0x718   : > { %v9431_v18 = vmax.f32 %v9429_v58, %v9430_v40  ;;  %v10511_v41 = vpack.c.bf16 %v9417_v15, %v9417_v15  ;;  %v9455_v38 = vmax.f32 %v9453_v57, %v9454_v32  ;;  %v9461_v26 = vrot.slane %v9460_v20, 4 }
 0x719   : > { %v9438_v54 = vmax.f32 %v9436_v30, %v9437_v5  ;;  %v10512_v14 = vpack.c.bf16 %v9424_v35, %v9424_v35  ;;  %v9443_v60 = vmax.f32 %v9441_v36, %v9442_v43  ;;  %v9449_v0 = vrot.slane %v9448_v33, 2 }
 0x71a   : > { %v10513_v25 = vpack.c.bf16 %v9431_v18, %v9431_v18  ;;  %v9827_v19 = vunpack.c.l.b16 %v10511_v41  ;;  %v9456_v4 = vrot.slane %v9455_v38, 2  ;;  %v9462_v1 = vmax.f32 %v9460_v20, %v9461_v26 }
 0x71b   : > { %v10514_v11 = vpack.c.bf16 %v9438_v54, %v9438_v54  ;;  %v9828_v23 = vunpack.c.l.b16 %v10512_v14  ;;  %v9444_v8 = vrot.slane %v9443_v60, 1  ;;  %v9450_v27 = vmax.f32 %v9448_v33, %v9449_v0 }
 0x71c   : > { %v9829_v48 = vunpack.c.l.b16 %v10513_v25  ;;  %v9457_v39 = vmax.f32 %v9455_v38, %v9456_v4  ;;  %v9463_v55 = vrot.slane %v9462_v1, 2  ;;  %v8720_v2 = vmax.f32 %v8702_v10, %v8704_v22 }
 0x71d   : > { %v9830_v52 = vunpack.c.l.b16 %v10514_v11  ;;  %v9892_v7 = vsel %vm9843_vm15, %v9828_v23, %v9827_v19  ;;  %v9445_v28 = vmax.f32 %v9443_v60, %v9444_v8  ;;  %v9451_v61 = vrot.slane %v9450_v27, 1 }
 0x71e   : > { %v9893_v46 = vsel %vm9845_vm0, %v9829_v48, %v9892_v7  ;;  %v9458_v44 = vrot.slane %v9457_v39, 1  ;;  %v9464_v56 = vmax.f32 %v9462_v1, %v9463_v55  ;;  %v8976_v51 = vcombine.high %v8720_v2, %v8720_v2 }
 0x71f   : > { %v9452_v17 = vmax.f32 %v9450_v27, %v9451_v61  ;;  %v10515_v12 = vpack.c.bf16 %v9445_v28, %v9445_v28  ;;  %v9894_v59 = vsel %vm9847_vm1, %v9830_v52, %v9893_v46  ;;  %v8983_v49 = vrot.slane %v8720_v2, %v14908_v45 }
 0x720   : > { %v9459_v13 = vmax.f32 %v9457_v39, %v9458_v44  ;;  %v9465_v21 = vrot.slane %v9464_v56, 1  ;;  %v8990_v29 = vrot.slane %v8976_v51, %v14908_v45  ;;  %v8705_v22 = vmax.f32 %v15184_v34, 0.0 }
 0x721   : > { %v10516_v10 = vpack.c.bf16 %v9452_v17, %v9452_v17  ;;  %v9831_v62 = vunpack.c.l.b16 %v10515_v12  ;;  %v8991_v3 = vcombine.high %v8983_v49, %v8983_v49  ;;  %v9467_v31 = vsel %vm9074_vm14, %v8983_v49, -inf }
 0x722   : > { %v9466_v50 = vmax.f32 %v9464_v56, %v9465_v21  ;;  %v10517_v47 = vpack.c.bf16 %v9459_v13, %v9459_v13  ;;  %v8992_v16 = vcombine.high %v8990_v29, %v8990_v29  ;;  %v9468_v24 = vrot.slane %v9467_v31, 4 }
 0x723   : > { %v9832_v9 = vunpack.c.l.b16 %v10516_v10  ;;  %v9895_v58 = vsel %vm9849_vm2, %v9831_v62, %v9894_v59  ;;  %v9474_v37 = vsel %vm9074_vm14, %v8991_v3, -inf  ;;  %v9481_v57 = vsel %vm9074_vm14, %v8990_v29, -inf }
 0x724   : > { %v10518_v42 = vpack.c.bf16 %v9466_v50, %v9466_v50  ;;  %v9833_v30 = vunpack.c.l.b16 %v10517_v47  ;;  %v9469_v36 = vmax.f32 %v9467_v31, %v9468_v24  ;;  %v9475_v34 = vrot.slane %v9474_v37, 4 }
 0x725   : > { %v9896_v53 = vsel %vm9851_vm3, %v9832_v9, %v9895_v58  ;;  %v9482_v15 = vrot.slane %v9481_v57, 4  ;;  %v9488_v40 = vsel %vm9074_vm14, %v8992_v16, -inf  ;;  %v8671_v32 = vadd.f32 %v15119_v6, %v15035_v63 }
 0x726   : > { %v9834_v20 = vunpack.c.l.b16 %v10518_v42  ;;  %v9897_v35 = vsel %vm9853_vm4, %v9833_v30, %v9896_v53  ;;  %v9470_v5 = vrot.slane %v9469_v36, 2  ;;  %v9476_v43 = vmax.f32 %v9474_v37, %v9475_v34 }
 0x727   : > { %v9483_v33 = vmax.f32 %v9481_v57, %v9482_v15  ;;  %v9489_v18 = vrot.slane %v9488_v40, 4  ;;  %v8703_v41 = vmax.f32 %v8671_v32, 0.0 }
 0x728   : > { %v9898_v38 = vsel %vm9855_vm5, %v9834_v20, %v9897_v35  ;;  %v9471_v26 = vmax.f32 %v9469_v36, %v9470_v5  ;;  %v9477_v54 = vrot.slane %v9476_v43, 2 }
 0x729   : > { %v9912_v14 = vpack.c.b16 %v9898_v38, %v9898_v38  ;;  %v9484_v60 = vrot.slane %v9483_v33, 2  ;;  %v9490_v0 = vmax.f32 %v9488_v40, %v9489_v18  ;;  %v8721_v25 = vmax.f32 %v8703_v41, %v8705_v22 }
 0x72a   : > { %v9472_v19 = vrot.slane %v9471_v26, 1  ;;  %v9478_v4 = vmax.f32 %v9476_v43, %v9477_v54 }
 0x72b   : > { %9928 = vst [vmem:[%s14984_s16 + $0x18] sm:$0xf] %v9912_v14  ;;  %v9485_v63 = vmax.f32 %v9483_v33, %v9484_v60  ;;  %v9491_v6 = vrot.slane %v9490_v0, 2  ;;  %v8993_v1 = vcombine.high %v8721_v25, %v8721_v25  ;;  %v9000_v11 = vrot.slane %v8721_v25, %v14908_v45 }
 0x72c   : > { %v9473_v23 = vmax.f32 %v9471_v26, %v9472_v19  ;;  %v9479_v8 = vrot.slane %v9478_v4, 1 }
 0x72d   : > { %v9486_v27 = vrot.slane %v9485_v63, 1  ;;  %v9492_v48 = vmax.f32 %v9490_v0, %v9491_v6  ;;  %v9007_v39 = vrot.slane %v8993_v1, %v14908_v45  ;;  %v9008_v55 = vcombine.high %v9000_v11, %v9000_v11 }
 0x72e   : > { %v9480_v2 = vmax.f32 %v9478_v4, %v9479_v8  ;;  %v9495_v52 = vsel %vm9074_vm14, %v9000_v11, -inf  ;;  %v10519_v44 = vpack.c.bf16 %v9473_v23, %v9473_v23 }
 0x72f   : > { %v9487_v7 = vmax.f32 %v9485_v63, %v9486_v27  ;;  %v9493_v28 = vrot.slane %v9492_v48, 1  ;;  %v9009_v61 = vcombine.high %v9007_v39, %v9007_v39  ;;  %v9496_v46 = vrot.slane %v9495_v52, 4 }
 0x730   : > { %v10520_v56 = vpack.c.bf16 %v9480_v2, %v9480_v2  ;;  %v9502_v51 = vsel %vm9074_vm14, %v9008_v55, -inf  ;;  %v9509_v17 = vsel %vm9074_vm14, %v9007_v39, -inf  ;;  %v9835_v3 = vunpack.c.l.b16 %v10519_v44 }
 0x731   : > { %v9494_v12 = vmax.f32 %v9492_v48, %v9493_v28  ;;  %v10521_v59 = vpack.c.bf16 %v9487_v7, %v9487_v7  ;;  %v9497_v49 = vmax.f32 %v9495_v52, %v9496_v46  ;;  %v9503_v13 = vrot.slane %v9502_v51, 4 }
 0x732   : > { %v9836_v21 = vunpack.c.l.b16 %v10520_v56  ;;  %v9510_v45 = vrot.slane %v9509_v17, 4  ;;  %v9516_v29 = vsel %vm9074_vm14, %v9009_v61, -inf }
 0x733   : > { %v9498_v22 = vrot.slane %v9497_v49, 2  ;;  %v9504_v10 = vmax.f32 %v9502_v51, %v9503_v13  ;;  %v10522_v62 = vpack.c.bf16 %v9494_v12, %v9494_v12  ;;  %v9517_v50 = vrot.slane %v9516_v29, 4 }
 0x734   : > { %v9511_v31 = vmax.f32 %v9509_v17, %v9510_v45  ;;  %v9837_v47 = vunpack.c.l.b16 %v10521_v59  ;;  %v9899_v9 = vsel %vm9843_vm15, %v9836_v21, %v9835_v3 }
 0x735   : > { %v9499_v16 = vmax.f32 %v9497_v49, %v9498_v22  ;;  %v9505_v24 = vrot.slane %v9504_v10, 2  ;;  %v9518_v37 = vmax.f32 %v9516_v29, %v9517_v50  ;;  %v9838_v30 = vunpack.c.l.b16 %v10522_v62 }
 0x736   : > { %v9512_v58 = vrot.slane %v9511_v31, 2  ;;  %v9900_v53 = vsel %vm9845_vm0, %v9837_v47, %v9899_v9 }
 0x737   : > { %v9500_v57 = vrot.slane %v9499_v16, 1  ;;  %v9506_v42 = vmax.f32 %v9504_v10, %v9505_v24  ;;  %v9519_v34 = vrot.slane %v9518_v37, 2  ;;  %v9901_v18 = vsel %vm9847_vm1, %v9838_v30, %v9900_v53 }
 0x738   : > { %v9513_v36 = vmax.f32 %v9511_v31, %v9512_v58 }
 0x739   : > { %v9501_v15 = vmax.f32 %v9499_v16, %v9500_v57  ;;  %v9507_v40 = vrot.slane %v9506_v42, 1  ;;  %v9520_v20 = vmax.f32 %v9518_v37, %v9519_v34 }
 0x73a   : > { %v9514_v32 = vrot.slane %v9513_v36, 1 }
 0x73b   : > { %v9508_v35 = vmax.f32 %v9506_v42, %v9507_v40  ;;  %v10523_v5 = vpack.c.bf16 %v9501_v15, %v9501_v15  ;;  %v9521_v33 = vrot.slane %v9520_v20, 1 }
 0x73c   : > { %v9515_v43 = vmax.f32 %v9513_v36, %v9514_v32 }
 0x73d   : > { %v10524_v41 = vpack.c.bf16 %v9508_v35, %v9508_v35  ;;  %v9839_v38 = vunpack.c.l.b16 %v10523_v5  ;;  %v9522_v26 = vmax.f32 %v9520_v20, %v9521_v33 }
 0x73e   : > { %v10525_v54 = vpack.c.bf16 %v9515_v43, %v9515_v43 }
 0x73f   : > { %v9840_v14 = vunpack.c.l.b16 %v10524_v41  ;;  %v9902_v60 = vsel %vm9849_vm2, %v9839_v38, %v9901_v18  ;;  %v10526_v0 = vpack.c.bf16 %v9522_v26, %v9522_v26 }
 0x740   : > { %v9841_v25 = vunpack.c.l.b16 %v10525_v54 }
 0x741   : > { %v9903_v19 = vsel %vm9851_vm3, %v9840_v14, %v9902_v60  ;;  %v9842_v4 = vunpack.c.l.b16 %v10526_v0 }
 0x742   : > { %v9904_v63 = vsel %vm9853_vm4, %v9841_v25, %v9903_v19 }
 0x743   : > { %v9905_v6 = vsel %vm9855_vm5, %v9842_v4, %v9904_v63 }
 0x744   : > { %v9913_v1 = vpack.c.b16 %v9905_v6, %v9905_v6 }
 0x746   : > { %9929 = vst [vmem:[%s14984_s16 + $0x1c] sm:$0xf] %v9913_v1 }
 0x747 PF: > { %s18_s18 = sadd.s32 1, %s12741_s18  }
 0x748   : > { %p15_p6 = scmp.ge.s32.totalorder %s18_s18, 4  }
 0x74a   :  { %17 = sbr.rel (!%p15_p6) target bundleno = 3 (0x3), region = 104 }
 0x751   :  { %9951 = vsyncpa [#allocation5], 1 }
 0x752   :  { %9953 = vsyncpa [#allocation5 + $0x1], 1 }
 0x753   :  { %9954 = vsyncpa [#allocation7], 1 }
 0x754   :  { %9955 = vsyncpa [#allocation10], 1 }

</bundles_post_ra>
